<compile_context>
chip_gen: v5e
topology: v5e:2x2
jax: 0.10.0
libtpu: 0.0.40
codegen_flags: <defaults>
</compile_context>

<pallas_src>
import functools

import jax
import jax.numpy as jnp
from jax.experimental import pallas as pl
from jax.experimental.pallas import tpu as pltpu

BN_EPS = 1e-5
MATMUL_DTYPE = jnp.bfloat16      # MXU input dtype (f32 accumulation everywhere)
VMEM_LIMIT = 32 * 1024 * 1024    # scoped-VMEM budget safe on v5e/v6e/v7x
DIST_TILE_M = 512                # row tile of the pairwise-distance kernel
EDGE_TILE_N = 512                # point tile of the fused edge-conv kernel
CONV6_TILE_N = 1024              # point tile of the conv6 / global-max kernel
HIGHEST = jax.lax.Precision.HIGHEST


def _leaky(v, slope):
    return jnp.where(v >= 0, v, slope * v)


def _pick_tile(n, target):
    """Largest tile <= target that divides n and is sublane-aligned (else full n).

    NOTE: if n has no multiple-of-8 divisor <= target (pathological point counts)
    this falls back to the full n, which may exceed the intended VMEM budget.
    """
    if n <= target:
        return n
    for t in range(target, 7, -1):
        if n % t == 0 and t % 8 == 0:
            return t
    return n


def _const_spec(shape):
    zeros = (0,) * len(shape)
    return pl.BlockSpec(shape, lambda *_, z=zeros: z)


# ----------------------------------------------------------------------------
# Pallas kernel 1: row-tiled pairwise negative squared distance (bf16 in / out)
# ----------------------------------------------------------------------------
def _neg_dist_kernel(xr_ref, xf_ref, sq_ref, o_ref):
    xr = xr_ref[0]                                       # (TM, C) bf16 row tile
    xf = xf_ref[0]                                       # (N, C)  bf16 all points
    xr32 = xr.astype(jnp.float32)
    row_sq = jnp.sum(xr32 * xr32, axis=1, keepdims=True)  # (TM, 1) f32
    # 2 * xr @ xf^T : bf16 operands, f32 MXU accumulation; 2x folded into lhs.
    prod2 = jax.lax.dot_general(xr + xr, xf, (((1,), (1,)), ((), ())),
                                preferred_element_type=jnp.float32)
    o_ref[0] = (prod2 - row_sq - sq_ref[0]).astype(o_ref.dtype)


def pairwise_neg_sq_dist(x_bnc, *, tile_m=DIST_TILE_M):
    """-(||x_i - x_j||^2) per batch, matching torch's knn() score (larger = closer)."""
    B, N, C = x_bnc.shape
    tm = _pick_tile(N, tile_m)
    xb = x_bnc.astype(jnp.bfloat16)
    x32 = xb.astype(jnp.float32)
    sq = jnp.sum(x32 * x32, axis=-1)[:, None, :]         # (B, 1, N) f32 column norms
    return pl.pallas_call(
        _neg_dist_kernel,
        out_shape=jax.ShapeDtypeStruct((B, N, N), jnp.bfloat16),
        grid=(B, N // tm),
        in_specs=[pl.BlockSpec((1, tm, C), lambda b, m: (b, m, 0)),
                  pl.BlockSpec((1, N, C), lambda b, m: (b, 0, 0)),
                  pl.BlockSpec((1, 1, N), lambda b, m: (b, 0, 0))],
        out_specs=pl.BlockSpec((1, tm, N), lambda b, m: (b, m, 0)),
        compiler_params=pltpu.CompilerParams(
            dimension_semantics=("parallel", "parallel"),
            vmem_limit_bytes=VMEM_LIMIT),
    )(xb, xb, sq)


# ----------------------------------------------------------------------------
# Pallas kernel 2: fused EdgeConv block (split first layer, no 2C edge tensor)
# ----------------------------------------------------------------------------
def _edge_conv_kernel(nb_ref, ce_ref, wnb_ref, wce_ref, b1_ref, *rest, two_layers):
    out_ref = rest[-1]
    nb = nb_ref[0]                                       # (K, TN, C) bf16 neighbors
    ce = ce_ref[0]                                       # (TN, C)    bf16 central pts
    K, TN, C = nb.shape
    wnb = wnb_ref[...]                                   # (C, C1) bf16
    wce = wce_ref[...]                                   # (C, C1) bf16
    # k-independent central-point term (computed once per point, broadcast over k)
    ce_term = jnp.dot(ce.astype(wce.dtype), wce,
                      preferred_element_type=jnp.float32) + b1_ref[...]   # (TN, C1)
    h = jnp.dot(nb.reshape(K * TN, C).astype(wnb.dtype), wnb,
                preferred_element_type=jnp.float32)                       # (K*TN, C1)
    c1 = h.shape[-1]
    h = _leaky(h.reshape(K, TN, c1) + ce_term[None, :, :], 0.2)
    if two_layers:
        w2 = rest[0][...]                                # (C1, C2) bf16
        b2 = rest[1][...]                                # (1, C2)  f32
        h = jnp.dot(h.reshape(K * TN, c1).astype(w2.dtype), w2,
                    preferred_element_type=jnp.float32) + b2
        h = _leaky(h, 0.2).reshape(K, TN, w2.shape[1])
    out_ref[0] = jnp.max(h, axis=0).astype(out_ref.dtype)   # max over k neighbors


def edge_conv_block(nb, ce, layers, *, tile_n=EDGE_TILE_N):
    """Fused EdgeConv: neighbors (B,k,N,C) + centrals (B,N,C) -> (B,N,Fout) bf16."""
    B, K, N, C = nb.shape
    (w_nb, w_ce, b1), *rest = layers
    two = len(rest) == 1
    fout = rest[0][0].shape[1] if two else w_nb.shape[1]
    tn = _pick_tile(N, tile_n)
    operands = [nb, ce, w_nb, w_ce, b1]
    in_specs = [pl.BlockSpec((1, K, tn, C), lambda b, m: (b, 0, m, 0)),
                pl.BlockSpec((1, tn, C), lambda b, m: (b, m, 0)),
                _const_spec(w_nb.shape), _const_spec(w_ce.shape),
                _const_spec(b1.shape)]
    if two:
        w2, b2 = rest[0]
        operands += [w2, b2]
        in_specs += [_const_spec(w2.shape), _const_spec(b2.shape)]
    kernel = functools.partial(_edge_conv_kernel, two_layers=two)
    return pl.pallas_call(
        kernel,
        out_shape=jax.ShapeDtypeStruct((B, N, fout), jnp.bfloat16),
        grid=(B, N // tn),
        in_specs=in_specs,
        out_specs=pl.BlockSpec((1, tn, fout), lambda b, m: (b, m, 0)),
        compiler_params=pltpu.CompilerParams(
            dimension_semantics=("parallel", "parallel"),
            vmem_limit_bytes=VMEM_LIMIT),
    )(*operands)


# ----------------------------------------------------------------------------
# Pallas kernel 3: conv6 on (x1,x2,x3) without the 192-wide concat, fused with
# the global max over N (output-resident accumulator).
# ----------------------------------------------------------------------------
def _conv6_kernel(x1_ref, x2_ref, x3_ref, wa_ref, wb_ref, wc_ref, b_ref,
                  local_ref, gmax_ref):
    wa, wb, wc = wa_ref[...], wb_ref[...], wc_ref[...]
    h = jnp.dot(x1_ref[0].astype(wa.dtype), wa, preferred_element_type=jnp.float32)
    h = h + jnp.dot(x2_ref[0].astype(wb.dtype), wb, preferred_element_type=jnp.float32)
    h = h + jnp.dot(x3_ref[0].astype(wc.dtype), wc, preferred_element_type=jnp.float32)
    h = _leaky(h + b_ref[...], 0.2)                      # (TN, F) f32
    local_ref[0] = h.astype(local_ref.dtype)
    tile_max = jnp.max(h, axis=0, keepdims=True)         # (1, F)

    @pl.when(pl.program_id(1) == 0)
    def _init():
        gmax_ref[0] = tile_max

    @pl.when(pl.program_id(1) != 0)
    def _accum():
        gmax_ref[0] = jnp.maximum(gmax_ref[0], tile_max)


def conv6_and_global_max(x1, x2, x3, c6, *, tile_n=CONV6_TILE_N):
    wa, wb, wc, b6 = c6
    B, N, C = x1.shape
    F = wa.shape[1]
    tn = _pick_tile(N, tile_n)
    local, gmax = pl.pallas_call(
        _conv6_kernel,
        out_shape=(jax.ShapeDtypeStruct((B, N, F), jnp.float32),
                   jax.ShapeDtypeStruct((B, 1, F), jnp.float32)),
        grid=(B, N // tn),
        in_specs=[pl.BlockSpec((1, tn, C), lambda b_, m: (b_, m, 0)),
                  pl.BlockSpec((1, tn, C), lambda b_, m: (b_, m, 0)),
                  pl.BlockSpec((1, tn, C), lambda b_, m: (b_, m, 0)),
                  _const_spec(wa.shape), _const_spec(wb.shape),
                  _const_spec(wc.shape), _const_spec(b6.shape)],
        out_specs=(pl.BlockSpec((1, tn, F), lambda b_, m: (b_, m, 0)),
                   pl.BlockSpec((1, 1, F), lambda b_, m: (b_, 0, 0))),
        compiler_params=pltpu.CompilerParams(
            dimension_semantics=("parallel", "arbitrary"),   # N axis reduces into gmax
            vmem_limit_bytes=VMEM_LIMIT),
    )(x1, x2, x3, wa, wb, wc, b6)
    return local, gmax[:, 0, :]


# ----------------------------------------------------------------------------
# Global MLP: plain JAX (B x 128 rows — a Pallas call is pure launch overhead)
# ----------------------------------------------------------------------------
def global_mlp(g, gw1, gb1, gw2, gb2):
    h = _leaky(jnp.dot(g, gw1, precision=HIGHEST) + gb1, 0.01)
    return jnp.dot(h, gw2, precision=HIGHEST) + gb2


# ----------------------------------------------------------------------------
# JAX glue: knn indices + bf16 neighbor gather (channels-last)
# ----------------------------------------------------------------------------
def knn_indices(x_bnc, k):
    neg_d = pairwise_neg_sq_dist(x_bnc)                  # (B, N, N) bf16
    # TODO(synk): exact sort-based top-k has no clean Pallas TPU equivalent.
    _, idx = jax.lax.top_k(neg_d, k)                     # self included, like torch topk
    return idx


def gather_neighbors(x_bnc, idx):
    """(B,N,C), (B,N,k) -> (B,k,N,C) bf16 neighbor features, channels-last."""
    idx_kn = jnp.transpose(idx, (0, 2, 1))               # (B, k, N) int32 (cheap)
    xb = x_bnc.astype(jnp.bfloat16)
    # TODO(synk): the dynamic neighbor gather stays in plain JAX (see header).
    return jax.vmap(lambda xx, ii: xx[ii])(xb, idx_kn)   # (B, k, N, C) bf16


# ----------------------------------------------------------------------------
# Parameters (deterministic) and BN folding / weight splitting
# ----------------------------------------------------------------------------
def _conv_bn_init(key, co, ci):
    k1, k2, k3, k4, k5 = jax.random.split(key, 5)
    return dict(
        w=0.1 * jax.random.normal(k1, (co, ci), jnp.float32),
        g=1.0 + 0.1 * jax.random.normal(k2, (co,), jnp.float32),
        b=0.1 * jax.random.normal(k3, (co,), jnp.float32),
        m=0.1 * jax.random.normal(k4, (co,), jnp.float32),
        v=jax.random.uniform(k5, (co,), jnp.float32, 0.5, 1.5),
    )


def init_params(key, feat_dim):
    ks = jax.random.split(key, 7)
    gk = jax.random.split(ks[6], 8)
    F = feat_dim
    return dict(
        c1=_conv_bn_init(ks[0], 64, 6),
        c2=_conv_bn_init(ks[1], 64, 64),
        c3=_conv_bn_init(ks[2], 64, 128),
        c4=_conv_bn_init(ks[3], 64, 64),
        c5=_conv_bn_init(ks[4], 64, 128),
        c6=_conv_bn_init(ks[5], F, 192),
        g1_w=0.1 * jax.random.normal(gk[0], (F, F), jnp.float32),
        g1_b=0.1 * jax.random.normal(gk[1], (F,), jnp.float32),
        gbn_g=1.0 + 0.1 * jax.random.normal(gk[2], (F,), jnp.float32),
        gbn_b=0.1 * jax.random.normal(gk[3], (F,), jnp.float32),
        gbn_m=0.1 * jax.random.normal(gk[4], (F,), jnp.float32),
        gbn_v=jax.random.uniform(gk[5], (F,), jnp.float32, 0.5, 1.5),
        g2_w=0.1 * jax.random.normal(gk[6], (F, F), jnp.float32),
        g2_b=0.1 * jax.random.normal(gk[7], (F,), jnp.float32),
    )


def fold_params(p, dtype=MATMUL_DTYPE):
    """Fold eval-mode BN into the conv/linear weights; split first-layer weights."""
    def fold(name):
        d = p[name]
        scale = d["g"] / jnp.sqrt(d["v"] + BN_EPS)
        w = (d["w"] * scale[:, None]).T                  # (Ci, Co) f32
        b = (d["b"] - d["m"] * scale)[None, :]           # (1, Co)  f32
        return w, b

    def split_first(name):
        # edge feature is [nb - ce ; ce]:  h = nb@W_top + ce@(W_bot - W_top)
        w, b = fold(name)
        c = w.shape[0] // 2
        return (w[:c].astype(dtype), (w[c:] - w[:c]).astype(dtype),
                b.astype(jnp.float32))

    def plain(name):
        w, b = fold(name)
        return (w.astype(dtype), b.astype(jnp.float32))

    w6, b6 = fold("c6")                                  # (192, F)
    fd = dict(
        e1=[split_first("c1"), plain("c2")],
        e2=[split_first("c3"), plain("c4")],
        e3=[split_first("c5")],
        c6=(w6[:64].astype(dtype), w6[64:128].astype(dtype),
            w6[128:].astype(dtype), b6.astype(jnp.float32)),
    )
    scale = p["gbn_g"] / jnp.sqrt(p["gbn_v"] + BN_EPS)
    gw1 = (p["g1_w"] * scale[:, None]).T.astype(jnp.float32)
    gb1 = ((p["g1_b"] - p["gbn_m"]) * scale + p["gbn_b"])[None, :].astype(jnp.float32)
    fd["g"] = (gw1, gb1, p["g2_w"].T.astype(jnp.float32), p["g2_b"][None, :])
    return fd


# ----------------------------------------------------------------------------
# Full DGCNN forward
# ----------------------------------------------------------------------------
def dgcnn_forward(points, params, *, k=20):
    """points: (B, N, 3) -> (global_feat (B,F), local_feat (B,N,F), aux)."""
    fd = fold_params(params)

    x0 = points.astype(jnp.bfloat16)
    idx1 = knn_indices(x0, k)
    x1 = edge_conv_block(gather_neighbors(x0, idx1), x0, fd["e1"])   # (B,N,64) bf16

    idx2 = knn_indices(x1, k)
    x2 = edge_conv_block(gather_neighbors(x1, idx2), x1, fd["e2"])   # (B,N,64) bf16

    idx3 = knn_indices(x2, k)
    x3 = edge_conv_block(gather_neighbors(x2, idx3), x2, fd["e3"])   # (B,N,64) bf16

    local_x, gmax = conv6_and_global_max(x1, x2, x3, fd["c6"])       # (B,N,F), (B,F)
    global_out = global_mlp(gmax, *fd["g"])                          # (B, F)
    return global_out, local_x, dict(idx=(idx1, idx2, idx3))


# ----------------------------------------------------------------------------
# Plain-JAX reference (same folded / split / bf16 numerics) for verification
# ----------------------------------------------------------------------------
def reference_forward(points, params, idxs):
    fd = fold_params(params)

    def edge_ref(x_bnc, idx, layers):
        xb = x_bnc.astype(jnp.bfloat16)
        nb = gather_neighbors(xb, idx)                   # (B, k, N, C) bf16
        (w_nb, w_ce, b1), *rest = layers
        ce_term = jnp.einsum("bnc,cf->bnf", xb, w_ce,
                             preferred_element_type=jnp.float32) + b1
        h = jnp.einsum("bknc,cf->bknf", nb, w_nb,
                       preferred_element_type=jnp.float32)
        h = _leaky(h + ce_term[:, None], 0.2)
        if rest:
            w2, b2 = rest[0]
            h = _leaky(jnp.einsum("bknc,cf->bknf", h.astype(w2.dtype), w2,
                                  preferred_element_type=jnp.float32) + b2, 0.2)
        return jnp.max(h, axis=1).astype(jnp.bfloat16)   # (B, N, F)

    x1 = edge_ref(points, idxs[0], fd["e1"])
    x2 = edge_ref(x1, idxs[1], fd["e2"])
    x3 = edge_ref(x2, idxs[2], fd["e3"])

    wa, wb, wc, b6 = fd["c6"]
    local = (jnp.einsum("bnc,cf->bnf", x1, wa, preferred_element_type=jnp.float32)
             + jnp.einsum("bnc,cf->bnf", x2, wb, preferred_element_type=jnp.float32)
             + jnp.einsum("bnc,cf->bnf", x3, wc, preferred_element_type=jnp.float32))
    local = _leaky(local + b6, 0.2)
    g = jnp.max(local, axis=1)
    return global_mlp(g, *fd["g"]), local


if __name__ == "__main__":
    B, N, FEAT_DIM, K = 2, 64, 128, 20

    key = jax.random.PRNGKey(0)
    kx, kp = jax.random.split(key)
    points = jax.random.normal(kx, (B, N, 3), jnp.float32)
    params = init_params(kp, FEAT_DIM)

    fwd = jax.jit(functools.partial(dgcnn_forward, k=K))
    global_out, local_x, aux = fwd(points, params)
    global_out = jax.block_until_ready(global_out)
    assert global_out.shape == (B, FEAT_DIM), global_out.shape
    assert local_x.shape == (B, N, FEAT_DIM), local_x.shape

    # 1) pairwise-distance Pallas kernel vs plain-JAX with the same bf16 numerics
    neg_d = pairwise_neg_sq_dist(points).astype(jnp.float32)
    xb32 = points.astype(jnp.bfloat16).astype(jnp.float32)
    xx = jnp.sum(xb32 * xb32, axis=-1)
    neg_d_ref = (2.0 * jnp.einsum("bnc,bmc->bnm", xb32, xb32, precision=HIGHEST)
                 - xx[:, :, None] - xx[:, None, :])
    err_d = float(jnp.max(jnp.abs(neg_d - neg_d_ref)))
    assert jnp.allclose(neg_d, neg_d_ref, atol=0.25, rtol=0.05), err_d

    # 2) fused conv pipeline vs plain-JAX reference (same knn indices)
    g_ref, local_ref = reference_forward(points, params, aux["idx"])
    err_l = float(jnp.max(jnp.abs(local_x - local_ref)))
    err_g = float(jnp.max(jnp.abs(global_out - g_ref)))
    assert jnp.allclose(local_x, local_ref, atol=5e-2, rtol=5e-2), err_l
    assert jnp.allclose(global_out, g_ref, atol=5e-2, rtol=5e-2), err_g

    print("KERNEL_OK")
</pallas_src>

<mosaic_0001>
module attributes {stable_mosaic.version = 11 : i64} {
  func.func @_neg_dist_kernel(%arg0: i32, %arg1: i32, %arg2: memref<1x64x3xbf16, #tpu.memory_space<vmem>>, %arg3: memref<1x64x3xbf16, #tpu.memory_space<vmem>>, %arg4: memref<1x1x64xf32, #tpu.memory_space<vmem>>, %arg5: memref<1x64x64xbf16, #tpu.memory_space<vmem>>) attributes {dimension_semantics = [#tpu.dimension_semantics<parallel>, #tpu.dimension_semantics<parallel>], iteration_bounds = array<i64: 2, 1>, scalar_prefetch = 0 : i64, scratch_operands = 0 : i64, tpu.core_type = #tpu.core_type<tc>, window_params = [{transform_indices = @transform_0, window_bounds = array<i64: 1, 64, 3>}, {transform_indices = @transform_1, window_bounds = array<i64: 1, 64, 3>}, {transform_indices = @transform_2, window_bounds = array<i64: 1, 1, 64>}, {transform_indices = @transform_3, window_bounds = array<i64: 1, 64, 64>}]} {
    %c0 = arith.constant 0 : index
    %c0_0 = arith.constant 0 : index
    %c0_1 = arith.constant 0 : index
    %0 = vector.load %arg2[%c0, %c0_0, %c0_1] : memref<1x64x3xbf16, #tpu.memory_space<vmem>>, vector<1x64x3xbf16>
    %1 = vector.shape_cast %0 : vector<1x64x3xbf16> to vector<64x3xbf16>
    %c0_2 = arith.constant 0 : index
    %c0_3 = arith.constant 0 : index
    %c0_4 = arith.constant 0 : index
    %2 = vector.load %arg3[%c0_2, %c0_3, %c0_4] : memref<1x64x3xbf16, #tpu.memory_space<vmem>>, vector<1x64x3xbf16>
    %3 = vector.shape_cast %2 : vector<1x64x3xbf16> to vector<64x3xbf16>
    %4 = arith.extf %1 : vector<64x3xbf16> to vector<64x3xf32>
    %5 = arith.mulf %4, %4 : vector<64x3xf32>
    %cst = arith.constant dense<0.000000e+00> : vector<64xf32>
    %6 = vector.multi_reduction <add>, %5, %cst [1] : vector<64x3xf32> to vector<64xf32>
    %7 = vector.shape_cast %6 : vector<64xf32> to vector<64x1xf32>
    %8 = arith.addf %1, %1 : vector<64x3xbf16>
    %cst_5 = arith.constant dense<0.000000e+00> : vector<64x64xf32>
    %9 = tpu.matmul %8, %3, %cst_5 {dimension_numbers = #tpu.dot_dimension_numbers<[1], [1], [0], [0], [0, 0, 1, 0], [], []>} : vector<64x3xbf16>, vector<64x3xbf16>, vector<64x64xf32> -> vector<64x64xf32>
    %10 = vector.broadcast %7 : vector<64x1xf32> to vector<64x64xf32>
    %11 = arith.subf %9, %10 : vector<64x64xf32>
    %c0_6 = arith.constant 0 : index
    %c0_7 = arith.constant 0 : index
    %c0_8 = arith.constant 0 : index
    %12 = vector.load %arg4[%c0_6, %c0_7, %c0_8] : memref<1x1x64xf32, #tpu.memory_space<vmem>>, vector<1x1x64xf32>
    %13 = vector.shape_cast %12 : vector<1x1x64xf32> to vector<1x64xf32>
    %14 = vector.broadcast %13 : vector<1x64xf32> to vector<64x64xf32>
    %15 = arith.subf %11, %14 : vector<64x64xf32>
    %16 = arith.truncf %15 : vector<64x64xf32> to vector<64x64xbf16>
    %c0_9 = arith.constant 0 : index
    %c0_10 = arith.constant 0 : index
    %c0_11 = arith.constant 0 : index
    %17 = vector.load %arg5[%c0_9, %c0_10, %c0_11] : memref<1x64x64xbf16, #tpu.memory_space<vmem>>, vector<1x64x64xbf16>
    %18 = vector.shape_cast %17 : vector<1x64x64xbf16> to vector<64x64xbf16>
    %19 = vector.shape_cast %16 : vector<64x64xbf16> to vector<1x64x64xbf16>
    tpu.vector_store %arg5[%c0_9, %c0_10, %c0_11], %19 {strides = array<i32>} : memref<1x64x64xbf16, #tpu.memory_space<vmem>>, vector<1x64x64xbf16>,
    return
  }
  func.func @transform_0(%arg0: i32, %arg1: i32) -> (i32, i32, i32) {
    %c0_i32 = arith.constant 0 : i32
    %c0_i32_0 = arith.constant 0 : i32
    return %arg0, %arg1, %c0_i32 : i32, i32, i32
  }
  func.func @transform_1(%arg0: i32, %arg1: i32) -> (i32, i32, i32) {
    %c0_i32 = arith.constant 0 : i32
    %c0_i32_0 = arith.constant 0 : i32
    %c0_i32_1 = arith.constant 0 : i32
    return %arg0, %c0_i32, %c0_i32_0 : i32, i32, i32
  }
  func.func @transform_2(%arg0: i32, %arg1: i32) -> (i32, i32, i32) {
    %c0_i32 = arith.constant 0 : i32
    %c0_i32_0 = arith.constant 0 : i32
    %c0_i32_1 = arith.constant 0 : i32
    return %arg0, %c0_i32, %c0_i32_0 : i32, i32, i32
  }
  func.func @transform_3(%arg0: i32, %arg1: i32) -> (i32, i32, i32) {
    %c0_i32 = arith.constant 0 : i32
    %c0_i32_0 = arith.constant 0 : i32
    return %arg0, %arg1, %c0_i32 : i32, i32, i32
  }
}

module attributes {stable_mosaic.version = 11 : i64} {
  func.func @_edge_conv_kernel(%arg0: i32, %arg1: i32, %arg2: memref<1x20x64x3xbf16, #tpu.memory_space<vmem>>, %arg3: memref<1x64x3xbf16, #tpu.memory_space<vmem>>, %arg4: memref<3x64xbf16, #tpu.memory_space<vmem>>, %arg5: memref<3x64xbf16, #tpu.memory_space<vmem>>, %arg6: memref<1x64xf32, #tpu.memory_space<vmem>>, %arg7: memref<64x64xbf16, #tpu.memory_space<vmem>>, %arg8: memref<1x64xf32, #tpu.memory_space<vmem>>, %arg9: memref<1x64x64xbf16, #tpu.memory_space<vmem>>) attributes {dimension_semantics = [#tpu.dimension_semantics<parallel>, #tpu.dimension_semantics<parallel>], iteration_bounds = array<i64: 2, 1>, scalar_prefetch = 0 : i64, scratch_operands = 0 : i64, tpu.core_type = #tpu.core_type<tc>, window_params = [{transform_indices = @transform_0, window_bounds = array<i64: 1, 20, 64, 3>}, {transform_indices = @transform_1, window_bounds = array<i64: 1, 64, 3>}, {pipeline_mode = #tpu.pipeline_mode<synchronous>, transform_indices = @transform_2, window_bounds = array<i64: 3, 64>}, {pipeline_mode = #tpu.pipeline_mode<synchronous>, transform_indices = @transform_3, window_bounds = array<i64: 3, 64>}, {pipeline_mode = #tpu.pipeline_mode<synchronous>, transform_indices = @transform_4, window_bounds = array<i64: 1, 64>}, {pipeline_mode = #tpu.pipeline_mode<synchronous>, transform_indices = @transform_5, window_bounds = array<i64: 64, 64>}, {pipeline_mode = #tpu.pipeline_mode<synchronous>, transform_indices = @transform_6, window_bounds = array<i64: 1, 64>}, {transform_indices = @transform_7, window_bounds = array<i64: 1, 64, 64>}]} {
    %c0 = arith.constant 0 : index
    %c0_0 = arith.constant 0 : index
    %c0_1 = arith.constant 0 : index
    %c0_2 = arith.constant 0 : index
    %0 = vector.load %arg2[%c0, %c0_0, %c0_1, %c0_2] : memref<1x20x64x3xbf16, #tpu.memory_space<vmem>>, vector<1x20x64x3xbf16>
    %1 = vector.shape_cast %0 : vector<1x20x64x3xbf16> to vector<20x64x3xbf16>
    %c0_3 = arith.constant 0 : index
    %c0_4 = arith.constant 0 : index
    %c0_5 = arith.constant 0 : index
    %2 = vector.load %arg3[%c0_3, %c0_4, %c0_5] : memref<1x64x3xbf16, #tpu.memory_space<vmem>>, vector<1x64x3xbf16>
    %3 = vector.shape_cast %2 : vector<1x64x3xbf16> to vector<64x3xbf16>
    %c0_6 = arith.constant 0 : index
    %c0_7 = arith.constant 0 : index
    %4 = vector.load %arg4[%c0_6, %c0_7] : memref<3x64xbf16, #tpu.memory_space<vmem>>, vector<3x64xbf16>
    %c0_8 = arith.constant 0 : index
    %c0_9 = arith.constant 0 : index
    %5 = vector.load %arg5[%c0_8, %c0_9] : memref<3x64xbf16, #tpu.memory_space<vmem>>, vector<3x64xbf16>
    %cst = arith.constant dense<0.000000e+00> : vector<64x64xf32>
    %6 = tpu.matmul %3, %5, %cst {dimension_numbers = #tpu.dot_dimension_numbers<[1], [0], [0], [1], [0, 0, 1, 1], [], []>} : vector<64x3xbf16>, vector<3x64xbf16>, vector<64x64xf32> -> vector<64x64xf32>
    %c0_10 = arith.constant 0 : index
    %c0_11 = arith.constant 0 : index
    %7 = vector.load %arg6[%c0_10, %c0_11] : memref<1x64xf32, #tpu.memory_space<vmem>>, vector<1x64xf32>
    %8 = vector.broadcast %7 : vector<1x64xf32> to vector<64x64xf32>
    %9 = arith.addf %6, %8 : vector<64x64xf32>
    %10 = vector.shape_cast %1 : vector<20x64x3xbf16> to vector<1280x3xbf16>
    %cst_12 = arith.constant dense<0.000000e+00> : vector<1280x64xf32>
    %11 = tpu.matmul %10, %4, %cst_12 {dimension_numbers = #tpu.dot_dimension_numbers<[1], [0], [0], [1], [0, 0, 1, 1], [], []>} : vector<1280x3xbf16>, vector<3x64xbf16>, vector<1280x64xf32> -> vector<1280x64xf32>
    %12 = vector.shape_cast %11 : vector<1280x64xf32> to vector<20x64x64xf32>
    %13 = vector.shape_cast %9 : vector<64x64xf32> to vector<1x64x64xf32>
    %14 = vector.broadcast %13 : vector<1x64x64xf32> to vector<20x64x64xf32>
    %15 = arith.addf %12, %14 : vector<20x64x64xf32>
    %cst_13 = arith.constant 0.000000e+00 : f32
    %16 = vector.broadcast %cst_13 : f32 to vector<20x64x64xf32>
    %17 = arith.cmpf oge, %15, %16 : vector<20x64x64xf32>
    %cst_14 = arith.constant 2.000000e-01 : f32
    %18 = vector.broadcast %cst_14 : f32 to vector<20x64x64xf32>
    %19 = arith.mulf %18, %15 : vector<20x64x64xf32>
    %20 = arith.select %17, %15, %19 : vector<20x64x64xi1>, vector<20x64x64xf32>
    %c0_15 = arith.constant 0 : index
    %c0_16 = arith.constant 0 : index
    %21 = vector.load %arg7[%c0_15, %c0_16] : memref<64x64xbf16, #tpu.memory_space<vmem>>, vector<64x64xbf16>
    %c0_17 = arith.constant 0 : index
    %c0_18 = arith.constant 0 : index
    %22 = vector.load %arg8[%c0_17, %c0_18] : memref<1x64xf32, #tpu.memory_space<vmem>>, vector<1x64xf32>
    %23 = vector.shape_cast %20 : vector<20x64x64xf32> to vector<1280x64xf32>
    %24 = arith.truncf %23 : vector<1280x64xf32> to vector<1280x64xbf16>
    %cst_19 = arith.constant dense<0.000000e+00> : vector<1280x64xf32>
    %25 = tpu.matmul %24, %21, %cst_19 {dimension_numbers = #tpu.dot_dimension_numbers<[1], [0], [0], [1], [0, 0, 1, 1], [], []>} : vector<1280x64xbf16>, vector<64x64xbf16>, vector<1280x64xf32> -> vector<1280x64xf32>
    %26 = vector.broadcast %22 : vector<1x64xf32> to vector<1280x64xf32>
    %27 = arith.addf %25, %26 : vector<1280x64xf32>
    %cst_20 = arith.constant 0.000000e+00 : f32
    %28 = vector.broadcast %cst_20 : f32 to vector<1280x64xf32>
    %29 = arith.cmpf oge, %27, %28 : vector<1280x64xf32>
    %cst_21 = arith.constant 2.000000e-01 : f32
    %30 = vector.broadcast %cst_21 : f32 to vector<1280x64xf32>
    %31 = arith.mulf %30, %27 : vector<1280x64xf32>
    %32 = arith.select %29, %27, %31 : vector<1280x64xi1>, vector<1280x64xf32>
    %33 = vector.shape_cast %32 : vector<1280x64xf32> to vector<20x64x64xf32>
    %cst_22 = arith.constant dense<0xFF800000> : vector<64x64xf32>
    %34 = vector.multi_reduction <maximumf>, %33, %cst_22 [0] : vector<20x64x64xf32> to vector<64x64xf32>
    %35 = arith.truncf %34 : vector<64x64xf32> to vector<64x64xbf16>
    %c0_23 = arith.constant 0 : index
    %c0_24 = arith.constant 0 : index
    %c0_25 = arith.constant 0 : index
    %36 = vector.load %arg9[%c0_23, %c0_24, %c0_25] : memref<1x64x64xbf16, #tpu.memory_space<vmem>>, vector<1x64x64xbf16>
    %37 = vector.shape_cast %36 : vector<1x64x64xbf16> to vector<64x64xbf16>
    %38 = vector.shape_cast %35 : vector<64x64xbf16> to vector<1x64x64xbf16>
    tpu.vector_store %arg9[%c0_23, %c0_24, %c0_25], %38 {strides = array<i32>} : memref<1x64x64xbf16, #tpu.memory_space<vmem>>, vector<1x64x64xbf16>,
    return
  }
  func.func @transform_0(%arg0: i32, %arg1: i32) -> (i32, i32, i32, i32) {
    %c0_i32 = arith.constant 0 : i32
    %c0_i32_0 = arith.constant 0 : i32
    %c0_i32_1 = arith.constant 0 : i32
    return %arg0, %c0_i32, %arg1, %c0_i32_0 : i32, i32, i32, i32
  }
  func.func @transform_1(%arg0: i32, %arg1: i32) -> (i32, i32, i32) {
    %c0_i32 = arith.constant 0 : i32
    %c0_i32_0 = arith.constant 0 : i32
    return %arg0, %arg1, %c0_i32 : i32, i32, i32
  }
  func.func @transform_2(%arg0: i32, %arg1: i32) -> (i32, i32) {
    %c0_i32 = arith.constant 0 : i32
    %c0_i32_0 = arith.constant 0 : i32
    %c0_i32_1 = arith.constant 0 : i32
    return %c0_i32, %c0_i32_0 : i32, i32
  }
  func.func @transform_3(%arg0: i32, %arg1: i32) -> (i32, i32) {
    %c0_i32 = arith.constant 0 : i32
    %c0_i32_0 = arith.constant 0 : i32
    %c0_i32_1 = arith.constant 0 : i32
    return %c0_i32, %c0_i32_0 : i32, i32
  }
  func.func @transform_4(%arg0: i32, %arg1: i32) -> (i32, i32) {
    %c0_i32 = arith.constant 0 : i32
    %c0_i32_0 = arith.constant 0 : i32
    %c0_i32_1 = arith.constant 0 : i32
    return %c0_i32, %c0_i32_0 : i32, i32
  }
  func.func @transform_5(%arg0: i32, %arg1: i32) -> (i32, i32) {
    %c0_i32 = arith.constant 0 : i32
    %c0_i32_0 = arith.constant 0 : i32
    %c0_i32_1 = arith.constant 0 : i32
    return %c0_i32, %c0_i32_0 : i32, i32
  }
  func.func @transform_6(%arg0: i32, %arg1: i32) -> (i32, i32) {
    %c0_i32 = arith.constant 0 : i32
    %c0_i32_0 = arith.constant 0 : i32
    %c0_i32_1 = arith.constant 0 : i32
    return %c0_i32, %c0_i32_0 : i32, i32
  }
  func.func @transform_7(%arg0: i32, %arg1: i32) -> (i32, i32, i32) {
    %c0_i32 = arith.constant 0 : i32
    %c0_i32_0 = arith.constant 0 : i32
    return %arg0, %arg1, %c0_i32 : i32, i32, i32
  }
}

module attributes {stable_mosaic.version = 11 : i64} {
  func.func @_neg_dist_kernel(%arg0: i32, %arg1: i32, %arg2: memref<1x64x64xbf16, #tpu.memory_space<vmem>>, %arg3: memref<1x64x64xbf16, #tpu.memory_space<vmem>>, %arg4: memref<1x1x64xf32, #tpu.memory_space<vmem>>, %arg5: memref<1x64x64xbf16, #tpu.memory_space<vmem>>) attributes {dimension_semantics = [#tpu.dimension_semantics<parallel>, #tpu.dimension_semantics<parallel>], iteration_bounds = array<i64: 2, 1>, scalar_prefetch = 0 : i64, scratch_operands = 0 : i64, tpu.core_type = #tpu.core_type<tc>, window_params = [{transform_indices = @transform_0, window_bounds = array<i64: 1, 64, 64>}, {transform_indices = @transform_1, window_bounds = array<i64: 1, 64, 64>}, {transform_indices = @transform_2, window_bounds = array<i64: 1, 1, 64>}, {transform_indices = @transform_3, window_bounds = array<i64: 1, 64, 64>}]} {
    %c0 = arith.constant 0 : index
    %c0_0 = arith.constant 0 : index
    %c0_1 = arith.constant 0 : index
    %0 = vector.load %arg2[%c0, %c0_0, %c0_1] : memref<1x64x64xbf16, #tpu.memory_space<vmem>>, vector<1x64x64xbf16>
    %1 = vector.shape_cast %0 : vector<1x64x64xbf16> to vector<64x64xbf16>
    %c0_2 = arith.constant 0 : index
    %c0_3 = arith.constant 0 : index
    %c0_4 = arith.constant 0 : index
    %2 = vector.load %arg3[%c0_2, %c0_3, %c0_4] : memref<1x64x64xbf16, #tpu.memory_space<vmem>>, vector<1x64x64xbf16>
    %3 = vector.shape_cast %2 : vector<1x64x64xbf16> to vector<64x64xbf16>
    %4 = arith.extf %1 : vector<64x64xbf16> to vector<64x64xf32>
    %5 = arith.mulf %4, %4 : vector<64x64xf32>
    %cst = arith.constant dense<0.000000e+00> : vector<64xf32>
    %6 = vector.multi_reduction <add>, %5, %cst [1] : vector<64x64xf32> to vector<64xf32>
    %7 = vector.shape_cast %6 : vector<64xf32> to vector<64x1xf32>
    %8 = arith.addf %1, %1 : vector<64x64xbf16>
    %cst_5 = arith.constant dense<0.000000e+00> : vector<64x64xf32>
    %9 = tpu.matmul %8, %3, %cst_5 {dimension_numbers = #tpu.dot_dimension_numbers<[1], [1], [0], [0], [0, 0, 1, 0], [], []>} : vector<64x64xbf16>, vector<64x64xbf16>, vector<64x64xf32> -> vector<64x64xf32>
    %10 = vector.broadcast %7 : vector<64x1xf32> to vector<64x64xf32>
    %11 = arith.subf %9, %10 : vector<64x64xf32>
    %c0_6 = arith.constant 0 : index
    %c0_7 = arith.constant 0 : index
    %c0_8 = arith.constant 0 : index
    %12 = vector.load %arg4[%c0_6, %c0_7, %c0_8] : memref<1x1x64xf32, #tpu.memory_space<vmem>>, vector<1x1x64xf32>
    %13 = vector.shape_cast %12 : vector<1x1x64xf32> to vector<1x64xf32>
    %14 = vector.broadcast %13 : vector<1x64xf32> to vector<64x64xf32>
    %15 = arith.subf %11, %14 : vector<64x64xf32>
    %16 = arith.truncf %15 : vector<64x64xf32> to vector<64x64xbf16>
    %c0_9 = arith.constant 0 : index
    %c0_10 = arith.constant 0 : index
    %c0_11 = arith.constant 0 : index
    %17 = vector.load %arg5[%c0_9, %c0_10, %c0_11] : memref<1x64x64xbf16, #tpu.memory_space<vmem>>, vector<1x64x64xbf16>
    %18 = vector.shape_cast %17 : vector<1x64x64xbf16> to vector<64x64xbf16>
    %19 = vector.shape_cast %16 : vector<64x64xbf16> to vector<1x64x64xbf16>
    tpu.vector_store %arg5[%c0_9, %c0_10, %c0_11], %19 {strides = array<i32>} : memref<1x64x64xbf16, #tpu.memory_space<vmem>>, vector<1x64x64xbf16>,
    return
  }
  func.func @transform_0(%arg0: i32, %arg1: i32) -> (i32, i32, i32) {
    %c0_i32 = arith.constant 0 : i32
    %c0_i32_0 = arith.constant 0 : i32
    return %arg0, %arg1, %c0_i32 : i32, i32, i32
  }
  func.func @transform_1(%arg0: i32, %arg1: i32) -> (i32, i32, i32) {
    %c0_i32 = arith.constant 0 : i32
    %c0_i32_0 = arith.constant 0 : i32
    %c0_i32_1 = arith.constant 0 : i32
    return %arg0, %c0_i32, %c0_i32_0 : i32, i32, i32
  }
  func.func @transform_2(%arg0: i32, %arg1: i32) -> (i32, i32, i32) {
    %c0_i32 = arith.constant 0 : i32
    %c0_i32_0 = arith.constant 0 : i32
    %c0_i32_1 = arith.constant 0 : i32
    return %arg0, %c0_i32, %c0_i32_0 : i32, i32, i32
  }
  func.func @transform_3(%arg0: i32, %arg1: i32) -> (i32, i32, i32) {
    %c0_i32 = arith.constant 0 : i32
    %c0_i32_0 = arith.constant 0 : i32
    return %arg0, %arg1, %c0_i32 : i32, i32, i32
  }
}

module attributes {stable_mosaic.version = 11 : i64} {
  func.func @_edge_conv_kernel(%arg0: i32, %arg1: i32, %arg2: memref<1x20x64x64xbf16, #tpu.memory_space<vmem>>, %arg3: memref<1x64x64xbf16, #tpu.memory_space<vmem>>, %arg4: memref<64x64xbf16, #tpu.memory_space<vmem>>, %arg5: memref<64x64xbf16, #tpu.memory_space<vmem>>, %arg6: memref<1x64xf32, #tpu.memory_space<vmem>>, %arg7: memref<64x64xbf16, #tpu.memory_space<vmem>>, %arg8: memref<1x64xf32, #tpu.memory_space<vmem>>, %arg9: memref<1x64x64xbf16, #tpu.memory_space<vmem>>) attributes {dimension_semantics = [#tpu.dimension_semantics<parallel>, #tpu.dimension_semantics<parallel>], iteration_bounds = array<i64: 2, 1>, scalar_prefetch = 0 : i64, scratch_operands = 0 : i64, tpu.core_type = #tpu.core_type<tc>, window_params = [{transform_indices = @transform_0, window_bounds = array<i64: 1, 20, 64, 64>}, {transform_indices = @transform_1, window_bounds = array<i64: 1, 64, 64>}, {pipeline_mode = #tpu.pipeline_mode<synchronous>, transform_indices = @transform_2, window_bounds = array<i64: 64, 64>}, {pipeline_mode = #tpu.pipeline_mode<synchronous>, transform_indices = @transform_3, window_bounds = array<i64: 64, 64>}, {pipeline_mode = #tpu.pipeline_mode<synchronous>, transform_indices = @transform_4, window_bounds = array<i64: 1, 64>}, {pipeline_mode = #tpu.pipeline_mode<synchronous>, transform_indices = @transform_5, window_bounds = array<i64: 64, 64>}, {pipeline_mode = #tpu.pipeline_mode<synchronous>, transform_indices = @transform_6, window_bounds = array<i64: 1, 64>}, {transform_indices = @transform_7, window_bounds = array<i64: 1, 64, 64>}]} {
    %c0 = arith.constant 0 : index
    %c0_0 = arith.constant 0 : index
    %c0_1 = arith.constant 0 : index
    %c0_2 = arith.constant 0 : index
    %0 = vector.load %arg2[%c0, %c0_0, %c0_1, %c0_2] : memref<1x20x64x64xbf16, #tpu.memory_space<vmem>>, vector<1x20x64x64xbf16>
    %1 = vector.shape_cast %0 : vector<1x20x64x64xbf16> to vector<20x64x64xbf16>
    %c0_3 = arith.constant 0 : index
    %c0_4 = arith.constant 0 : index
    %c0_5 = arith.constant 0 : index
    %2 = vector.load %arg3[%c0_3, %c0_4, %c0_5] : memref<1x64x64xbf16, #tpu.memory_space<vmem>>, vector<1x64x64xbf16>
    %3 = vector.shape_cast %2 : vector<1x64x64xbf16> to vector<64x64xbf16>
    %c0_6 = arith.constant 0 : index
    %c0_7 = arith.constant 0 : index
    %4 = vector.load %arg4[%c0_6, %c0_7] : memref<64x64xbf16, #tpu.memory_space<vmem>>, vector<64x64xbf16>
    %c0_8 = arith.constant 0 : index
    %c0_9 = arith.constant 0 : index
    %5 = vector.load %arg5[%c0_8, %c0_9] : memref<64x64xbf16, #tpu.memory_space<vmem>>, vector<64x64xbf16>
    %cst = arith.constant dense<0.000000e+00> : vector<64x64xf32>
    %6 = tpu.matmul %3, %5, %cst {dimension_numbers = #tpu.dot_dimension_numbers<[1], [0], [0], [1], [0, 0, 1, 1], [], []>} : vector<64x64xbf16>, vector<64x64xbf16>, vector<64x64xf32> -> vector<64x64xf32>
    %c0_10 = arith.constant 0 : index
    %c0_11 = arith.constant 0 : index
    %7 = vector.load %arg6[%c0_10, %c0_11] : memref<1x64xf32, #tpu.memory_space<vmem>>, vector<1x64xf32>
    %8 = vector.broadcast %7 : vector<1x64xf32> to vector<64x64xf32>
    %9 = arith.addf %6, %8 : vector<64x64xf32>
    %10 = vector.shape_cast %1 : vector<20x64x64xbf16> to vector<1280x64xbf16>
    %cst_12 = arith.constant dense<0.000000e+00> : vector<1280x64xf32>
    %11 = tpu.matmul %10, %4, %cst_12 {dimension_numbers = #tpu.dot_dimension_numbers<[1], [0], [0], [1], [0, 0, 1, 1], [], []>} : vector<1280x64xbf16>, vector<64x64xbf16>, vector<1280x64xf32> -> vector<1280x64xf32>
    %12 = vector.shape_cast %11 : vector<1280x64xf32> to vector<20x64x64xf32>
    %13 = vector.shape_cast %9 : vector<64x64xf32> to vector<1x64x64xf32>
    %14 = vector.broadcast %13 : vector<1x64x64xf32> to vector<20x64x64xf32>
    %15 = arith.addf %12, %14 : vector<20x64x64xf32>
    %cst_13 = arith.constant 0.000000e+00 : f32
    %16 = vector.broadcast %cst_13 : f32 to vector<20x64x64xf32>
    %17 = arith.cmpf oge, %15, %16 : vector<20x64x64xf32>
    %cst_14 = arith.constant 2.000000e-01 : f32
    %18 = vector.broadcast %cst_14 : f32 to vector<20x64x64xf32>
    %19 = arith.mulf %18, %15 : vector<20x64x64xf32>
    %20 = arith.select %17, %15, %19 : vector<20x64x64xi1>, vector<20x64x64xf32>
    %c0_15 = arith.constant 0 : index
    %c0_16 = arith.constant 0 : index
    %21 = vector.load %arg7[%c0_15, %c0_16] : memref<64x64xbf16, #tpu.memory_space<vmem>>, vector<64x64xbf16>
    %c0_17 = arith.constant 0 : index
    %c0_18 = arith.constant 0 : index
    %22 = vector.load %arg8[%c0_17, %c0_18] : memref<1x64xf32, #tpu.memory_space<vmem>>, vector<1x64xf32>
    %23 = vector.shape_cast %20 : vector<20x64x64xf32> to vector<1280x64xf32>
    %24 = arith.truncf %23 : vector<1280x64xf32> to vector<1280x64xbf16>
    %cst_19 = arith.constant dense<0.000000e+00> : vector<1280x64xf32>
    %25 = tpu.matmul %24, %21, %cst_19 {dimension_numbers = #tpu.dot_dimension_numbers<[1], [0], [0], [1], [0, 0, 1, 1], [], []>} : vector<1280x64xbf16>, vector<64x64xbf16>, vector<1280x64xf32> -> vector<1280x64xf32>
    %26 = vector.broadcast %22 : vector<1x64xf32> to vector<1280x64xf32>
    %27 = arith.addf %25, %26 : vector<1280x64xf32>
    %cst_20 = arith.constant 0.000000e+00 : f32
    %28 = vector.broadcast %cst_20 : f32 to vector<1280x64xf32>
    %29 = arith.cmpf oge, %27, %28 : vector<1280x64xf32>
    %cst_21 = arith.constant 2.000000e-01 : f32
    %30 = vector.broadcast %cst_21 : f32 to vector<1280x64xf32>
    %31 = arith.mulf %30, %27 : vector<1280x64xf32>
    %32 = arith.select %29, %27, %31 : vector<1280x64xi1>, vector<1280x64xf32>
    %33 = vector.shape_cast %32 : vector<1280x64xf32> to vector<20x64x64xf32>
    %cst_22 = arith.constant dense<0xFF800000> : vector<64x64xf32>
    %34 = vector.multi_reduction <maximumf>, %33, %cst_22 [0] : vector<20x64x64xf32> to vector<64x64xf32>
    %35 = arith.truncf %34 : vector<64x64xf32> to vector<64x64xbf16>
    %c0_23 = arith.constant 0 : index
    %c0_24 = arith.constant 0 : index
    %c0_25 = arith.constant 0 : index
    %36 = vector.load %arg9[%c0_23, %c0_24, %c0_25] : memref<1x64x64xbf16, #tpu.memory_space<vmem>>, vector<1x64x64xbf16>
    %37 = vector.shape_cast %36 : vector<1x64x64xbf16> to vector<64x64xbf16>
    %38 = vector.shape_cast %35 : vector<64x64xbf16> to vector<1x64x64xbf16>
    tpu.vector_store %arg9[%c0_23, %c0_24, %c0_25], %38 {strides = array<i32>} : memref<1x64x64xbf16, #tpu.memory_space<vmem>>, vector<1x64x64xbf16>,
    return
  }
  func.func @transform_0(%arg0: i32, %arg1: i32) -> (i32, i32, i32, i32) {
    %c0_i32 = arith.constant 0 : i32
    %c0_i32_0 = arith.constant 0 : i32
    %c0_i32_1 = arith.constant 0 : i32
    return %arg0, %c0_i32, %arg1, %c0_i32_0 : i32, i32, i32, i32
  }
  func.func @transform_1(%arg0: i32, %arg1: i32) -> (i32, i32, i32) {
    %c0_i32 = arith.constant 0 : i32
    %c0_i32_0 = arith.constant 0 : i32
    return %arg0, %arg1, %c0_i32 : i32, i32, i32
  }
  func.func @transform_2(%arg0: i32, %arg1: i32) -> (i32, i32) {
    %c0_i32 = arith.constant 0 : i32
    %c0_i32_0 = arith.constant 0 : i32
    %c0_i32_1 = arith.constant 0 : i32
    return %c0_i32, %c0_i32_0 : i32, i32
  }
  func.func @transform_3(%arg0: i32, %arg1: i32) -> (i32, i32) {
    %c0_i32 = arith.constant 0 : i32
    %c0_i32_0 = arith.constant 0 : i32
    %c0_i32_1 = arith.constant 0 : i32
    return %c0_i32, %c0_i32_0 : i32, i32
  }
  func.func @transform_4(%arg0: i32, %arg1: i32) -> (i32, i32) {
    %c0_i32 = arith.constant 0 : i32
    %c0_i32_0 = arith.constant 0 : i32
    %c0_i32_1 = arith.constant 0 : i32
    return %c0_i32, %c0_i32_0 : i32, i32
  }
  func.func @transform_5(%arg0: i32, %arg1: i32) -> (i32, i32) {
    %c0_i32 = arith.constant 0 : i32
    %c0_i32_0 = arith.constant 0 : i32
    %c0_i32_1 = arith.constant 0 : i32
    return %c0_i32, %c0_i32_0 : i32, i32
  }
  func.func @transform_6(%arg0: i32, %arg1: i32) -> (i32, i32) {
    %c0_i32 = arith.constant 0 : i32
    %c0_i32_0 = arith.constant 0 : i32
    %c0_i32_1 = arith.constant 0 : i32
    return %c0_i32, %c0_i32_0 : i32, i32
  }
  func.func @transform_7(%arg0: i32, %arg1: i32) -> (i32, i32, i32) {
    %c0_i32 = arith.constant 0 : i32
    %c0_i32_0 = arith.constant 0 : i32
    return %arg0, %arg1, %c0_i32 : i32, i32, i32
  }
}

module attributes {stable_mosaic.version = 11 : i64} {
  func.func @_edge_conv_kernel(%arg0: i32, %arg1: i32, %arg2: memref<1x20x64x64xbf16, #tpu.memory_space<vmem>>, %arg3: memref<1x64x64xbf16, #tpu.memory_space<vmem>>, %arg4: memref<64x64xbf16, #tpu.memory_space<vmem>>, %arg5: memref<64x64xbf16, #tpu.memory_space<vmem>>, %arg6: memref<1x64xf32, #tpu.memory_space<vmem>>, %arg7: memref<1x64x64xbf16, #tpu.memory_space<vmem>>) attributes {dimension_semantics = [#tpu.dimension_semantics<parallel>, #tpu.dimension_semantics<parallel>], iteration_bounds = array<i64: 2, 1>, scalar_prefetch = 0 : i64, scratch_operands = 0 : i64, tpu.core_type = #tpu.core_type<tc>, window_params = [{transform_indices = @transform_0, window_bounds = array<i64: 1, 20, 64, 64>}, {transform_indices = @transform_1, window_bounds = array<i64: 1, 64, 64>}, {pipeline_mode = #tpu.pipeline_mode<synchronous>, transform_indices = @transform_2, window_bounds = array<i64: 64, 64>}, {pipeline_mode = #tpu.pipeline_mode<synchronous>, transform_indices = @transform_3, window_bounds = array<i64: 64, 64>}, {pipeline_mode = #tpu.pipeline_mode<synchronous>, transform_indices = @transform_4, window_bounds = array<i64: 1, 64>}, {transform_indices = @transform_5, window_bounds = array<i64: 1, 64, 64>}]} {
    %c0 = arith.constant 0 : index
    %c0_0 = arith.constant 0 : index
    %c0_1 = arith.constant 0 : index
    %c0_2 = arith.constant 0 : index
    %0 = vector.load %arg2[%c0, %c0_0, %c0_1, %c0_2] : memref<1x20x64x64xbf16, #tpu.memory_space<vmem>>, vector<1x20x64x64xbf16>
    %1 = vector.shape_cast %0 : vector<1x20x64x64xbf16> to vector<20x64x64xbf16>
    %c0_3 = arith.constant 0 : index
    %c0_4 = arith.constant 0 : index
    %c0_5 = arith.constant 0 : index
    %2 = vector.load %arg3[%c0_3, %c0_4, %c0_5] : memref<1x64x64xbf16, #tpu.memory_space<vmem>>, vector<1x64x64xbf16>
    %3 = vector.shape_cast %2 : vector<1x64x64xbf16> to vector<64x64xbf16>
    %c0_6 = arith.constant 0 : index
    %c0_7 = arith.constant 0 : index
    %4 = vector.load %arg4[%c0_6, %c0_7] : memref<64x64xbf16, #tpu.memory_space<vmem>>, vector<64x64xbf16>
    %c0_8 = arith.constant 0 : index
    %c0_9 = arith.constant 0 : index
    %5 = vector.load %arg5[%c0_8, %c0_9] : memref<64x64xbf16, #tpu.memory_space<vmem>>, vector<64x64xbf16>
    %cst = arith.constant dense<0.000000e+00> : vector<64x64xf32>
    %6 = tpu.matmul %3, %5, %cst {dimension_numbers = #tpu.dot_dimension_numbers<[1], [0], [0], [1], [0, 0, 1, 1], [], []>} : vector<64x64xbf16>, vector<64x64xbf16>, vector<64x64xf32> -> vector<64x64xf32>
    %c0_10 = arith.constant 0 : index
    %c0_11 = arith.constant 0 : index
    %7 = vector.load %arg6[%c0_10, %c0_11] : memref<1x64xf32, #tpu.memory_space<vmem>>, vector<1x64xf32>
    %8 = vector.broadcast %7 : vector<1x64xf32> to vector<64x64xf32>
    %9 = arith.addf %6, %8 : vector<64x64xf32>
    %10 = vector.shape_cast %1 : vector<20x64x64xbf16> to vector<1280x64xbf16>
    %cst_12 = arith.constant dense<0.000000e+00> : vector<1280x64xf32>
    %11 = tpu.matmul %10, %4, %cst_12 {dimension_numbers = #tpu.dot_dimension_numbers<[1], [0], [0], [1], [0, 0, 1, 1], [], []>} : vector<1280x64xbf16>, vector<64x64xbf16>, vector<1280x64xf32> -> vector<1280x64xf32>
    %12 = vector.shape_cast %11 : vector<1280x64xf32> to vector<20x64x64xf32>
    %13 = vector.shape_cast %9 : vector<64x64xf32> to vector<1x64x64xf32>
    %14 = vector.broadcast %13 : vector<1x64x64xf32> to vector<20x64x64xf32>
    %15 = arith.addf %12, %14 : vector<20x64x64xf32>
    %cst_13 = arith.constant 0.000000e+00 : f32
    %16 = vector.broadcast %cst_13 : f32 to vector<20x64x64xf32>
    %17 = arith.cmpf oge, %15, %16 : vector<20x64x64xf32>
    %cst_14 = arith.constant 2.000000e-01 : f32
    %18 = vector.broadcast %cst_14 : f32 to vector<20x64x64xf32>
    %19 = arith.mulf %18, %15 : vector<20x64x64xf32>
    %20 = arith.select %17, %15, %19 : vector<20x64x64xi1>, vector<20x64x64xf32>
    %cst_15 = arith.constant dense<0xFF800000> : vector<64x64xf32>
    %21 = vector.multi_reduction <maximumf>, %20, %cst_15 [0] : vector<20x64x64xf32> to vector<64x64xf32>
    %22 = arith.truncf %21 : vector<64x64xf32> to vector<64x64xbf16>
    %c0_16 = arith.constant 0 : index
    %c0_17 = arith.constant 0 : index
    %c0_18 = arith.constant 0 : index
    %23 = vector.load %arg7[%c0_16, %c0_17, %c0_18] : memref<1x64x64xbf16, #tpu.memory_space<vmem>>, vector<1x64x64xbf16>
    %24 = vector.shape_cast %23 : vector<1x64x64xbf16> to vector<64x64xbf16>
    %25 = vector.shape_cast %22 : vector<64x64xbf16> to vector<1x64x64xbf16>
    tpu.vector_store %arg7[%c0_16, %c0_17, %c0_18], %25 {strides = array<i32>} : memref<1x64x64xbf16, #tpu.memory_space<vmem>>, vector<1x64x64xbf16>,
    return
  }
  func.func @transform_0(%arg0: i32, %arg1: i32) -> (i32, i32, i32, i32) {
    %c0_i32 = arith.constant 0 : i32
    %c0_i32_0 = arith.constant 0 : i32
    %c0_i32_1 = arith.constant 0 : i32
    return %arg0, %c0_i32, %arg1, %c0_i32_0 : i32, i32, i32, i32
  }
  func.func @transform_1(%arg0: i32, %arg1: i32) -> (i32, i32, i32) {
    %c0_i32 = arith.constant 0 : i32
    %c0_i32_0 = arith.constant 0 : i32
    return %arg0, %arg1, %c0_i32 : i32, i32, i32
  }
  func.func @transform_2(%arg0: i32, %arg1: i32) -> (i32, i32) {
    %c0_i32 = arith.constant 0 : i32
    %c0_i32_0 = arith.constant 0 : i32
    %c0_i32_1 = arith.constant 0 : i32
    return %c0_i32, %c0_i32_0 : i32, i32
  }
  func.func @transform_3(%arg0: i32, %arg1: i32) -> (i32, i32) {
    %c0_i32 = arith.constant 0 : i32
    %c0_i32_0 = arith.constant 0 : i32
    %c0_i32_1 = arith.constant 0 : i32
    return %c0_i32, %c0_i32_0 : i32, i32
  }
  func.func @transform_4(%arg0: i32, %arg1: i32) -> (i32, i32) {
    %c0_i32 = arith.constant 0 : i32
    %c0_i32_0 = arith.constant 0 : i32
    %c0_i32_1 = arith.constant 0 : i32
    return %c0_i32, %c0_i32_0 : i32, i32
  }
  func.func @transform_5(%arg0: i32, %arg1: i32) -> (i32, i32, i32) {
    %c0_i32 = arith.constant 0 : i32
    %c0_i32_0 = arith.constant 0 : i32
    return %arg0, %arg1, %c0_i32 : i32, i32, i32
  }
}

module attributes {stable_mosaic.version = 11 : i64} {
  func.func @_conv6_kernel(%arg0: i32, %arg1: i32, %arg2: memref<1x64x64xbf16, #tpu.memory_space<vmem>>, %arg3: memref<1x64x64xbf16, #tpu.memory_space<vmem>>, %arg4: memref<1x64x64xbf16, #tpu.memory_space<vmem>>, %arg5: memref<64x128xbf16, #tpu.memory_space<vmem>>, %arg6: memref<64x128xbf16, #tpu.memory_space<vmem>>, %arg7: memref<64x128xbf16, #tpu.memory_space<vmem>>, %arg8: memref<1x128xf32, #tpu.memory_space<vmem>>, %arg9: memref<1x64x128xf32, #tpu.memory_space<vmem>>, %arg10: memref<1x1x128xf32, #tpu.memory_space<vmem>>) attributes {dimension_semantics = [#tpu.dimension_semantics<parallel>, #tpu.dimension_semantics<arbitrary>], iteration_bounds = array<i64: 2, 1>, scalar_prefetch = 0 : i64, scratch_operands = 0 : i64, tpu.core_type = #tpu.core_type<tc>, window_params = [{transform_indices = @transform_0, window_bounds = array<i64: 1, 64, 64>}, {transform_indices = @transform_1, window_bounds = array<i64: 1, 64, 64>}, {transform_indices = @transform_2, window_bounds = array<i64: 1, 64, 64>}, {pipeline_mode = #tpu.pipeline_mode<synchronous>, transform_indices = @transform_3, window_bounds = array<i64: 64, 128>}, {pipeline_mode = #tpu.pipeline_mode<synchronous>, transform_indices = @transform_4, window_bounds = array<i64: 64, 128>}, {pipeline_mode = #tpu.pipeline_mode<synchronous>, transform_indices = @transform_5, window_bounds = array<i64: 64, 128>}, {pipeline_mode = #tpu.pipeline_mode<synchronous>, transform_indices = @transform_6, window_bounds = array<i64: 1, 128>}, {transform_indices = @transform_7, window_bounds = array<i64: 1, 64, 128>}, {transform_indices = @transform_8, window_bounds = array<i64: 1, 1, 128>}]} {
    %c0 = arith.constant 0 : index
    %c0_0 = arith.constant 0 : index
    %0 = vector.load %arg5[%c0, %c0_0] : memref<64x128xbf16, #tpu.memory_space<vmem>>, vector<64x128xbf16>
    %c0_1 = arith.constant 0 : index
    %c0_2 = arith.constant 0 : index
    %1 = vector.load %arg6[%c0_1, %c0_2] : memref<64x128xbf16, #tpu.memory_space<vmem>>, vector<64x128xbf16>
    %c0_3 = arith.constant 0 : index
    %c0_4 = arith.constant 0 : index
    %2 = vector.load %arg7[%c0_3, %c0_4] : memref<64x128xbf16, #tpu.memory_space<vmem>>, vector<64x128xbf16>
    %c0_5 = arith.constant 0 : index
    %c0_6 = arith.constant 0 : index
    %c0_7 = arith.constant 0 : index
    %3 = vector.load %arg2[%c0_5, %c0_6, %c0_7] : memref<1x64x64xbf16, #tpu.memory_space<vmem>>, vector<1x64x64xbf16>
    %4 = vector.shape_cast %3 : vector<1x64x64xbf16> to vector<64x64xbf16>
    %cst = arith.constant dense<0.000000e+00> : vector<64x128xf32>
    %5 = tpu.matmul %4, %0, %cst {dimension_numbers = #tpu.dot_dimension_numbers<[1], [0], [0], [1], [0, 0, 1, 1], [], []>} : vector<64x64xbf16>, vector<64x128xbf16>, vector<64x128xf32> -> vector<64x128xf32>
    %c0_8 = arith.constant 0 : index
    %c0_9 = arith.constant 0 : index
    %c0_10 = arith.constant 0 : index
    %6 = vector.load %arg3[%c0_8, %c0_9, %c0_10] : memref<1x64x64xbf16, #tpu.memory_space<vmem>>, vector<1x64x64xbf16>
    %7 = vector.shape_cast %6 : vector<1x64x64xbf16> to vector<64x64xbf16>
    %cst_11 = arith.constant dense<0.000000e+00> : vector<64x128xf32>
    %8 = tpu.matmul %7, %1, %cst_11 {dimension_numbers = #tpu.dot_dimension_numbers<[1], [0], [0], [1], [0, 0, 1, 1], [], []>} : vector<64x64xbf16>, vector<64x128xbf16>, vector<64x128xf32> -> vector<64x128xf32>
    %9 = arith.addf %5, %8 : vector<64x128xf32>
    %c0_12 = arith.constant 0 : index
    %c0_13 = arith.constant 0 : index
    %c0_14 = arith.constant 0 : index
    %10 = vector.load %arg4[%c0_12, %c0_13, %c0_14] : memref<1x64x64xbf16, #tpu.memory_space<vmem>>, vector<1x64x64xbf16>
    %11 = vector.shape_cast %10 : vector<1x64x64xbf16> to vector<64x64xbf16>
    %cst_15 = arith.constant dense<0.000000e+00> : vector<64x128xf32>
    %12 = tpu.matmul %11, %2, %cst_15 {dimension_numbers = #tpu.dot_dimension_numbers<[1], [0], [0], [1], [0, 0, 1, 1], [], []>} : vector<64x64xbf16>, vector<64x128xbf16>, vector<64x128xf32> -> vector<64x128xf32>
    %13 = arith.addf %9, %12 : vector<64x128xf32>
    %c0_16 = arith.constant 0 : index
    %c0_17 = arith.constant 0 : index
    %14 = vector.load %arg8[%c0_16, %c0_17] : memref<1x128xf32, #tpu.memory_space<vmem>>, vector<1x128xf32>
    %15 = vector.broadcast %14 : vector<1x128xf32> to vector<64x128xf32>
    %16 = arith.addf %13, %15 : vector<64x128xf32>
    %cst_18 = arith.constant 0.000000e+00 : f32
    %17 = vector.broadcast %cst_18 : f32 to vector<64x128xf32>
    %18 = arith.cmpf oge, %16, %17 : vector<64x128xf32>
    %cst_19 = arith.constant 2.000000e-01 : f32
    %19 = vector.broadcast %cst_19 : f32 to vector<64x128xf32>
    %20 = arith.mulf %19, %16 : vector<64x128xf32>
    %21 = arith.select %18, %16, %20 : vector<64x128xi1>, vector<64x128xf32>
    %c0_20 = arith.constant 0 : index
    %c0_21 = arith.constant 0 : index
    %c0_22 = arith.constant 0 : index
    %22 = vector.load %arg9[%c0_20, %c0_21, %c0_22] : memref<1x64x128xf32, #tpu.memory_space<vmem>>, vector<1x64x128xf32>
    %23 = vector.shape_cast %22 : vector<1x64x128xf32> to vector<64x128xf32>
    %24 = vector.shape_cast %21 : vector<64x128xf32> to vector<1x64x128xf32>
    tpu.vector_store %arg9[%c0_20, %c0_21, %c0_22], %24 {strides = array<i32>} : memref<1x64x128xf32, #tpu.memory_space<vmem>>, vector<1x64x128xf32>,
    %cst_23 = arith.constant dense<0xFF800000> : vector<128xf32>
    %25 = vector.multi_reduction <maximumf>, %21, %cst_23 [0] : vector<64x128xf32> to vector<128xf32>
    %26 = vector.shape_cast %25 : vector<128xf32> to vector<1x128xf32>
    %c0_i32 = arith.constant 0 : i32
    %27 = arith.cmpi eq, %arg1, %c0_i32 : i32
    %28 = arith.extui %27 : i1 to i32
    %c0_i32_24 = arith.constant 0 : i32
    %29 = arith.cmpi ne, %28, %c0_i32_24 : i32
    scf.if %29 {
      %c0_27 = arith.constant 0 : index
      %c0_28 = arith.constant 0 : index
      %c0_29 = arith.constant 0 : index
      %33 = vector.load %arg10[%c0_27, %c0_28, %c0_29] : memref<1x1x128xf32, #tpu.memory_space<vmem>>, vector<1x1x128xf32>
      %34 = vector.shape_cast %33 : vector<1x1x128xf32> to vector<1x128xf32>
      %35 = vector.shape_cast %26 : vector<1x128xf32> to vector<1x1x128xf32>
      tpu.vector_store %arg10[%c0_27, %c0_28, %c0_29], %35 {strides = array<i32>} : memref<1x1x128xf32, #tpu.memory_space<vmem>>, vector<1x1x128xf32>,
    } else {
    }
    %c0_i32_25 = arith.constant 0 : i32
    %30 = arith.cmpi ne, %arg1, %c0_i32_25 : i32
    %31 = arith.extui %30 : i1 to i32
    %c0_i32_26 = arith.constant 0 : i32
    %32 = arith.cmpi ne, %31, %c0_i32_26 : i32
    scf.if %32 {
      %c0_27 = arith.constant 0 : index
      %c0_28 = arith.constant 0 : index
      %c0_29 = arith.constant 0 : index
      %33 = vector.load %arg10[%c0_27, %c0_28, %c0_29] : memref<1x1x128xf32, #tpu.memory_space<vmem>>, vector<1x1x128xf32>
      %34 = vector.shape_cast %33 : vector<1x1x128xf32> to vector<1x128xf32>
      %35 = arith.maximumf %34, %26 : vector<1x128xf32>
      %c0_30 = arith.constant 0 : index
      %c0_31 = arith.constant 0 : index
      %c0_32 = arith.constant 0 : index
      %36 = vector.load %arg10[%c0_30, %c0_31, %c0_32] : memref<1x1x128xf32, #tpu.memory_space<vmem>>, vector<1x1x128xf32>
      %37 = vector.shape_cast %36 : vector<1x1x128xf32> to vector<1x128xf32>
      %38 = vector.shape_cast %35 : vector<1x128xf32> to vector<1x1x128xf32>
      tpu.vector_store %arg10[%c0_30, %c0_31, %c0_32], %38 {strides = array<i32>} : memref<1x1x128xf32, #tpu.memory_space<vmem>>, vector<1x1x128xf32>,
    } else {
    }
    return
  }
  func.func @transform_0(%arg0: i32, %arg1: i32) -> (i32, i32, i32) {
    %c0_i32 = arith.constant 0 : i32
    %c0_i32_0 = arith.constant 0 : i32
    return %arg0, %arg1, %c0_i32 : i32, i32, i32
  }
  func.func @transform_1(%arg0: i32, %arg1: i32) -> (i32, i32, i32) {
    %c0_i32 = arith.constant 0 : i32
    %c0_i32_0 = arith.constant 0 : i32
    return %arg0, %arg1, %c0_i32 : i32, i32, i32
  }
  func.func @transform_2(%arg0: i32, %arg1: i32) -> (i32, i32, i32) {
    %c0_i32 = arith.constant 0 : i32
    %c0_i32_0 = arith.constant 0 : i32
    return %arg0, %arg1, %c0_i32 : i32, i32, i32
  }
  func.func @transform_3(%arg0: i32, %arg1: i32) -> (i32, i32) {
    %c0_i32 = arith.constant 0 : i32
    %c0_i32_0 = arith.constant 0 : i32
    %c0_i32_1 = arith.constant 0 : i32
    return %c0_i32, %c0_i32_0 : i32, i32
  }
  func.func @transform_4(%arg0: i32, %arg1: i32) -> (i32, i32) {
    %c0_i32 = arith.constant 0 : i32
    %c0_i32_0 = arith.constant 0 : i32
    %c0_i32_1 = arith.constant 0 : i32
    return %c0_i32, %c0_i32_0 : i32, i32
  }
  func.func @transform_5(%arg0: i32, %arg1: i32) -> (i32, i32) {
    %c0_i32 = arith.constant 0 : i32
    %c0_i32_0 = arith.constant 0 : i32
    %c0_i32_1 = arith.constant 0 : i32
    return %c0_i32, %c0_i32_0 : i32, i32
  }
  func.func @transform_6(%arg0: i32, %arg1: i32) -> (i32, i32) {
    %c0_i32 = arith.constant 0 : i32
    %c0_i32_0 = arith.constant 0 : i32
    %c0_i32_1 = arith.constant 0 : i32
    return %c0_i32, %c0_i32_0 : i32, i32
  }
  func.func @transform_7(%arg0: i32, %arg1: i32) -> (i32, i32, i32) {
    %c0_i32 = arith.constant 0 : i32
    %c0_i32_0 = arith.constant 0 : i32
    return %arg0, %arg1, %c0_i32 : i32, i32, i32
  }
  func.func @transform_8(%arg0: i32, %arg1: i32) -> (i32, i32, i32) {
    %c0_i32 = arith.constant 0 : i32
    %c0_i32_0 = arith.constant 0 : i32
    %c0_i32_1 = arith.constant 0 : i32
    return %arg0, %c0_i32, %c0_i32_0 : i32, i32, i32
  }
}

</mosaic_0001>

<bundles_post_ra>
// kernel: dgcnn_forward.7
= control target key start
LH: loop header
LB: loop body
LE: loop exit
PB: predicated region body
PF: predicated region fallthrough
CT: control target
= control target key end

     0   :  { %s672_s12 = smov 0   ;;  %s674_s13 = smov 0   ;;  %s771_s0 = inlined_call_operand.vmem [shape: bf16[2,64,3], index: 0, kind: input, shape index: {}, may-alias: {0,1}]   ;;  %s772_s1 = inlined_call_operand.vmem [shape: bf16[2,64,3], index: 1, kind: input, shape index: {}, may-alias: {0,1}]   ;;  %s773_s2 = inlined_call_operand.vmem [shape: f32[2,1,64], index: 2, kind: input, shape index: {}]   ;;  %s774_s3 = inlined_call_operand.vmem [shape: bf16[2,64,64], index: 3, kind: output, shape index: {}]  }
   0x1   :  { %s676_s14 = smov 0  }
   0x2 LB: > { %s25_s15 = sadd.s32 1, %s646_s13  ;;  %p536_p0 = scmp.ge.s32.totalorder %s650_s14, 1  ;;  %s650_s14 = sphi %s676_s14, %s13_s14   ;;  %s646_s13 = sphi %s674_s13, %s776_s13   ;;  %s642_s12 = sphi %s672_s12, %s775_s12  }
   0x3   : > { %p27_p1 = scmp.ge.s32.totalorder %s25_s15, 2  ;;  %p176_p2 = scmp.lt.s32.totalorder %s650_s14, 3 }
   0x5   : > { %s778_s15 = smov (%p27_p1, %s25_s15), 0  ;;  %p177_p3 = pnand %p536_p0, %p176_p2 }
   0x6   : > { %p217_p4 = scmp.lt.s32.totalorder (!%p177_p3), %s642_s12, 1 }
   0x7   : > { %180 = sbr.rel (%p177_p3) target bundleno = 197 (0xc5), region = 32 }
   0xc   : > { %s780_s12 = smov (!%p217_p4, %s642_s12), 1  ;;  %vm277_vm0 = vcmask 23552   ;;  %vm415_vm1 = vcmask 519168  }
   0xd   : > { %s693_s16 = sshll.u32 %s780_s12, 5  ;;  %s233_s19 = scalar_lea.vmem %s773_s2, %s780_s12 }
   0xe   : > { %s703_s22 = scalar_lea.vmem %s772_s1, %s693_s16  ;;  %s709_s25 = scalar_lea.vmem %s771_s0, %s693_s16  ;;  %v627_v51 = vld [vmem:[%s233_s19] ss:$0 sm:$0xff] }
   0xf   : > { %v571_v0 = vld [vmem:[%s703_s22 + $0x18] sm:$0xff]  ;;  %v573_v1 = vld [vmem:[%s709_s25] sm:$0xff]   ;;  %v588_v4 = vld [vmem:[%s709_s25 + $0x8] sm:$0xff]   ;;  %s744_s30 = scalar_lea.vmem %s774_s3, %s693_s16 }
  0x10   : > { %v356_v2 = vsel %vm277_vm0, %v571_v0, 0  ;;  %v574_v3 = vunpack.c.l.bf16 %v573_v1  ;;  %v589_v5 = vld [vmem:[%s709_s25 + $0x10] sm:$0xff]   ;;  %v578_v7 = vunpack.c.l.bf16 %v588_v4  ;;  %v575_v12 = vunpack.c.h.bf16 %v573_v1  ;;  %v569_v20 = vld [vmem:[%s703_s22 + $0x8] sm:$0xff]  ;;  %v590_v22 = vld [vmem:[%s709_s25 + $0x18] sm:$0xff]  }
  0x11   : > { %362 = vmatpush.bf16.xpose.msra.mxu0 %v356_v2  ;;  %591 = vmatpush.bf16.xpose.msra.mxu1 %v356_v2  ;;  %v570_v6 = vld [vmem:[%s703_s22 + $0x10] sm:$0xff]  ;;  %v582_v8 = vunpack.c.l.bf16 %v589_v5  ;;  %v579_v15 = vunpack.c.h.bf16 %v588_v4  ;;  %v583_v21 = vunpack.c.h.bf16 %v589_v5  ;;  %v350_v26 = vsel %vm277_vm0, %v569_v20, 0  ;;  %v568_v32 = vld [vmem:[%s703_s22] sm:$0xff] }
  0x12   : > { %592 = vmatpush.bf16.xpose.msra.mxu2 %v356_v2  ;;  %593 = vmatpush.bf16.xpose.msra.mxu3 %v356_v2  ;;  %v269_v9 = vmul.f32 %v574_v3, %v574_v3  ;;  %v271_v10 = vmul.f32 %v578_v7, %v578_v7  ;;  %v353_v11 = vsel %vm277_vm0, %v570_v6, 0  ;;  %v270_v17 = vmul.f32 %v575_v12, %v575_v12 }
  0x13   : > { %v273_v14 = vmul.f32 %v582_v8, %v582_v8  ;;  %v272_v19 = vmul.f32 %v579_v15, %v579_v15  ;;  %v274_v24 = vmul.f32 %v583_v21, %v583_v21  ;;  %v586_v27 = vunpack.c.l.bf16 %v590_v22 }
  0x14   : > { %v278_v13 = vsel %vm277_vm0, %v269_v9, 0.0  ;;  %v284_v16 = vsel %vm277_vm0, %v271_v10, 0.0  ;;  %v281_v23 = vsel %vm277_vm0, %v270_v17, 0.0  ;;  %v587_v28 = vunpack.c.h.bf16 %v590_v22 }
  0x15   : > { %279 = vadd.xlane.f32.xlu0 %v278_v13  ;;  %285 = vadd.xlane.f32.xlu1 %v284_v16  ;;  %v290_v18 = vsel %vm277_vm0, %v273_v14, 0.0  ;;  %v287_v25 = vsel %vm277_vm0, %v272_v19, 0.0  ;;  %v275_v29 = vmul.f32 %v586_v27, %v586_v27  ;;  %v293_v30 = vsel %vm277_vm0, %v274_v24, 0.0 }
  0x16   : > { %291 = vadd.xlane.f32.xlu2 %v290_v18  ;;  %v276_v31 = vmul.f32 %v587_v28, %v587_v28  ;;  %v347_v35 = vsel %vm277_vm0, %v568_v32, 0  ;;  %v302_v36 = vadd.f32 %v574_v3, %v574_v3  ;;  %v303_v37 = vadd.f32 %v575_v12, %v575_v12 }
  0x17   : > { %v296_v33 = vsel %vm277_vm0, %v275_v29, 0.0  ;;  %v304_v38 = vadd.f32 %v578_v7, %v578_v7  ;;  %v305_v39 = vadd.f32 %v579_v15, %v579_v15  ;;  %v306_v40 = vadd.f32 %v582_v8, %v582_v8 }
  0x18   : > { %v299_v34 = vsel %vm277_vm0, %v276_v31, 0.0  ;;  %v307_v41 = vadd.f32 %v583_v21, %v583_v21  ;;  %v308_v42 = vadd.f32 %v586_v27, %v586_v27  ;;  %v309_v43 = vadd.f32 %v587_v28, %v587_v28 }
  0x19   : > { %363 = vmatpush.bf16.xpose.msra.mxu0 %v353_v11  ;;  %594 = vmatpush.bf16.xpose.msra.mxu1 %v353_v11  ;;  %v310_v44 = vpack.c.bf16 %v303_v37, %v302_v36  ;;  %v311_v45 = vpack.c.bf16 %v305_v39, %v304_v38 }
  0x1a   : > { %595 = vmatpush.bf16.xpose.msra.mxu2 %v353_v11  ;;  %596 = vmatpush.bf16.xpose.msra.mxu3 %v353_v11  ;;  %v312_v46 = vpack.c.bf16 %v307_v41, %v306_v40  ;;  %v313_v47 = vpack.c.bf16 %v309_v43, %v308_v42 }
  0x1d   : > { %282 = vadd.xlane.f32.xlu0 %v281_v23  ;;  %288 = vadd.xlane.f32.xlu1 %v287_v25 }
  0x1e   : > { %294 = vadd.xlane.f32.xlu2 %v293_v30 }
  0x21   : > { %364 = vmatpush.bf16.xpose.msra.mxu0 %v350_v26  ;;  %597 = vmatpush.bf16.xpose.msra.mxu1 %v350_v26 }
  0x22   : > { %598 = vmatpush.bf16.xpose.msra.mxu2 %v350_v26  ;;  %599 = vmatpush.bf16.xpose.msra.mxu3 %v350_v26 }
  0x25   : > { %297 = vadd.xlane.f32.xlu0 %v296_v33  ;;  %300 = vadd.xlane.f32.xlu1 %v299_v34 }
  0x29   : > { %365 = vmatpush.bf16.xpose.msra.mxu0 %v347_v35  ;;  %600 = vmatpush.bf16.xpose.msra.mxu1 %v347_v35 }
  0x2a   : > { %601 = vmatpush.bf16.xpose.msra.mxu2 %v347_v35  ;;  %602 = vmatpush.bf16.xpose.msra.mxu3 %v347_v35 }
  0x30   : > { %559 = vmatmul.msk.bf16.vlgmr.msra.gmra.mxu0 %vm277_vm0, %v310_v44  ;;  %560 = vmatmul.msk.bf16.vlgmr.msra.gmra.mxu1 %vm277_vm0, %v311_v45 }
  0x31   : > { %561 = vmatmul.msk.bf16.vlgmr.msra.gmra.mxu2 %vm277_vm0, %v312_v46  ;;  %562 = vmatmul.msk.bf16.vlgmr.msra.gmra.mxu3 %vm277_vm0, %v313_v47 }
  0x88   : > { %v280_v48 = vpop.xlane.xlu0 %279  ;;  %v286_v49 = vpop.xlane.xlu1 %285 }
  0x89   : > { %v292_v58 = vpop.xlane.xlu2 %291 }
  0x90   : > { %v283_v50 = vpop.xlane.xlu0 %282  ;;  %v289_v59 = vpop.xlane.xlu1 %288 }
  0x91   : > { %v295_v15 = vpop.xlane.xlu2 %294 }
  0x98   : > { %v298_v62 = vpop.xlane.xlu0 %297  ;;  %v301_v16 = vpop.xlane.xlu1 %300 }
  0xad   : > { %v367_v52 = vpop.f32.mrf.mxu0  ;;  %v372_v53 = vpop.f32.mrf.mxu1 }
  0xae   : > { %v387_v54 = vsub.f32 %v367_v52, %v280_v48  ;;  %v389_v55 = vsub.f32 %v372_v53, %v286_v49 }
  0xb0   : > { %v399_v56 = vsub.f32 %v387_v54, %v627_v51  ;;  %v401_v57 = vsub.f32 %v389_v55, %v627_v51 }
  0xb2   : > { %v407_v60 = vpack.c.bf16 %v399_v56, %v399_v56  ;;  %v409_v61 = vpack.c.bf16 %v401_v57, %v401_v57 }
  0xb4   : > { %416 = vst.msk [vmem:[%s744_s30] sm:$0xf] %vm415_vm1, %v407_v60  ;;  %v377_v63 = vpop.f32.mrf.mxu2  ;;  %v382_v0 = vpop.f32.mrf.mxu3 }
  0xb5   : > { %418 = vst.msk [vmem:[%s744_s30 + $0x8] sm:$0xf] %vm415_vm1, %v409_v61  ;;  %v391_v1 = vsub.f32 %v377_v63, %v292_v58  ;;  %v393_v2 = vsub.f32 %v382_v0, %v298_v62  ;;  %v369_v3 = vpop.f32.mrf.mxu0  ;;  %v374_v4 = vpop.f32.mrf.mxu1 }
  0xb6   : > { %v388_v5 = vsub.f32 %v369_v3, %v283_v50  ;;  %v390_v6 = vsub.f32 %v374_v4, %v289_v59 }
  0xb7   : > { %v403_v7 = vsub.f32 %v391_v1, %v627_v51  ;;  %v405_v8 = vsub.f32 %v393_v2, %v627_v51 }
  0xb8   : > { %v400_v9 = vsub.f32 %v388_v5, %v627_v51  ;;  %v402_v10 = vsub.f32 %v390_v6, %v627_v51 }
  0xb9   : > { %v411_v11 = vpack.c.bf16 %v403_v7, %v403_v7  ;;  %v413_v12 = vpack.c.bf16 %v405_v8, %v405_v8 }
  0xba   : > { %v408_v13 = vpack.c.bf16 %v400_v9, %v400_v9  ;;  %v410_v14 = vpack.c.bf16 %v402_v10, %v402_v10 }
  0xbb   : > { %420 = vst.msk [vmem:[%s744_s30 + $0x10] sm:$0xf] %vm415_vm1, %v411_v11 }
  0xbc   : > { %422 = vst.msk [vmem:[%s744_s30 + $0x18] sm:$0xf] %vm415_vm1, %v413_v12  ;;  %v379_v17 = vpop.f32.mrf.mxu2  ;;  %v384_v18 = vpop.f32.mrf.mxu3 }
  0xbd   : > { %417 = vst.msk [vmem:[%s744_s30 + $0x4] sm:$0xf] %vm415_vm1, %v408_v13  ;;  %v392_v19 = vsub.f32 %v379_v17, %v295_v15  ;;  %v394_v20 = vsub.f32 %v384_v18, %v301_v16 }
  0xbe   : > { %419 = vst.msk [vmem:[%s744_s30 + $0xc] sm:$0xf] %vm415_vm1, %v410_v14 }
  0xbf   : > { %v404_v21 = vsub.f32 %v392_v19, %v627_v51  ;;  %v406_v22 = vsub.f32 %v394_v20, %v627_v51 }
  0xc1   : > { %v412_v23 = vpack.c.bf16 %v404_v21, %v404_v21  ;;  %v414_v24 = vpack.c.bf16 %v406_v22, %v406_v22 }
  0xc3   : > { %421 = vst.msk [vmem:[%s744_s30 + $0x14] sm:$0xf] %vm415_vm1, %v412_v23 }
  0xc4   : > { %423 = vst.msk [vmem:[%s744_s30 + $0x1c] sm:$0xf] %vm415_vm1, %v414_v24 }
  0xc5 PF: > { %s13_s14 = sadd.s32 1, %s650_s14   ;;  %s775_s12 = smov %s646_s13 }
  0xc6   : > { %p10_p5 = scmp.ge.s32.totalorder %s13_s14, 4   ;;  %s776_s13 = smov %s778_s15 }
  0xc8   :  { %12 = sbr.rel (!%p10_p5) target bundleno = 2 (0x2), region = 68 }

// kernel: dgcnn_forward.9
= control target key start
LH: loop header
LB: loop body
LE: loop exit
PB: predicated region body
PF: predicated region fallthrough
CT: control target
= control target key end

     0   :  { %s672_s12 = smov 0   ;;  %s674_s13 = smov 0   ;;  %s771_s0 = inlined_call_operand.vmem [shape: bf16[2,64,64], index: 0, kind: input, shape index: {}, may-alias: {0,1}]   ;;  %s772_s1 = inlined_call_operand.vmem [shape: bf16[2,64,64], index: 1, kind: input, shape index: {}, may-alias: {0,1}]   ;;  %s773_s2 = inlined_call_operand.vmem [shape: f32[2,1,64], index: 2, kind: input, shape index: {}]   ;;  %s774_s3 = inlined_call_operand.vmem [shape: bf16[2,64,64], index: 3, kind: output, shape index: {}]  }
   0x1   :  { %s676_s14 = smov 0  }
   0x2 LB: > { %s25_s15 = sadd.s32 1, %s646_s13  ;;  %p536_p0 = scmp.ge.s32.totalorder %s650_s14, 1  ;;  %s650_s14 = sphi %s676_s14, %s13_s14   ;;  %s646_s13 = sphi %s674_s13, %s776_s13   ;;  %s642_s12 = sphi %s672_s12, %s775_s12  }
   0x3   : > { %p27_p1 = scmp.ge.s32.totalorder %s25_s15, 2  ;;  %p176_p2 = scmp.lt.s32.totalorder %s650_s14, 3 }
   0x5   : > { %s778_s15 = smov (%p27_p1, %s25_s15), 0  ;;  %p177_p3 = pnand %p536_p0, %p176_p2 }
   0x6   : > { %p217_p4 = scmp.lt.s32.totalorder (!%p177_p3), %s642_s12, 1 }
   0x7   : > { %180 = sbr.rel (%p177_p3) target bundleno = 197 (0xc5), region = 32 }
   0xc   : > { %s780_s12 = smov (!%p217_p4, %s642_s12), 1  ;;  %vm277_vm0 = vcmask 523264   ;;  %vm415_vm1 = vcmask 519168  }
   0xd   : > { %s693_s16 = sshll.u32 %s780_s12, 5  ;;  %s233_s19 = scalar_lea.vmem %s773_s2, %s780_s12 }
   0xe   : > { %s703_s22 = scalar_lea.vmem %s772_s1, %s693_s16  ;;  %s709_s25 = scalar_lea.vmem %s771_s0, %s693_s16  ;;  %v627_v51 = vld [vmem:[%s233_s19] ss:$0 sm:$0xff] }
   0xf   : > { %v571_v0 = vld [vmem:[%s703_s22 + $0x18] sm:$0xff]  ;;  %v573_v1 = vld [vmem:[%s709_s25] sm:$0xff]   ;;  %v588_v4 = vld [vmem:[%s709_s25 + $0x8] sm:$0xff]   ;;  %s744_s30 = scalar_lea.vmem %s774_s3, %s693_s16 }
  0x10   : > { %v356_v2 = vsel %vm277_vm0, %v571_v0, 0  ;;  %v574_v3 = vunpack.c.l.bf16 %v573_v1  ;;  %v589_v5 = vld [vmem:[%s709_s25 + $0x10] sm:$0xff]   ;;  %v578_v7 = vunpack.c.l.bf16 %v588_v4  ;;  %v575_v12 = vunpack.c.h.bf16 %v573_v1  ;;  %v569_v20 = vld [vmem:[%s703_s22 + $0x8] sm:$0xff]  ;;  %v590_v22 = vld [vmem:[%s709_s25 + $0x18] sm:$0xff]  }
  0x11   : > { %362 = vmatpush.bf16.xpose.msra.mxu0 %v356_v2  ;;  %591 = vmatpush.bf16.xpose.msra.mxu1 %v356_v2  ;;  %v570_v6 = vld [vmem:[%s703_s22 + $0x10] sm:$0xff]  ;;  %v582_v8 = vunpack.c.l.bf16 %v589_v5  ;;  %v579_v15 = vunpack.c.h.bf16 %v588_v4  ;;  %v583_v21 = vunpack.c.h.bf16 %v589_v5  ;;  %v350_v26 = vsel %vm277_vm0, %v569_v20, 0  ;;  %v568_v32 = vld [vmem:[%s703_s22] sm:$0xff] }
  0x12   : > { %592 = vmatpush.bf16.xpose.msra.mxu2 %v356_v2  ;;  %593 = vmatpush.bf16.xpose.msra.mxu3 %v356_v2  ;;  %v269_v9 = vmul.f32 %v574_v3, %v574_v3  ;;  %v271_v10 = vmul.f32 %v578_v7, %v578_v7  ;;  %v353_v11 = vsel %vm277_vm0, %v570_v6, 0  ;;  %v270_v17 = vmul.f32 %v575_v12, %v575_v12 }
  0x13   : > { %v273_v14 = vmul.f32 %v582_v8, %v582_v8  ;;  %v272_v19 = vmul.f32 %v579_v15, %v579_v15  ;;  %v274_v24 = vmul.f32 %v583_v21, %v583_v21  ;;  %v586_v27 = vunpack.c.l.bf16 %v590_v22 }
  0x14   : > { %v278_v13 = vsel %vm277_vm0, %v269_v9, 0.0  ;;  %v284_v16 = vsel %vm277_vm0, %v271_v10, 0.0  ;;  %v281_v23 = vsel %vm277_vm0, %v270_v17, 0.0  ;;  %v587_v28 = vunpack.c.h.bf16 %v590_v22 }
  0x15   : > { %279 = vadd.xlane.f32.xlu0 %v278_v13  ;;  %285 = vadd.xlane.f32.xlu1 %v284_v16  ;;  %v290_v18 = vsel %vm277_vm0, %v273_v14, 0.0  ;;  %v287_v25 = vsel %vm277_vm0, %v272_v19, 0.0  ;;  %v275_v29 = vmul.f32 %v586_v27, %v586_v27  ;;  %v293_v30 = vsel %vm277_vm0, %v274_v24, 0.0 }
  0x16   : > { %291 = vadd.xlane.f32.xlu2 %v290_v18  ;;  %v276_v31 = vmul.f32 %v587_v28, %v587_v28  ;;  %v347_v35 = vsel %vm277_vm0, %v568_v32, 0  ;;  %v302_v36 = vadd.f32 %v574_v3, %v574_v3  ;;  %v303_v37 = vadd.f32 %v575_v12, %v575_v12 }
  0x17   : > { %v296_v33 = vsel %vm277_vm0, %v275_v29, 0.0  ;;  %v304_v38 = vadd.f32 %v578_v7, %v578_v7  ;;  %v305_v39 = vadd.f32 %v579_v15, %v579_v15  ;;  %v306_v40 = vadd.f32 %v582_v8, %v582_v8 }
  0x18   : > { %v299_v34 = vsel %vm277_vm0, %v276_v31, 0.0  ;;  %v307_v41 = vadd.f32 %v583_v21, %v583_v21  ;;  %v308_v42 = vadd.f32 %v586_v27, %v586_v27  ;;  %v309_v43 = vadd.f32 %v587_v28, %v587_v28 }
  0x19   : > { %363 = vmatpush.bf16.xpose.msra.mxu0 %v353_v11  ;;  %594 = vmatpush.bf16.xpose.msra.mxu1 %v353_v11  ;;  %v310_v44 = vpack.c.bf16 %v303_v37, %v302_v36  ;;  %v311_v45 = vpack.c.bf16 %v305_v39, %v304_v38 }
  0x1a   : > { %595 = vmatpush.bf16.xpose.msra.mxu2 %v353_v11  ;;  %596 = vmatpush.bf16.xpose.msra.mxu3 %v353_v11  ;;  %v312_v46 = vpack.c.bf16 %v307_v41, %v306_v40  ;;  %v313_v47 = vpack.c.bf16 %v309_v43, %v308_v42 }
  0x1d   : > { %282 = vadd.xlane.f32.xlu0 %v281_v23  ;;  %288 = vadd.xlane.f32.xlu1 %v287_v25 }
  0x1e   : > { %294 = vadd.xlane.f32.xlu2 %v293_v30 }
  0x21   : > { %364 = vmatpush.bf16.xpose.msra.mxu0 %v350_v26  ;;  %597 = vmatpush.bf16.xpose.msra.mxu1 %v350_v26 }
  0x22   : > { %598 = vmatpush.bf16.xpose.msra.mxu2 %v350_v26  ;;  %599 = vmatpush.bf16.xpose.msra.mxu3 %v350_v26 }
  0x25   : > { %297 = vadd.xlane.f32.xlu0 %v296_v33  ;;  %300 = vadd.xlane.f32.xlu1 %v299_v34 }
  0x29   : > { %365 = vmatpush.bf16.xpose.msra.mxu0 %v347_v35  ;;  %600 = vmatpush.bf16.xpose.msra.mxu1 %v347_v35 }
  0x2a   : > { %601 = vmatpush.bf16.xpose.msra.mxu2 %v347_v35  ;;  %602 = vmatpush.bf16.xpose.msra.mxu3 %v347_v35 }
  0x30   : > { %559 = vmatmul.msk.bf16.vlgmr.msra.gmra.mxu0 %vm277_vm0, %v310_v44  ;;  %560 = vmatmul.msk.bf16.vlgmr.msra.gmra.mxu1 %vm277_vm0, %v311_v45 }
  0x31   : > { %561 = vmatmul.msk.bf16.vlgmr.msra.gmra.mxu2 %vm277_vm0, %v312_v46  ;;  %562 = vmatmul.msk.bf16.vlgmr.msra.gmra.mxu3 %vm277_vm0, %v313_v47 }
  0x88   : > { %v280_v48 = vpop.xlane.xlu0 %279  ;;  %v286_v49 = vpop.xlane.xlu1 %285 }
  0x89   : > { %v292_v58 = vpop.xlane.xlu2 %291 }
  0x90   : > { %v283_v50 = vpop.xlane.xlu0 %282  ;;  %v289_v59 = vpop.xlane.xlu1 %288 }
  0x91   : > { %v295_v15 = vpop.xlane.xlu2 %294 }
  0x98   : > { %v298_v62 = vpop.xlane.xlu0 %297  ;;  %v301_v16 = vpop.xlane.xlu1 %300 }
  0xad   : > { %v367_v52 = vpop.f32.mrf.mxu0  ;;  %v372_v53 = vpop.f32.mrf.mxu1 }
  0xae   : > { %v387_v54 = vsub.f32 %v367_v52, %v280_v48  ;;  %v389_v55 = vsub.f32 %v372_v53, %v286_v49 }
  0xb0   : > { %v399_v56 = vsub.f32 %v387_v54, %v627_v51  ;;  %v401_v57 = vsub.f32 %v389_v55, %v627_v51 }
  0xb2   : > { %v407_v60 = vpack.c.bf16 %v399_v56, %v399_v56  ;;  %v409_v61 = vpack.c.bf16 %v401_v57, %v401_v57 }
  0xb4   : > { %416 = vst.msk [vmem:[%s744_s30] sm:$0xf] %vm415_vm1, %v407_v60  ;;  %v377_v63 = vpop.f32.mrf.mxu2  ;;  %v382_v0 = vpop.f32.mrf.mxu3 }
  0xb5   : > { %418 = vst.msk [vmem:[%s744_s30 + $0x8] sm:$0xf] %vm415_vm1, %v409_v61  ;;  %v391_v1 = vsub.f32 %v377_v63, %v292_v58  ;;  %v393_v2 = vsub.f32 %v382_v0, %v298_v62  ;;  %v369_v3 = vpop.f32.mrf.mxu0  ;;  %v374_v4 = vpop.f32.mrf.mxu1 }
  0xb6   : > { %v388_v5 = vsub.f32 %v369_v3, %v283_v50  ;;  %v390_v6 = vsub.f32 %v374_v4, %v289_v59 }
  0xb7   : > { %v403_v7 = vsub.f32 %v391_v1, %v627_v51  ;;  %v405_v8 = vsub.f32 %v393_v2, %v627_v51 }
  0xb8   : > { %v400_v9 = vsub.f32 %v388_v5, %v627_v51  ;;  %v402_v10 = vsub.f32 %v390_v6, %v627_v51 }
  0xb9   : > { %v411_v11 = vpack.c.bf16 %v403_v7, %v403_v7  ;;  %v413_v12 = vpack.c.bf16 %v405_v8, %v405_v8 }
  0xba   : > { %v408_v13 = vpack.c.bf16 %v400_v9, %v400_v9  ;;  %v410_v14 = vpack.c.bf16 %v402_v10, %v402_v10 }
  0xbb   : > { %420 = vst.msk [vmem:[%s744_s30 + $0x10] sm:$0xf] %vm415_vm1, %v411_v11 }
  0xbc   : > { %422 = vst.msk [vmem:[%s744_s30 + $0x18] sm:$0xf] %vm415_vm1, %v413_v12  ;;  %v379_v17 = vpop.f32.mrf.mxu2  ;;  %v384_v18 = vpop.f32.mrf.mxu3 }
  0xbd   : > { %417 = vst.msk [vmem:[%s744_s30 + $0x4] sm:$0xf] %vm415_vm1, %v408_v13  ;;  %v392_v19 = vsub.f32 %v379_v17, %v295_v15  ;;  %v394_v20 = vsub.f32 %v384_v18, %v301_v16 }
  0xbe   : > { %419 = vst.msk [vmem:[%s744_s30 + $0xc] sm:$0xf] %vm415_vm1, %v410_v14 }
  0xbf   : > { %v404_v21 = vsub.f32 %v392_v19, %v627_v51  ;;  %v406_v22 = vsub.f32 %v394_v20, %v627_v51 }
  0xc1   : > { %v412_v23 = vpack.c.bf16 %v404_v21, %v404_v21  ;;  %v414_v24 = vpack.c.bf16 %v406_v22, %v406_v22 }
  0xc3   : > { %421 = vst.msk [vmem:[%s744_s30 + $0x14] sm:$0xf] %vm415_vm1, %v412_v23 }
  0xc4   : > { %423 = vst.msk [vmem:[%s744_s30 + $0x1c] sm:$0xf] %vm415_vm1, %v414_v24 }
  0xc5 PF: > { %s13_s14 = sadd.s32 1, %s650_s14   ;;  %s775_s12 = smov %s646_s13 }
  0xc6   : > { %p10_p5 = scmp.ge.s32.totalorder %s13_s14, 4   ;;  %s776_s13 = smov %s778_s15 }
  0xc8   :  { %12 = sbr.rel (!%p10_p5) target bundleno = 2 (0x2), region = 68 }

// kernel: dgcnn_forward.8
= control target key start
LH: loop header
LB: loop body
LE: loop exit
PB: predicated region body
PF: predicated region fallthrough
CT: control target
= control target key end

     0   :  { %s4689_s24 = smov 0   ;;  %s4691_s25 = smov 0   ;;  %s6203_s0 = inlined_call_operand.vmem [shape: bf16[2,20,64,3], index: 0, kind: input, shape index: {}]   ;;  %s6204_s1 = inlined_call_operand.vmem [shape: bf16[2,64,3], index: 1, kind: input, shape index: {}]   ;;  %s6205_s2 = inlined_call_operand.vmem [shape: bf16[3,64], index: 2, kind: input, shape index: {}]   ;;  %s6206_s3 = inlined_call_operand.vmem [shape: bf16[3,64], index: 3, kind: input, shape index: {}]   ;;  %s6207_s4 = inlined_call_operand.vmem [shape: f32[1,64], index: 4, kind: input, shape index: {}]   ;;  %s6208_s5 = inlined_call_operand.vmem [shape: bf16[64,64], index: 5, kind: input, shape index: {}]   ;;  %s6209_s6 = inlined_call_operand.vmem [shape: f32[1,64], index: 6, kind: input, shape index: {}]   ;;  %s6210_s7 = inlined_call_operand.vmem [shape: bf16[2,64,64], index: 7, kind: output, shape index: {}]  }
   0x1   :  { %s4693_s26 = smov 0  }
   0x2 LB: > { %s29_s27 = sadd.s32 1, %s4642_s25  ;;  %p3974_p0 = scmp.ge.s32.totalorder %s4646_s26, 1  ;;  %s4646_s26 = sphi %s4693_s26, %s17_s26   ;;  %s4642_s25 = sphi %s4691_s25, %s6212_s25   ;;  %s4638_s24 = sphi %s4689_s24, %s6211_s24  }
   0x3   : > { %p31_p1 = scmp.ge.s32.totalorder %s29_s27, 2  ;;  %p275_p2 = scmp.lt.s32.totalorder %s4646_s26, 3 }
   0x5   : > { %s6214_s27 = smov (%p31_p1, %s29_s27), 0  ;;  %p276_p3 = pnand %p3974_p0, %p275_p2 }
   0x6   : > { %p325_p4 = scmp.lt.s32.totalorder (!%p276_p3), %s4638_s24, 1 }
   0x7   : > { %279 = sbr.rel (%p276_p3) target bundleno = 1016 (0x3f8), region = 48 }
   0xc   : > { %v524_v0 = vld [vmem:[%s6206_s3] sm:$0x3]  ;;  %vm562_vm0 = vcmask 1040384   ;;  %vm563_vm1 = vcmask 1041408   ;;  %v4648_v1 = vmov 65535   ;;  %s6216_s24 = smov (!%p325_p4, %s4638_s24), 1 }
   0xd   : > { %v564_v2 = vsel %vm562_vm0, 4294967295, %v4648_v1  ;;  %v523_v3 = vld [vmem:[%s6205_s2] sm:$0x3]  ;;  %s4593_s9 = smul.u32 640, %s6216_s24  ;;  %s4498_s10 = sshll.u32 %s6216_s24, 5  ;;  %vm549_vm2 = vcmask 23552  }
   0xe   : > { %v565_v4 = vsel %vm563_vm1, %v564_v2, 0  ;;  %s342_s13 = scalar_lea.vmem %s6204_s1, %s4498_s10  ;;  %v4587_v32 = vld [vmem:[%s6208_s5 + $0x18] sm:$0xff]  ;;  %v4586_v34 = vld [vmem:[%s6208_s5 + $0x10] sm:$0xff]  ;;  %v4585_v36 = vld [vmem:[%s6208_s5 + $0x8] sm:$0xff]  ;;  %vm2406_vm11 = vcmask 523264   ;;  %s6104_s19 = scalar_lea.vmem %s6210_s7, %s4498_s10 }
   0xf   : > { %v567_v5 = vand.u32 %v565_v4, %v524_v0  ;;  %v1239_v6 = vand.u32 %v565_v4, %v523_v3  ;;  %s4725_s16 = scalar_lea.vmem %s6203_s0, %s4593_s9  ;;  %v4580_v7 = vld [vmem:[%s342_s13] sm:$0xff]  ;;  %v4581_v9 = vld [vmem:[%s342_s13 + $0x8] sm:$0xff]  ;;  %v4582_v11 = vld [vmem:[%s342_s13 + $0x10] sm:$0xff]  ;;  %4589 = vmatpush.bf16.msra.mxu3 %v4587_v32  ;;  %2651 = vmatpush.bf16.msra.mxu2 %v4587_v32 }
  0x10   : > { %v4538_v8 = vld [vmem:[%s4725_s16 + $0x130] sm:$0xff]  ;;  %v4539_v10 = vld [vmem:[%s4725_s16 + $0x138] sm:$0xff]  ;;  %v4540_v12 = vld [vmem:[%s4725_s16 + $0x140] sm:$0xff] }
  0x11   : > { %576 = vmatpush.bf16.msra.mxu0 %v567_v5  ;;  %4588 = vmatpush.bf16.msra.mxu1 %v1239_v6  ;;  %v4583_v13 = vld [vmem:[%s342_s13 + $0x18] sm:$0xff]  ;;  %v4541_v14 = vld [vmem:[%s4725_s16 + $0x148] sm:$0xff]  ;;  %v4500_v15 = vld [vmem:[%s4725_s16] sm:$0xff] }
  0x12   : > { %v4542_v16 = vld [vmem:[%s4725_s16 + $0x150] sm:$0xff]  ;;  %v4501_v17 = vld [vmem:[%s4725_s16 + $0x8] sm:$0xff]  ;;  %v4543_v18 = vld [vmem:[%s4725_s16 + $0x158] sm:$0xff] }
  0x13   : > { %v4502_v19 = vld [vmem:[%s4725_s16 + $0x10] sm:$0xff]  ;;  %v4544_v20 = vld [vmem:[%s4725_s16 + $0x160] sm:$0xff]  ;;  %v4503_v21 = vld [vmem:[%s4725_s16 + $0x18] sm:$0xff]  ;;  %4590 = vmatpush.bf16.msra.mxu3 %v4586_v34  ;;  %2652 = vmatpush.bf16.msra.mxu2 %v4586_v34 }
  0x14   : > { %3996 = vmatmul.msk.bf16.vlgmr.msra.gmra.mxu0 %vm549_vm2, %v4580_v7  ;;  %4358 = vmatmul.msk.bf16.vlgmr.msra.gmra.mxu1 %vm549_vm2, %v4538_v8  ;;  %v4545_v22 = vld [vmem:[%s4725_s16 + $0x168] sm:$0xff]  ;;  %v4504_v23 = vld [vmem:[%s4725_s16 + $0x20] sm:$0xff]  ;;  %v4546_v25 = vld [vmem:[%s4725_s16 + $0x170] sm:$0xff] }
  0x15   : > { %1248 = vmatpush.bf16.msrb.mxu0 %v1239_v6  ;;  %v4505_v29 = vld [vmem:[%s4725_s16 + $0x28] sm:$0xff]  ;;  %v4547_v31 = vld [vmem:[%s4725_s16 + $0x178] sm:$0xff]  ;;  %v4584_v38 = vld [vmem:[%s6208_s5] sm:$0xff] }
  0x16   : > { %v4506_v39 = vld [vmem:[%s4725_s16 + $0x30] sm:$0xff]  ;;  %v4619_v40 = vld [vmem:[%s6207_s4] ss:$0 sm:$0xff]  ;;  %v4507_v61 = vld [vmem:[%s4725_s16 + $0x38] sm:$0xff] }
  0x17   : > { %4591 = vmatpush.bf16.msra.mxu3 %v4585_v36  ;;  %2653 = vmatpush.bf16.msra.mxu2 %v4585_v36  ;;  %v4548_v42 = vld [vmem:[%s4725_s16 + $0x180] sm:$0xff]  ;;  %v4549_v1 = vld [vmem:[%s4725_s16 + $0x188] sm:$0xff] }
  0x1b   : > { %4592 = vmatpush.bf16.msra.mxu3 %v4584_v38  ;;  %2654 = vmatpush.bf16.msra.mxu2 %v4584_v38 }
  0x24   : > { %3997 = vmatmul.msk.bf16.gmra.mxu0 %vm549_vm2, %v4581_v9  ;;  %4359 = vmatmul.msk.bf16.gmra.mxu1 %vm549_vm2, %v4539_v10 }
  0x34   : > { %3998 = vmatmul.msk.bf16.gmra.mxu0 %vm549_vm2, %v4582_v11  ;;  %4360 = vmatmul.msk.bf16.gmra.mxu1 %vm549_vm2, %v4540_v12 }
  0x44   : > { %3999 = vmatmul.msk.bf16.gmra.mxu0 %vm549_vm2, %v4583_v13  ;;  %4361 = vmatmul.msk.bf16.gmra.mxu1 %vm549_vm2, %v4541_v14 }
  0x54   : > { %4320 = vmatmul.msk.bf16.vlgmr.msrb.gmra.mxu0 %vm549_vm2, %v4500_v15  ;;  %4362 = vmatmul.msk.bf16.gmra.mxu1 %vm549_vm2, %v4542_v16 }
  0x64   : > { %4321 = vmatmul.msk.bf16.gmra.mxu0 %vm549_vm2, %v4501_v17  ;;  %4363 = vmatmul.msk.bf16.gmra.mxu1 %vm549_vm2, %v4543_v18 }
  0x74   : > { %4322 = vmatmul.msk.bf16.gmra.mxu0 %vm549_vm2, %v4502_v19  ;;  %4364 = vmatmul.msk.bf16.gmra.mxu1 %vm549_vm2, %v4544_v20 }
  0x84   : > { %4323 = vmatmul.msk.bf16.gmra.mxu0 %vm549_vm2, %v4503_v21  ;;  %4365 = vmatmul.msk.bf16.gmra.mxu1 %vm549_vm2, %v4545_v22  ;;  %v4508_v21 = vld [vmem:[%s4725_s16 + $0x40] sm:$0xff] }
  0x91   : > { %v578_v24 = vpop.f32.mrf.mxu0  ;;  %v1440_v26 = vpop.f32.mrf.mxu1 }
  0x92   : > { %v4783_v45 = vadd.f32 %v4619_v40, %v578_v24 }
  0x94   : > { %4324 = vmatmul.msk.bf16.gmra.mxu0 %vm549_vm2, %v4504_v23  ;;  %4366 = vmatmul.msk.bf16.gmra.mxu1 %vm549_vm2, %v4546_v25  ;;  %v4550_v25 = vld [vmem:[%s4725_s16 + $0x190] sm:$0xff] }
  0x99   : > { %v580_v27 = vpop.f32.mrf.mxu0  ;;  %v1442_v28 = vpop.f32.mrf.mxu1 }
  0x9a   : > { %v4788_v48 = vadd.f32 %v4619_v40, %v580_v27 }
  0xa1   : > { %v583_v30 = vpop.f32.mrf.mxu0  ;;  %v1445_v33 = vpop.f32.mrf.mxu1 }
  0xa2   : > { %v4811_v5 = vadd.f32 %v4619_v40, %v583_v30 }
  0xa4   : > { %4325 = vmatmul.msk.bf16.gmra.mxu0 %vm549_vm2, %v4505_v29  ;;  %4367 = vmatmul.msk.bf16.gmra.mxu1 %vm549_vm2, %v4547_v31 }
  0xa9   : > { %v585_v35 = vpop.f32.mrf.mxu0  ;;  %v1447_v37 = vpop.f32.mrf.mxu1 }
  0xaa   : > { %v4816_v8 = vadd.f32 %v4619_v40, %v585_v35 }
  0xb1   : > { %v588_v41 = vpop.f32.mrf.mxu0  ;;  %v1450_v43 = vpop.f32.mrf.mxu1 }
  0xb2   : > { %v4780_v44 = vadd.f32 %v4619_v40, %v588_v41  ;;  %v1730_v46 = vadd.f32 %v1450_v43, %v4783_v45 }
  0xb4   : > { %4326 = vmatmul.msk.bf16.gmra.mxu0 %vm549_vm2, %v4506_v39  ;;  %4368 = vmatmul.msk.bf16.gmra.mxu1 %vm549_vm2, %v4548_v42  ;;  %v1726_v47 = vadd.f32 %v1440_v26, %v4780_v44  ;;  %v2050_v52 = vmul.f32 0.2, %v1730_v46  ;;  %vm1890_vm3 = vcmp.ge.f32.partialorder %v1730_v46, 0.0 }
  0xb6   : > { %v2046_v55 = vmul.f32 0.2, %v1726_v47  ;;  %vm1886_vm5 = vcmp.ge.f32.partialorder %v1726_v47, 0.0  ;;  %v4794_v58 = vsel %vm1890_vm3, %v1730_v46, %v2050_v52  ;;  %v4509_v46 = vld [vmem:[%s4725_s16 + $0x48] sm:$0xff] }
  0xb8   : > { %v4801_v62 = vsel %vm1886_vm5, %v1726_v47, %v2046_v55 }
  0xb9   : > { %v590_v49 = vpop.f32.mrf.mxu0  ;;  %v1452_v51 = vpop.f32.mrf.mxu1 }
  0xba   : > { %v4790_v50 = vadd.f32 %v4619_v40, %v590_v49  ;;  %v1731_v53 = vadd.f32 %v1452_v51, %v4788_v48  ;;  %v4551_v49 = vld [vmem:[%s4725_s16 + $0x198] sm:$0xff] }
  0xbc   : > { %v1727_v54 = vadd.f32 %v1442_v28, %v4790_v50  ;;  %vm1891_vm4 = vcmp.ge.f32.partialorder %v1731_v53, 0.0  ;;  %v2051_v56 = vmul.f32 0.2, %v1731_v53 }
  0xbe   : > { %vm1887_vm6 = vcmp.ge.f32.partialorder %v1727_v54, 0.0  ;;  %v2047_v57 = vmul.f32 0.2, %v1727_v54  ;;  %v4796_v59 = vsel %vm1891_vm4, %v1731_v53, %v2051_v56 }
  0xbf   : > { %v2339_v60 = vpack.c.bf16 %v4796_v59, %v4794_v58 }
  0xc0   : > { %v4803_v63 = vsel %vm1887_vm6, %v1727_v54, %v2047_v57 }
  0xc1   : > { %v593_v0 = vpop.f32.mrf.mxu0  ;;  %v2337_v2 = vpack.c.bf16 %v4803_v63, %v4801_v62  ;;  %v1455_v3 = vpop.f32.mrf.mxu1 }
  0xc2   : > { %v4808_v4 = vadd.f32 %v4619_v40, %v593_v0  ;;  %v1732_v6 = vadd.f32 %v1455_v3, %v4811_v5 }
  0xc4   : > { %4327 = vmatmul.msk.bf16.gmra.mxu0 %vm549_vm2, %v4507_v61  ;;  %4369 = vmatmul.msk.bf16.gmra.mxu1 %vm549_vm2, %v4549_v1  ;;  %v1728_v7 = vadd.f32 %v1445_v33, %v4808_v4  ;;  %v2052_v12 = vmul.f32 0.2, %v1732_v6  ;;  %vm1892_vm7 = vcmp.ge.f32.partialorder %v1732_v6, 0.0 }
  0xc6   : > { %v2048_v15 = vmul.f32 0.2, %v1728_v7  ;;  %vm1888_vm9 = vcmp.ge.f32.partialorder %v1728_v7, 0.0  ;;  %v2212_v18 = vsel %vm1892_vm7, %v1732_v6, %v2052_v12 }
  0xc8   : > { %v4823_v22 = vsel %vm1888_vm9, %v1728_v7, %v2048_v15 }
  0xc9   : > { %v595_v9 = vpop.f32.mrf.mxu0  ;;  %v1457_v11 = vpop.f32.mrf.mxu1 }
  0xca   : > { %v4818_v10 = vadd.f32 %v4619_v40, %v595_v9  ;;  %v1733_v13 = vadd.f32 %v1457_v11, %v4816_v8 }
  0xcc   : > { %v1729_v14 = vadd.f32 %v1447_v37, %v4818_v10  ;;  %vm1893_vm8 = vcmp.ge.f32.partialorder %v1733_v13, 0.0  ;;  %v2053_v16 = vmul.f32 0.2, %v1733_v13 }
  0xce   : > { %vm1889_vm10 = vcmp.ge.f32.partialorder %v1729_v14, 0.0  ;;  %v2049_v17 = vmul.f32 0.2, %v1729_v14  ;;  %v2213_v19 = vsel %vm1893_vm8, %v1733_v13, %v2053_v16  ;;  %v4552_v16 = vld [vmem:[%s4725_s16 + $0x1a0] sm:$0xff] }
  0xcf   : > { %v2340_v20 = vpack.c.bf16 %v2213_v19, %v2212_v18 }
  0xd0   : > { %v4825_v23 = vsel %vm1889_vm10, %v1729_v14, %v2049_v17  ;;  %v4510_v14 = vld [vmem:[%s4725_s16 + $0x50] sm:$0xff] }
  0xd1   : > { %v1250_v24 = vpop.f32.mrf.mxu0  ;;  %v2338_v26 = vpack.c.bf16 %v4825_v23, %v4823_v22  ;;  %v1460_v27 = vpop.f32.mrf.mxu1  ;;  %4457 = vmatmul.msk.bf16.vlgmr.msra.gmra.mxu3 %vm2406_vm11, %v2340_v20 }
  0xd2   : > { %v1650_v28 = vadd.f32 %v1250_v24, %v4783_v45  ;;  %v1734_v29 = vadd.f32 %v1460_v27, %v4780_v44 }
  0xd4   : > { %4328 = vmatmul.msk.bf16.gmra.mxu0 %vm549_vm2, %v4508_v21  ;;  %4370 = vmatmul.msk.bf16.gmra.mxu1 %vm549_vm2, %v4550_v25  ;;  %v1970_v31 = vmul.f32 0.2, %v1650_v28  ;;  %vm1810_vm12 = vcmp.ge.f32.partialorder %v1650_v28, 0.0  ;;  %v2054_v34 = vmul.f32 0.2, %v1734_v29  ;;  %vm1894_vm13 = vcmp.ge.f32.partialorder %v1734_v29, 0.0 }
  0xd6   : > { %v2130_v38 = vsel %vm1810_vm12, %v1650_v28, %v1970_v31  ;;  %v2214_v41 = vsel %vm1894_vm13, %v1734_v29, %v2054_v34 }
  0xd9   : > { %v1252_v30 = vpop.f32.mrf.mxu0  ;;  %v1462_v33 = vpop.f32.mrf.mxu1 }
  0xda   : > { %v1651_v32 = vadd.f32 %v1252_v30, %v4788_v48  ;;  %v1735_v35 = vadd.f32 %v1462_v33, %v4790_v50 }
  0xdc   : > { %vm1811_vm14 = vcmp.ge.f32.partialorder %v1651_v32, 0.0  ;;  %v1971_v36 = vmul.f32 0.2, %v1651_v32  ;;  %vm1895_vm15 = vcmp.ge.f32.partialorder %v1735_v35, 0.0  ;;  %v2055_v37 = vmul.f32 0.2, %v1735_v35 }
  0xde   : > { %v2131_v39 = vsel %vm1811_vm14, %v1651_v32, %v1971_v36  ;;  %v2215_v42 = vsel %vm1895_vm15, %v1735_v35, %v2055_v37  ;;  %v4511_v37 = vld [vmem:[%s4725_s16 + $0x58] sm:$0xff] }
  0xdf   : > { %v2299_v40 = vpack.c.bf16 %v2131_v39, %v2130_v38  ;;  %v2341_v43 = vpack.c.bf16 %v2215_v42, %v2214_v41  ;;  %v4553_v39 = vld [vmem:[%s4725_s16 + $0x1a8] sm:$0xff] }
  0xe1   : > { %v1255_v47 = vpop.f32.mrf.mxu0  ;;  %4416 = vmatmul.msk.bf16.vlgmr.msra.gmra.mxu2 %vm2406_vm11, %v2299_v40  ;;  %v1465_v51 = vpop.f32.mrf.mxu1  ;;  %4458 = vmatmul.msk.bf16.gmra.mxu3 %vm2406_vm11, %v2341_v43 }
  0xe2   : > { %v1652_v52 = vadd.f32 %v1255_v47, %v4811_v5  ;;  %v1736_v53 = vadd.f32 %v1465_v51, %v4808_v4 }
  0xe4   : > { %4329 = vmatmul.msk.bf16.gmra.mxu0 %vm549_vm2, %v4509_v46  ;;  %4371 = vmatmul.msk.bf16.gmra.mxu1 %vm549_vm2, %v4551_v49  ;;  %v1972_v55 = vmul.f32 0.2, %v1652_v52  ;;  %vm1812_vm0 = vcmp.ge.f32.partialorder %v1652_v52, 0.0  ;;  %v2056_v61 = vmul.f32 0.2, %v1736_v53  ;;  %vm1896_vm1 = vcmp.ge.f32.partialorder %v1736_v53, 0.0 }
  0xe6   : > { %v2132_v6 = vsel %vm1812_vm0, %v1652_v52, %v1972_v55  ;;  %v2216_v11 = vsel %vm1896_vm1, %v1736_v53, %v2056_v61 }
  0xe9   : > { %v1257_v54 = vpop.f32.mrf.mxu0  ;;  %v1467_v57 = vpop.f32.mrf.mxu1 }
  0xea   : > { %v1653_v56 = vadd.f32 %v1257_v54, %v4816_v8  ;;  %v1737_v0 = vadd.f32 %v1467_v57, %v4818_v10 }
  0xec   : > { %vm1813_vm3 = vcmp.ge.f32.partialorder %v1653_v56, 0.0  ;;  %v1973_v1 = vmul.f32 0.2, %v1653_v56  ;;  %vm1897_vm4 = vcmp.ge.f32.partialorder %v1737_v0, 0.0  ;;  %v2057_v3 = vmul.f32 0.2, %v1737_v0 }
  0xee   : > { %v2133_v7 = vsel %vm1813_vm3, %v1653_v56, %v1973_v1  ;;  %v2217_v12 = vsel %vm1897_vm4, %v1737_v0, %v2057_v3  ;;  %v4512_v3 = vld [vmem:[%s4725_s16 + $0x60] sm:$0xff] }
  0xef   : > { %v2300_v9 = vpack.c.bf16 %v2133_v7, %v2132_v6  ;;  %v2342_v13 = vpack.c.bf16 %v2217_v12, %v2216_v11  ;;  %v4554_v7 = vld [vmem:[%s4725_s16 + $0x1b0] sm:$0xff] }
  0xf1   : > { %v1260_v15 = vpop.f32.mrf.mxu0  ;;  %4417 = vmatmul.msk.bf16.gmra.mxu2 %vm2406_vm11, %v2300_v9  ;;  %v1470_v17 = vpop.f32.mrf.mxu1  ;;  %4459 = vmatmul.msk.bf16.gmra.mxu3 %vm2406_vm11, %v2342_v13 }
  0xf2   : > { %v1654_v18 = vadd.f32 %v1260_v15, %v4780_v44  ;;  %v1738_v19 = vadd.f32 %v1470_v17, %v4783_v45 }
  0xf4   : > { %4330 = vmatmul.msk.bf16.gmra.mxu0 %vm549_vm2, %v4510_v14  ;;  %4372 = vmatmul.msk.bf16.gmra.mxu1 %vm549_vm2, %v4552_v16  ;;  %v1974_v21 = vmul.f32 0.2, %v1654_v18  ;;  %vm1814_vm5 = vcmp.ge.f32.partialorder %v1654_v18, 0.0  ;;  %v2058_v27 = vmul.f32 0.2, %v1738_v19  ;;  %vm1898_vm6 = vcmp.ge.f32.partialorder %v1738_v19, 0.0 }
  0xf6   : > { %v2134_v31 = vsel %vm1814_vm5, %v1654_v18, %v1974_v21  ;;  %v2218_v34 = vsel %vm1898_vm6, %v1738_v19, %v2058_v27 }
  0xf9   : > { %v1262_v20 = vpop.f32.mrf.mxu0  ;;  %v1472_v25 = vpop.f32.mrf.mxu1 }
  0xfa   : > { %v1655_v24 = vadd.f32 %v1262_v20, %v4790_v50  ;;  %v1739_v28 = vadd.f32 %v1472_v25, %v4788_v48 }
  0xfc   : > { %vm1815_vm7 = vcmp.ge.f32.partialorder %v1655_v24, 0.0  ;;  %v1975_v29 = vmul.f32 0.2, %v1655_v24  ;;  %vm1899_vm8 = vcmp.ge.f32.partialorder %v1739_v28, 0.0  ;;  %v2059_v30 = vmul.f32 0.2, %v1739_v28 }
  0xfe   : > { %v2135_v32 = vsel %vm1815_vm7, %v1655_v24, %v1975_v29  ;;  %v2219_v35 = vsel %vm1899_vm8, %v1739_v28, %v2059_v30  ;;  %v4513_v30 = vld [vmem:[%s4725_s16 + $0x68] sm:$0xff] }
  0xff   : > { %v2301_v33 = vpack.c.bf16 %v2135_v32, %v2134_v31  ;;  %v2343_v36 = vpack.c.bf16 %v2219_v35, %v2218_v34  ;;  %v4555_v32 = vld [vmem:[%s4725_s16 + $0x1b8] sm:$0xff] }
 0x101   : > { %v1265_v38 = vpop.f32.mrf.mxu0  ;;  %4418 = vmatmul.msk.bf16.gmra.mxu2 %vm2406_vm11, %v2301_v33  ;;  %v1475_v40 = vpop.f32.mrf.mxu1  ;;  %4460 = vmatmul.msk.bf16.gmra.mxu3 %vm2406_vm11, %v2343_v36 }
 0x102   : > { %v1656_v41 = vadd.f32 %v1265_v38, %v4808_v4  ;;  %v1740_v42 = vadd.f32 %v1475_v40, %v4811_v5 }
 0x104   : > { %4331 = vmatmul.msk.bf16.gmra.mxu0 %vm549_vm2, %v4511_v37  ;;  %4373 = vmatmul.msk.bf16.gmra.mxu1 %vm549_vm2, %v4553_v39  ;;  %v1976_v46 = vmul.f32 0.2, %v1656_v41  ;;  %vm1816_vm9 = vcmp.ge.f32.partialorder %v1656_v41, 0.0  ;;  %v2060_v51 = vmul.f32 0.2, %v1740_v42  ;;  %vm1900_vm10 = vcmp.ge.f32.partialorder %v1740_v42, 0.0 }
 0x106   : > { %v2136_v55 = vsel %vm1816_vm9, %v1656_v41, %v1976_v46  ;;  %v2220_v61 = vsel %vm1900_vm10, %v1740_v42, %v2060_v51 }
 0x109   : > { %v1267_v43 = vpop.f32.mrf.mxu0  ;;  %v1477_v49 = vpop.f32.mrf.mxu1 }
 0x10a   : > { %v1657_v47 = vadd.f32 %v1267_v43, %v4818_v10  ;;  %v1741_v52 = vadd.f32 %v1477_v49, %v4816_v8 }
 0x10c   : > { %vm1817_vm12 = vcmp.ge.f32.partialorder %v1657_v47, 0.0  ;;  %v1977_v53 = vmul.f32 0.2, %v1657_v47  ;;  %vm1901_vm13 = vcmp.ge.f32.partialorder %v1741_v52, 0.0  ;;  %v2061_v54 = vmul.f32 0.2, %v1741_v52 }
 0x10e   : > { %v2137_v56 = vsel %vm1817_vm12, %v1657_v47, %v1977_v53  ;;  %v2221_v0 = vsel %vm1901_vm13, %v1741_v52, %v2061_v54  ;;  %v4514_v54 = vld [vmem:[%s4725_s16 + $0x70] sm:$0xff] }
 0x10f   : > { %v2302_v57 = vpack.c.bf16 %v2137_v56, %v2136_v55  ;;  %v2344_v1 = vpack.c.bf16 %v2221_v0, %v2220_v61  ;;  %v4556_v56 = vld [vmem:[%s4725_s16 + $0x1c0] sm:$0xff] }
 0x111   : > { %v1270_v6 = vpop.f32.mrf.mxu0  ;;  %4419 = vmatmul.msk.bf16.gmra.mxu2 %vm2406_vm11, %v2302_v57  ;;  %v1480_v9 = vpop.f32.mrf.mxu1  ;;  %4461 = vmatmul.msk.bf16.gmra.mxu3 %vm2406_vm11, %v2344_v1 }
 0x112   : > { %v1658_v11 = vadd.f32 %v1270_v6, %v4783_v45  ;;  %v1742_v12 = vadd.f32 %v1480_v9, %v4780_v44 }
 0x114   : > { %4332 = vmatmul.msk.bf16.gmra.mxu0 %vm549_vm2, %v4512_v3  ;;  %4374 = vmatmul.msk.bf16.gmra.mxu1 %vm549_vm2, %v4554_v7  ;;  %v1978_v14 = vmul.f32 0.2, %v1658_v11  ;;  %vm1818_vm14 = vcmp.ge.f32.partialorder %v1658_v11, 0.0  ;;  %v2062_v17 = vmul.f32 0.2, %v1742_v12  ;;  %vm1902_vm15 = vcmp.ge.f32.partialorder %v1742_v12, 0.0 }
 0x116   : > { %v2138_v21 = vsel %vm1818_vm14, %v1658_v11, %v1978_v14  ;;  %v2222_v27 = vsel %vm1902_vm15, %v1742_v12, %v2062_v17 }
 0x119   : > { %v1272_v13 = vpop.f32.mrf.mxu0  ;;  %v1482_v16 = vpop.f32.mrf.mxu1 }
 0x11a   : > { %v1659_v15 = vadd.f32 %v1272_v13, %v4788_v48  ;;  %v1743_v18 = vadd.f32 %v1482_v16, %v4790_v50 }
 0x11c   : > { %vm1819_vm0 = vcmp.ge.f32.partialorder %v1659_v15, 0.0  ;;  %v1979_v19 = vmul.f32 0.2, %v1659_v15  ;;  %vm1903_vm1 = vcmp.ge.f32.partialorder %v1743_v18, 0.0  ;;  %v2063_v20 = vmul.f32 0.2, %v1743_v18 }
 0x11e   : > { %v2139_v24 = vsel %vm1819_vm0, %v1659_v15, %v1979_v19  ;;  %v2223_v28 = vsel %vm1903_vm1, %v1743_v18, %v2063_v20  ;;  %v4515_v20 = vld [vmem:[%s4725_s16 + $0x78] sm:$0xff] }
 0x11f   : > { %v2303_v25 = vpack.c.bf16 %v2139_v24, %v2138_v21  ;;  %v2345_v29 = vpack.c.bf16 %v2223_v28, %v2222_v27  ;;  %v4557_v24 = vld [vmem:[%s4725_s16 + $0x1c8] sm:$0xff] }
 0x121   : > { %v1275_v31 = vpop.f32.mrf.mxu0  ;;  %4420 = vmatmul.msk.bf16.gmra.mxu2 %vm2406_vm11, %v2303_v25  ;;  %v1485_v33 = vpop.f32.mrf.mxu1  ;;  %4462 = vmatmul.msk.bf16.gmra.mxu3 %vm2406_vm11, %v2345_v29 }
 0x122   : > { %v1660_v34 = vadd.f32 %v1275_v31, %v4811_v5  ;;  %v1744_v35 = vadd.f32 %v1485_v33, %v4808_v4 }
 0x124   : > { %4333 = vmatmul.msk.bf16.gmra.mxu0 %vm549_vm2, %v4513_v30  ;;  %4375 = vmatmul.msk.bf16.gmra.mxu1 %vm549_vm2, %v4555_v32  ;;  %v1980_v37 = vmul.f32 0.2, %v1660_v34  ;;  %vm1820_vm3 = vcmp.ge.f32.partialorder %v1660_v34, 0.0  ;;  %v2064_v40 = vmul.f32 0.2, %v1744_v35  ;;  %vm1904_vm4 = vcmp.ge.f32.partialorder %v1744_v35, 0.0 }
 0x126   : > { %v2140_v46 = vsel %vm1820_vm3, %v1660_v34, %v1980_v37  ;;  %v2224_v51 = vsel %vm1904_vm4, %v1744_v35, %v2064_v40 }
 0x129   : > { %v1277_v36 = vpop.f32.mrf.mxu0  ;;  %v1487_v39 = vpop.f32.mrf.mxu1 }
 0x12a   : > { %v1661_v38 = vadd.f32 %v1277_v36, %v4816_v8  ;;  %v1745_v41 = vadd.f32 %v1487_v39, %v4818_v10 }
 0x12c   : > { %vm1821_vm5 = vcmp.ge.f32.partialorder %v1661_v38, 0.0  ;;  %v1981_v42 = vmul.f32 0.2, %v1661_v38  ;;  %vm1905_vm6 = vcmp.ge.f32.partialorder %v1745_v41, 0.0  ;;  %v2065_v43 = vmul.f32 0.2, %v1745_v41 }
 0x12e   : > { %v2141_v47 = vsel %vm1821_vm5, %v1661_v38, %v1981_v42  ;;  %v2225_v52 = vsel %vm1905_vm6, %v1745_v41, %v2065_v43  ;;  %v4516_v43 = vld [vmem:[%s4725_s16 + $0x80] sm:$0xff] }
 0x12f   : > { %v2304_v49 = vpack.c.bf16 %v2141_v47, %v2140_v46  ;;  %v2346_v53 = vpack.c.bf16 %v2225_v52, %v2224_v51  ;;  %v4558_v47 = vld [vmem:[%s4725_s16 + $0x1d0] sm:$0xff] }
 0x131   : > { %v1280_v55 = vpop.f32.mrf.mxu0  ;;  %4421 = vmatmul.msk.bf16.gmra.mxu2 %vm2406_vm11, %v2304_v49  ;;  %v1490_v57 = vpop.f32.mrf.mxu1  ;;  %4463 = vmatmul.msk.bf16.gmra.mxu3 %vm2406_vm11, %v2346_v53 }
 0x132   : > { %v1662_v61 = vadd.f32 %v1280_v55, %v4780_v44  ;;  %v1746_v0 = vadd.f32 %v1490_v57, %v4783_v45 }
 0x134   : > { %4334 = vmatmul.msk.bf16.gmra.mxu0 %vm549_vm2, %v4514_v54  ;;  %4376 = vmatmul.msk.bf16.gmra.mxu1 %vm549_vm2, %v4556_v56  ;;  %v1982_v3 = vmul.f32 0.2, %v1662_v61  ;;  %vm1822_vm7 = vcmp.ge.f32.partialorder %v1662_v61, 0.0  ;;  %v2066_v9 = vmul.f32 0.2, %v1746_v0  ;;  %vm1906_vm8 = vcmp.ge.f32.partialorder %v1746_v0, 0.0 }
 0x136   : > { %v2142_v14 = vsel %vm1822_vm7, %v1662_v61, %v1982_v3  ;;  %v2226_v17 = vsel %vm1906_vm8, %v1746_v0, %v2066_v9 }
 0x139   : > { %v1282_v1 = vpop.f32.mrf.mxu0  ;;  %v1492_v7 = vpop.f32.mrf.mxu1 }
 0x13a   : > { %v1663_v6 = vadd.f32 %v1282_v1, %v4790_v50  ;;  %v1747_v11 = vadd.f32 %v1492_v7, %v4788_v48 }
 0x13c   : > { %vm1823_vm9 = vcmp.ge.f32.partialorder %v1663_v6, 0.0  ;;  %v1983_v12 = vmul.f32 0.2, %v1663_v6  ;;  %vm1907_vm10 = vcmp.ge.f32.partialorder %v1747_v11, 0.0  ;;  %v2067_v13 = vmul.f32 0.2, %v1747_v11 }
 0x13e   : > { %v2143_v15 = vsel %vm1823_vm9, %v1663_v6, %v1983_v12  ;;  %v2227_v18 = vsel %vm1907_vm10, %v1747_v11, %v2067_v13 }
 0x13f   : > { %v2305_v16 = vpack.c.bf16 %v2143_v15, %v2142_v14  ;;  %v2347_v19 = vpack.c.bf16 %v2227_v18, %v2226_v17  ;;  %v4517_v15 = vld [vmem:[%s4725_s16 + $0x88] sm:$0xff]  ;;  %v4559_v17 = vld [vmem:[%s4725_s16 + $0x1d8] sm:$0xff] }
 0x141   : > { %v1285_v21 = vpop.f32.mrf.mxu0  ;;  %4422 = vmatmul.msk.bf16.gmra.mxu2 %vm2406_vm11, %v2305_v16  ;;  %v1495_v25 = vpop.f32.mrf.mxu1  ;;  %4464 = vmatmul.msk.bf16.gmra.mxu3 %vm2406_vm11, %v2347_v19 }
 0x142   : > { %v1664_v27 = vadd.f32 %v1285_v21, %v4808_v4  ;;  %v1748_v28 = vadd.f32 %v1495_v25, %v4811_v5  ;;  %v4928_v25 = vld [vmem:[%s6209_s6] ss:$0 sm:$0xff] }
 0x144   : > { %4335 = vmatmul.msk.bf16.gmra.mxu0 %vm549_vm2, %v4515_v20  ;;  %4377 = vmatmul.msk.bf16.gmra.mxu1 %vm549_vm2, %v4557_v24  ;;  %v1984_v30 = vmul.f32 0.2, %v1664_v27  ;;  %vm1824_vm12 = vcmp.ge.f32.partialorder %v1664_v27, 0.0  ;;  %v2068_v33 = vmul.f32 0.2, %v1748_v28  ;;  %vm1908_vm13 = vcmp.ge.f32.partialorder %v1748_v28, 0.0 }
 0x146   : > { %v2144_v37 = vsel %vm1824_vm12, %v1664_v27, %v1984_v30  ;;  %v2228_v40 = vsel %vm1908_vm13, %v1748_v28, %v2068_v33 }
 0x149   : > { %v1287_v29 = vpop.f32.mrf.mxu0  ;;  %v1497_v32 = vpop.f32.mrf.mxu1 }
 0x14a   : > { %v1665_v31 = vadd.f32 %v1287_v29, %v4818_v10  ;;  %v1749_v34 = vadd.f32 %v1497_v32, %v4816_v8 }
 0x14c   : > { %vm1825_vm14 = vcmp.ge.f32.partialorder %v1665_v31, 0.0  ;;  %v1985_v35 = vmul.f32 0.2, %v1665_v31  ;;  %vm1909_vm15 = vcmp.ge.f32.partialorder %v1749_v34, 0.0  ;;  %v2069_v36 = vmul.f32 0.2, %v1749_v34 }
 0x14e   : > { %v2145_v38 = vsel %vm1825_vm14, %v1665_v31, %v1985_v35  ;;  %v2229_v41 = vsel %vm1909_vm15, %v1749_v34, %v2069_v36 }
 0x14f   : > { %v2306_v39 = vpack.c.bf16 %v2145_v38, %v2144_v37  ;;  %v2348_v42 = vpack.c.bf16 %v2229_v41, %v2228_v40 }
 0x151   : > { %v1290_v46 = vpop.f32.mrf.mxu0  ;;  %4423 = vmatmul.msk.bf16.gmra.mxu2 %vm2406_vm11, %v2306_v39  ;;  %v1500_v49 = vpop.f32.mrf.mxu1  ;;  %4465 = vmatmul.msk.bf16.gmra.mxu3 %vm2406_vm11, %v2348_v42 }
 0x152   : > { %v1666_v52 = vadd.f32 %v1290_v46, %v4783_v45  ;;  %v1750_v53 = vadd.f32 %v1500_v49, %v4780_v44  ;;  %v4518_v46 = vld [vmem:[%s4725_s16 + $0x90] sm:$0xff] }
 0x154   : > { %4336 = vmatmul.msk.bf16.gmra.mxu0 %vm549_vm2, %v4516_v43  ;;  %4378 = vmatmul.msk.bf16.gmra.mxu1 %vm549_vm2, %v4558_v47  ;;  %v2861_v51 = vpop.f32.mrf.mxu3  ;;  %v1986_v55 = vmul.f32 0.2, %v1666_v52  ;;  %vm1826_vm0 = vcmp.ge.f32.partialorder %v1666_v52, 0.0  ;;  %v2070_v61 = vmul.f32 0.2, %v1750_v53  ;;  %vm1910_vm1 = vcmp.ge.f32.partialorder %v1750_v53, 0.0 }
 0x155   : > { %v2862_v35 = vadd.f32 %v4928_v25, %v2861_v51 }
 0x156   : > { %v2146_v7 = vsel %vm1826_vm0, %v1666_v52, %v1986_v55  ;;  %v2230_v12 = vsel %vm1910_vm1, %v1750_v53, %v2070_v61  ;;  %v4560_v52 = vld [vmem:[%s4725_s16 + $0x1e0] sm:$0xff] }
 0x157   : > { %v3298_v47 = vmul.f32 0.2, %v2862_v35  ;;  %vm3138_vm9 = vcmp.ge.f32.partialorder %v2862_v35, 0.0 }
 0x159   : > { %v1292_v54 = vpop.f32.mrf.mxu0  ;;  %v1502_v57 = vpop.f32.mrf.mxu1 }
 0x15a   : > { %v1667_v56 = vadd.f32 %v1292_v54, %v4788_v48  ;;  %v1751_v0 = vadd.f32 %v1502_v57, %v4790_v50  ;;  %v3458_v54 = vsel %vm3138_vm9, %v2862_v35, %v3298_v47 }
 0x15c   : > { %vm1827_vm3 = vcmp.ge.f32.partialorder %v1667_v56, 0.0  ;;  %v1987_v1 = vmul.f32 0.2, %v1667_v56  ;;  %vm1911_vm4 = vcmp.ge.f32.partialorder %v1751_v0, 0.0  ;;  %v2071_v3 = vmul.f32 0.2, %v1751_v0  ;;  %v2863_v6 = vpop.f32.mrf.mxu3 }
 0x15d   : > { %v2864_v55 = vadd.f32 %v4928_v25, %v2863_v6 }
 0x15e   : > { %v2147_v9 = vsel %vm1827_vm3, %v1667_v56, %v1987_v1  ;;  %v2231_v13 = vsel %vm1911_vm4, %v1751_v0, %v2071_v3  ;;  %v4950_v3 = vsel %vm2406_vm11, %v3458_v54, -inf }
 0x15f   : > { %v2307_v11 = vpack.c.bf16 %v2147_v9, %v2146_v7  ;;  %v2349_v14 = vpack.c.bf16 %v2231_v13, %v2230_v12  ;;  %vm3139_vm12 = vcmp.ge.f32.partialorder %v2864_v55, 0.0  ;;  %v3299_v7 = vmul.f32 0.2, %v2864_v55 }
 0x161   : > { %v1295_v16 = vpop.f32.mrf.mxu0  ;;  %4424 = vmatmul.msk.bf16.gmra.mxu2 %vm2406_vm11, %v2307_v11  ;;  %v1505_v18 = vpop.f32.mrf.mxu1  ;;  %4466 = vmatmul.msk.bf16.gmra.mxu3 %vm2406_vm11, %v2349_v14 }
 0x162   : > { %v1668_v21 = vadd.f32 %v1295_v16, %v4811_v5  ;;  %v1752_v24 = vadd.f32 %v1505_v18, %v4808_v4 }
 0x164   : > { %4337 = vmatmul.msk.bf16.gmra.mxu0 %vm549_vm2, %v4517_v15  ;;  %v2656_v19 = vpop.f32.mrf.mxu2  ;;  %4379 = vmatmul.msk.bf16.gmra.mxu1 %vm549_vm2, %v4559_v17  ;;  %v2866_v20 = vpop.f32.mrf.mxu3  ;;  %v1988_v28 = vmul.f32 0.2, %v1668_v21  ;;  %vm1828_vm5 = vcmp.ge.f32.partialorder %v1668_v21, 0.0  ;;  %v2072_v31 = vmul.f32 0.2, %v1752_v24  ;;  %vm1912_vm6 = vcmp.ge.f32.partialorder %v1752_v24, 0.0 }
 0x165   : > { %v2657_v9 = vadd.f32 %v4928_v25, %v2656_v19 }
 0x166   : > { %v2148_v38 = vsel %vm1828_vm5, %v1668_v21, %v1988_v28  ;;  %v2232_v41 = vsel %vm1912_vm6, %v1752_v24, %v2072_v31  ;;  %v2867_v21 = vadd.f32 %v4928_v25, %v2866_v20 }
 0x167   : > { %v3216_v31 = vmul.f32 0.2, %v2657_v9  ;;  %vm3056_vm3 = vcmp.ge.f32.partialorder %v2657_v9, 0.0 }
 0x168   : > { %vm3140_vm4 = vcmp.ge.f32.partialorder %v2867_v21, 0.0 }
 0x169   : > { %v1297_v27 = vpop.f32.mrf.mxu0  ;;  %v1507_v30 = vpop.f32.mrf.mxu1 }
 0x16a   : > { %v1669_v29 = vadd.f32 %v1297_v27, %v4816_v8  ;;  %v1753_v32 = vadd.f32 %v1507_v30, %v4818_v10  ;;  %v3459_v27 = vsel %vm3139_vm12, %v2864_v55, %v3299_v7 }
 0x16b   : > { %v4969_v47 = vsel %vm2406_vm11, %v3459_v27, -inf }
 0x16c   : > { %vm1829_vm7 = vcmp.ge.f32.partialorder %v1669_v29, 0.0  ;;  %v1989_v33 = vmul.f32 0.2, %v1669_v29  ;;  %v4932_v34 = vpop.f32.mrf.mxu2  ;;  %vm1913_vm8 = vcmp.ge.f32.partialorder %v1753_v32, 0.0  ;;  %v2073_v36 = vmul.f32 0.2, %v1753_v32  ;;  %v4935_v37 = vpop.f32.mrf.mxu3 }
 0x16e   : > { %v2149_v39 = vsel %vm1829_vm7, %v1669_v29, %v1989_v33  ;;  %v2233_v42 = vsel %vm1913_vm8, %v1753_v32, %v2073_v36 }
 0x16f   : > { %v2308_v40 = vpack.c.bf16 %v2149_v39, %v2148_v38  ;;  %v2350_v43 = vpack.c.bf16 %v2233_v42, %v2232_v41  ;;  %v3300_v39 = vmul.f32 0.2, %v2867_v21  ;;  %v4519_v41 = vld [vmem:[%s4725_s16 + $0x98] sm:$0xff] }
 0x171   : > { %v1300_v49 = vpop.f32.mrf.mxu0  ;;  %4425 = vmatmul.msk.bf16.gmra.mxu2 %vm2406_vm11, %v2308_v40  ;;  %v1510_v53 = vpop.f32.mrf.mxu1  ;;  %4467 = vmatmul.msk.bf16.gmra.mxu3 %vm2406_vm11, %v2350_v43  ;;  %v3460_v55 = vsel %vm3140_vm4, %v2867_v21, %v3300_v39 }
 0x172   : > { %v1670_v61 = vadd.f32 %v1300_v49, %v4780_v44  ;;  %v1754_v0 = vadd.f32 %v1510_v53, %v4783_v45  ;;  %v3376_v53 = vsel %vm3056_vm3, %v2657_v9, %v3216_v31 }
 0x173   : > { %v4986_v9 = vsel %vm2406_vm11, %v3376_v53, -inf }
 0x174   : > { %4338 = vmatmul.msk.bf16.gmra.mxu0 %vm549_vm2, %v4518_v46  ;;  %v2661_v51 = vpop.f32.mrf.mxu2  ;;  %4380 = vmatmul.msk.bf16.gmra.mxu1 %vm549_vm2, %v4560_v52  ;;  %v4945_v57 = vpop.f32.mrf.mxu3  ;;  %v1990_v12 = vmul.f32 0.2, %v1670_v61  ;;  %v2074_v13 = vmul.f32 0.2, %v1754_v0  ;;  %vm1830_vm13 = vcmp.ge.f32.partialorder %v1670_v61, 0.0  ;;  %vm1914_vm14 = vcmp.ge.f32.partialorder %v1754_v0, 0.0 }
 0x175   : > { %v2662_v56 = vadd.f32 %v4928_v25, %v2661_v51  ;;  %v4561_v46 = vld [vmem:[%s4725_s16 + $0x1e8] sm:$0xff]  ;;  %v2659_v51 = vadd.f32 %v4928_v25, %v4932_v34  ;;  %v2872_v39 = vadd.f32 %v4928_v25, %v4945_v57 }
 0x176   : > { %v2150_v32 = vsel %vm1830_vm13, %v1670_v61, %v1990_v12  ;;  %v2234_v35 = vsel %vm1914_vm14, %v1754_v0, %v2074_v13 }
 0x177   : > { %vm3058_vm10 = vcmp.ge.f32.partialorder %v2662_v56, 0.0  ;;  %v3218_v1 = vmul.f32 0.2, %v2662_v56  ;;  %vm3057_vm6 = vcmp.ge.f32.partialorder %v2659_v51, 0.0 }
 0x179   : > { %v3378_v6 = vsel %vm3058_vm10, %v2662_v56, %v3218_v1  ;;  %v1302_v11 = vpop.f32.mrf.mxu0  ;;  %v1512_v16 = vpop.f32.mrf.mxu1  ;;  %v2869_v56 = vadd.f32 %v4928_v25, %v4935_v37  ;;  %v3217_v37 = vmul.f32 0.2, %v2659_v51 }
 0x17a   : > { %v4954_v14 = vsel %vm2406_vm11, %v3378_v6, -inf  ;;  %v1671_v15 = vadd.f32 %v1302_v11, %v4790_v50  ;;  %v1755_v18 = vadd.f32 %v1512_v16, %v4788_v48  ;;  %v4991_v11 = vsel %vm2406_vm11, %v3460_v55, -inf }
 0x17b   : > { %v3616_v17 = vmax.f32 %v4954_v14, %v4950_v3  ;;  %v3301_v13 = vmul.f32 0.2, %v2869_v56  ;;  %vm3141_vm8 = vcmp.ge.f32.partialorder %v2869_v56, 0.0 }
 0x17c   : > { %vm1831_vm15 = vcmp.ge.f32.partialorder %v1671_v15, 0.0  ;;  %v1991_v19 = vmul.f32 0.2, %v1671_v15  ;;  %v2663_v24 = vpop.f32.mrf.mxu2  ;;  %vm1915_vm0 = vcmp.ge.f32.partialorder %v1755_v18, 0.0  ;;  %v2075_v28 = vmul.f32 0.2, %v1755_v18  ;;  %v4963_v30 = vpop.f32.mrf.mxu3 }
 0x17d   : > { %v2664_v29 = vadd.f32 %v4928_v25, %v2663_v24 }
 0x17e   : > { %v2151_v33 = vsel %vm1831_vm15, %v1671_v15, %v1991_v19  ;;  %v2235_v38 = vsel %vm1915_vm0, %v1755_v18, %v2075_v28  ;;  %vm3142_vm0 = vcmp.ge.f32.partialorder %v2872_v39, 0.0 }
 0x17f   : > { %vm3059_vm1 = vcmp.ge.f32.partialorder %v2664_v29, 0.0  ;;  %v3219_v36 = vmul.f32 0.2, %v2664_v29  ;;  %v2309_v20 = vpack.c.bf16 %v2151_v33, %v2150_v32  ;;  %v2351_v40 = vpack.c.bf16 %v2235_v38, %v2234_v35 }
 0x180   : > { %v3461_v35 = vsel %vm3141_vm8, %v2869_v56, %v3301_v13 }
 0x181   : > { %v3379_v42 = vsel %vm3059_vm1, %v2664_v29, %v3219_v36  ;;  %v1305_v43 = vpop.f32.mrf.mxu0  ;;  %4426 = vmatmul.msk.bf16.gmra.mxu2 %vm2406_vm11, %v2309_v20  ;;  %v1515_v52 = vpop.f32.mrf.mxu1  ;;  %4468 = vmatmul.msk.bf16.gmra.mxu3 %vm2406_vm11, %v2351_v40 }
 0x182   : > { %v4972_v49 = vsel %vm2406_vm11, %v3379_v42, -inf  ;;  %v1672_v0 = vadd.f32 %v1305_v43, %v4808_v4  ;;  %v1756_v34 = vadd.f32 %v1515_v52, %v4811_v5 }
 0x183   : > { %v3655_v54 = vmax.f32 %v4972_v49, %v4969_v47 }
 0x184   : > { %4339 = vmatmul.msk.bf16.gmra.mxu0 %vm549_vm2, %v4519_v41  ;;  %v2666_v61 = vpop.f32.mrf.mxu2  ;;  %4381 = vmatmul.msk.bf16.gmra.mxu1 %vm549_vm2, %v4561_v46  ;;  %v2876_v7 = vpop.f32.mrf.mxu3  ;;  %vm1832_vm9 = vcmp.ge.f32.partialorder %v1672_v0, 0.0  ;;  %v1992_v16 = vmul.f32 0.2, %v1672_v0  ;;  %v2076_v19 = vmul.f32 0.2, %v1756_v34  ;;  %vm1916_vm10 = vcmp.ge.f32.partialorder %v1756_v34, 0.0 }
 0x185   : > { %v2667_v1 = vadd.f32 %v4928_v25, %v2666_v61  ;;  %v2877_v6 = vadd.f32 %v4928_v25, %v2876_v7 }
 0x186   : > { %v2236_v43 = vsel %vm1916_vm10, %v1756_v34, %v2076_v19  ;;  %v2152_v52 = vsel %vm1832_vm9, %v1672_v0, %v1992_v16  ;;  %v4562_v34 = vld [vmem:[%s4725_s16 + $0x1f0] sm:$0xff] }
 0x187   : > { %vm3060_vm5 = vcmp.ge.f32.partialorder %v2667_v1, 0.0  ;;  %v3220_v12 = vmul.f32 0.2, %v2667_v1  ;;  %vm3144_vm7 = vcmp.ge.f32.partialorder %v2877_v6, 0.0  ;;  %v3304_v15 = vmul.f32 0.2, %v2877_v6 }
 0x189   : > { %v3380_v18 = vsel %vm3060_vm5, %v2667_v1, %v3220_v12  ;;  %v1307_v21 = vpop.f32.mrf.mxu0  ;;  %v3464_v27 = vsel %vm3144_vm7, %v2877_v6, %v3304_v15  ;;  %v1517_v29 = vpop.f32.mrf.mxu1  ;;  %v3377_v1 = vsel %vm3057_vm6, %v2659_v51, %v3217_v37  ;;  %v4520_v6 = vld [vmem:[%s4725_s16 + $0xa0] sm:$0xff]  ;;  %v3302_v12 = vmul.f32 0.2, %v2872_v39 }
 0x18a   : > { %v4994_v24 = vsel %vm2406_vm11, %v3380_v18, -inf  ;;  %v1673_v28 = vadd.f32 %v1307_v21, %v4818_v10  ;;  %v5000_v32 = vsel %vm2406_vm11, %v3464_v27, -inf  ;;  %v1757_v33 = vadd.f32 %v1517_v29, %v4816_v8 }
 0x18b   : > { %v3694_v31 = vmax.f32 %v4994_v24, %v4991_v11  ;;  %v3538_v36 = vmax.f32 %v4986_v9, %v5000_v32  ;;  %v5015_v18 = vsel %vm2406_vm11, %v3461_v35, -inf  ;;  %v5022_v51 = vsel %vm2406_vm11, %v3377_v1, -inf }
 0x18c   : > { %vm1833_vm12 = vcmp.ge.f32.partialorder %v1673_v28, 0.0  ;;  %v1993_v20 = vmul.f32 0.2, %v1673_v28  ;;  %v2668_v38 = vpop.f32.mrf.mxu2  ;;  %vm1917_vm13 = vcmp.ge.f32.partialorder %v1757_v33, 0.0  ;;  %v2077_v40 = vmul.f32 0.2, %v1757_v33  ;;  %v2878_v42 = vpop.f32.mrf.mxu3 }
 0x18d   : > { %v2669_v41 = vadd.f32 %v4928_v25, %v2668_v38  ;;  %v2879_v46 = vadd.f32 %v4928_v25, %v2878_v42  ;;  %v2874_v27 = vadd.f32 %v4928_v25, %v4963_v30 }
 0x18e   : > { %v2153_v53 = vsel %vm1833_vm12, %v1673_v28, %v1993_v20  ;;  %v2237_v55 = vsel %vm1917_vm13, %v1757_v33, %v2077_v40  ;;  %v3462_v33 = vsel %vm3142_vm0, %v2872_v39, %v3302_v12 }
 0x18f   : > { %vm3061_vm14 = vcmp.ge.f32.partialorder %v2669_v41, 0.0  ;;  %v3221_v56 = vmul.f32 0.2, %v2669_v41  ;;  %v2310_v61 = vpack.c.bf16 %v2153_v53, %v2152_v52  ;;  %v2352_v57 = vpack.c.bf16 %v2237_v55, %v2236_v43 }
 0x190   : > { %vm3145_vm15 = vcmp.ge.f32.partialorder %v2879_v46, 0.0  ;;  %v3305_v7 = vmul.f32 0.2, %v2879_v46  ;;  %v5040_v42 = vsel %vm2406_vm11, %v3462_v33, -inf  ;;  %vm3143_vm3 = vcmp.ge.f32.partialorder %v2874_v27, 0.0 }
 0x191   : > { %v3381_v13 = vsel %vm3061_vm14, %v2669_v41, %v3221_v56  ;;  %v1310_v15 = vpop.f32.mrf.mxu0  ;;  %4427 = vmatmul.msk.bf16.gmra.mxu2 %vm2406_vm11, %v2310_v61  ;;  %v1520_v21 = vpop.f32.mrf.mxu1  ;;  %4469 = vmatmul.msk.bf16.gmra.mxu3 %vm2406_vm11, %v2352_v57  ;;  %v3303_v39 = vmul.f32 0.2, %v2874_v27 }
 0x192   : > { %v5018_v0 = vsel %vm2406_vm11, %v3381_v13, -inf  ;;  %v3465_v16 = vsel %vm3145_vm15, %v2879_v46, %v3305_v7  ;;  %v1674_v35 = vadd.f32 %v1310_v15, %v4783_v45  ;;  %v1758_v40 = vadd.f32 %v1520_v21, %v4780_v44 }
 0x193   : > { %v3733_v37 = vmax.f32 %v5018_v0, %v5015_v18  ;;  %v5027_v19 = vsel %vm2406_vm11, %v3465_v16, -inf  ;;  %v3463_v16 = vsel %vm3143_vm3, %v2874_v27, %v3303_v39  ;;  %v4521_v39 = vld [vmem:[%s4725_s16 + $0xa8] sm:$0xff] }
 0x194   : > { %v3577_v28 = vmax.f32 %v5022_v51, %v5027_v19  ;;  %4340 = vmatmul.msk.bf16.gmra.mxu0 %vm549_vm2, %v4520_v6  ;;  %v2671_v29 = vpop.f32.mrf.mxu2  ;;  %4382 = vmatmul.msk.bf16.gmra.mxu1 %vm549_vm2, %v4562_v34  ;;  %v2881_v38 = vpop.f32.mrf.mxu3  ;;  %vm1834_vm5 = vcmp.ge.f32.partialorder %v1674_v35, 0.0  ;;  %v1994_v46 = vmul.f32 0.2, %v1674_v35  ;;  %v2078_v55 = vmul.f32 0.2, %v1758_v40 }
 0x195   : > { %v2672_v20 = vadd.f32 %v4928_v25, %v2671_v29  ;;  %v2882_v41 = vadd.f32 %v4928_v25, %v2881_v38  ;;  %vm1918_vm6 = vcmp.ge.f32.partialorder %v1758_v40, 0.0 }
 0x196   : > { %v2238_v38 = vsel %vm1918_vm6, %v1758_v40, %v2078_v55 }
 0x197   : > { %vm3062_vm1 = vcmp.ge.f32.partialorder %v2672_v20, 0.0  ;;  %v3222_v30 = vmul.f32 0.2, %v2672_v20  ;;  %vm3146_vm4 = vcmp.ge.f32.partialorder %v2882_v41, 0.0  ;;  %v3306_v43 = vmul.f32 0.2, %v2882_v41 }
 0x199   : > { %v3382_v52 = vsel %vm3062_vm1, %v2672_v20, %v3222_v30  ;;  %v1312_v53 = vpop.f32.mrf.mxu0  ;;  %v3466_v61 = vsel %vm3146_vm4, %v2882_v41, %v3306_v43  ;;  %v1522_v57 = vpop.f32.mrf.mxu1  ;;  %v2154_v20 = vsel %vm1834_vm5, %v1674_v35, %v1994_v46 }
 0x19a   : > { %v5043_v56 = vsel %vm2406_vm11, %v3382_v52, -inf  ;;  %v1675_v1 = vadd.f32 %v1312_v53, %v4788_v48  ;;  %v3635_v6 = vsel %vm2406_vm11, %v3466_v61, -inf  ;;  %v1759_v12 = vadd.f32 %v1522_v57, %v4790_v50  ;;  %v4563_v61 = vld [vmem:[%s4725_s16 + $0x1f8] sm:$0xff] }
 0x19b   : > { %v3772_v7 = vmax.f32 %v5043_v56, %v5040_v42  ;;  %v5053_v13 = vmax.f32 %v3616_v17, %v3635_v6  ;;  %v5063_v57 = vsel %vm2406_vm11, %v3463_v16, -inf }
 0x19c   : > { %vm1835_vm7 = vcmp.ge.f32.partialorder %v1675_v1, 0.0  ;;  %v1995_v15 = vmul.f32 0.2, %v1675_v1  ;;  %v2673_v34 = vpop.f32.mrf.mxu2  ;;  %vm1919_vm8 = vcmp.ge.f32.partialorder %v1759_v12, 0.0  ;;  %v2079_v21 = vmul.f32 0.2, %v1759_v12  ;;  %v2883_v33 = vpop.f32.mrf.mxu3 }
 0x19d   : > { %v2674_v29 = vadd.f32 %v4928_v25, %v2673_v34  ;;  %v2884_v3 = vadd.f32 %v4928_v25, %v2883_v33 }
 0x19e   : > { %v2155_v41 = vsel %vm1835_vm7, %v1675_v1, %v1995_v15  ;;  %v2239_v17 = vsel %vm1919_vm8, %v1759_v12, %v2079_v21 }
 0x19f   : > { %v2311_v14 = vpack.c.bf16 %v2155_v41, %v2154_v20  ;;  %vm3063_vm9 = vcmp.ge.f32.partialorder %v2674_v29, 0.0  ;;  %v3223_v30 = vmul.f32 0.2, %v2674_v29  ;;  %v2353_v43 = vpack.c.bf16 %v2239_v17, %v2238_v38 }
 0x1a0   : > { %vm3147_vm10 = vcmp.ge.f32.partialorder %v2884_v3, 0.0  ;;  %v3307_v27 = vmul.f32 0.2, %v2884_v3 }
 0x1a1   : > { %v3383_v52 = vsel %vm3063_vm9, %v2674_v29, %v3223_v30  ;;  %v1315_v53 = vpop.f32.mrf.mxu0  ;;  %4428 = vmatmul.msk.bf16.gmra.mxu2 %vm2406_vm11, %v2311_v14  ;;  %v1525_v46 = vpop.f32.mrf.mxu1  ;;  %4470 = vmatmul.msk.bf16.gmra.mxu3 %vm2406_vm11, %v2353_v43 }
 0x1a2   : > { %v5066_v35 = vsel %vm2406_vm11, %v3383_v52, -inf  ;;  %v3467_v40 = vsel %vm3147_vm10, %v2884_v3, %v3307_v27  ;;  %v1676_v15 = vadd.f32 %v1315_v53, %v4811_v5  ;;  %v1760_v21 = vadd.f32 %v1525_v46, %v4808_v4 }
 0x1a3   : > { %v3811_v55 = vmax.f32 %v5066_v35, %v5063_v57  ;;  %v3674_v1 = vsel %vm2406_vm11, %v3467_v40, -inf }
 0x1a4   : > { %v5075_v6 = vmax.f32 %v3655_v54, %v3674_v1  ;;  %4341 = vmatmul.msk.bf16.gmra.mxu0 %vm549_vm2, %v4521_v39  ;;  %v2676_v12 = vpop.f32.mrf.mxu2  ;;  %4383 = vmatmul.msk.bf16.gmra.mxu1 %vm549_vm2, %v4563_v61  ;;  %v2886_v16 = vpop.f32.mrf.mxu3  ;;  %vm1836_vm14 = vcmp.ge.f32.partialorder %v1676_v15, 0.0  ;;  %v1996_v49 = vmul.f32 0.2, %v1676_v15  ;;  %v2080_v38 = vmul.f32 0.2, %v1760_v21 }
 0x1a5   : > { %v2677_v34 = vadd.f32 %v4928_v25, %v2676_v12  ;;  %v2887_v29 = vadd.f32 %v4928_v25, %v2886_v16  ;;  %vm1920_vm15 = vcmp.ge.f32.partialorder %v1760_v21, 0.0  ;;  %v4522_v16 = vld [vmem:[%s4725_s16 + $0xb0] sm:$0xff] }
 0x1a6   : > { %v2156_v32 = vsel %vm1836_vm14, %v1676_v15, %v1996_v49 }
 0x1a7   : > { %vm3064_vm12 = vcmp.ge.f32.partialorder %v2677_v34, 0.0  ;;  %v3224_v33 = vmul.f32 0.2, %v2677_v34  ;;  %vm3148_vm13 = vcmp.ge.f32.partialorder %v2887_v29, 0.0  ;;  %v3308_v47 = vmul.f32 0.2, %v2887_v29 }
 0x1a9   : > { %v3384_v54 = vsel %vm3064_vm12, %v2677_v34, %v3224_v33  ;;  %v1317_v20 = vpop.f32.mrf.mxu0  ;;  %v3468_v3 = vsel %vm3148_vm13, %v2887_v29, %v3308_v47  ;;  %v1527_v17 = vpop.f32.mrf.mxu1  ;;  %v4564_v47 = vld [vmem:[%s4725_s16 + $0x200] sm:$0xff] }
 0x1aa   : > { %v3537_v41 = vsel %vm2406_vm11, %v3384_v54, -inf  ;;  %v1677_v14 = vadd.f32 %v1317_v20, %v4816_v8  ;;  %v3713_v43 = vsel %vm2406_vm11, %v3468_v3, -inf  ;;  %v1761_v27 = vadd.f32 %v1527_v17, %v4818_v10 }
 0x1ab   : > { %v5088_v30 = vmax.f32 %v3538_v36, %v3537_v41  ;;  %v5095_v39 = vmax.f32 %v3694_v31, %v3713_v43  ;;  %v2240_v36 = vsel %vm1920_vm15, %v1760_v21, %v2080_v38 }
 0x1ac   : > { %vm1837_vm0 = vcmp.ge.f32.partialorder %v1677_v14, 0.0  ;;  %v1997_v52 = vmul.f32 0.2, %v1677_v14  ;;  %v2678_v53 = vpop.f32.mrf.mxu2  ;;  %vm1921_vm1 = vcmp.ge.f32.partialorder %v1761_v27, 0.0  ;;  %v2081_v61 = vmul.f32 0.2, %v1761_v27  ;;  %v2888_v9 = vpop.f32.mrf.mxu3 }
 0x1ad   : > { %v2679_v40 = vadd.f32 %v4928_v25, %v2678_v53  ;;  %v2889_v1 = vadd.f32 %v4928_v25, %v2888_v9 }
 0x1ae   : > { %v2157_v46 = vsel %vm1837_vm0, %v1677_v14, %v1997_v52  ;;  %v2241_v11 = vsel %vm1921_vm1, %v1761_v27, %v2081_v61 }
 0x1af   : > { %v2312_v12 = vpack.c.bf16 %v2157_v46, %v2156_v32  ;;  %vm3065_vm3 = vcmp.ge.f32.partialorder %v2679_v40, 0.0  ;;  %v3225_v24 = vmul.f32 0.2, %v2679_v40  ;;  %v2354_v31 = vpack.c.bf16 %v2241_v11, %v2240_v36 }
 0x1b0   : > { %vm3149_vm4 = vcmp.ge.f32.partialorder %v2889_v1, 0.0  ;;  %v3309_v34 = vmul.f32 0.2, %v2889_v1 }
 0x1b1   : > { %v3385_v29 = vsel %vm3065_vm3, %v2679_v40, %v3225_v24  ;;  %v1320_v33 = vpop.f32.mrf.mxu0  ;;  %4429 = vmatmul.msk.bf16.gmra.mxu2 %vm2406_vm11, %v2312_v12  ;;  %v1530_v21 = vpop.f32.mrf.mxu1  ;;  %4471 = vmatmul.msk.bf16.gmra.mxu3 %vm2406_vm11, %v2354_v31 }
 0x1b2   : > { %v3576_v54 = vsel %vm2406_vm11, %v3385_v29, -inf  ;;  %v3469_v15 = vsel %vm3149_vm4, %v2889_v1, %v3309_v34  ;;  %v1678_v3 = vadd.f32 %v1320_v33, %v4780_v44  ;;  %v1762_v51 = vadd.f32 %v1530_v21, %v4783_v45 }
 0x1b3   : > { %v5108_v49 = vmax.f32 %v3577_v28, %v3576_v54  ;;  %v3752_v20 = vsel %vm2406_vm11, %v3469_v15, -inf  ;;  %v4523_v15 = vld [vmem:[%s4725_s16 + $0xb8] sm:$0xff] }
 0x1b4   : > { %v5114_v38 = vmax.f32 %v3733_v37, %v3752_v20  ;;  %4342 = vmatmul.msk.bf16.gmra.mxu0 %vm549_vm2, %v4522_v16  ;;  %v2681_v41 = vpop.f32.mrf.mxu2  ;;  %4384 = vmatmul.msk.bf16.gmra.mxu1 %vm549_vm2, %v4564_v47  ;;  %v2891_v17 = vpop.f32.mrf.mxu3  ;;  %vm1838_vm7 = vcmp.ge.f32.partialorder %v1678_v3, 0.0  ;;  %v1998_v0 = vmul.f32 0.2, %v1678_v3  ;;  %v2082_v27 = vmul.f32 0.2, %v1762_v51 }
 0x1b5   : > { %v2682_v14 = vadd.f32 %v4928_v25, %v2681_v41  ;;  %v2892_v19 = vadd.f32 %v4928_v25, %v2891_v17  ;;  %vm1922_vm8 = vcmp.ge.f32.partialorder %v1762_v51, 0.0  ;;  %v4565_v41 = vld [vmem:[%s4725_s16 + $0x208] sm:$0xff] }
 0x1b6   : > { %v2158_v34 = vsel %vm1838_vm7, %v1678_v3, %v1998_v0  ;;  %v2242_v16 = vsel %vm1922_vm8, %v1762_v51, %v2082_v27 }
 0x1b7   : > { %vm3066_vm5 = vcmp.ge.f32.partialorder %v2682_v14, 0.0  ;;  %v3226_v28 = vmul.f32 0.2, %v2682_v14  ;;  %vm3150_vm6 = vcmp.ge.f32.partialorder %v2892_v19, 0.0  ;;  %v3310_v18 = vmul.f32 0.2, %v2892_v19 }
 0x1b9   : > { %v3386_v37 = vsel %vm3066_vm5, %v2682_v14, %v3226_v28  ;;  %v1322_v43 = vpop.f32.mrf.mxu0  ;;  %v3470_v53 = vsel %vm3150_vm6, %v2892_v19, %v3310_v18  ;;  %v1532_v40 = vpop.f32.mrf.mxu1 }
 0x1ba   : > { %v5123_v52 = vsel %vm2406_vm11, %v3386_v37, -inf  ;;  %v1679_v61 = vadd.f32 %v1322_v43, %v4790_v50  ;;  %v3791_v32 = vsel %vm2406_vm11, %v3470_v53, -inf  ;;  %v1763_v36 = vadd.f32 %v1532_v40, %v4788_v48 }
 0x1bb   : > { %v3620_v9 = vmax.f32 %v5053_v13, %v5123_v52  ;;  %v5133_v46 = vmax.f32 %v3772_v7, %v3791_v32 }
 0x1bc   : > { %vm1839_vm9 = vcmp.ge.f32.partialorder %v1679_v61, 0.0  ;;  %v1999_v1 = vmul.f32 0.2, %v1679_v61  ;;  %v2683_v12 = vpop.f32.mrf.mxu2  ;;  %vm1923_vm10 = vcmp.ge.f32.partialorder %v1763_v36, 0.0  ;;  %v2083_v11 = vmul.f32 0.2, %v1763_v36  ;;  %v2893_v31 = vpop.f32.mrf.mxu3 }
 0x1bd   : > { %v2684_v24 = vadd.f32 %v4928_v25, %v2683_v12  ;;  %v2894_v33 = vadd.f32 %v4928_v25, %v2893_v31 }
 0x1be   : > { %v2159_v29 = vsel %vm1839_vm9, %v1679_v61, %v1999_v1  ;;  %v2243_v42 = vsel %vm1923_vm10, %v1763_v36, %v2083_v11 }
 0x1bf   : > { %v2313_v47 = vpack.c.bf16 %v2159_v29, %v2158_v34  ;;  %vm3067_vm12 = vcmp.ge.f32.partialorder %v2684_v24, 0.0  ;;  %v3227_v56 = vmul.f32 0.2, %v2684_v24  ;;  %v2355_v7 = vpack.c.bf16 %v2243_v42, %v2242_v16 }
 0x1c0   : > { %vm3151_vm13 = vcmp.ge.f32.partialorder %v2894_v33, 0.0  ;;  %v3311_v54 = vmul.f32 0.2, %v2894_v33 }
 0x1c1   : > { %v3387_v21 = vsel %vm3067_vm12, %v2684_v24, %v3227_v56  ;;  %v1325_v20 = vpop.f32.mrf.mxu0  ;;  %4430 = vmatmul.msk.bf16.gmra.mxu2 %vm2406_vm11, %v2313_v47  ;;  %v1535_v17 = vpop.f32.mrf.mxu1  ;;  %4472 = vmatmul.msk.bf16.gmra.mxu3 %vm2406_vm11, %v2355_v7 }
 0x1c2   : > { %v5142_v14 = vsel %vm2406_vm11, %v3387_v21, -inf  ;;  %v3471_v3 = vsel %vm3151_vm13, %v2894_v33, %v3311_v54  ;;  %v1680_v0 = vadd.f32 %v1325_v20, %v4808_v4  ;;  %v1764_v27 = vadd.f32 %v1535_v17, %v4811_v5 }
 0x1c3   : > { %v3659_v51 = vmax.f32 %v5075_v6, %v5142_v14  ;;  %v3830_v19 = vsel %vm2406_vm11, %v3471_v3, -inf }
 0x1c4   : > { %v5151_v28 = vmax.f32 %v3811_v55, %v3830_v19  ;;  %4343 = vmatmul.msk.bf16.gmra.mxu0 %vm549_vm2, %v4523_v15  ;;  %v2686_v18 = vpop.f32.mrf.mxu2  ;;  %4385 = vmatmul.msk.bf16.gmra.mxu1 %vm549_vm2, %v4565_v41  ;;  %v2896_v43 = vpop.f32.mrf.mxu3  ;;  %vm1840_vm0 = vcmp.ge.f32.partialorder %v1680_v0, 0.0  ;;  %v2000_v35 = vmul.f32 0.2, %v1680_v0  ;;  %v2084_v32 = vmul.f32 0.2, %v1764_v27 }
 0x1c5   : > { %v2687_v37 = vadd.f32 %v4928_v25, %v2686_v18  ;;  %v2897_v53 = vadd.f32 %v4928_v25, %v2896_v43  ;;  %vm1924_vm1 = vcmp.ge.f32.partialorder %v1764_v27, 0.0  ;;  %v4524_v18 = vld [vmem:[%s4725_s16 + $0xc0] sm:$0xff] }
 0x1c6   : > { %v2160_v7 = vsel %vm1840_vm0, %v1680_v0, %v2000_v35  ;;  %v2244_v54 = vsel %vm1924_vm1, %v1764_v27, %v2084_v32 }
 0x1c7   : > { %vm3068_vm14 = vcmp.ge.f32.partialorder %v2687_v37, 0.0  ;;  %v3228_v61 = vmul.f32 0.2, %v2687_v37  ;;  %vm3152_vm15 = vcmp.ge.f32.partialorder %v2897_v53, 0.0  ;;  %v3312_v57 = vmul.f32 0.2, %v2897_v53 }
 0x1c9   : > { %v3388_v55 = vsel %vm3068_vm14, %v2687_v37, %v3228_v61  ;;  %v1327_v40 = vpop.f32.mrf.mxu0  ;;  %v3472_v1 = vsel %vm3152_vm15, %v2897_v53, %v3312_v57  ;;  %v1537_v11 = vpop.f32.mrf.mxu1  ;;  %v4566_v53 = vld [vmem:[%s4725_s16 + $0x210] sm:$0xff] }
 0x1ca   : > { %v5160_v36 = vsel %vm2406_vm11, %v3388_v55, -inf  ;;  %v1681_v12 = vadd.f32 %v1327_v40, %v4818_v10  ;;  %v5166_v31 = vsel %vm2406_vm11, %v3472_v1, -inf  ;;  %v1765_v34 = vadd.f32 %v1537_v11, %v4816_v8 }
 0x1cb   : > { %v3698_v24 = vmax.f32 %v5095_v39, %v5160_v36  ;;  %v3542_v16 = vmax.f32 %v5088_v30, %v5166_v31 }
 0x1cc   : > { %vm1841_vm3 = vcmp.ge.f32.partialorder %v1681_v12, 0.0  ;;  %v2001_v29 = vmul.f32 0.2, %v1681_v12  ;;  %v2688_v33 = vpop.f32.mrf.mxu2  ;;  %vm1925_vm4 = vcmp.ge.f32.partialorder %v1765_v34, 0.0  ;;  %v2085_v47 = vmul.f32 0.2, %v1765_v34  ;;  %v2898_v56 = vpop.f32.mrf.mxu3 }
 0x1cd   : > { %v2689_v42 = vadd.f32 %v4928_v25, %v2688_v33  ;;  %v2899_v21 = vadd.f32 %v4928_v25, %v2898_v56 }
 0x1ce   : > { %v2161_v15 = vsel %vm1841_vm3, %v1681_v12, %v2001_v29  ;;  %v2245_v41 = vsel %vm1925_vm4, %v1765_v34, %v2085_v47 }
 0x1cf   : > { %v2314_v20 = vpack.c.bf16 %v2161_v15, %v2160_v7  ;;  %vm3069_vm5 = vcmp.ge.f32.partialorder %v2689_v42, 0.0  ;;  %v3229_v3 = vmul.f32 0.2, %v2689_v42  ;;  %v2356_v17 = vpack.c.bf16 %v2245_v41, %v2244_v54 }
 0x1d0   : > { %vm3153_vm6 = vcmp.ge.f32.partialorder %v2899_v21, 0.0  ;;  %v3313_v19 = vmul.f32 0.2, %v2899_v21 }
 0x1d1   : > { %v3389_v37 = vsel %vm3069_vm5, %v2689_v42, %v3229_v3  ;;  %v1330_v43 = vpop.f32.mrf.mxu0  ;;  %4431 = vmatmul.msk.bf16.gmra.mxu2 %vm2406_vm11, %v2314_v20  ;;  %v1540_v27 = vpop.f32.mrf.mxu1  ;;  %4473 = vmatmul.msk.bf16.gmra.mxu3 %vm2406_vm11, %v2356_v17 }
 0x1d2   : > { %v5178_v61 = vsel %vm2406_vm11, %v3389_v37, -inf  ;;  %v3473_v0 = vsel %vm3153_vm6, %v2899_v21, %v3313_v19  ;;  %v1682_v32 = vadd.f32 %v1330_v43, %v4783_v45  ;;  %v1766_v11 = vadd.f32 %v1540_v27, %v4780_v44 }
 0x1d3   : > { %v3737_v57 = vmax.f32 %v5114_v38, %v5178_v61  ;;  %v5184_v35 = vsel %vm2406_vm11, %v3473_v0, -inf }
 0x1d4   : > { %v3581_v55 = vmax.f32 %v5108_v49, %v5184_v35  ;;  %4344 = vmatmul.msk.bf16.gmra.mxu0 %vm549_vm2, %v4524_v18  ;;  %v2691_v40 = vpop.f32.mrf.mxu2  ;;  %4386 = vmatmul.msk.bf16.gmra.mxu1 %vm549_vm2, %v4566_v53  ;;  %v2901_v12 = vpop.f32.mrf.mxu3  ;;  %vm1842_vm9 = vcmp.ge.f32.partialorder %v1682_v32, 0.0  ;;  %v2002_v47 = vmul.f32 0.2, %v1682_v32  ;;  %v2086_v7 = vmul.f32 0.2, %v1766_v11 }
 0x1d5   : > { %v2692_v1 = vadd.f32 %v4928_v25, %v2691_v40  ;;  %v2902_v34 = vadd.f32 %v4928_v25, %v2901_v12  ;;  %vm1926_vm10 = vcmp.ge.f32.partialorder %v1766_v11, 0.0 }
 0x1d6   : > { %v2162_v27 = vsel %vm1842_vm9, %v1682_v32, %v2002_v47  ;;  %v2246_v40 = vsel %vm1926_vm10, %v1766_v11, %v2086_v7 }
 0x1d7   : > { %vm3070_vm7 = vcmp.ge.f32.partialorder %v2692_v1, 0.0  ;;  %v3230_v29 = vmul.f32 0.2, %v2692_v1  ;;  %vm3154_vm8 = vcmp.ge.f32.partialorder %v2902_v34, 0.0  ;;  %v3314_v33 = vmul.f32 0.2, %v2902_v34 }
 0x1d9   : > { %v3390_v42 = vsel %vm3070_vm7, %v2692_v1, %v3230_v29  ;;  %v1332_v56 = vpop.f32.mrf.mxu0  ;;  %v3474_v15 = vsel %vm3154_vm8, %v2902_v34, %v3314_v33  ;;  %v1542_v20 = vpop.f32.mrf.mxu1  ;;  %v4525_v33 = vld [vmem:[%s4725_s16 + $0xc8] sm:$0xff] }
 0x1da   : > { %v5195_v54 = vsel %vm2406_vm11, %v3390_v42, -inf  ;;  %v1683_v21 = vadd.f32 %v1332_v56, %v4788_v48  ;;  %v3637_v3 = vsel %vm2406_vm11, %v3474_v15, -inf  ;;  %v1767_v17 = vadd.f32 %v1542_v20, %v4790_v50  ;;  %v4567_v15 = vld [vmem:[%s4725_s16 + $0x218] sm:$0xff] }
 0x1db   : > { %v3776_v41 = vmax.f32 %v5133_v46, %v5195_v54  ;;  %v5205_v19 = vmax.f32 %v3620_v9, %v3637_v3 }
 0x1dc   : > { %vm1843_vm12 = vcmp.ge.f32.partialorder %v1683_v21, 0.0  ;;  %v2003_v18 = vmul.f32 0.2, %v1683_v21  ;;  %v2693_v37 = vpop.f32.mrf.mxu2  ;;  %vm1927_vm13 = vcmp.ge.f32.partialorder %v1767_v17, 0.0  ;;  %v2087_v43 = vmul.f32 0.2, %v1767_v17  ;;  %v2903_v0 = vpop.f32.mrf.mxu3 }
 0x1dd   : > { %v2694_v53 = vadd.f32 %v4928_v25, %v2693_v37  ;;  %v2904_v12 = vadd.f32 %v4928_v25, %v2903_v0 }
 0x1de   : > { %v2163_v1 = vsel %vm1843_vm12, %v1683_v21, %v2003_v18  ;;  %v2247_v13 = vsel %vm1927_vm13, %v1767_v17, %v2087_v43 }
 0x1df   : > { %v2315_v34 = vpack.c.bf16 %v2163_v1, %v2162_v27  ;;  %vm3071_vm14 = vcmp.ge.f32.partialorder %v2694_v53, 0.0  ;;  %v3231_v52 = vmul.f32 0.2, %v2694_v53  ;;  %v2357_v9 = vpack.c.bf16 %v2247_v13, %v2246_v40 }
 0x1e0   : > { %vm3155_vm15 = vcmp.ge.f32.partialorder %v2904_v12, 0.0  ;;  %v3315_v29 = vmul.f32 0.2, %v2904_v12 }
 0x1e1   : > { %v3391_v42 = vsel %vm3071_vm14, %v2694_v53, %v3231_v52  ;;  %v1335_v56 = vpop.f32.mrf.mxu0  ;;  %4432 = vmatmul.msk.bf16.gmra.mxu2 %vm2406_vm11, %v2315_v34  ;;  %v1545_v11 = vpop.f32.mrf.mxu1  ;;  %4474 = vmatmul.msk.bf16.gmra.mxu3 %vm2406_vm11, %v2357_v9 }
 0x1e2   : > { %v5214_v20 = vsel %vm2406_vm11, %v3391_v42, -inf  ;;  %v3475_v32 = vsel %vm3155_vm15, %v2904_v12, %v3315_v29  ;;  %v1684_v17 = vadd.f32 %v1335_v56, %v4811_v5  ;;  %v1768_v43 = vadd.f32 %v1545_v11, %v4808_v4 }
 0x1e3   : > { %v3815_v47 = vmax.f32 %v5151_v28, %v5214_v20  ;;  %v3676_v7 = vsel %vm2406_vm11, %v3475_v32, -inf }
 0x1e4   : > { %v5223_v21 = vmax.f32 %v3659_v51, %v3676_v7  ;;  %4345 = vmatmul.msk.bf16.gmra.mxu0 %vm549_vm2, %v4525_v33  ;;  %v2696_v3 = vpop.f32.mrf.mxu2  ;;  %4387 = vmatmul.msk.bf16.gmra.mxu1 %vm549_vm2, %v4567_v15  ;;  %v2906_v37 = vpop.f32.mrf.mxu3  ;;  %vm1844_vm3 = vcmp.ge.f32.partialorder %v1684_v17, 0.0  ;;  %v2004_v14 = vmul.f32 0.2, %v1684_v17  ;;  %v2088_v40 = vmul.f32 0.2, %v1768_v43 }
 0x1e5   : > { %v2697_v18 = vadd.f32 %v4928_v25, %v2696_v3  ;;  %v2907_v53 = vadd.f32 %v4928_v25, %v2906_v37  ;;  %vm1928_vm4 = vcmp.ge.f32.partialorder %v1768_v43, 0.0  ;;  %v4526_v37 = vld [vmem:[%s4725_s16 + $0xd0] sm:$0xff] }
 0x1e6   : > { %v2164_v31 = vsel %vm1844_vm3, %v1684_v17, %v2004_v14 }
 0x1e7   : > { %vm3072_vm0 = vcmp.ge.f32.partialorder %v2697_v18, 0.0  ;;  %v3232_v0 = vmul.f32 0.2, %v2697_v18  ;;  %vm3156_vm1 = vcmp.ge.f32.partialorder %v2907_v53, 0.0  ;;  %v3316_v6 = vmul.f32 0.2, %v2907_v53 }
 0x1e9   : > { %v3392_v51 = vsel %vm3072_vm0, %v2697_v18, %v3232_v0  ;;  %v1337_v27 = vpop.f32.mrf.mxu0  ;;  %v3476_v12 = vsel %vm3156_vm1, %v2907_v53, %v3316_v6  ;;  %v1547_v13 = vpop.f32.mrf.mxu1  ;;  %v4568_v6 = vld [vmem:[%s4725_s16 + $0x220] sm:$0xff] }
 0x1ea   : > { %v3539_v1 = vsel %vm2406_vm11, %v3392_v51, -inf  ;;  %v1685_v34 = vadd.f32 %v1337_v27, %v4816_v8  ;;  %v3715_v9 = vsel %vm2406_vm11, %v3476_v12, -inf  ;;  %v1769_v29 = vadd.f32 %v1547_v13, %v4818_v10 }
 0x1eb   : > { %v5236_v52 = vmax.f32 %v3542_v16, %v3539_v1  ;;  %v5243_v33 = vmax.f32 %v3698_v24, %v3715_v9  ;;  %v2248_v16 = vsel %vm1928_vm4, %v1768_v43, %v2088_v40 }
 0x1ec   : > { %vm1845_vm5 = vcmp.ge.f32.partialorder %v1685_v34, 0.0  ;;  %v2005_v42 = vmul.f32 0.2, %v1685_v34  ;;  %v2698_v56 = vpop.f32.mrf.mxu2  ;;  %vm1929_vm6 = vcmp.ge.f32.partialorder %v1769_v29, 0.0  ;;  %v2089_v15 = vmul.f32 0.2, %v1769_v29  ;;  %v2908_v30 = vpop.f32.mrf.mxu3 }
 0x1ed   : > { %v2699_v32 = vadd.f32 %v4928_v25, %v2698_v56  ;;  %v2909_v7 = vadd.f32 %v4928_v25, %v2908_v30 }
 0x1ee   : > { %v2165_v11 = vsel %vm1845_vm5, %v1685_v34, %v2005_v42  ;;  %v2249_v39 = vsel %vm1929_vm6, %v1769_v29, %v2089_v15 }
 0x1ef   : > { %v2316_v3 = vpack.c.bf16 %v2165_v11, %v2164_v31  ;;  %vm3073_vm7 = vcmp.ge.f32.partialorder %v2699_v32, 0.0  ;;  %v3233_v36 = vmul.f32 0.2, %v2699_v32  ;;  %v2358_v24 = vpack.c.bf16 %v2249_v39, %v2248_v16  ;;  %v5286_v39 = vld [vmem:[%s6209_s6] ss:$0 sm:$0xff] }
 0x1f0   : > { %vm3157_vm8 = vcmp.ge.f32.partialorder %v2909_v7, 0.0  ;;  %v3317_v18 = vmul.f32 0.2, %v2909_v7 }
 0x1f1   : > { %v3393_v53 = vsel %vm3073_vm7, %v2699_v32, %v3233_v36  ;;  %v1340_v0 = vpop.f32.mrf.mxu0  ;;  %4433 = vmatmul.msk.bf16.gmra.mxu2 %vm2406_vm11, %v2316_v3  ;;  %v1550_v43 = vpop.f32.mrf.mxu1  ;;  %4475 = vmatmul.msk.bf16.gmra.mxu3 %vm2406_vm11, %v2358_v24 }
 0x1f2   : > { %v3578_v51 = vsel %vm2406_vm11, %v3393_v53, -inf  ;;  %v3477_v17 = vsel %vm3157_vm8, %v2909_v7, %v3317_v18  ;;  %v1686_v12 = vadd.f32 %v1340_v0, %v4780_v44  ;;  %v1770_v49 = vadd.f32 %v1550_v43, %v4783_v45 }
 0x1f3   : > { %v5256_v14 = vmax.f32 %v3581_v55, %v3578_v51  ;;  %v3754_v27 = vsel %vm2406_vm11, %v3477_v17, -inf  ;;  %v4527_v17 = vld [vmem:[%s4725_s16 + $0xd8] sm:$0xff] }
 0x1f4   : > { %v5262_v40 = vmax.f32 %v3737_v57, %v3754_v27  ;;  %4346 = vmatmul.msk.bf16.gmra.mxu0 %vm549_vm2, %v4526_v37  ;;  %v2701_v1 = vpop.f32.mrf.mxu2  ;;  %4388 = vmatmul.msk.bf16.gmra.mxu1 %vm549_vm2, %v4568_v6  ;;  %v2911_v13 = vpop.f32.mrf.mxu3  ;;  %vm1846_vm12 = vcmp.ge.f32.partialorder %v1686_v12, 0.0  ;;  %v2006_v61 = vmul.f32 0.2, %v1686_v12  ;;  %v2090_v29 = vmul.f32 0.2, %v1770_v49 }
 0x1f5   : > { %v2702_v34 = vadd.f32 %v4928_v25, %v2701_v1  ;;  %v2912_v35 = vadd.f32 %v4928_v25, %v2911_v13  ;;  %vm1930_vm13 = vcmp.ge.f32.partialorder %v1770_v49, 0.0  ;;  %v4569_v1 = vld [vmem:[%s4725_s16 + $0x228] sm:$0xff] }
 0x1f6   : > { %v2166_v18 = vsel %vm1846_vm12, %v1686_v12, %v2006_v61  ;;  %v2250_v46 = vsel %vm1930_vm13, %v1770_v49, %v2090_v29 }
 0x1f7   : > { %vm3074_vm9 = vcmp.ge.f32.partialorder %v2702_v34, 0.0  ;;  %v3234_v55 = vmul.f32 0.2, %v2702_v34  ;;  %vm3158_vm10 = vcmp.ge.f32.partialorder %v2912_v35, 0.0  ;;  %v3318_v38 = vmul.f32 0.2, %v2912_v35 }
 0x1f9   : > { %v3394_v57 = vsel %vm3074_vm9, %v2702_v34, %v3234_v55  ;;  %v1342_v9 = vpop.f32.mrf.mxu0  ;;  %v3478_v56 = vsel %vm3158_vm10, %v2912_v35, %v3318_v38  ;;  %v1552_v32 = vpop.f32.mrf.mxu1 }
 0x1fa   : > { %v5271_v42 = vsel %vm2406_vm11, %v3394_v57, -inf  ;;  %v1687_v15 = vadd.f32 %v1342_v9, %v4790_v50  ;;  %v3793_v30 = vsel %vm2406_vm11, %v3478_v56, -inf  ;;  %v1771_v31 = vadd.f32 %v1552_v32, %v4788_v48 }
 0x1fb   : > { %v3624_v25 = vmax.f32 %v5205_v19, %v5271_v42  ;;  %v5281_v16 = vmax.f32 %v3776_v41, %v3793_v30 }
 0x1fc   : > { %vm1847_vm14 = vcmp.ge.f32.partialorder %v1687_v15, 0.0  ;;  %v2007_v11 = vmul.f32 0.2, %v1687_v15  ;;  %v2703_v7 = vpop.f32.mrf.mxu2  ;;  %vm1931_vm15 = vcmp.ge.f32.partialorder %v1771_v31, 0.0  ;;  %v2091_v3 = vmul.f32 0.2, %v1771_v31  ;;  %v2913_v24 = vpop.f32.mrf.mxu3 }
 0x1fd   : > { %v2704_v36 = vadd.f32 %v5286_v39, %v2703_v7  ;;  %v2914_v41 = vadd.f32 %v5286_v39, %v2913_v24 }
 0x1fe   : > { %v2167_v54 = vsel %vm1847_vm14, %v1687_v15, %v2007_v11  ;;  %v2251_v53 = vsel %vm1931_vm15, %v1771_v31, %v2091_v3 }
 0x1ff   : > { %v2317_v37 = vpack.c.bf16 %v2167_v54, %v2166_v18  ;;  %vm3075_vm0 = vcmp.ge.f32.partialorder %v2704_v36, 0.0  ;;  %v3235_v0 = vmul.f32 0.2, %v2704_v36  ;;  %v2359_v6 = vpack.c.bf16 %v2251_v53, %v2250_v46 }
 0x200   : > { %vm3159_vm1 = vcmp.ge.f32.partialorder %v2914_v41, 0.0  ;;  %v3319_v51 = vmul.f32 0.2, %v2914_v41 }
 0x201   : > { %v3395_v43 = vsel %vm3075_vm0, %v2704_v36, %v3235_v0  ;;  %v1345_v27 = vpop.f32.mrf.mxu0  ;;  %4434 = vmatmul.msk.bf16.gmra.mxu2 %vm2406_vm11, %v2317_v37  ;;  %v1555_v13 = vpop.f32.mrf.mxu1  ;;  %4476 = vmatmul.msk.bf16.gmra.mxu3 %vm2406_vm11, %v2359_v6 }
 0x202   : > { %v5295_v34 = vsel %vm2406_vm11, %v3395_v43, -inf  ;;  %v3479_v12 = vsel %vm3159_vm1, %v2914_v41, %v3319_v51  ;;  %v1688_v61 = vadd.f32 %v1345_v27, %v4808_v4  ;;  %v1772_v29 = vadd.f32 %v1555_v13, %v4811_v5 }
 0x203   : > { %v3663_v49 = vmax.f32 %v5223_v21, %v5295_v34  ;;  %v3832_v35 = vsel %vm2406_vm11, %v3479_v12, -inf }
 0x204   : > { %v5304_v55 = vmax.f32 %v3815_v47, %v3832_v35  ;;  %4347 = vmatmul.msk.bf16.gmra.mxu0 %vm549_vm2, %v4527_v17  ;;  %v2706_v38 = vpop.f32.mrf.mxu2  ;;  %4389 = vmatmul.msk.bf16.gmra.mxu1 %vm549_vm2, %v4569_v1  ;;  %v2916_v9 = vpop.f32.mrf.mxu3  ;;  %vm1848_vm5 = vcmp.ge.f32.partialorder %v1688_v61, 0.0  ;;  %v2008_v20 = vmul.f32 0.2, %v1688_v61  ;;  %v2092_v30 = vmul.f32 0.2, %v1772_v29 }
 0x205   : > { %v2707_v57 = vadd.f32 %v5286_v39, %v2706_v38  ;;  %v2917_v56 = vadd.f32 %v5286_v39, %v2916_v9  ;;  %vm1932_vm6 = vcmp.ge.f32.partialorder %v1772_v29, 0.0  ;;  %v4528_v38 = vld [vmem:[%s4725_s16 + $0xe0] sm:$0xff] }
 0x206   : > { %v2168_v6 = vsel %vm1848_vm5, %v1688_v61, %v2008_v20  ;;  %v2252_v51 = vsel %vm1932_vm6, %v1772_v29, %v2092_v30 }
 0x207   : > { %vm3076_vm3 = vcmp.ge.f32.partialorder %v2707_v57, 0.0  ;;  %v3236_v15 = vmul.f32 0.2, %v2707_v57  ;;  %vm3160_vm4 = vcmp.ge.f32.partialorder %v2917_v56, 0.0  ;;  %v3320_v28 = vmul.f32 0.2, %v2917_v56 }
 0x209   : > { %v3396_v47 = vsel %vm3076_vm3, %v2707_v57, %v3236_v15  ;;  %v1347_v32 = vpop.f32.mrf.mxu0  ;;  %v3480_v11 = vsel %vm3160_vm4, %v2917_v56, %v3320_v28  ;;  %v1557_v3 = vpop.f32.mrf.mxu1  ;;  %v4570_v56 = vld [vmem:[%s4725_s16 + $0x230] sm:$0xff] }
 0x20a   : > { %v5313_v31 = vsel %vm2406_vm11, %v3396_v47, -inf  ;;  %v1689_v7 = vadd.f32 %v1347_v32, %v4818_v10  ;;  %v5319_v24 = vsel %vm2406_vm11, %v3480_v11, -inf  ;;  %v1773_v18 = vadd.f32 %v1557_v3, %v4816_v8 }
 0x20b   : > { %v3702_v36 = vmax.f32 %v5243_v33, %v5313_v31  ;;  %v3546_v46 = vmax.f32 %v5236_v52, %v5319_v24 }
 0x20c   : > { %vm1849_vm7 = vcmp.ge.f32.partialorder %v1689_v7, 0.0  ;;  %v2009_v54 = vmul.f32 0.2, %v1689_v7  ;;  %v2708_v41 = vpop.f32.mrf.mxu2  ;;  %vm1933_vm8 = vcmp.ge.f32.partialorder %v1773_v18, 0.0  ;;  %v2093_v37 = vmul.f32 0.2, %v1773_v18  ;;  %v2918_v0 = vpop.f32.mrf.mxu3 }
 0x20d   : > { %v2709_v53 = vadd.f32 %v5286_v39, %v2708_v41  ;;  %v2919_v43 = vadd.f32 %v5286_v39, %v2918_v0 }
 0x20e   : > { %v2169_v17 = vsel %vm1849_vm7, %v1689_v7, %v2009_v54  ;;  %v2253_v1 = vsel %vm1933_vm8, %v1773_v18, %v2093_v37 }
 0x20f   : > { %v2318_v27 = vpack.c.bf16 %v2169_v17, %v2168_v6  ;;  %vm3077_vm9 = vcmp.ge.f32.partialorder %v2709_v53, 0.0  ;;  %v3237_v12 = vmul.f32 0.2, %v2709_v53  ;;  %v2360_v13 = vpack.c.bf16 %v2253_v1, %v2252_v51 }
 0x210   : > { %vm3161_vm10 = vcmp.ge.f32.partialorder %v2919_v43, 0.0  ;;  %v3321_v35 = vmul.f32 0.2, %v2919_v43 }
 0x211   : > { %v3397_v57 = vsel %vm3077_vm9, %v2709_v53, %v3237_v12  ;;  %v1350_v9 = vpop.f32.mrf.mxu0  ;;  %4435 = vmatmul.msk.bf16.gmra.mxu2 %vm2406_vm11, %v2318_v27  ;;  %v1560_v29 = vpop.f32.mrf.mxu1  ;;  %4477 = vmatmul.msk.bf16.gmra.mxu3 %vm2406_vm11, %v2360_v13 }
 0x212   : > { %v5331_v15 = vsel %vm2406_vm11, %v3397_v57, -inf  ;;  %v3481_v61 = vsel %vm3161_vm10, %v2919_v43, %v3321_v35  ;;  %v1690_v30 = vadd.f32 %v1350_v9, %v4783_v45  ;;  %v1774_v3 = vadd.f32 %v1560_v29, %v4780_v44 }
 0x213   : > { %v3741_v28 = vmax.f32 %v5262_v40, %v5331_v15  ;;  %v5337_v20 = vsel %vm2406_vm11, %v3481_v61, -inf }
 0x214   : > { %v3585_v47 = vmax.f32 %v5256_v14, %v5337_v20  ;;  %4348 = vmatmul.msk.bf16.gmra.mxu0 %vm549_vm2, %v4528_v38  ;;  %v2711_v32 = vpop.f32.mrf.mxu2  ;;  %4390 = vmatmul.msk.bf16.gmra.mxu1 %vm549_vm2, %v4570_v56  ;;  %v2921_v7 = vpop.f32.mrf.mxu3  ;;  %vm1850_vm14 = vcmp.ge.f32.partialorder %v1690_v30, 0.0  ;;  %v2010_v37 = vmul.f32 0.2, %v1690_v30  ;;  %v2094_v6 = vmul.f32 0.2, %v1774_v3 }
 0x215   : > { %v2712_v11 = vadd.f32 %v5286_v39, %v2711_v32  ;;  %v2922_v18 = vadd.f32 %v5286_v39, %v2921_v7  ;;  %vm1934_vm15 = vcmp.ge.f32.partialorder %v1774_v3, 0.0 }
 0x216   : > { %v2170_v29 = vsel %vm1850_vm14, %v1690_v30, %v2010_v37  ;;  %v2254_v32 = vsel %vm1934_vm15, %v1774_v3, %v2094_v6 }
 0x217   : > { %vm3078_vm12 = vcmp.ge.f32.partialorder %v2712_v11, 0.0  ;;  %v3238_v54 = vmul.f32 0.2, %v2712_v11  ;;  %vm3162_vm13 = vcmp.ge.f32.partialorder %v2922_v18, 0.0  ;;  %v3322_v41 = vmul.f32 0.2, %v2922_v18 }
 0x219   : > { %v3398_v53 = vsel %vm3078_vm12, %v2712_v11, %v3238_v54  ;;  %v1352_v0 = vpop.f32.mrf.mxu0  ;;  %v3482_v17 = vsel %vm3162_vm13, %v2922_v18, %v3322_v41  ;;  %v1562_v27 = vpop.f32.mrf.mxu1  ;;  %v4529_v41 = vld [vmem:[%s4725_s16 + $0xe8] sm:$0xff] }
 0x21a   : > { %v5348_v51 = vsel %vm2406_vm11, %v3398_v53, -inf  ;;  %v1691_v43 = vadd.f32 %v1352_v0, %v4788_v48  ;;  %v3639_v12 = vsel %vm2406_vm11, %v3482_v17, -inf  ;;  %v1775_v13 = vadd.f32 %v1562_v27, %v4790_v50  ;;  %v4571_v17 = vld [vmem:[%s4725_s16 + $0x238] sm:$0xff] }
 0x21b   : > { %v3780_v1 = vmax.f32 %v5281_v16, %v5348_v51  ;;  %v5358_v35 = vmax.f32 %v3624_v25, %v3639_v12 }
 0x21c   : > { %vm1851_vm0 = vcmp.ge.f32.partialorder %v1691_v43, 0.0  ;;  %v2011_v38 = vmul.f32 0.2, %v1691_v43  ;;  %v2713_v57 = vpop.f32.mrf.mxu2  ;;  %vm1935_vm1 = vcmp.ge.f32.partialorder %v1775_v13, 0.0  ;;  %v2095_v9 = vmul.f32 0.2, %v1775_v13  ;;  %v2923_v61 = vpop.f32.mrf.mxu3 }
 0x21d   : > { %v2714_v56 = vadd.f32 %v5286_v39, %v2713_v57  ;;  %v2924_v7 = vadd.f32 %v5286_v39, %v2923_v61 }
 0x21e   : > { %v2171_v11 = vsel %vm1851_vm0, %v1691_v43, %v2011_v38  ;;  %v2255_v19 = vsel %vm1935_vm1, %v1775_v13, %v2095_v9 }
 0x21f   : > { %v2319_v18 = vpack.c.bf16 %v2171_v11, %v2170_v29  ;;  %vm3079_vm3 = vcmp.ge.f32.partialorder %v2714_v56, 0.0  ;;  %v3239_v42 = vmul.f32 0.2, %v2714_v56  ;;  %v2361_v25 = vpack.c.bf16 %v2255_v19, %v2254_v32 }
 0x220   : > { %vm3163_vm4 = vcmp.ge.f32.partialorder %v2924_v7, 0.0  ;;  %v3323_v54 = vmul.f32 0.2, %v2924_v7 }
 0x221   : > { %v3399_v53 = vsel %vm3079_vm3, %v2714_v56, %v3239_v42  ;;  %v1355_v0 = vpop.f32.mrf.mxu0  ;;  %4436 = vmatmul.msk.bf16.gmra.mxu2 %vm2406_vm11, %v2319_v18  ;;  %v1565_v3 = vpop.f32.mrf.mxu1  ;;  %4478 = vmatmul.msk.bf16.gmra.mxu3 %vm2406_vm11, %v2361_v25 }
 0x222   : > { %v5367_v27 = vsel %vm2406_vm11, %v3399_v53, -inf  ;;  %v3483_v30 = vsel %vm3163_vm4, %v2924_v7, %v3323_v54  ;;  %v1692_v13 = vadd.f32 %v1355_v0, %v4811_v5  ;;  %v1776_v9 = vadd.f32 %v1565_v3, %v4808_v4 }
 0x223   : > { %v3819_v37 = vmax.f32 %v5304_v55, %v5367_v27  ;;  %v3678_v6 = vsel %vm2406_vm11, %v3483_v30, -inf }
 0x224   : > { %v5376_v43 = vmax.f32 %v3663_v49, %v3678_v6  ;;  %4349 = vmatmul.msk.bf16.gmra.mxu0 %vm549_vm2, %v4529_v41  ;;  %v2716_v12 = vpop.f32.mrf.mxu2  ;;  %4391 = vmatmul.msk.bf16.gmra.mxu1 %vm549_vm2, %v4571_v17  ;;  %v2926_v57 = vpop.f32.mrf.mxu3  ;;  %vm1852_vm7 = vcmp.ge.f32.partialorder %v1692_v13, 0.0  ;;  %v2012_v34 = vmul.f32 0.2, %v1692_v13  ;;  %v2096_v32 = vmul.f32 0.2, %v1776_v9 }
 0x225   : > { %v2717_v38 = vadd.f32 %v5286_v39, %v2716_v12  ;;  %v2927_v56 = vadd.f32 %v5286_v39, %v2926_v57  ;;  %vm1936_vm8 = vcmp.ge.f32.partialorder %v1776_v9, 0.0  ;;  %v4530_v57 = vld [vmem:[%s4725_s16 + $0xf0] sm:$0xff] }
 0x226   : > { %v2172_v24 = vsel %vm1852_vm7, %v1692_v13, %v2012_v34 }
 0x227   : > { %vm3080_vm5 = vcmp.ge.f32.partialorder %v2717_v38, 0.0  ;;  %v3240_v61 = vmul.f32 0.2, %v2717_v38  ;;  %vm3164_vm6 = vcmp.ge.f32.partialorder %v2927_v56, 0.0  ;;  %v3324_v21 = vmul.f32 0.2, %v2927_v56 }
 0x229   : > { %v3400_v49 = vsel %vm3080_vm5, %v2717_v38, %v3240_v61  ;;  %v1357_v29 = vpop.f32.mrf.mxu0  ;;  %v3484_v7 = vsel %vm3164_vm6, %v2927_v56, %v3324_v21  ;;  %v1567_v19 = vpop.f32.mrf.mxu1  ;;  %v4572_v21 = vld [vmem:[%s4725_s16 + $0x240] sm:$0xff] }
 0x22a   : > { %v3541_v11 = vsel %vm2406_vm11, %v3400_v49, -inf  ;;  %v1693_v18 = vadd.f32 %v1357_v29, %v4816_v8  ;;  %v3717_v25 = vsel %vm2406_vm11, %v3484_v7, -inf  ;;  %v1777_v54 = vadd.f32 %v1567_v19, %v4818_v10 }
 0x22b   : > { %v5389_v42 = vmax.f32 %v3546_v46, %v3541_v11  ;;  %v5396_v41 = vmax.f32 %v3702_v36, %v3717_v25  ;;  %v2256_v46 = vsel %vm1936_vm8, %v1776_v9, %v2096_v32 }
 0x22c   : > { %vm1853_vm9 = vcmp.ge.f32.partialorder %v1693_v18, 0.0  ;;  %v2013_v53 = vmul.f32 0.2, %v1693_v18  ;;  %v2718_v0 = vpop.f32.mrf.mxu2  ;;  %vm1937_vm10 = vcmp.ge.f32.partialorder %v1777_v54, 0.0  ;;  %v2097_v17 = vmul.f32 0.2, %v1777_v54  ;;  %v2928_v52 = vpop.f32.mrf.mxu3 }
 0x22d   : > { %v2719_v30 = vadd.f32 %v5286_v39, %v2718_v0  ;;  %v2929_v6 = vadd.f32 %v5286_v39, %v2928_v52 }
 0x22e   : > { %v2173_v3 = vsel %vm1853_vm9, %v1693_v18, %v2013_v53  ;;  %v2257_v33 = vsel %vm1937_vm10, %v1777_v54, %v2097_v17 }
 0x22f   : > { %v2320_v12 = vpack.c.bf16 %v2173_v3, %v2172_v24  ;;  %vm3081_vm12 = vcmp.ge.f32.partialorder %v2719_v30, 0.0  ;;  %v3241_v31 = vmul.f32 0.2, %v2719_v30  ;;  %v2362_v36 = vpack.c.bf16 %v2257_v33, %v2256_v46 }
 0x230   : > { %vm3165_vm13 = vcmp.ge.f32.partialorder %v2929_v6, 0.0  ;;  %v3325_v38 = vmul.f32 0.2, %v2929_v6 }
 0x231   : > { %v3401_v56 = vsel %vm3081_vm12, %v2719_v30, %v3241_v31  ;;  %v1360_v61 = vpop.f32.mrf.mxu0  ;;  %4437 = vmatmul.msk.bf16.gmra.mxu2 %vm2406_vm11, %v2320_v12  ;;  %v1570_v9 = vpop.f32.mrf.mxu1  ;;  %4479 = vmatmul.msk.bf16.gmra.mxu3 %vm2406_vm11, %v2362_v36 }
 0x232   : > { %v3580_v49 = vsel %vm2406_vm11, %v3401_v56, -inf  ;;  %v3485_v13 = vsel %vm3165_vm13, %v2929_v6, %v3325_v38  ;;  %v1694_v7 = vadd.f32 %v1360_v61, %v4780_v44  ;;  %v1778_v14 = vadd.f32 %v1570_v9, %v4783_v45 }
 0x233   : > { %v5409_v34 = vmax.f32 %v3585_v47, %v3580_v49  ;;  %v3756_v29 = vsel %vm2406_vm11, %v3485_v13, -inf  ;;  %v4531_v13 = vld [vmem:[%s4725_s16 + $0xf8] sm:$0xff] }
 0x234   : > { %v5415_v32 = vmax.f32 %v3741_v28, %v3756_v29  ;;  %4350 = vmatmul.msk.bf16.gmra.mxu0 %vm549_vm2, %v4530_v57  ;;  %v2721_v11 = vpop.f32.mrf.mxu2  ;;  %4392 = vmatmul.msk.bf16.gmra.mxu1 %vm549_vm2, %v4572_v21  ;;  %v2931_v19 = vpop.f32.mrf.mxu3  ;;  %vm1854_vm0 = vcmp.ge.f32.partialorder %v1694_v7, 0.0  ;;  %v2014_v15 = vmul.f32 0.2, %v1694_v7  ;;  %v2098_v54 = vmul.f32 0.2, %v1778_v14 }
 0x235   : > { %v2722_v18 = vadd.f32 %v5286_v39, %v2721_v11  ;;  %v2932_v20 = vadd.f32 %v5286_v39, %v2931_v19  ;;  %vm1938_vm1 = vcmp.ge.f32.partialorder %v1778_v14, 0.0  ;;  %v4573_v11 = vld [vmem:[%s4725_s16 + $0x248] sm:$0xff] }
 0x236   : > { %v2174_v38 = vsel %vm1854_vm0, %v1694_v7, %v2014_v15  ;;  %v2258_v57 = vsel %vm1938_vm1, %v1778_v14, %v2098_v54 }
 0x237   : > { %vm3082_vm14 = vcmp.ge.f32.partialorder %v2722_v18, 0.0  ;;  %v3242_v47 = vmul.f32 0.2, %v2722_v18  ;;  %vm3166_vm15 = vcmp.ge.f32.partialorder %v2932_v20, 0.0  ;;  %v3326_v40 = vmul.f32 0.2, %v2932_v20 }
 0x239   : > { %v3402_v28 = vsel %vm3082_vm14, %v2722_v18, %v3242_v47  ;;  %v1362_v25 = vpop.f32.mrf.mxu0  ;;  %v3486_v0 = vsel %vm3166_vm15, %v2932_v20, %v3326_v40  ;;  %v1572_v30 = vpop.f32.mrf.mxu1 }
 0x23a   : > { %v5424_v53 = vsel %vm2406_vm11, %v3402_v28, -inf  ;;  %v1695_v17 = vadd.f32 %v1362_v25, %v4790_v50  ;;  %v3795_v24 = vsel %vm2406_vm11, %v3486_v0, -inf  ;;  %v1779_v46 = vadd.f32 %v1572_v30, %v4788_v48 }
 0x23b   : > { %v3628_v52 = vmax.f32 %v5358_v35, %v5424_v53  ;;  %v5434_v3 = vmax.f32 %v3780_v1, %v3795_v24 }
 0x23c   : > { %vm1855_vm3 = vcmp.ge.f32.partialorder %v1695_v17, 0.0  ;;  %v2015_v6 = vmul.f32 0.2, %v1695_v17  ;;  %v2723_v12 = vpop.f32.mrf.mxu2  ;;  %vm1939_vm4 = vcmp.ge.f32.partialorder %v1779_v46, 0.0  ;;  %v2099_v33 = vmul.f32 0.2, %v1779_v46  ;;  %v2933_v36 = vpop.f32.mrf.mxu3 }
 0x23d   : > { %v2724_v31 = vadd.f32 %v5286_v39, %v2723_v12  ;;  %v2934_v61 = vadd.f32 %v5286_v39, %v2933_v36 }
 0x23e   : > { %v2175_v56 = vsel %vm1855_vm3, %v1695_v17, %v2015_v6  ;;  %v2259_v16 = vsel %vm1939_vm4, %v1779_v46, %v2099_v33 }
 0x23f   : > { %v2321_v21 = vpack.c.bf16 %v2175_v56, %v2174_v38  ;;  %vm3083_vm5 = vcmp.ge.f32.partialorder %v2724_v31, 0.0  ;;  %v3243_v51 = vmul.f32 0.2, %v2724_v31  ;;  %v2363_v1 = vpack.c.bf16 %v2259_v16, %v2258_v57 }
 0x240   : > { %vm3167_vm6 = vcmp.ge.f32.partialorder %v2934_v61, 0.0  ;;  %v3327_v49 = vmul.f32 0.2, %v2934_v61 }
 0x241   : > { %v3403_v9 = vsel %vm3083_vm5, %v2724_v31, %v3243_v51  ;;  %v1365_v29 = vpop.f32.mrf.mxu0  ;;  %4438 = vmatmul.msk.bf16.gmra.mxu2 %vm2406_vm11, %v2321_v21  ;;  %v1575_v19 = vpop.f32.mrf.mxu1  ;;  %4480 = vmatmul.msk.bf16.gmra.mxu3 %vm2406_vm11, %v2363_v1 }
 0x242   : > { %v5443_v18 = vsel %vm2406_vm11, %v3403_v9, -inf  ;;  %v3487_v7 = vsel %vm3167_vm6, %v2934_v61, %v3327_v49  ;;  %v1696_v15 = vadd.f32 %v1365_v29, %v4808_v4  ;;  %v1780_v54 = vadd.f32 %v1575_v19, %v4811_v5 }
 0x243   : > { %v3667_v14 = vmax.f32 %v5376_v43, %v5443_v18  ;;  %v3834_v20 = vsel %vm2406_vm11, %v3487_v7, -inf }
 0x244   : > { %v5452_v47 = vmax.f32 %v3819_v37, %v3834_v20  ;;  %4351 = vmatmul.msk.bf16.gmra.mxu0 %vm549_vm2, %v4531_v13  ;;  %v2726_v40 = vpop.f32.mrf.mxu2  ;;  %4393 = vmatmul.msk.bf16.gmra.mxu1 %vm549_vm2, %v4573_v11  ;;  %v2936_v25 = vpop.f32.mrf.mxu3  ;;  %vm1856_vm9 = vcmp.ge.f32.partialorder %v1696_v15, 0.0  ;;  %v2016_v27 = vmul.f32 0.2, %v1696_v15  ;;  %v2100_v24 = vmul.f32 0.2, %v1780_v54 }
 0x245   : > { %v2727_v28 = vadd.f32 %v5286_v39, %v2726_v40  ;;  %v2937_v0 = vadd.f32 %v5286_v39, %v2936_v25  ;;  %vm1940_vm10 = vcmp.ge.f32.partialorder %v1780_v54, 0.0  ;;  %v4532_v40 = vld [vmem:[%s4725_s16 + $0x100] sm:$0xff] }
 0x246   : > { %v2176_v1 = vsel %vm1856_vm9, %v1696_v15, %v2016_v27  ;;  %v2260_v49 = vsel %vm1940_vm10, %v1780_v54, %v2100_v24 }
 0x247   : > { %vm3084_vm7 = vcmp.ge.f32.partialorder %v2727_v28, 0.0  ;;  %v3244_v17 = vmul.f32 0.2, %v2727_v28  ;;  %vm3168_vm8 = vcmp.ge.f32.partialorder %v2937_v0, 0.0  ;;  %v3328_v55 = vmul.f32 0.2, %v2937_v0 }
 0x249   : > { %v3404_v37 = vsel %vm3084_vm7, %v2727_v28, %v3244_v17  ;;  %v1367_v30 = vpop.f32.mrf.mxu0  ;;  %v3488_v6 = vsel %vm3168_vm8, %v2937_v0, %v3328_v55  ;;  %v1577_v33 = vpop.f32.mrf.mxu1  ;;  %v4574_v0 = vld [vmem:[%s4725_s16 + $0x250] sm:$0xff] }
 0x24a   : > { %v5461_v46 = vsel %vm2406_vm11, %v3404_v37, -inf  ;;  %v1697_v12 = vadd.f32 %v1367_v30, %v4818_v10  ;;  %v5467_v36 = vsel %vm2406_vm11, %v3488_v6, -inf  ;;  %v1781_v38 = vadd.f32 %v1577_v33, %v4816_v8 }
 0x24b   : > { %v3706_v31 = vmax.f32 %v5396_v41, %v5461_v46  ;;  %v3550_v57 = vmax.f32 %v5389_v42, %v5467_v36 }
 0x24c   : > { %vm1857_vm12 = vcmp.ge.f32.partialorder %v1697_v12, 0.0  ;;  %v2017_v56 = vmul.f32 0.2, %v1697_v12  ;;  %v2728_v61 = vpop.f32.mrf.mxu2  ;;  %vm1941_vm13 = vcmp.ge.f32.partialorder %v1781_v38, 0.0  ;;  %v2101_v21 = vmul.f32 0.2, %v1781_v38  ;;  %v2938_v51 = vpop.f32.mrf.mxu3 }
 0x24d   : > { %v2729_v16 = vadd.f32 %v5286_v39, %v2728_v61  ;;  %v2939_v9 = vadd.f32 %v5286_v39, %v2938_v51 }
 0x24e   : > { %v2177_v13 = vsel %vm1857_vm12, %v1697_v12, %v2017_v56  ;;  %v2261_v11 = vsel %vm1941_vm13, %v1781_v38, %v2101_v21 }
 0x24f   : > { %v2322_v29 = vpack.c.bf16 %v2177_v13, %v2176_v1  ;;  %vm3085_vm14 = vcmp.ge.f32.partialorder %v2729_v16, 0.0  ;;  %v3245_v7 = vmul.f32 0.2, %v2729_v16  ;;  %v2364_v19 = vpack.c.bf16 %v2261_v11, %v2260_v49 }
 0x250   : > { %vm3169_vm15 = vcmp.ge.f32.partialorder %v2939_v9, 0.0  ;;  %v3329_v20 = vmul.f32 0.2, %v2939_v9 }
 0x251   : > { %v3405_v28 = vsel %vm3085_vm14, %v2729_v16, %v3245_v7  ;;  %v1370_v25 = vpop.f32.mrf.mxu0  ;;  %4439 = vmatmul.msk.bf16.gmra.mxu2 %vm2406_vm11, %v2322_v29  ;;  %v1580_v54 = vpop.f32.mrf.mxu1  ;;  %4481 = vmatmul.msk.bf16.gmra.mxu3 %vm2406_vm11, %v2364_v19 }
 0x252   : > { %v5479_v17 = vsel %vm2406_vm11, %v3405_v28, -inf  ;;  %v3489_v15 = vsel %vm3169_vm15, %v2939_v9, %v3329_v20  ;;  %v1698_v24 = vadd.f32 %v1370_v25, %v4783_v45  ;;  %v1782_v33 = vadd.f32 %v1580_v54, %v4780_v44 }
 0x253   : > { %v3745_v55 = vmax.f32 %v5415_v32, %v5479_v17  ;;  %v5485_v27 = vsel %vm2406_vm11, %v3489_v15, -inf }
 0x254   : > { %v3589_v37 = vmax.f32 %v5409_v34, %v5485_v27  ;;  %4352 = vmatmul.msk.bf16.gmra.mxu0 %vm549_vm2, %v4532_v40  ;;  %v2731_v30 = vpop.f32.mrf.mxu2  ;;  %4394 = vmatmul.msk.bf16.gmra.mxu1 %vm549_vm2, %v4574_v0  ;;  %v2941_v12 = vpop.f32.mrf.mxu3  ;;  %vm1858_vm3 = vcmp.ge.f32.partialorder %v1698_v24, 0.0  ;;  %v2018_v21 = vmul.f32 0.2, %v1698_v24  ;;  %v2102_v1 = vmul.f32 0.2, %v1782_v33 }
 0x255   : > { %v2732_v6 = vadd.f32 %v5286_v39, %v2731_v30  ;;  %v2942_v38 = vadd.f32 %v5286_v39, %v2941_v12  ;;  %vm1942_vm4 = vcmp.ge.f32.partialorder %v1782_v33, 0.0 }
 0x256   : > { %v2178_v54 = vsel %vm1858_vm3, %v1698_v24, %v2018_v21  ;;  %v2262_v30 = vsel %vm1942_vm4, %v1782_v33, %v2102_v1 }
 0x257   : > { %vm3086_vm0 = vcmp.ge.f32.partialorder %v2732_v6, 0.0  ;;  %v3246_v56 = vmul.f32 0.2, %v2732_v6  ;;  %vm3170_vm1 = vcmp.ge.f32.partialorder %v2942_v38, 0.0  ;;  %v3330_v61 = vmul.f32 0.2, %v2942_v38 }
 0x259   : > { %v3406_v16 = vsel %vm3086_vm0, %v2732_v6, %v3246_v56  ;;  %v1372_v51 = vpop.f32.mrf.mxu0  ;;  %v3490_v13 = vsel %vm3170_vm1, %v2942_v38, %v3330_v61  ;;  %v1582_v29 = vpop.f32.mrf.mxu1  ;;  %v4533_v61 = vld [vmem:[%s4725_s16 + $0x108] sm:$0xff] }
 0x25a   : > { %v5496_v49 = vsel %vm2406_vm11, %v3406_v16, -inf  ;;  %v1699_v9 = vadd.f32 %v1372_v51, %v4788_v48  ;;  %v3641_v7 = vsel %vm2406_vm11, %v3490_v13, -inf  ;;  %v1783_v19 = vadd.f32 %v1582_v29, %v4790_v50  ;;  %v4575_v13 = vld [vmem:[%s4725_s16 + $0x258] sm:$0xff] }
 0x25b   : > { %v3784_v11 = vmax.f32 %v5434_v3, %v5496_v49  ;;  %v5506_v20 = vmax.f32 %v3628_v52, %v3641_v7 }
 0x25c   : > { %vm1859_vm5 = vcmp.ge.f32.partialorder %v1699_v9, 0.0  ;;  %v2019_v40 = vmul.f32 0.2, %v1699_v9  ;;  %v2733_v28 = vpop.f32.mrf.mxu2  ;;  %vm1943_vm6 = vcmp.ge.f32.partialorder %v1783_v19, 0.0  ;;  %v2103_v25 = vmul.f32 0.2, %v1783_v19  ;;  %v2943_v15 = vpop.f32.mrf.mxu3 }
 0x25d   : > { %v2734_v0 = vadd.f32 %v5286_v39, %v2733_v28  ;;  %v2944_v12 = vadd.f32 %v5286_v39, %v2943_v15 }
 0x25e   : > { %v2179_v6 = vsel %vm1859_vm5, %v1699_v9, %v2019_v40  ;;  %v2263_v35 = vsel %vm1943_vm6, %v1783_v19, %v2103_v25 }
 0x25f   : > { %v2323_v38 = vpack.c.bf16 %v2179_v6, %v2178_v54  ;;  %vm3087_vm7 = vcmp.ge.f32.partialorder %v2734_v0, 0.0  ;;  %v3247_v53 = vmul.f32 0.2, %v2734_v0  ;;  %v2365_v52 = vpack.c.bf16 %v2263_v35, %v2262_v30 }
 0x260   : > { %vm3171_vm8 = vcmp.ge.f32.partialorder %v2944_v12, 0.0  ;;  %v3331_v56 = vmul.f32 0.2, %v2944_v12 }
 0x261   : > { %v3407_v16 = vsel %vm3087_vm7, %v2734_v0, %v3247_v53  ;;  %v1375_v51 = vpop.f32.mrf.mxu0  ;;  %4440 = vmatmul.msk.bf16.gmra.mxu2 %vm2406_vm11, %v2323_v38  ;;  %v1585_v33 = vpop.f32.mrf.mxu1  ;;  %4482 = vmatmul.msk.bf16.gmra.mxu3 %vm2406_vm11, %v2365_v52 }
 0x262   : > { %v5515_v29 = vsel %vm2406_vm11, %v3407_v16, -inf  ;;  %v3491_v24 = vsel %vm3171_vm8, %v2944_v12, %v3331_v56  ;;  %v1700_v19 = vadd.f32 %v1375_v51, %v4811_v5  ;;  %v1784_v25 = vadd.f32 %v1585_v33, %v4808_v4 }
 0x263   : > { %v3823_v21 = vmax.f32 %v5452_v47, %v5515_v29  ;;  %v3680_v1 = vsel %vm2406_vm11, %v3491_v24, -inf }
 0x264   : > { %v5524_v9 = vmax.f32 %v3667_v14, %v3680_v1  ;;  %4353 = vmatmul.msk.bf16.gmra.mxu0 %vm549_vm2, %v4533_v61  ;;  %v2736_v7 = vpop.f32.mrf.mxu2  ;;  %4395 = vmatmul.msk.bf16.gmra.mxu1 %vm549_vm2, %v4575_v13  ;;  %v2946_v28 = vpop.f32.mrf.mxu3  ;;  %vm1860_vm12 = vcmp.ge.f32.partialorder %v1700_v19, 0.0  ;;  %v2020_v18 = vmul.f32 0.2, %v1700_v19  ;;  %v2104_v30 = vmul.f32 0.2, %v1784_v25 }
 0x265   : > { %v2737_v40 = vadd.f32 %v5286_v39, %v2736_v7  ;;  %v2947_v0 = vadd.f32 %v5286_v39, %v2946_v28  ;;  %vm1944_vm13 = vcmp.ge.f32.partialorder %v1784_v25, 0.0  ;;  %v4534_v28 = vld [vmem:[%s4725_s16 + $0x110] sm:$0xff] }
 0x266   : > { %v2180_v36 = vsel %vm1860_vm12, %v1700_v19, %v2020_v18 }
 0x267   : > { %vm3088_vm9 = vcmp.ge.f32.partialorder %v2737_v40, 0.0  ;;  %v3248_v15 = vmul.f32 0.2, %v2737_v40  ;;  %vm3172_vm10 = vcmp.ge.f32.partialorder %v2947_v0, 0.0  ;;  %v3332_v43 = vmul.f32 0.2, %v2947_v0 }
 0x269   : > { %v3408_v14 = vsel %vm3088_vm9, %v2737_v40, %v3248_v15  ;;  %v1377_v54 = vpop.f32.mrf.mxu0  ;;  %v3492_v12 = vsel %vm3172_vm10, %v2947_v0, %v3332_v43  ;;  %v1587_v35 = vpop.f32.mrf.mxu1  ;;  %v4576_v43 = vld [vmem:[%s4725_s16 + $0x260] sm:$0xff] }
 0x26a   : > { %v3543_v6 = vsel %vm2406_vm11, %v3408_v14, -inf  ;;  %v1701_v38 = vadd.f32 %v1377_v54, %v4816_v8  ;;  %v3719_v52 = vsel %vm2406_vm11, %v3492_v12, -inf  ;;  %v1785_v56 = vadd.f32 %v1587_v35, %v4818_v10 }
 0x26b   : > { %v5537_v53 = vmax.f32 %v3550_v57, %v3543_v6  ;;  %v5544_v61 = vmax.f32 %v3706_v31, %v3719_v52  ;;  %v2264_v57 = vsel %vm1944_vm13, %v1784_v25, %v2104_v30 }
 0x26c   : > { %vm1861_vm14 = vcmp.ge.f32.partialorder %v1701_v38, 0.0  ;;  %v2021_v16 = vmul.f32 0.2, %v1701_v38  ;;  %v2738_v51 = vpop.f32.mrf.mxu2  ;;  %vm1945_vm15 = vcmp.ge.f32.partialorder %v1785_v56, 0.0  ;;  %v2105_v13 = vmul.f32 0.2, %v1785_v56  ;;  %v2948_v42 = vpop.f32.mrf.mxu3 }
 0x26d   : > { %v2739_v24 = vadd.f32 %v5286_v39, %v2738_v51  ;;  %v2949_v1 = vadd.f32 %v5286_v39, %v2948_v42 }
 0x26e   : > { %v2181_v33 = vsel %vm1861_vm14, %v1701_v38, %v2021_v16  ;;  %v2265_v41 = vsel %vm1945_vm15, %v1785_v56, %v2105_v13 }
 0x26f   : > { %v2324_v7 = vpack.c.bf16 %v2181_v33, %v2180_v36  ;;  %vm3089_vm0 = vcmp.ge.f32.partialorder %v2739_v24, 0.0  ;;  %v3249_v46 = vmul.f32 0.2, %v2739_v24  ;;  %v2366_v31 = vpack.c.bf16 %v2265_v41, %v2264_v57 }
 0x270   : > { %vm3173_vm1 = vcmp.ge.f32.partialorder %v2949_v1, 0.0  ;;  %v3333_v40 = vmul.f32 0.2, %v2949_v1 }
 0x271   : > { %v3409_v0 = vsel %vm3089_vm0, %v2739_v24, %v3249_v46  ;;  %v1380_v15 = vpop.f32.mrf.mxu0  ;;  %4441 = vmatmul.msk.bf16.gmra.mxu2 %vm2406_vm11, %v2324_v7  ;;  %v1590_v25 = vpop.f32.mrf.mxu1  ;;  %4483 = vmatmul.msk.bf16.gmra.mxu3 %vm2406_vm11, %v2366_v31 }
 0x272   : > { %v3582_v14 = vsel %vm2406_vm11, %v3409_v0, -inf  ;;  %v3493_v19 = vsel %vm3173_vm1, %v2949_v1, %v3333_v40  ;;  %v1702_v12 = vadd.f32 %v1380_v15, %v4780_v44  ;;  %v1786_v34 = vadd.f32 %v1590_v25, %v4783_v45 }
 0x273   : > { %v5557_v18 = vmax.f32 %v3589_v37, %v3582_v14  ;;  %v3758_v54 = vsel %vm2406_vm11, %v3493_v19, -inf  ;;  %v4535_v19 = vld [vmem:[%s4725_s16 + $0x118] sm:$0xff] }
 0x274   : > { %v5563_v30 = vmax.f32 %v3745_v55, %v3758_v54  ;;  %4354 = vmatmul.msk.bf16.gmra.mxu0 %vm549_vm2, %v4534_v28  ;;  %v2741_v6 = vpop.f32.mrf.mxu2  ;;  %4396 = vmatmul.msk.bf16.gmra.mxu1 %vm549_vm2, %v4576_v43  ;;  %v2951_v35 = vpop.f32.mrf.mxu3  ;;  %vm1862_vm5 = vcmp.ge.f32.partialorder %v1702_v12, 0.0  ;;  %v2022_v17 = vmul.f32 0.2, %v1702_v12  ;;  %v2106_v56 = vmul.f32 0.2, %v1786_v34 }
 0x275   : > { %v2742_v38 = vadd.f32 %v5286_v39, %v2741_v6  ;;  %v2952_v27 = vadd.f32 %v5286_v39, %v2951_v35  ;;  %vm1946_vm6 = vcmp.ge.f32.partialorder %v1786_v34, 0.0  ;;  %v4577_v6 = vld [vmem:[%s4725_s16 + $0x268] sm:$0xff] }
 0x276   : > { %v2182_v40 = vsel %vm1862_vm5, %v1702_v12, %v2022_v17  ;;  %v2266_v28 = vsel %vm1946_vm6, %v1786_v34, %v2106_v56 }
 0x277   : > { %vm3090_vm3 = vcmp.ge.f32.partialorder %v2742_v38, 0.0  ;;  %v3250_v37 = vmul.f32 0.2, %v2742_v38  ;;  %vm3174_vm4 = vcmp.ge.f32.partialorder %v2952_v27, 0.0  ;;  %v3334_v32 = vmul.f32 0.2, %v2952_v27 }
 0x279   : > { %v3410_v55 = vsel %vm3090_vm3, %v2742_v38, %v3250_v37  ;;  %v1382_v52 = vpop.f32.mrf.mxu0  ;;  %v3494_v51 = vsel %vm3174_vm4, %v2952_v27, %v3334_v32  ;;  %v1592_v24 = vpop.f32.mrf.mxu1 }
 0x27a   : > { %v5572_v16 = vsel %vm2406_vm11, %v3410_v55, -inf  ;;  %v1703_v13 = vadd.f32 %v1382_v52, %v4790_v50  ;;  %v3797_v36 = vsel %vm2406_vm11, %v3494_v51, -inf  ;;  %v1787_v57 = vadd.f32 %v1592_v24, %v4788_v48 }
 0x27b   : > { %v3632_v42 = vmax.f32 %v5506_v20, %v5572_v16  ;;  %v5582_v33 = vmax.f32 %v3784_v11, %v3797_v36 }
 0x27c   : > { %vm1863_vm7 = vcmp.ge.f32.partialorder %v1703_v13, 0.0  ;;  %v2023_v1 = vmul.f32 0.2, %v1703_v13  ;;  %v2743_v7 = vpop.f32.mrf.mxu2  ;;  %vm1947_vm8 = vcmp.ge.f32.partialorder %v1787_v57, 0.0  ;;  %v2107_v41 = vmul.f32 0.2, %v1787_v57  ;;  %v2953_v31 = vpop.f32.mrf.mxu3 }
 0x27d   : > { %v2744_v46 = vadd.f32 %v5286_v39, %v2743_v7  ;;  %v2954_v15 = vadd.f32 %v5286_v39, %v2953_v31 }
 0x27e   : > { %v2183_v0 = vsel %vm1863_vm7, %v1703_v13, %v2023_v1  ;;  %v2267_v3 = vsel %vm1947_vm8, %v1787_v57, %v2107_v41 }
 0x27f   : > { %v2325_v43 = vpack.c.bf16 %v2183_v0, %v2182_v40  ;;  %vm3091_vm9 = vcmp.ge.f32.partialorder %v2744_v46, 0.0  ;;  %v3251_v49 = vmul.f32 0.2, %v2744_v46  ;;  %v2367_v11 = vpack.c.bf16 %v2267_v3, %v2266_v28 }
 0x280   : > { %vm3175_vm10 = vcmp.ge.f32.partialorder %v2954_v15, 0.0  ;;  %v3335_v14 = vmul.f32 0.2, %v2954_v15 }
 0x281   : > { %v3411_v25 = vsel %vm3091_vm9, %v2744_v46, %v3251_v49  ;;  %v1385_v54 = vpop.f32.mrf.mxu0  ;;  %4442 = vmatmul.msk.bf16.gmra.mxu2 %vm2406_vm11, %v2325_v43  ;;  %v1595_v35 = vpop.f32.mrf.mxu1  ;;  %4484 = vmatmul.msk.bf16.gmra.mxu3 %vm2406_vm11, %v2367_v11 }
 0x282   : > { %v5591_v38 = vsel %vm2406_vm11, %v3411_v25, -inf  ;;  %v3495_v12 = vsel %vm3175_vm10, %v2954_v15, %v3335_v14  ;;  %v1704_v17 = vadd.f32 %v1385_v54, %v4808_v4  ;;  %v1788_v56 = vadd.f32 %v1595_v35, %v4811_v5 }
 0x283   : > { %v3671_v34 = vmax.f32 %v5524_v9, %v5591_v38  ;;  %v3836_v27 = vsel %vm2406_vm11, %v3495_v12, -inf }
 0x284   : > { %v5600_v37 = vmax.f32 %v3823_v21, %v3836_v27  ;;  %4355 = vmatmul.msk.bf16.gmra.mxu0 %vm549_vm2, %v4535_v19  ;;  %v2746_v32 = vpop.f32.mrf.mxu2  ;;  %4397 = vmatmul.msk.bf16.gmra.mxu1 %vm549_vm2, %v4577_v6  ;;  %v2956_v52 = vpop.f32.mrf.mxu3  ;;  %vm1864_vm14 = vcmp.ge.f32.partialorder %v1704_v17, 0.0  ;;  %v2024_v29 = vmul.f32 0.2, %v1704_v17  ;;  %v2108_v36 = vmul.f32 0.2, %v1788_v56 }
 0x285   : > { %v2747_v55 = vadd.f32 %v5286_v39, %v2746_v32  ;;  %v2957_v51 = vadd.f32 %v5286_v39, %v2956_v52  ;;  %vm1948_vm15 = vcmp.ge.f32.partialorder %v1788_v56, 0.0  ;;  %v4536_v32 = vld [vmem:[%s4725_s16 + $0x120] sm:$0xff] }
 0x286   : > { %v2184_v11 = vsel %vm1864_vm14, %v1704_v17, %v2024_v29  ;;  %v2268_v14 = vsel %vm1948_vm15, %v1788_v56, %v2108_v36  ;;  %v5642_v36 = vld [vmem:[%s6209_s6] ss:$0 sm:$0xff] }
 0x287   : > { %vm3092_vm12 = vcmp.ge.f32.partialorder %v2747_v55, 0.0  ;;  %v3252_v13 = vmul.f32 0.2, %v2747_v55  ;;  %vm3176_vm13 = vcmp.ge.f32.partialorder %v2957_v51, 0.0  ;;  %v3336_v47 = vmul.f32 0.2, %v2957_v51 }
 0x289   : > { %v3412_v21 = vsel %vm3092_vm12, %v2747_v55, %v3252_v13  ;;  %v1387_v24 = vpop.f32.mrf.mxu0  ;;  %v3496_v1 = vsel %vm3176_vm13, %v2957_v51, %v3336_v47  ;;  %v1597_v41 = vpop.f32.mrf.mxu1  ;;  %v4578_v51 = vld [vmem:[%s4725_s16 + $0x270] sm:$0xff] }
 0x28a   : > { %v5609_v57 = vsel %vm2406_vm11, %v3412_v21, -inf  ;;  %v1705_v7 = vadd.f32 %v1387_v24, %v4818_v10  ;;  %v5615_v31 = vsel %vm2406_vm11, %v3496_v1, -inf  ;;  %v1789_v40 = vadd.f32 %v1597_v41, %v4816_v8 }
 0x28b   : > { %v3710_v46 = vmax.f32 %v5544_v61, %v5609_v57  ;;  %v3554_v28 = vmax.f32 %v5537_v53, %v5615_v31 }
 0x28c   : > { %vm1865_vm0 = vcmp.ge.f32.partialorder %v1705_v7, 0.0  ;;  %v2025_v0 = vmul.f32 0.2, %v1705_v7  ;;  %v2748_v15 = vpop.f32.mrf.mxu2  ;;  %vm1949_vm1 = vcmp.ge.f32.partialorder %v1789_v40, 0.0  ;;  %v2109_v43 = vmul.f32 0.2, %v1789_v40  ;;  %v2958_v49 = vpop.f32.mrf.mxu3 }
 0x28d   : > { %v2749_v3 = vadd.f32 %v5286_v39, %v2748_v15  ;;  %v2959_v25 = vadd.f32 %v5286_v39, %v2958_v49 }
 0x28e   : > { %v2185_v19 = vsel %vm1865_vm0, %v1705_v7, %v2025_v0  ;;  %v2269_v6 = vsel %vm1949_vm1, %v1789_v40, %v2109_v43 }
 0x28f   : > { %v2326_v54 = vpack.c.bf16 %v2185_v19, %v2184_v11  ;;  %vm3093_vm3 = vcmp.ge.f32.partialorder %v2749_v3, 0.0  ;;  %v3253_v12 = vmul.f32 0.2, %v2749_v3  ;;  %v2368_v35 = vpack.c.bf16 %v2269_v6, %v2268_v14 }
 0x290   : > { %vm3177_vm4 = vcmp.ge.f32.partialorder %v2959_v25, 0.0  ;;  %v3337_v27 = vmul.f32 0.2, %v2959_v25 }
 0x291   : > { %v3413_v55 = vsel %vm3093_vm3, %v2749_v3, %v3253_v12  ;;  %v1390_v52 = vpop.f32.mrf.mxu0  ;;  %4443 = vmatmul.msk.bf16.gmra.mxu2 %vm2406_vm11, %v2326_v54  ;;  %v1600_v56 = vpop.f32.mrf.mxu1  ;;  %4485 = vmatmul.msk.bf16.gmra.mxu3 %vm2406_vm11, %v2368_v35 }
 0x292   : > { %v5627_v13 = vsel %vm2406_vm11, %v3413_v55, -inf  ;;  %v3497_v17 = vsel %vm3177_vm4, %v2959_v25, %v3337_v27  ;;  %v1706_v24 = vadd.f32 %v1390_v52, %v4783_v45  ;;  %v1790_v41 = vadd.f32 %v1600_v56, %v4780_v44 }
 0x293   : > { %v3749_v39 = vmax.f32 %v5563_v30, %v5627_v13  ;;  %v5633_v47 = vsel %vm2406_vm11, %v3497_v17, -inf }
 0x294   : > { %v3593_v29 = vmax.f32 %v5557_v18, %v5633_v47  ;;  %4356 = vmatmul.msk.bf16.gmra.mxu0 %vm549_vm2, %v4536_v32  ;;  %v2751_v21 = vpop.f32.mrf.mxu2  ;;  %4398 = vmatmul.msk.bf16.gmra.mxu1 %vm549_vm2, %v4578_v51  ;;  %v2961_v7 = vpop.f32.mrf.mxu3  ;;  %vm1866_vm7 = vcmp.ge.f32.partialorder %v1706_v24, 0.0  ;;  %v2026_v43 = vmul.f32 0.2, %v1706_v24  ;;  %v2110_v11 = vmul.f32 0.2, %v1790_v41 }
 0x295   : > { %v2752_v1 = vadd.f32 %v5642_v36, %v2751_v21  ;;  %v2962_v40 = vadd.f32 %v5642_v36, %v2961_v7  ;;  %vm1950_vm8 = vcmp.ge.f32.partialorder %v1790_v41, 0.0 }
 0x296   : > { %v2186_v56 = vsel %vm1866_vm7, %v1706_v24, %v2026_v43  ;;  %v2270_v21 = vsel %vm1950_vm8, %v1790_v41, %v2110_v11 }
 0x297   : > { %vm3094_vm5 = vcmp.ge.f32.partialorder %v2752_v1, 0.0  ;;  %v3254_v0 = vmul.f32 0.2, %v2752_v1  ;;  %vm3178_vm6 = vcmp.ge.f32.partialorder %v2962_v40, 0.0  ;;  %v3338_v15 = vmul.f32 0.2, %v2962_v40 }
 0x299   : > { %v3414_v3 = vsel %vm3094_vm5, %v2752_v1, %v3254_v0  ;;  %v1392_v49 = vpop.f32.mrf.mxu0  ;;  %v3498_v19 = vsel %vm3178_vm6, %v2962_v40, %v3338_v15  ;;  %v1602_v54 = vpop.f32.mrf.mxu1  ;;  %v4537_v15 = vld [vmem:[%s4725_s16 + $0x128] sm:$0xff] }
 0x29a   : > { %v5649_v14 = vsel %vm2406_vm11, %v3414_v3, -inf  ;;  %v1707_v25 = vadd.f32 %v1392_v49, %v4788_v48  ;;  %v3643_v12 = vsel %vm2406_vm11, %v3498_v19, -inf  ;;  %v1791_v35 = vadd.f32 %v1602_v54, %v4790_v50  ;;  %v4579_v19 = vld [vmem:[%s4725_s16 + $0x278] sm:$0xff] }
 0x29b   : > { %v3788_v6 = vmax.f32 %v5582_v33, %v5649_v14  ;;  %v5659_v27 = vmax.f32 %v3632_v42, %v3643_v12 }
 0x29c   : > { %vm1867_vm9 = vcmp.ge.f32.partialorder %v1707_v25, 0.0  ;;  %v2027_v32 = vmul.f32 0.2, %v1707_v25  ;;  %v2753_v55 = vpop.f32.mrf.mxu2  ;;  %vm1951_vm10 = vcmp.ge.f32.partialorder %v1791_v35, 0.0  ;;  %v2111_v52 = vmul.f32 0.2, %v1791_v35  ;;  %v2963_v17 = vpop.f32.mrf.mxu3 }
 0x29d   : > { %v2754_v51 = vadd.f32 %v5642_v36, %v2753_v55  ;;  %v2964_v7 = vadd.f32 %v5642_v36, %v2963_v17 }
 0x29e   : > { %v2187_v1 = vsel %vm1867_vm9, %v1707_v25, %v2027_v32  ;;  %v2271_v20 = vsel %vm1951_vm10, %v1791_v35, %v2111_v52 }
 0x29f   : > { %v2327_v40 = vpack.c.bf16 %v2187_v1, %v2186_v56  ;;  %vm3095_vm12 = vcmp.ge.f32.partialorder %v2754_v51, 0.0  ;;  %v3255_v16 = vmul.f32 0.2, %v2754_v51  ;;  %v2369_v42 = vpack.c.bf16 %v2271_v20, %v2270_v21 }
 0x2a0   : > { %vm3179_vm13 = vcmp.ge.f32.partialorder %v2964_v7, 0.0  ;;  %v3339_v0 = vmul.f32 0.2, %v2964_v7 }
 0x2a1   : > { %v3415_v3 = vsel %vm3095_vm12, %v2754_v51, %v3255_v16  ;;  %v1395_v49 = vpop.f32.mrf.mxu0  ;;  %4444 = vmatmul.msk.bf16.gmra.mxu2 %vm2406_vm11, %v2327_v40  ;;  %v1605_v41 = vpop.f32.mrf.mxu1  ;;  %4486 = vmatmul.msk.bf16.gmra.mxu3 %vm2406_vm11, %v2369_v42 }
 0x2a2   : > { %v5668_v54 = vsel %vm2406_vm11, %v3415_v3, -inf  ;;  %v3499_v24 = vsel %vm3179_vm13, %v2964_v7, %v3339_v0  ;;  %v1708_v35 = vadd.f32 %v1395_v49, %v4811_v5  ;;  %v1792_v52 = vadd.f32 %v1605_v41, %v4808_v4 }
 0x2a3   : > { %v3827_v43 = vmax.f32 %v5600_v37, %v5668_v54  ;;  %v3682_v11 = vsel %vm2406_vm11, %v3499_v24, -inf }
 0x2a4   : > { %v5677_v25 = vmax.f32 %v3671_v34, %v3682_v11  ;;  %4357 = vmatmul.msk.bf16.gmra.mxu0 %vm549_vm2, %v4537_v15  ;;  %v2756_v12 = vpop.f32.mrf.mxu2  ;;  %4399 = vmatmul.msk.bf16.gmra.mxu1 %vm549_vm2, %v4579_v19  ;;  %v2966_v55 = vpop.f32.mrf.mxu3  ;;  %vm1868_vm0 = vcmp.ge.f32.partialorder %v1708_v35, 0.0  ;;  %v2028_v38 = vmul.f32 0.2, %v1708_v35  ;;  %v2112_v21 = vmul.f32 0.2, %v1792_v52 }
 0x2a5   : > { %v2757_v32 = vadd.f32 %v5642_v36, %v2756_v12  ;;  %v2967_v51 = vadd.f32 %v5642_v36, %v2966_v55  ;;  %vm1952_vm2 = vcmp.ge.f32.partialorder %v1792_v52, 0.0 }
 0x2a6   : > { %v2188_v53 = vsel %vm1868_vm0, %v1708_v35, %v2028_v38  ;;  %v2272_v31 = vsel %vm1952_vm2, %v1792_v52, %v2112_v21 }
 0x2a7   : > { %vm3096_vm14 = vcmp.ge.f32.partialorder %v2757_v32, 0.0  ;;  %v3256_v17 = vmul.f32 0.2, %v2757_v32  ;;  %vm3180_vm15 = vcmp.ge.f32.partialorder %v2967_v51, 0.0  ;;  %v3340_v9 = vmul.f32 0.2, %v2967_v51 }
 0x2a9   : > { %v3416_v34 = vsel %vm3096_vm14, %v2757_v32, %v3256_v17  ;;  %v1397_v56 = vpop.f32.mrf.mxu0  ;;  %v3500_v7 = vsel %vm3180_vm15, %v2967_v51, %v3340_v9  ;;  %v1607_v20 = vpop.f32.mrf.mxu1 }
 0x2aa   : > { %v3545_v1 = vsel %vm2406_vm11, %v3416_v34, -inf  ;;  %v1709_v40 = vadd.f32 %v1397_v56, %v4816_v8  ;;  %v3721_v42 = vsel %vm2406_vm11, %v3500_v7, -inf  ;;  %v1793_v0 = vadd.f32 %v1607_v20, %v4818_v10 }
 0x2ab   : > { %v5690_v16 = vmax.f32 %v3554_v28, %v3545_v1  ;;  %v5697_v15 = vmax.f32 %v3710_v46, %v3721_v42 }
 0x2ac   : > { %vm1869_vm1 = vcmp.ge.f32.partialorder %v1709_v40, 0.0  ;;  %v2029_v3 = vmul.f32 0.2, %v1709_v40  ;;  %v2758_v49 = vpop.f32.mrf.mxu2  ;;  %vm1953_vm3 = vcmp.ge.f32.partialorder %v1793_v0, 0.0  ;;  %v2113_v19 = vmul.f32 0.2, %v1793_v0  ;;  %v2968_v41 = vpop.f32.mrf.mxu3 }
 0x2ad   : > { %v2759_v24 = vadd.f32 %v5642_v36, %v2758_v49  ;;  %v2969_v11 = vadd.f32 %v5642_v36, %v2968_v41 }
 0x2ae   : > { %v2189_v28 = vsel %vm1869_vm1, %v1709_v40, %v2029_v3  ;;  %v2273_v32 = vsel %vm1953_vm3, %v1793_v0, %v2113_v19 }
 0x2af   : > { %v2328_v12 = vpack.c.bf16 %v2189_v28, %v2188_v53  ;;  %vm3097_vm4 = vcmp.ge.f32.partialorder %v2759_v24, 0.0  ;;  %v3257_v61 = vmul.f32 0.2, %v2759_v24  ;;  %v2370_v57 = vpack.c.bf16 %v2273_v32, %v2272_v31 }
 0x2b0   : > { %vm3181_vm5 = vcmp.ge.f32.partialorder %v2969_v11, 0.0  ;;  %v3341_v46 = vmul.f32 0.2, %v2969_v11 }
 0x2b1   : > { %v3417_v55 = vsel %vm3097_vm4, %v2759_v24, %v3257_v61  ;;  %v1400_v51 = vpop.f32.mrf.mxu0  ;;  %4445 = vmatmul.msk.bf16.gmra.mxu2 %vm2406_vm11, %v2328_v12  ;;  %v1610_v34 = vpop.f32.mrf.mxu1  ;;  %4487 = vmatmul.msk.bf16.gmra.mxu3 %vm2406_vm11, %v2370_v57 }
 0x2b2   : > { %v3584_v17 = vsel %vm2406_vm11, %v3417_v55, -inf  ;;  %v3501_v9 = vsel %vm3181_vm5, %v2969_v11, %v3341_v46  ;;  %v1710_v21 = vadd.f32 %v1400_v51, %v4780_v44  ;;  %v1794_v40 = vadd.f32 %v1610_v34, %v4783_v45 }
 0x2b3   : > { %v5708_v35 = vmax.f32 %v3593_v29, %v3584_v17  ;;  %v3760_v52 = vsel %vm2406_vm11, %v3501_v9, -inf }
 0x2b4   : > { %v5714_v38 = vmax.f32 %v3749_v39, %v3760_v52  ;;  %v2761_v56 = vpop.f32.mrf.mxu2  ;;  %v2971_v7 = vpop.f32.mrf.mxu3  ;;  %vm1870_vm8 = vcmp.ge.f32.partialorder %v1710_v21, 0.0  ;;  %v2030_v29 = vmul.f32 0.2, %v1710_v21  ;;  %v2114_v13 = vmul.f32 0.2, %v1794_v40 }
 0x2b5   : > { %v2762_v1 = vadd.f32 %v5642_v36, %v2761_v56  ;;  %v2972_v20 = vadd.f32 %v5642_v36, %v2971_v7  ;;  %vm1954_vm9 = vcmp.ge.f32.partialorder %v1794_v40, 0.0 }
 0x2b6   : > { %v2190_v61 = vsel %vm1870_vm8, %v1710_v21, %v2030_v29  ;;  %v2274_v57 = vsel %vm1954_vm9, %v1794_v40, %v2114_v13 }
 0x2b7   : > { %vm3098_vm6 = vcmp.ge.f32.partialorder %v2762_v1, 0.0  ;;  %v3258_v18 = vmul.f32 0.2, %v2762_v1  ;;  %vm3182_vm7 = vcmp.ge.f32.partialorder %v2972_v20, 0.0  ;;  %v3342_v47 = vmul.f32 0.2, %v2972_v20 }
 0x2b9   : > { %v3418_v42 = vsel %vm3098_vm6, %v2762_v1, %v3258_v18  ;;  %v1402_v30 = vpop.f32.mrf.mxu0  ;;  %v3502_v0 = vsel %vm3182_vm7, %v2972_v20, %v3342_v47  ;;  %v1612_v49 = vpop.f32.mrf.mxu1 }
 0x2ba   : > { %v5721_v39 = vsel %vm2406_vm11, %v3418_v42, -inf  ;;  %v1711_v3 = vadd.f32 %v1402_v30, %v4790_v50  ;;  %v3799_v24 = vsel %vm2406_vm11, %v3502_v0, -inf  ;;  %v1795_v41 = vadd.f32 %v1612_v49, %v4788_v48 }
 0x2bb   : > { %v3636_v19 = vmax.f32 %v5659_v27, %v5721_v39  ;;  %v5731_v53 = vmax.f32 %v3788_v6, %v3799_v24 }
 0x2bc   : > { %vm1871_vm10 = vcmp.ge.f32.partialorder %v1711_v3, 0.0  ;;  %v2031_v31 = vmul.f32 0.2, %v1711_v3  ;;  %v2763_v28 = vpop.f32.mrf.mxu2  ;;  %vm1955_vm12 = vcmp.ge.f32.partialorder %v1795_v41, 0.0  ;;  %v2115_v11 = vmul.f32 0.2, %v1795_v41  ;;  %v2973_v32 = vpop.f32.mrf.mxu3 }
 0x2bd   : > { %v2764_v12 = vadd.f32 %v5642_v36, %v2763_v28  ;;  %v2974_v55 = vadd.f32 %v5642_v36, %v2973_v32 }
 0x2be   : > { %v2191_v46 = vsel %vm1871_vm10, %v1711_v3, %v2031_v31  ;;  %v2275_v17 = vsel %vm1955_vm12, %v1795_v41, %v2115_v11 }
 0x2bf   : > { %v2329_v51 = vpack.c.bf16 %v2191_v46, %v2190_v61  ;;  %vm3099_vm13 = vcmp.ge.f32.partialorder %v2764_v12, 0.0  ;;  %v3259_v33 = vmul.f32 0.2, %v2764_v12  ;;  %v2371_v14 = vpack.c.bf16 %v2275_v17, %v2274_v57 }
 0x2c0   : > { %vm3183_vm14 = vcmp.ge.f32.partialorder %v2974_v55, 0.0  ;;  %v3343_v6 = vmul.f32 0.2, %v2974_v55 }
 0x2c1   : > { %v3419_v9 = vsel %vm3099_vm13, %v2764_v12, %v3259_v33  ;;  %v1405_v34 = vpop.f32.mrf.mxu0  ;;  %4446 = vmatmul.msk.bf16.gmra.mxu2 %vm2406_vm11, %v2329_v51  ;;  %v1615_v21 = vpop.f32.mrf.mxu1  ;;  %4488 = vmatmul.msk.bf16.gmra.mxu3 %vm2406_vm11, %v2371_v14 }
 0x2c2   : > { %v5738_v52 = vsel %vm2406_vm11, %v3419_v9, -inf  ;;  %v3503_v56 = vsel %vm3183_vm14, %v2974_v55, %v3343_v6  ;;  %v1712_v18 = vadd.f32 %v1405_v34, %v4808_v4  ;;  %v1796_v42 = vadd.f32 %v1615_v21, %v4811_v5 }
 0x2c3   : > { %v3675_v1 = vmax.f32 %v5677_v25, %v5738_v52  ;;  %v3838_v7 = vsel %vm2406_vm11, %v3503_v56, -inf }
 0x2c4   : > { %v5747_v40 = vmax.f32 %v3827_v43, %v3838_v7  ;;  %v2766_v20 = vpop.f32.mrf.mxu2  ;;  %v2976_v29 = vpop.f32.mrf.mxu3  ;;  %vm1872_vm2 = vcmp.ge.f32.partialorder %v1712_v18, 0.0  ;;  %v2032_v3 = vmul.f32 0.2, %v1712_v18  ;;  %v2116_v54 = vmul.f32 0.2, %v1796_v42 }
 0x2c5   : > { %v2767_v47 = vadd.f32 %v5642_v36, %v2766_v20  ;;  %v2977_v30 = vadd.f32 %v5642_v36, %v2976_v29  ;;  %vm1956_vm1 = vcmp.ge.f32.partialorder %v1796_v42, 0.0 }
 0x2c6   : > { %v2192_v17 = vsel %vm1872_vm2, %v1712_v18, %v2032_v3  ;;  %v2276_v33 = vsel %vm1956_vm1, %v1796_v42, %v2116_v54 }
 0x2c7   : > { %vm3100_vm15 = vcmp.ge.f32.partialorder %v2767_v47, 0.0  ;;  %v3260_v13 = vmul.f32 0.2, %v2767_v47  ;;  %vm3184_vm0 = vcmp.ge.f32.partialorder %v2977_v30, 0.0  ;;  %v3344_v0 = vmul.f32 0.2, %v2977_v30 }
 0x2c9   : > { %v3420_v49 = vsel %vm3100_vm15, %v2767_v47, %v3260_v13  ;;  %v1407_v37 = vpop.f32.mrf.mxu0  ;;  %v3504_v24 = vsel %vm3184_vm0, %v2977_v30, %v3344_v0  ;;  %v1617_v31 = vpop.f32.mrf.mxu1 }
 0x2ca   : > { %v5754_v43 = vsel %vm2406_vm11, %v3420_v49, -inf  ;;  %v1713_v41 = vadd.f32 %v1407_v37, %v4818_v10  ;;  %v5760_v11 = vsel %vm2406_vm11, %v3504_v24, -inf  ;;  %v1797_v12 = vadd.f32 %v1617_v31, %v4816_v8 }
 0x2cb   : > { %v3714_v28 = vmax.f32 %v5697_v15, %v5754_v43  ;;  %v3558_v32 = vmax.f32 %v5690_v16, %v5760_v11 }
 0x2cc   : > { %vm1873_vm3 = vcmp.ge.f32.partialorder %v1713_v41, 0.0  ;;  %v2033_v61 = vmul.f32 0.2, %v1713_v41  ;;  %v2768_v57 = vpop.f32.mrf.mxu2  ;;  %vm1957_vm4 = vcmp.ge.f32.partialorder %v1797_v12, 0.0  ;;  %v2117_v46 = vmul.f32 0.2, %v1797_v12  ;;  %v2978_v51 = vpop.f32.mrf.mxu3 }
 0x2cd   : > { %v2769_v55 = vadd.f32 %v5642_v36, %v2768_v57  ;;  %v2979_v6 = vadd.f32 %v5642_v36, %v2978_v51 }
 0x2ce   : > { %v2193_v14 = vsel %vm1873_vm3, %v1713_v41, %v2033_v61  ;;  %v2277_v34 = vsel %vm1957_vm4, %v1797_v12, %v2117_v46 }
 0x2cf   : > { %v2330_v9 = vpack.c.bf16 %v2193_v14, %v2192_v17  ;;  %vm3101_vm5 = vcmp.ge.f32.partialorder %v2769_v55, 0.0  ;;  %v3261_v56 = vmul.f32 0.2, %v2769_v55  ;;  %v2372_v21 = vpack.c.bf16 %v2277_v34, %v2276_v33 }
 0x2d0   : > { %vm3185_vm6 = vcmp.ge.f32.partialorder %v2979_v6, 0.0  ;;  %v3345_v7 = vmul.f32 0.2, %v2979_v6 }
 0x2d1   : > { %v3421_v20 = vsel %vm3101_vm5, %v2769_v55, %v3261_v56  ;;  %v1410_v47 = vpop.f32.mrf.mxu0  ;;  %4447 = vmatmul.msk.bf16.gmra.mxu2 %vm2406_vm11, %v2330_v9  ;;  %v1620_v18 = vpop.f32.mrf.mxu1  ;;  %4489 = vmatmul.msk.bf16.gmra.mxu3 %vm2406_vm11, %v2372_v21 }
 0x2d2   : > { %v5770_v29 = vsel %vm2406_vm11, %v3421_v20, -inf  ;;  %v3505_v30 = vsel %vm3185_vm6, %v2979_v6, %v3345_v7  ;;  %v1714_v49 = vadd.f32 %v1410_v47, %v4783_v45  ;;  %v1798_v24 = vadd.f32 %v1620_v18, %v4780_v44 }
 0x2d3   : > { %v3753_v42 = vmax.f32 %v5714_v38, %v5770_v29  ;;  %v5776_v13 = vsel %vm2406_vm11, %v3505_v30, -inf }
 0x2d4   : > { %v3597_v0 = vmax.f32 %v5708_v35, %v5776_v13  ;;  %v2771_v3 = vpop.f32.mrf.mxu2  ;;  %v2981_v54 = vpop.f32.mrf.mxu3  ;;  %vm1874_vm9 = vcmp.ge.f32.partialorder %v1714_v49, 0.0  ;;  %v2034_v61 = vmul.f32 0.2, %v1714_v49  ;;  %v2118_v55 = vmul.f32 0.2, %v1798_v24 }
 0x2d5   : > { %v2772_v37 = vadd.f32 %v5642_v36, %v2771_v3  ;;  %v2982_v41 = vadd.f32 %v5642_v36, %v2981_v54  ;;  %vm1958_vm10 = vcmp.ge.f32.partialorder %v1798_v24, 0.0 }
 0x2d6   : > { %v2194_v18 = vsel %vm1874_vm9, %v1714_v49, %v2034_v61  ;;  %v2278_v3 = vsel %vm1958_vm10, %v1798_v24, %v2118_v55 }
 0x2d7   : > { %vm3102_vm7 = vcmp.ge.f32.partialorder %v2772_v37, 0.0  ;;  %v3262_v31 = vmul.f32 0.2, %v2772_v37  ;;  %vm3186_vm8 = vcmp.ge.f32.partialorder %v2982_v41, 0.0  ;;  %v3346_v12 = vmul.f32 0.2, %v2982_v41 }
 0x2d9   : > { %v3422_v57 = vsel %vm3102_vm7, %v2772_v37, %v3262_v31  ;;  %v1412_v46 = vpop.f32.mrf.mxu0  ;;  %v3506_v17 = vsel %vm3186_vm8, %v2982_v41, %v3346_v12  ;;  %v1622_v14 = vpop.f32.mrf.mxu1 }
 0x2da   : > { %v5785_v51 = vsel %vm2406_vm11, %v3422_v57, -inf  ;;  %v1715_v33 = vadd.f32 %v1412_v46, %v4788_v48  ;;  %v3645_v9 = vsel %vm2406_vm11, %v3506_v17, -inf  ;;  %v1799_v34 = vadd.f32 %v1622_v14, %v4790_v50 }
 0x2db   : > { %v3792_v6 = vmax.f32 %v5731_v53, %v5785_v51  ;;  %v5795_v56 = vmax.f32 %v3636_v19, %v3645_v9 }
 0x2dc   : > { %vm1875_vm12 = vcmp.ge.f32.partialorder %v1715_v33, 0.0  ;;  %v2035_v21 = vmul.f32 0.2, %v1715_v33  ;;  %v2773_v7 = vpop.f32.mrf.mxu2  ;;  %vm1959_vm13 = vcmp.ge.f32.partialorder %v1799_v34, 0.0  ;;  %v2119_v20 = vmul.f32 0.2, %v1799_v34  ;;  %v2983_v30 = vpop.f32.mrf.mxu3 }
 0x2dd   : > { %v2774_v47 = vadd.f32 %v5642_v36, %v2773_v7  ;;  %v2984_v54 = vadd.f32 %v5642_v36, %v2983_v30 }
 0x2de   : > { %v2195_v37 = vsel %vm1875_vm12, %v1715_v33, %v2035_v21  ;;  %v2279_v31 = vsel %vm1959_vm13, %v1799_v34, %v2119_v20 }
 0x2df   : > { %v2331_v41 = vpack.c.bf16 %v2195_v37, %v2194_v18  ;;  %vm3103_vm14 = vcmp.ge.f32.partialorder %v2774_v47, 0.0  ;;  %v3263_v27 = vmul.f32 0.2, %v2774_v47  ;;  %v2373_v39 = vpack.c.bf16 %v2279_v31, %v2278_v3 }
 0x2e0   : > { %vm3187_vm15 = vcmp.ge.f32.partialorder %v2984_v54, 0.0  ;;  %v3347_v19 = vmul.f32 0.2, %v2984_v54 }
 0x2e1   : > { %v3423_v12 = vsel %vm3103_vm14, %v2774_v47, %v3263_v27  ;;  %v1415_v57 = vpop.f32.mrf.mxu0  ;;  %4448 = vmatmul.msk.bf16.gmra.mxu2 %vm2406_vm11, %v2331_v41  ;;  %v1625_v49 = vpop.f32.mrf.mxu1  ;;  %4490 = vmatmul.msk.bf16.gmra.mxu3 %vm2406_vm11, %v2373_v39 }
 0x2e2   : > { %v5802_v46 = vsel %vm2406_vm11, %v3423_v12, -inf  ;;  %v3507_v17 = vsel %vm3187_vm15, %v2984_v54, %v3347_v19  ;;  %v1716_v14 = vadd.f32 %v1415_v57, %v4811_v5  ;;  %v1800_v21 = vadd.f32 %v1625_v49, %v4808_v4 }
 0x2e3   : > { %v3831_v24 = vmax.f32 %v5747_v40, %v5802_v46  ;;  %v3684_v61 = vsel %vm2406_vm11, %v3507_v17, -inf }
 0x2e4   : > { %v5811_v55 = vmax.f32 %v3675_v1, %v3684_v61  ;;  %v2776_v33 = vpop.f32.mrf.mxu2  ;;  %v2986_v34 = vpop.f32.mrf.mxu3  ;;  %vm1876_vm1 = vcmp.ge.f32.partialorder %v1716_v14, 0.0  ;;  %v2036_v30 = vmul.f32 0.2, %v1716_v14  ;;  %v2120_v52 = vmul.f32 0.2, %v1800_v21 }
 0x2e5   : > { %v2777_v9 = vadd.f32 %v5642_v36, %v2776_v33  ;;  %v2987_v7 = vadd.f32 %v5642_v36, %v2986_v34  ;;  %vm1960_vm3 = vcmp.ge.f32.partialorder %v1800_v21, 0.0 }
 0x2e6   : > { %v2196_v16 = vsel %vm1876_vm1, %v1716_v14, %v2036_v30  ;;  %v2280_v11 = vsel %vm1960_vm3, %v1800_v21, %v2120_v52 }
 0x2e7   : > { %vm3104_vm0 = vcmp.ge.f32.partialorder %v2777_v9, 0.0  ;;  %v3264_v20 = vmul.f32 0.2, %v2777_v9  ;;  %vm3188_vm2 = vcmp.ge.f32.partialorder %v2987_v7, 0.0  ;;  %v3348_v47 = vmul.f32 0.2, %v2987_v7 }
 0x2e9   : > { %v3424_v18 = vsel %vm3104_vm0, %v2777_v9, %v3264_v20  ;;  %v1417_v25 = vpop.f32.mrf.mxu0  ;;  %v3508_v3 = vsel %vm3188_vm2, %v2987_v7, %v3348_v47  ;;  %v1627_v54 = vpop.f32.mrf.mxu1 }
 0x2ea   : > { %v3547_v1 = vsel %vm2406_vm11, %v3424_v18, -inf  ;;  %v1717_v37 = vadd.f32 %v1417_v25, %v4816_v8  ;;  %v3723_v31 = vsel %vm2406_vm11, %v3508_v3, -inf  ;;  %v1801_v27 = vadd.f32 %v1627_v54, %v4818_v10 }
 0x2eb   : > { %v5822_v41 = vmax.f32 %v3558_v32, %v3547_v1  ;;  %v5829_v39 = vmax.f32 %v3714_v28, %v3723_v31 }
 0x2ec   : > { %vm1877_vm4 = vcmp.ge.f32.partialorder %v1717_v37, 0.0  ;;  %v2037_v19 = vmul.f32 0.2, %v1717_v37  ;;  %v2778_v12 = vpop.f32.mrf.mxu2  ;;  %vm1961_vm5 = vcmp.ge.f32.partialorder %v1801_v27, 0.0  ;;  %v2121_v57 = vmul.f32 0.2, %v1801_v27  ;;  %v2988_v49 = vpop.f32.mrf.mxu3 }
 0x2ed   : > { %v2779_v17 = vadd.f32 %v5642_v36, %v2778_v12  ;;  %v2989_v61 = vadd.f32 %v5642_v36, %v2988_v49 }
 0x2ee   : > { %v2197_v32 = vsel %vm1877_vm4, %v1717_v37, %v2037_v19  ;;  %v2281_v9 = vsel %vm1961_vm5, %v1801_v27, %v2121_v57 }
 0x2ef   : > { %v2332_v33 = vpack.c.bf16 %v2197_v32, %v2196_v16  ;;  %vm3105_vm6 = vcmp.ge.f32.partialorder %v2779_v17, 0.0  ;;  %v3265_v15 = vmul.f32 0.2, %v2779_v17  ;;  %v2374_v43 = vpack.c.bf16 %v2281_v9, %v2280_v11 }
 0x2f0   : > { %vm3189_vm7 = vcmp.ge.f32.partialorder %v2989_v61, 0.0  ;;  %v3349_v28 = vmul.f32 0.2, %v2989_v61 }
 0x2f1   : > { %v3425_v34 = vsel %vm3105_vm6, %v2779_v17, %v3265_v15  ;;  %v1420_v7 = vpop.f32.mrf.mxu0  ;;  %4449 = vmatmul.msk.bf16.gmra.mxu2 %vm2406_vm11, %v2332_v33  ;;  %v1630_v18 = vpop.f32.mrf.mxu1  ;;  %4491 = vmatmul.msk.bf16.gmra.mxu3 %vm2406_vm11, %v2374_v43 }
 0x2f2   : > { %v3586_v20 = vsel %vm2406_vm11, %v3425_v34, -inf  ;;  %v3509_v47 = vsel %vm3189_vm7, %v2989_v61, %v3349_v28  ;;  %v1718_v52 = vadd.f32 %v1420_v7, %v4780_v44  ;;  %v1802_v37 = vadd.f32 %v1630_v18, %v4783_v45 }
 0x2f3   : > { %v5840_v14 = vmax.f32 %v3597_v0, %v3586_v20  ;;  %v3762_v21 = vsel %vm2406_vm11, %v3509_v47, -inf }
 0x2f4   : > { %v5846_v30 = vmax.f32 %v3753_v42, %v3762_v21  ;;  %v2781_v25 = vpop.f32.mrf.mxu2  ;;  %v2991_v3 = vpop.f32.mrf.mxu3  ;;  %vm1878_vm10 = vcmp.ge.f32.partialorder %v1718_v52, 0.0  ;;  %v2038_v0 = vmul.f32 0.2, %v1718_v52  ;;  %v2122_v29 = vmul.f32 0.2, %v1802_v37 }
 0x2f5   : > { %v2782_v1 = vadd.f32 %v5642_v36, %v2781_v25  ;;  %v2992_v54 = vadd.f32 %v5642_v36, %v2991_v3  ;;  %vm1962_vm12 = vcmp.ge.f32.partialorder %v1802_v37, 0.0 }
 0x2f6   : > { %v2198_v15 = vsel %vm1878_vm10, %v1718_v52, %v2038_v0  ;;  %v2282_v43 = vsel %vm1962_vm12, %v1802_v37, %v2122_v29 }
 0x2f7   : > { %vm3106_vm8 = vcmp.ge.f32.partialorder %v2782_v1, 0.0  ;;  %v3266_v35 = vmul.f32 0.2, %v2782_v1  ;;  %vm3190_vm9 = vcmp.ge.f32.partialorder %v2992_v54, 0.0  ;;  %v3350_v13 = vmul.f32 0.2, %v2992_v54 }
 0x2f9   : > { %v3426_v31 = vsel %vm3106_vm8, %v2782_v1, %v3266_v35  ;;  %v1422_v38 = vpop.f32.mrf.mxu0  ;;  %v3510_v27 = vsel %vm3190_vm9, %v2992_v54, %v3350_v13  ;;  %v1632_v12 = vpop.f32.mrf.mxu1 }
 0x2fa   : > { %v5853_v42 = vsel %vm2406_vm11, %v3426_v31, -inf  ;;  %v1719_v19 = vadd.f32 %v1422_v38, %v4790_v50  ;;  %v3801_v17 = vsel %vm2406_vm11, %v3510_v27, -inf  ;;  %v1803_v49 = vadd.f32 %v1632_v12, %v4788_v48 }
 0x2fb   : > { %v3640_v57 = vmax.f32 %v5795_v56, %v5853_v42  ;;  %v5863_v16 = vmax.f32 %v3792_v6, %v3801_v17 }
 0x2fc   : > { %vm1879_vm13 = vcmp.ge.f32.partialorder %v1719_v19, 0.0  ;;  %v2039_v11 = vmul.f32 0.2, %v1719_v19  ;;  %v2783_v32 = vpop.f32.mrf.mxu2  ;;  %vm1963_vm14 = vcmp.ge.f32.partialorder %v1803_v49, 0.0  ;;  %v2123_v61 = vmul.f32 0.2, %v1803_v49  ;;  %v2993_v9 = vpop.f32.mrf.mxu3 }
 0x2fd   : > { %v2784_v33 = vadd.f32 %v5642_v36, %v2783_v32  ;;  %v2994_v34 = vadd.f32 %v5642_v36, %v2993_v9 }
 0x2fe   : > { %v2199_v28 = vsel %vm1879_vm13, %v1719_v19, %v2039_v11  ;;  %v2283_v20 = vsel %vm1963_vm14, %v1803_v49, %v2123_v61 }
 0x2ff   : > { %v2333_v7 = vpack.c.bf16 %v2199_v28, %v2198_v15  ;;  %vm3107_vm15 = vcmp.ge.f32.partialorder %v2784_v33, 0.0  ;;  %v3267_v53 = vmul.f32 0.2, %v2784_v33  ;;  %v2375_v51 = vpack.c.bf16 %v2283_v20, %v2282_v43 }
 0x300   : > { %vm3191_vm0 = vcmp.ge.f32.partialorder %v2994_v34, 0.0  ;;  %v3351_v6 = vmul.f32 0.2, %v2994_v34 }
 0x301   : > { %v3427_v47 = vsel %vm3107_vm15, %v2784_v33, %v3267_v53  ;;  %v1425_v18 = vpop.f32.mrf.mxu0  ;;  %4450 = vmatmul.msk.bf16.gmra.mxu2 %vm2406_vm11, %v2333_v7  ;;  %v1635_v52 = vpop.f32.mrf.mxu1  ;;  %4492 = vmatmul.msk.bf16.gmra.mxu3 %vm2406_vm11, %v2375_v51 }
 0x302   : > { %v5870_v21 = vsel %vm2406_vm11, %v3427_v47, -inf  ;;  %v3511_v25 = vsel %vm3191_vm0, %v2994_v34, %v3351_v6  ;;  %v1720_v35 = vadd.f32 %v1425_v18, %v4808_v4  ;;  %v1804_v31 = vadd.f32 %v1635_v52, %v4811_v5 }
 0x303   : > { %v3679_v1 = vmax.f32 %v5811_v55, %v5870_v21  ;;  %v3840_v3 = vsel %vm2406_vm11, %v3511_v25, -inf }
 0x304   : > { %v5879_v37 = vmax.f32 %v3831_v24, %v3840_v3  ;;  %v2786_v54 = vpop.f32.mrf.mxu2  ;;  %v2996_v0 = vpop.f32.mrf.mxu3  ;;  %vm1880_vm3 = vcmp.ge.f32.partialorder %v1720_v35, 0.0  ;;  %v2040_v19 = vmul.f32 0.2, %v1720_v35  ;;  %v2124_v46 = vmul.f32 0.2, %v1804_v31 }
 0x305   : > { %v2787_v13 = vadd.f32 %v5642_v36, %v2786_v54  ;;  %v2997_v38 = vadd.f32 %v5642_v36, %v2996_v0  ;;  %vm1964_vm4 = vcmp.ge.f32.partialorder %v1804_v31, 0.0 }
 0x306   : > { %v2200_v20 = vsel %vm1880_vm3, %v1720_v35, %v2040_v19  ;;  %v2284_v53 = vsel %vm1964_vm4, %v1804_v31, %v2124_v46 }
 0x307   : > { %vm3108_vm2 = vcmp.ge.f32.partialorder %v2787_v13, 0.0  ;;  %v3268_v29 = vmul.f32 0.2, %v2787_v13  ;;  %vm3192_vm1 = vcmp.ge.f32.partialorder %v2997_v38, 0.0  ;;  %v3352_v27 = vmul.f32 0.2, %v2997_v38 }
 0x309   : > { %v3428_v12 = vsel %vm3108_vm2, %v2787_v13, %v3268_v29  ;;  %v1427_v40 = vpop.f32.mrf.mxu0  ;;  %v3512_v17 = vsel %vm3192_vm1, %v2997_v38, %v3352_v27  ;;  %v1637_v11 = vpop.f32.mrf.mxu1 }
 0x30a   : > { %v5886_v24 = vsel %vm2406_vm11, %v3428_v12, -inf  ;;  %v1721_v49 = vadd.f32 %v1427_v40, %v4818_v10  ;;  %v5892_v61 = vsel %vm2406_vm11, %v3512_v17, -inf  ;;  %v1805_v33 = vadd.f32 %v1637_v11, %v4816_v8 }
 0x30b   : > { %v3718_v32 = vmax.f32 %v5829_v39, %v5886_v24  ;;  %v3562_v9 = vmax.f32 %v5822_v41, %v5892_v61 }
 0x30c   : > { %vm1881_vm5 = vcmp.ge.f32.partialorder %v1721_v49, 0.0  ;;  %v2041_v15 = vmul.f32 0.2, %v1721_v49  ;;  %v2788_v43 = vpop.f32.mrf.mxu2  ;;  %vm1965_vm6 = vcmp.ge.f32.partialorder %v1805_v33, 0.0  ;;  %v2125_v28 = vmul.f32 0.2, %v1805_v33  ;;  %v2998_v7 = vpop.f32.mrf.mxu3 }
 0x30d   : > { %v2789_v34 = vadd.f32 %v5642_v36, %v2788_v43  ;;  %v2999_v6 = vadd.f32 %v5642_v36, %v2998_v7 }
 0x30e   : > { %v2201_v51 = vsel %vm1881_vm5, %v1721_v49, %v2041_v15  ;;  %v2285_v18 = vsel %vm1965_vm6, %v1805_v33, %v2125_v28 }
 0x30f   : > { %v2334_v47 = vpack.c.bf16 %v2201_v51, %v2200_v20  ;;  %vm3109_vm7 = vcmp.ge.f32.partialorder %v2789_v34, 0.0  ;;  %v3269_v25 = vmul.f32 0.2, %v2789_v34  ;;  %v2376_v52 = vpack.c.bf16 %v2285_v18, %v2284_v53 }
 0x310   : > { %vm3193_vm8 = vcmp.ge.f32.partialorder %v2999_v6, 0.0  ;;  %v3353_v3 = vmul.f32 0.2, %v2999_v6 }
 0x311   : > { %v3429_v54 = vsel %vm3109_vm7, %v2789_v34, %v3269_v25  ;;  %v1430_v13 = vpop.f32.mrf.mxu0  ;;  %4451 = vmatmul.msk.bf16.gmra.mxu2 %vm2406_vm11, %v2334_v47  ;;  %v1640_v35 = vpop.f32.mrf.mxu1  ;;  %4493 = vmatmul.msk.bf16.gmra.mxu3 %vm2406_vm11, %v2376_v52 }
 0x312   : > { %v5902_v0 = vsel %vm2406_vm11, %v3429_v54, -inf  ;;  %v3513_v38 = vsel %vm3193_vm8, %v2999_v6, %v3353_v3  ;;  %v1722_v12 = vadd.f32 %v1430_v13, %v4783_v45  ;;  %v1806_v17 = vadd.f32 %v1640_v35, %v4780_v44 }
 0x313   : > { %v3757_v31 = vmax.f32 %v5846_v30, %v5902_v0  ;;  %v5908_v29 = vsel %vm2406_vm11, %v3513_v38, -inf }
 0x314   : > { %v3601_v27 = vmax.f32 %v5840_v14, %v5908_v29  ;;  %v2791_v19 = vpop.f32.mrf.mxu2  ;;  %v3001_v46 = vpop.f32.mrf.mxu3  ;;  %vm1882_vm12 = vcmp.ge.f32.partialorder %v1722_v12, 0.0  ;;  %v2042_v15 = vmul.f32 0.2, %v1722_v12  ;;  %v2126_v34 = vmul.f32 0.2, %v1806_v17 }
 0x315   : > { %v2792_v40 = vadd.f32 %v5642_v36, %v2791_v19  ;;  %v3002_v49 = vadd.f32 %v5642_v36, %v3001_v46  ;;  %vm1966_vm13 = vcmp.ge.f32.partialorder %v1806_v17, 0.0 }
 0x316   : > { %v2202_v54 = vsel %vm1882_vm12, %v1722_v12, %v2042_v15  ;;  %v2286_v13 = vsel %vm1966_vm13, %v1806_v17, %v2126_v34 }
 0x317   : > { %vm3110_vm9 = vcmp.ge.f32.partialorder %v2792_v40, 0.0  ;;  %v3270_v11 = vmul.f32 0.2, %v2792_v40  ;;  %vm3194_vm10 = vcmp.ge.f32.partialorder %v3002_v49, 0.0  ;;  %v3354_v33 = vmul.f32 0.2, %v3002_v49 }
 0x319   : > { %v3430_v43 = vsel %vm3110_vm9, %v2792_v40, %v3270_v11  ;;  %v1432_v28 = vpop.f32.mrf.mxu0  ;;  %v3514_v45 = vsel %vm3194_vm10, %v3002_v49, %v3354_v33  ;;  %v1642_v53 = vpop.f32.mrf.mxu1 }
 0x31a   : > { %v5917_v7 = vsel %vm2406_vm11, %v3430_v43, -inf  ;;  %v1723_v20 = vadd.f32 %v1432_v28, %v4788_v48  ;;  %v3647_v51 = vsel %vm2406_vm11, %v3514_v45, -inf  ;;  %v1807_v6 = vadd.f32 %v1642_v53, %v4790_v50 }
 0x31b   : > { %v3796_v44 = vmax.f32 %v5863_v16, %v5917_v7  ;;  %v5927_v47 = vmax.f32 %v3640_v57, %v3647_v51 }
 0x31c   : > { %vm1883_vm14 = vcmp.ge.f32.partialorder %v1723_v20, 0.0  ;;  %v2043_v18 = vmul.f32 0.2, %v1723_v20  ;;  %v2793_v25 = vpop.f32.mrf.mxu2  ;;  %vm1967_vm15 = vcmp.ge.f32.partialorder %v1807_v6, 0.0  ;;  %v2127_v52 = vmul.f32 0.2, %v1807_v6  ;;  %v3003_v3 = vpop.f32.mrf.mxu3 }
 0x31d   : > { %v2794_v48 = vadd.f32 %v5642_v36, %v2793_v25  ;;  %v3004_v35 = vadd.f32 %v5642_v36, %v3003_v3 }
 0x31e   : > { %v2203_v38 = vsel %vm1883_vm14, %v1723_v20, %v2043_v18  ;;  %v2287_v19 = vsel %vm1967_vm15, %v1807_v6, %v2127_v52 }
 0x31f   : > { %v2335_v50 = vpack.c.bf16 %v2203_v38, %v2202_v54  ;;  %vm3111_vm0 = vcmp.ge.f32.partialorder %v2794_v48, 0.0  ;;  %v3271_v56 = vmul.f32 0.2, %v2794_v48  ;;  %v2377_v42 = vpack.c.bf16 %v2287_v19, %v2286_v13 }
 0x320   : > { %vm3195_vm2 = vcmp.ge.f32.partialorder %v3004_v35, 0.0  ;;  %v3355_v57 = vmul.f32 0.2, %v3004_v35 }
 0x321   : > { %v3431_v40 = vsel %vm3111_vm0, %v2794_v48, %v3271_v56  ;;  %v1435_v46 = vpop.f32.mrf.mxu0  ;;  %4452 = vmatmul.msk.bf16.gmra.mxu2 %vm2406_vm11, %v2335_v50  ;;  %v1645_v12 = vpop.f32.mrf.mxu1  ;;  %4494 = vmatmul.msk.bf16.gmra.mxu3 %vm2406_vm11, %v2377_v42 }
 0x322   : > { %v5934_v49 = vsel %vm2406_vm11, %v3431_v40, -inf  ;;  %v3515_v11 = vsel %vm3195_vm2, %v3004_v35, %v3355_v57  ;;  %v1724_v28 = vadd.f32 %v1435_v46, %v4811_v5  ;;  %v1808_v20 = vadd.f32 %v1645_v12, %v4808_v4 }
 0x323   : > { %v3835_v17 = vmax.f32 %v5879_v37, %v5934_v49  ;;  %v3686_v33 = vsel %vm2406_vm11, %v3515_v11, -inf }
 0x324   : > { %v5943_v15 = vmax.f32 %v3679_v1, %v3686_v33  ;;  %v2796_v43 = vpop.f32.mrf.mxu2  ;;  %v3006_v45 = vpop.f32.mrf.mxu3  ;;  %vm1884_vm4 = vcmp.ge.f32.partialorder %v1724_v28, 0.0  ;;  %v2044_v18 = vmul.f32 0.2, %v1724_v28  ;;  %v2128_v21 = vmul.f32 0.2, %v1808_v20 }
 0x325   : > { %v2797_v34 = vadd.f32 %v5642_v36, %v2796_v43  ;;  %v3007_v53 = vadd.f32 %v5642_v36, %v3006_v45  ;;  %vm1968_vm5 = vcmp.ge.f32.partialorder %v1808_v20, 0.0  ;;  %v5983_v43 = vld [vmem:[%s6209_s6] ss:$0 sm:$0xff] }
 0x326   : > { %v2204_v41 = vsel %vm1884_vm4, %v1724_v28, %v2044_v18  ;;  %v2288_v61 = vsel %vm1968_vm5, %v1808_v20, %v2128_v21 }
 0x327   : > { %vm3112_vm1 = vcmp.ge.f32.partialorder %v2797_v34, 0.0  ;;  %v3272_v51 = vmul.f32 0.2, %v2797_v34  ;;  %vm3196_vm3 = vcmp.ge.f32.partialorder %v3007_v53, 0.0  ;;  %v3356_v6 = vmul.f32 0.2, %v3007_v53 }
 0x329   : > { %v3432_v25 = vsel %vm3112_vm1, %v2797_v34, %v3272_v51  ;;  %v1437_v55 = vpop.f32.mrf.mxu0  ;;  %v3516_v52 = vsel %vm3196_vm3, %v3007_v53, %v3356_v6  ;;  %v1647_v48 = vpop.f32.mrf.mxu1 }
 0x32a   : > { %v3549_v1 = vsel %vm2406_vm11, %v3432_v25, -inf  ;;  %v1725_v5 = vadd.f32 %v1437_v55, %v4816_v8  ;;  %v3725_v3 = vsel %vm2406_vm11, %v3516_v52, -inf  ;;  %v1809_v54 = vadd.f32 %v1647_v48, %v4818_v10 }
 0x32b   : > { %v5954_v4 = vmax.f32 %v3562_v9, %v3549_v1  ;;  %v5961_v13 = vmax.f32 %v3718_v32, %v3725_v3 }
 0x32c   : > { %vm1885_vm6 = vcmp.ge.f32.partialorder %v1725_v5, 0.0  ;;  %v2045_v38 = vmul.f32 0.2, %v1725_v5  ;;  %v2798_v35 = vpop.f32.mrf.mxu2  ;;  %vm1969_vm7 = vcmp.ge.f32.partialorder %v1809_v54, 0.0  ;;  %v2129_v8 = vmul.f32 0.2, %v1809_v54  ;;  %v3008_v19 = vpop.f32.mrf.mxu3 }
 0x32d   : > { %v2799_v50 = vadd.f32 %v5642_v36, %v2798_v35  ;;  %v3009_v56 = vadd.f32 %v5642_v36, %v3008_v19 }
 0x32e   : > { %v2205_v9 = vsel %vm1885_vm6, %v1725_v5, %v2045_v38  ;;  %v2289_v42 = vsel %vm1969_vm7, %v1809_v54, %v2129_v8 }
 0x32f   : > { %v2336_v10 = vpack.c.bf16 %v2205_v9, %v2204_v41  ;;  %vm3113_vm8 = vcmp.ge.f32.partialorder %v2799_v50, 0.0  ;;  %v3273_v39 = vmul.f32 0.2, %v2799_v50  ;;  %v2378_v24 = vpack.c.bf16 %v2289_v42, %v2288_v61 }
 0x330   : > { %vm3197_vm9 = vcmp.ge.f32.partialorder %v3009_v56, 0.0  ;;  %v3357_v32 = vmul.f32 0.2, %v3009_v56 }
 0x331   : > { %v3433_v57 = vsel %vm3113_vm8, %v2799_v50, %v3273_v39  ;;  %4453 = vmatmul.msk.bf16.gmra.mxu2 %vm2406_vm11, %v2336_v10  ;;  %4495 = vmatmul.msk.bf16.gmra.mxu3 %vm2406_vm11, %v2378_v24 }
 0x332   : > { %v3588_v40 = vsel %vm2406_vm11, %v3433_v57, -inf  ;;  %v3517_v46 = vsel %vm3197_vm9, %v3009_v56, %v3357_v32 }
 0x333   : > { %v5972_v11 = vmax.f32 %v3601_v27, %v3588_v40  ;;  %v3764_v36 = vsel %vm2406_vm11, %v3517_v46, -inf }
 0x334   : > { %v5978_v12 = vmax.f32 %v3757_v31, %v3764_v36  ;;  %v2801_v33 = vpop.f32.mrf.mxu2  ;;  %v3011_v34 = vpop.f32.mrf.mxu3 }
 0x335   : > { %v2802_v28 = vadd.f32 %v5983_v43, %v2801_v33  ;;  %v3012_v14 = vadd.f32 %v5983_v43, %v3011_v34 }
 0x337   : > { %vm3114_vm10 = vcmp.ge.f32.partialorder %v2802_v28, 0.0  ;;  %v3274_v29 = vmul.f32 0.2, %v2802_v28  ;;  %vm3198_vm12 = vcmp.ge.f32.partialorder %v3012_v14, 0.0  ;;  %v3358_v27 = vmul.f32 0.2, %v3012_v14 }
 0x339   : > { %v3434_v45 = vsel %vm3114_vm10, %v2802_v28, %v3274_v29  ;;  %v3518_v0 = vsel %vm3198_vm12, %v3012_v14, %v3358_v27 }
 0x33a   : > { %v5988_v30 = vsel %vm2406_vm11, %v3434_v45, -inf  ;;  %v3803_v20 = vsel %vm2406_vm11, %v3518_v0, -inf }
 0x33b   : > { %v3644_v31 = vmax.f32 %v5927_v47, %v5988_v30  ;;  %v5996_v53 = vmax.f32 %v3796_v44, %v3803_v20 }
 0x33c   : > { %v2803_v51 = vpop.f32.mrf.mxu2  ;;  %v3013_v18 = vpop.f32.mrf.mxu3 }
 0x33d   : > { %v2804_v6 = vadd.f32 %v5983_v43, %v2803_v51  ;;  %v3014_v25 = vadd.f32 %v5983_v43, %v3013_v18 }
 0x33f   : > { %vm3115_vm13 = vcmp.ge.f32.partialorder %v2804_v6, 0.0  ;;  %v3275_v55 = vmul.f32 0.2, %v2804_v6  ;;  %vm3199_vm14 = vcmp.ge.f32.partialorder %v3014_v25, 0.0  ;;  %v3359_v21 = vmul.f32 0.2, %v3014_v25 }
 0x341   : > { %v3435_v1 = vsel %vm3115_vm13, %v2804_v6, %v3275_v55  ;;  %4454 = vmatmul.msk.bf16.gmra.mxu2 %vm2406_vm11, %v2337_v2  ;;  %v3519_v7 = vsel %vm3199_vm14, %v3014_v25, %v3359_v21 }
 0x342   : > { %v6005_v16 = vsel %vm2406_vm11, %v3435_v1, -inf  ;;  %v3842_v52 = vsel %vm2406_vm11, %v3519_v7, -inf }
 0x343   : > { %v3683_v44 = vmax.f32 %v5943_v15, %v6005_v16  ;;  %v6013_v5 = vmax.f32 %v3835_v17, %v3842_v52 }
 0x344   : > { %v2806_v48 = vpop.f32.mrf.mxu2  ;;  %v3016_v62 = vpop.f32.mrf.mxu3 }
 0x345   : > { %v2807_v3 = vadd.f32 %v5983_v43, %v2806_v48  ;;  %v3017_v63 = vadd.f32 %v5983_v43, %v3016_v62 }
 0x347   : > { %vm3116_vm15 = vcmp.ge.f32.partialorder %v2807_v3, 0.0  ;;  %v3276_v2 = vmul.f32 0.2, %v2807_v3  ;;  %vm3200_vm0 = vcmp.ge.f32.partialorder %v3017_v63, 0.0  ;;  %v3360_v54 = vmul.f32 0.2, %v3017_v63 }
 0x349   : > { %v3436_v38 = vsel %vm3116_vm15, %v2807_v3, %v3276_v2  ;;  %v3520_v8 = vsel %vm3200_vm0, %v3017_v63, %v3360_v54  ;;  %vm3856_vm0 = vcmask 519168  }
 0x34a   : > { %v6018_v35 = vsel %vm2406_vm11, %v3436_v38, -inf  ;;  %v3571_v49 = vsel %vm2406_vm11, %v3520_v8, -inf }
 0x34b   : > { %v3722_v37 = vmax.f32 %v5961_v13, %v6018_v35  ;;  %v3566_v17 = vmax.f32 %v5954_v4, %v3571_v49 }
 0x34c   : > { %v2808_v50 = vpop.f32.mrf.mxu2  ;;  %v3018_v41 = vpop.f32.mrf.mxu3 }
 0x34d   : > { %v2809_v19 = vadd.f32 %v5983_v43, %v2808_v50  ;;  %v3019_v61 = vadd.f32 %v5983_v43, %v3018_v41 }
 0x34f   : > { %vm3117_vm2 = vcmp.ge.f32.partialorder %v2809_v19, 0.0  ;;  %v3277_v9 = vmul.f32 0.2, %v2809_v19  ;;  %vm3201_vm1 = vcmp.ge.f32.partialorder %v3019_v61, 0.0  ;;  %v3361_v56 = vmul.f32 0.2, %v3019_v61 }
 0x351   : > { %v3437_v10 = vsel %vm3117_vm2, %v2809_v19, %v3277_v9  ;;  %4455 = vmatmul.msk.bf16.gmra.mxu2 %vm2406_vm11, %v2338_v26  ;;  %v3521_v4 = vsel %vm3201_vm1, %v3019_v61, %v3361_v56 }
 0x352   : > { %v6031_v42 = vsel %vm2406_vm11, %v3437_v10, -inf  ;;  %v3610_v24 = vsel %vm2406_vm11, %v3521_v4, -inf }
 0x353   : > { %v3761_v39 = vmax.f32 %v5978_v12, %v6031_v42  ;;  %v3605_v32 = vmax.f32 %v5972_v11, %v3610_v24 }
 0x354   : > { %v2811_v57 = vpop.f32.mrf.mxu2  ;;  %v3021_v46 = vpop.f32.mrf.mxu3 }
 0x355   : > { %v2812_v40 = vadd.f32 %v5983_v43, %v2811_v57  ;;  %v3022_v19 = vadd.f32 %v5983_v43, %v3021_v46 }
 0x357   : > { %vm3118_vm3 = vcmp.ge.f32.partialorder %v2812_v40, 0.0  ;;  %v3278_v36 = vmul.f32 0.2, %v2812_v40  ;;  %v3362_v9 = vmul.f32 0.2, %v3022_v19  ;;  %vm3202_vm7 = vcmp.ge.f32.partialorder %v3022_v19, 0.0 }
 0x359   : > { %v3438_v22 = vsel %vm3118_vm3, %v2812_v40, %v3278_v36 }
 0x35a   : > { %v6039_v23 = vsel %vm2406_vm11, %v3438_v22, -inf }
 0x35b   : > { %v3800_v26 = vmax.f32 %v5996_v53, %v6039_v23 }
 0x35c   : > { %v2813_v33 = vpop.f32.mrf.mxu2  ;;  %v3023_v34 = vpop.f32.mrf.mxu3 }
 0x35d   : > { %v2814_v28 = vadd.f32 %v5983_v43, %v2813_v33  ;;  %v3024_v24 = vadd.f32 %v5983_v43, %v3023_v34 }
 0x35f   : > { %vm3119_vm4 = vcmp.ge.f32.partialorder %v2814_v28, 0.0  ;;  %v3279_v14 = vmul.f32 0.2, %v2814_v28  ;;  %v3363_v33 = vmul.f32 0.2, %v3024_v24  ;;  %vm3203_vm10 = vcmp.ge.f32.partialorder %v3024_v24, 0.0 }
 0x361   : > { %v3439_v11 = vsel %vm3119_vm4, %v2814_v28, %v3279_v14  ;;  %4456 = vmatmul.msk.bf16.gmra.mxu2 %vm2406_vm11, %v2339_v60 }
 0x362   : > { %v6049_v29 = vsel %vm2406_vm11, %v3439_v11, -inf }
 0x363   : > { %v3839_v27 = vmax.f32 %v6013_v5, %v6049_v29 }
 0x364   : > { %v2816_v45 = vpop.f32.mrf.mxu2  ;;  %v3026_v20 = vpop.f32.mrf.mxu3 }
 0x365   : > { %v2817_v0 = vadd.f32 %v5983_v43, %v2816_v45 }
 0x367   : > { %vm3120_vm5 = vcmp.ge.f32.partialorder %v2817_v0, 0.0  ;;  %v3280_v51 = vmul.f32 0.2, %v2817_v0 }
 0x369   : > { %v3440_v6 = vsel %vm3120_vm5, %v2817_v0, %v3280_v51 }
 0x36a   : > { %v3551_v18 = vsel %vm2406_vm11, %v3440_v6, -inf  ;;  %v3523_v6 = vsel %vm3203_vm10, %v3024_v24, %v3363_v33 }
 0x36b   : > { %v6055_v25 = vmax.f32 %v3566_v17, %v3551_v18  ;;  %v3027_v18 = vadd.f32 %v5983_v43, %v3026_v20 }
 0x36c   : > { %v2818_v58 = vpop.f32.mrf.mxu2  ;;  %v6058_v60 = vpop.f32.mrf.mxu3 }
 0x36d   : > { %v2819_v59 = vadd.f32 %v5983_v43, %v2818_v58  ;;  %vm3204_vm15 = vcmp.ge.f32.partialorder %v3027_v18, 0.0 }
 0x36f   : > { %vm3121_vm6 = vcmp.ge.f32.partialorder %v2819_v59, 0.0  ;;  %v3281_v55 = vmul.f32 0.2, %v2819_v59 }
 0x371   : > { %v3441_v21 = vsel %vm3121_vm6, %v2819_v59, %v3281_v55 }
 0x372   : > { %v3590_v1 = vsel %vm2406_vm11, %v3441_v21, -inf }
 0x373   : > { %v6061_v7 = vmax.f32 %v3605_v32, %v3590_v1  ;;  %v3522_v32 = vsel %vm3202_vm7, %v3022_v19, %v3362_v9 }
 0x374   : > { %v2821_v52 = vpop.f32.mrf.mxu2  ;;  %v6063_v48 = vpop.f32.mrf.mxu3  ;;  %v3649_v22 = vsel %vm2406_vm11, %v3522_v32, -inf }
 0x375   : > { %v2822_v61 = vadd.f32 %v5983_v43, %v2821_v52  ;;  %v3646_v34 = vmax.f32 %v3644_v31, %v3649_v22  ;;  %v3688_v31 = vsel %vm2406_vm11, %v3523_v6, -inf }
 0x377   : > { %v3282_v4 = vmul.f32 0.2, %v2822_v61  ;;  %vm3122_vm8 = vcmp.ge.f32.partialorder %v2822_v61, 0.0 }
 0x379   : > { %v3442_v40 = vsel %vm3122_vm8, %v2822_v61, %v3282_v4 }
 0x37a   : > { %v3629_v11 = vsel %vm2406_vm11, %v3442_v40, -inf }
 0x37b   : > { %v3648_v59 = vmax.f32 %v3646_v34, %v3629_v11 }
 0x37c   : > { %v2823_v3 = vpop.f32.mrf.mxu2  ;;  %v6065_v62 = vpop.f32.mrf.mxu3 }
 0x37d   : > { %v2824_v36 = vadd.f32 %v5983_v43, %v2823_v3  ;;  %v3364_v3 = vmul.f32 0.2, %v3027_v18 }
 0x37f   : > { %v3283_v0 = vmul.f32 0.2, %v2824_v36  ;;  %vm3123_vm12 = vcmp.ge.f32.partialorder %v2824_v36, 0.0 }
 0x381   : > { %v3443_v1 = vsel %vm3123_vm12, %v2824_v36, %v3283_v0 }
 0x384   : > { %v2826_v63 = vpop.f32.mrf.mxu2  ;;  %v6067_v2 = vpop.f32.mrf.mxu3 }
 0x385   : > { %v2827_v52 = vadd.f32 %v5983_v43, %v2826_v63  ;;  %v3668_v63 = vsel %vm2406_vm11, %v3443_v1, -inf }
 0x387   : > { %v3284_v4 = vmul.f32 0.2, %v2827_v52  ;;  %vm3124_vm2 = vcmp.ge.f32.partialorder %v2827_v52, 0.0 }
 0x389   : > { %v3444_v15 = vsel %vm3124_vm2, %v2827_v52, %v3284_v4 }
 0x38c   : > { %v6069_v54 = vpop.f32.mrf.mxu2  ;;  %v6071_v38 = vpop.f32.mrf.mxu3 }
 0x38d   : > { %v2829_v16 = vadd.f32 %v5983_v43, %v6069_v54 }
 0x38f   : > { %vm3125_vm5 = vcmp.ge.f32.partialorder %v2829_v16, 0.0 }
 0x394   : > { %v6073_v8 = vpop.f32.mrf.mxu2  ;;  %v3041_v17 = vpop.f32.mrf.mxu3 }
 0x395   : > { %v3042_v56 = vadd.f32 %v5983_v43, %v3041_v17  ;;  %v2832_v35 = vadd.f32 %v5983_v43, %v6073_v8 }
 0x397   : > { %v3370_v57 = vmul.f32 0.2, %v3042_v56  ;;  %vm3210_vm9 = vcmp.ge.f32.partialorder %v3042_v56, 0.0 }
 0x399   : > { %v3530_v28 = vsel %vm3210_vm9, %v3042_v56, %v3370_v57  ;;  %v3685_v56 = vmax.f32 %v3683_v44, %v3688_v31  ;;  %v3524_v57 = vsel %vm3204_vm15, %v3027_v18, %v3364_v3  ;;  %v3285_v18 = vmul.f32 0.2, %v2829_v16 }
 0x39a   : > { %v3651_v58 = vsel %vm2406_vm11, %v3530_v28, -inf  ;;  %vm3126_vm9 = vcmp.ge.f32.partialorder %v2832_v35, 0.0 }
 0x39b   : > { %v3650_v47 = vmax.f32 %v3648_v59, %v3651_v58  ;;  %v3687_v22 = vmax.f32 %v3685_v56, %v3668_v63  ;;  %v3445_v13 = vsel %vm3125_vm5, %v2829_v16, %v3285_v18  ;;  %v3286_v56 = vmul.f32 0.2, %v2832_v35 }
 0x39c   : > { %v6075_v49 = vpop.f32.mrf.mxu2  ;;  %v3043_v41 = vpop.f32.mrf.mxu3  ;;  %v3746_v63 = vsel %vm2406_vm11, %v3445_v13, -inf }
 0x39d   : > { %v3044_v14 = vadd.f32 %v5983_v43, %v3043_v41  ;;  %v3446_v12 = vsel %vm3126_vm9, %v2832_v35, %v3286_v56  ;;  %v2834_v42 = vadd.f32 %v5983_v43, %v6075_v49 }
 0x39f   : > { %v3371_v55 = vmul.f32 0.2, %v3044_v14  ;;  %vm3211_vm14 = vcmp.ge.f32.partialorder %v3044_v14, 0.0 }
 0x3a1   : > { %v3531_v19 = vsel %vm3211_vm14, %v3044_v14, %v3371_v55  ;;  %v3727_v14 = vsel %vm2406_vm11, %v3524_v57, -inf  ;;  %vm3127_vm14 = vcmp.ge.f32.partialorder %v2834_v42, 0.0 }
 0x3a2   : > { %v3690_v40 = vsel %vm2406_vm11, %v3531_v19, -inf  ;;  %v3724_v54 = vmax.f32 %v3722_v37, %v3727_v14 }
 0x3a3   : > { %v3689_v44 = vmax.f32 %v3687_v22, %v3690_v40 }
 0x3a4   : > { %v6077_v50 = vpop.f32.mrf.mxu2  ;;  %v3046_v46 = vpop.f32.mrf.mxu3 }
 0x3a5   : > { %v3047_v17 = vadd.f32 %v5983_v43, %v3046_v46  ;;  %v3029_v46 = vadd.f32 %v5983_v43, %v6058_v60 }
 0x3a7   : > { %v3372_v36 = vmul.f32 0.2, %v3047_v17  ;;  %vm3212_vm3 = vcmp.ge.f32.partialorder %v3047_v17, 0.0  ;;  %v3365_v34 = vmul.f32 0.2, %v3029_v46  ;;  %vm3205_vm4 = vcmp.ge.f32.partialorder %v3029_v46, 0.0 }
 0x3a9   : > { %v3532_v60 = vsel %vm3212_vm3, %v3047_v17, %v3372_v36  ;;  %v3034_v36 = vadd.f32 %v5983_v43, %v6065_v62 }
 0x3aa   : > { %v3729_v1 = vsel %vm2406_vm11, %v3532_v60, -inf  ;;  %v3287_v60 = vmul.f32 0.2, %v2834_v42 }
 0x3ab   : > { %v3367_v62 = vmul.f32 0.2, %v3034_v36 }
 0x3ac   : > { %v6082_v10 = vpop.f32.mrf.mxu2  ;;  %v3048_v41 = vpop.f32.mrf.mxu3  ;;  %v3447_v53 = vsel %vm3127_vm14, %v2834_v42, %v3287_v60 }
 0x3ad   : > { %v3049_v11 = vadd.f32 %v5983_v43, %v3048_v41 }
 0x3af   : > { %v3373_v52 = vmul.f32 0.2, %v3049_v11  ;;  %vm3213_vm7 = vcmp.ge.f32.partialorder %v3049_v11, 0.0 }
 0x3b1   : > { %v3533_v41 = vsel %vm3213_vm7, %v3049_v11, %v3373_v52 }
 0x3b2   : > { %v3768_v57 = vsel %vm2406_vm11, %v3533_v41, -inf  ;;  %v3039_v41 = vadd.f32 %v5983_v43, %v6071_v38 }
 0x3b4   : > { %v2841_v45 = vpop.f32.mrf.mxu2  ;;  %v3051_v58 = vpop.f32.mrf.mxu3  ;;  %vm3209_vm5 = vcmp.ge.f32.partialorder %v3039_v41, 0.0 }
 0x3b5   : > { %v2842_v51 = vadd.f32 %v5983_v43, %v2841_v45 }
 0x3b7   : > { %vm3130_vm13 = vcmp.ge.f32.partialorder %v2842_v51, 0.0  ;;  %v3290_v21 = vmul.f32 0.2, %v2842_v51 }
 0x3b9   : > { %v3450_v30 = vsel %vm3130_vm13, %v2842_v51, %v3290_v21  ;;  %v3707_v51 = vsel %vm2406_vm11, %v3444_v15, -inf  ;;  %v3032_v21 = vadd.f32 %v5983_v43, %v6063_v48  ;;  %vm3207_vm13 = vcmp.ge.f32.partialorder %v3034_v36, 0.0 }
 0x3ba   : > { %v3631_v20 = vsel %vm2406_vm11, %v3450_v30, -inf  ;;  %v3726_v30 = vmax.f32 %v3724_v54, %v3707_v51  ;;  %v3527_v18 = vsel %vm3207_vm13, %v3034_v36, %v3367_v62 }
 0x3bb   : > { %v3652_v61 = vmax.f32 %v3650_v47, %v3631_v20  ;;  %v3525_v47 = vsel %vm3205_vm4, %v3029_v46, %v3365_v34  ;;  %v3366_v48 = vmul.f32 0.2, %v3032_v21  ;;  %v3052_v20 = vadd.f32 %v5983_v43, %v3051_v58 }
 0x3bc   : > { %v2843_v9 = vpop.f32.mrf.mxu2  ;;  %v3728_v37 = vmax.f32 %v3726_v30, %v3729_v1  ;;  %v3766_v17 = vsel %vm2406_vm11, %v3525_v47, -inf  ;;  %vm3206_vm8 = vcmp.ge.f32.partialorder %v3032_v21, 0.0  ;;  %v3053_v22 = vpop.f32.mrf.mxu3  ;;  %v2837_v1 = vadd.f32 %v5983_v43, %v6077_v50 }
 0x3bd   : > { %v3850_v24 = vpack.c.bf16 %v3652_v61, %v3652_v61  ;;  %v2844_v32 = vadd.f32 %v5983_v43, %v2843_v9  ;;  %v3763_v8 = vmax.f32 %v3761_v39, %v3766_v17  ;;  %v3374_v40 = vmul.f32 0.2, %v3052_v20 }
 0x3be   : > { %vm3214_vm12 = vcmp.ge.f32.partialorder %v3052_v20, 0.0  ;;  %v3288_v17 = vmul.f32 0.2, %v2837_v1  ;;  %vm3128_vm4 = vcmp.ge.f32.partialorder %v2837_v1, 0.0 }
 0x3bf   : > { %3859 = vst.msk [vmem:[%s6104_s19 + $0x8] sm:$0xf] %vm3856_vm0, %v3850_v24  ;;  %vm3131_vm1 = vcmp.ge.f32.partialorder %v2844_v32, 0.0  ;;  %v3291_v33 = vmul.f32 0.2, %v2844_v32  ;;  %v3765_v46 = vmax.f32 %v3763_v8, %v3746_v63  ;;  %v3534_v14 = vsel %vm3214_vm12, %v3052_v20, %v3374_v40 }
 0x3c0   : > { %v3448_v63 = vsel %vm3128_vm4, %v2837_v1, %v3288_v17 }
 0x3c1   : > { %v3451_v28 = vsel %vm3131_vm1, %v2844_v32, %v3291_v33  ;;  %v3526_v32 = vsel %vm3206_vm8, %v3032_v21, %v3366_v48  ;;  %v3767_v39 = vmax.f32 %v3765_v46, %v3768_v57  ;;  %v3844_v21 = vsel %vm2406_vm11, %v3527_v18, -inf }
 0x3c2   : > { %v3670_v45 = vsel %vm2406_vm11, %v3451_v28, -inf  ;;  %v3805_v16 = vsel %vm2406_vm11, %v3526_v32, -inf  ;;  %v3553_v38 = vsel %vm2406_vm11, %v3448_v63, -inf }
 0x3c3   : > { %v3691_v0 = vmax.f32 %v3689_v44, %v3670_v45  ;;  %v3054_v44 = vadd.f32 %v5983_v43, %v3053_v22  ;;  %v3785_v45 = vsel %vm2406_vm11, %v3446_v12, -inf  ;;  %v3802_v49 = vmax.f32 %v3800_v26, %v3805_v16 }
 0x3c4   : > { %v2846_v6 = vpop.f32.mrf.mxu2 }
 0x3c5   : > { %v3851_v59 = vpack.c.bf16 %v3691_v0, %v3691_v0  ;;  %v2847_v55 = vadd.f32 %v5983_v43, %v2846_v6  ;;  %v3807_v6 = vsel %vm2406_vm11, %v3534_v14, -inf  ;;  %v3375_v54 = vmul.f32 0.2, %v3054_v44 }
 0x3c6   : > { %v3804_v58 = vmax.f32 %v3802_v49, %v3785_v45  ;;  %vm3215_vm2 = vcmp.ge.f32.partialorder %v3054_v44, 0.0 }
 0x3c7   : > { %3860 = vst.msk [vmem:[%s6104_s19 + $0xc] sm:$0xf] %vm3856_vm0, %v3851_v59  ;;  %vm3132_vm6 = vcmp.ge.f32.partialorder %v2847_v55, 0.0  ;;  %v3292_v31 = vmul.f32 0.2, %v2847_v55  ;;  %v3535_v47 = vsel %vm3215_vm2, %v3054_v44, %v3375_v54 }
 0x3c8   : > { %v3806_v23 = vmax.f32 %v3804_v58, %v3807_v6  ;;  %v3846_v48 = vsel %vm2406_vm11, %v3535_v47, -inf }
 0x3c9   : > { %v3452_v3 = vsel %vm3132_vm6, %v2847_v55, %v3292_v31  ;;  %v3037_v55 = vadd.f32 %v5983_v43, %v6067_v2  ;;  %v3824_v31 = vsel %vm2406_vm11, %v3447_v53, -inf  ;;  %v3841_v2 = vmax.f32 %v3839_v27, %v3844_v21 }
 0x3ca   : > { %v3709_v19 = vsel %vm2406_vm11, %v3452_v3, -inf  ;;  %v2839_v27 = vadd.f32 %v5983_v43, %v6082_v10 }
 0x3cb   : > { %v3730_v61 = vmax.f32 %v3728_v37, %v3709_v19  ;;  %v3368_v35 = vmul.f32 0.2, %v3037_v55  ;;  %vm3208_vm1 = vcmp.ge.f32.partialorder %v3037_v55, 0.0  ;;  %v3843_v50 = vmax.f32 %v3841_v2, %v3824_v31 }
 0x3cc   : > { %v2848_v9 = vpop.f32.mrf.mxu2  ;;  %v3289_v57 = vmul.f32 0.2, %v2839_v27  ;;  %vm3129_vm7 = vcmp.ge.f32.partialorder %v2839_v27, 0.0 }
 0x3cd   : > { %v3852_v4 = vpack.c.bf16 %v3730_v61, %v3730_v61  ;;  %v2849_v24 = vadd.f32 %v5983_v43, %v2848_v9  ;;  %v3528_v19 = vsel %vm3208_vm1, %v3037_v55, %v3368_v35  ;;  %v3845_v5 = vmax.f32 %v3843_v50, %v3846_v48 }
 0x3ce   : > { %v3573_v8 = vsel %vm2406_vm11, %v3528_v19, -inf  ;;  %v3449_v12 = vsel %vm3129_vm7, %v2839_v27, %v3289_v57 }
 0x3cf   : > { %3861 = vst.msk [vmem:[%s6104_s19 + $0x10] sm:$0xf] %vm3856_vm0, %v3852_v4  ;;  %vm3133_vm10 = vcmp.ge.f32.partialorder %v2849_v24, 0.0  ;;  %v3293_v33 = vmul.f32 0.2, %v2849_v24  ;;  %v3570_v40 = vmax.f32 %v6055_v25, %v3573_v8  ;;  %v3592_v44 = vsel %vm2406_vm11, %v3449_v12, -inf }
 0x3d0   : > { %v3369_v4 = vmul.f32 0.2, %v3039_v41 }
 0x3d1   : > { %v3453_v15 = vsel %vm3133_vm10, %v2849_v24, %v3293_v33  ;;  %v3572_v46 = vmax.f32 %v3570_v40, %v3553_v38 }
 0x3d2   : > { %v3748_v28 = vsel %vm2406_vm11, %v3453_v15, -inf  ;;  %v3529_v36 = vsel %vm3209_vm5, %v3039_v41, %v3369_v4 }
 0x3d3   : > { %v3769_v11 = vmax.f32 %v3767_v39, %v3748_v28  ;;  %v3612_v39 = vsel %vm2406_vm11, %v3529_v36, -inf }
 0x3d4   : > { %v2851_v34 = vpop.f32.mrf.mxu2  ;;  %v3609_v28 = vmax.f32 %v6061_v7, %v3612_v39 }
 0x3d5   : > { %v3853_v0 = vpack.c.bf16 %v3769_v11, %v3769_v11  ;;  %v2852_v51 = vadd.f32 %v5983_v43, %v2851_v34 }
 0x3d6   : > { %v3611_v14 = vmax.f32 %v3609_v28, %v3592_v44 }
 0x3d7   : > { %3862 = vst.msk [vmem:[%s6104_s19 + $0x14] sm:$0xf] %vm3856_vm0, %v3853_v0  ;;  %vm3134_vm15 = vcmp.ge.f32.partialorder %v2852_v51, 0.0  ;;  %v3294_v59 = vmul.f32 0.2, %v2852_v51 }
 0x3d9   : > { %v3454_v26 = vsel %vm3134_vm15, %v2852_v51, %v3294_v59 }
 0x3da   : > { %v3787_v52 = vsel %vm2406_vm11, %v3454_v26, -inf }
 0x3db   : > { %v3808_v30 = vmax.f32 %v3806_v23, %v3787_v52 }
 0x3dc   : > { %v2853_v13 = vpop.f32.mrf.mxu2 }
 0x3dd   : > { %v3854_v37 = vpack.c.bf16 %v3808_v30, %v3808_v30  ;;  %v2854_v3 = vadd.f32 %v5983_v43, %v2853_v13 }
 0x3df   : > { %3863 = vst.msk [vmem:[%s6104_s19 + $0x18] sm:$0xf] %vm3856_vm0, %v3854_v37  ;;  %vm3135_vm3 = vcmp.ge.f32.partialorder %v2854_v3, 0.0  ;;  %v3295_v20 = vmul.f32 0.2, %v2854_v3 }
 0x3e1   : > { %v3455_v29 = vsel %vm3135_vm3, %v2854_v3, %v3295_v20 }
 0x3e2   : > { %v3826_v61 = vsel %vm2406_vm11, %v3455_v29, -inf }
 0x3e3   : > { %v3847_v9 = vmax.f32 %v3845_v5, %v3826_v61 }
 0x3e4   : > { %v2856_v56 = vpop.f32.mrf.mxu2 }
 0x3e5   : > { %v3855_v24 = vpack.c.bf16 %v3847_v9, %v3847_v9  ;;  %v2857_v32 = vadd.f32 %v5983_v43, %v2856_v56 }
 0x3e7   : > { %3864 = vst.msk [vmem:[%s6104_s19 + $0x1c] sm:$0xf] %vm3856_vm0, %v3855_v24  ;;  %vm3136_vm6 = vcmp.ge.f32.partialorder %v2857_v32, 0.0  ;;  %v3296_v10 = vmul.f32 0.2, %v2857_v32 }
 0x3e9   : > { %v3456_v22 = vsel %vm3136_vm6, %v2857_v32, %v3296_v10 }
 0x3ea   : > { %v3555_v33 = vsel %vm2406_vm11, %v3456_v22, -inf }
 0x3eb   : > { %v3574_v42 = vmax.f32 %v3572_v46, %v3555_v33 }
 0x3ec   : > { %v2858_v15 = vpop.f32.mrf.mxu2 }
 0x3ed   : > { %v3848_v16 = vpack.c.bf16 %v3574_v42, %v3574_v42  ;;  %v2859_v25 = vadd.f32 %v5983_v43, %v2858_v15 }
 0x3ef   : > { %3857 = vst.msk [vmem:[%s6104_s19] sm:$0xf] %vm3856_vm0, %v3848_v16  ;;  %vm3137_vm8 = vcmp.ge.f32.partialorder %v2859_v25, 0.0  ;;  %v3297_v62 = vmul.f32 0.2, %v2859_v25 }
 0x3f1   : > { %v3457_v11 = vsel %vm3137_vm8, %v2859_v25, %v3297_v62 }
 0x3f2   : > { %v3594_v45 = vsel %vm2406_vm11, %v3457_v11, -inf }
 0x3f3   : > { %v3613_v34 = vmax.f32 %v3611_v14, %v3594_v45 }
 0x3f5   : > { %v3849_v49 = vpack.c.bf16 %v3613_v34, %v3613_v34 }
 0x3f7   : > { %3858 = vst.msk [vmem:[%s6104_s19 + $0x4] sm:$0xf] %vm3856_vm0, %v3849_v49 }
 0x3f8 PF: > { %s17_s26 = sadd.s32 1, %s4646_s26   ;;  %s6211_s24 = smov %s4642_s25 }
 0x3f9   : > { %p14_p5 = scmp.ge.s32.totalorder %s17_s26, 4   ;;  %s6212_s25 = smov %s6214_s27 }
 0x3fb   :  { %16 = sbr.rel (!%p14_p5) target bundleno = 2 (0x2), region = 81 }

// kernel: dgcnn_forward.10
= control target key start
LH: loop header
LB: loop body
LE: loop exit
PB: predicated region body
PF: predicated region fallthrough
CT: control target
= control target key end

     0   :  { %s4785_s24 = smov 0   ;;  %s4787_s25 = smov 0   ;;  %s6538_s0 = inlined_call_operand.vmem [shape: bf16[2,20,64,64], index: 0, kind: input, shape index: {}]   ;;  %s6539_s1 = inlined_call_operand.vmem [shape: bf16[2,64,64], index: 1, kind: input, shape index: {}]   ;;  %s6540_s2 = inlined_call_operand.vmem [shape: bf16[64,64], index: 2, kind: input, shape index: {}]   ;;  %s6541_s3 = inlined_call_operand.vmem [shape: bf16[64,64], index: 3, kind: input, shape index: {}]   ;;  %s6542_s4 = inlined_call_operand.vmem [shape: f32[1,64], index: 4, kind: input, shape index: {}]   ;;  %s6543_s5 = inlined_call_operand.vmem [shape: bf16[64,64], index: 5, kind: input, shape index: {}]   ;;  %s6544_s6 = inlined_call_operand.vmem [shape: f32[1,64], index: 6, kind: input, shape index: {}]   ;;  %s6545_s7 = inlined_call_operand.vmem [shape: bf16[2,64,64], index: 7, kind: output, shape index: {}]  }
   0x1   :  { %s4789_s26 = smov 0  }
   0x2 LB: > { %s29_s27 = sadd.s32 1, %s4739_s25  ;;  %p4025_p0 = scmp.ge.s32.totalorder %s4743_s26, 1  ;;  %s4743_s26 = sphi %s4789_s26, %s17_s26   ;;  %s4739_s25 = sphi %s4787_s25, %s6695_s25   ;;  %s4735_s24 = sphi %s4785_s24, %s6694_s24  }
   0x3   : > { %p31_p1 = scmp.ge.s32.totalorder %s29_s27, 2  ;;  %p275_p2 = scmp.lt.s32.totalorder %s4743_s26, 3 }
   0x5   : > { %s6697_s27 = smov (%p31_p1, %s29_s27), 0  ;;  %p276_p3 = pnand %p4025_p0, %p275_p2 }
   0x7   : > { %279 = sbr.rel (%p276_p3) target bundleno = 1585 (0x631), region = 48 }
   0xc   : > { %v4674_v0 = vld [vmem:[%s6541_s3 + $0x18] sm:$0xff]  ;;  %p325_p4 = scmp.lt.s32.totalorder %s4735_s24, 1  ;;  %v4673_v2 = vld [vmem:[%s6541_s3 + $0x10] sm:$0xff]  ;;  %v4672_v4 = vld [vmem:[%s6541_s3 + $0x8] sm:$0xff]  ;;  %vm587_vm0 = vcmask 523264  }
   0xd   : > { %v4670_v1 = vld [vmem:[%s6540_s2 + $0x18] sm:$0xff]  ;;  %604 = vmatpush.bf16.msra.mxu0 %v4674_v0  ;;  %4679 = vmatpush.bf16.msra.mxu3 %v4674_v0  ;;  %v4669_v3 = vld [vmem:[%s6540_s2 + $0x10] sm:$0xff]  ;;  %v4668_v5 = vld [vmem:[%s6540_s2 + $0x8] sm:$0xff] }
   0xe   : > { %1297 = vmatpush.bf16.msra.mxu1 %v4670_v1  ;;  %s6699_s24 = smov (!%p325_p4, %s4735_s24), 1  ;;  %v4671_v6 = vld [vmem:[%s6541_s3] sm:$0xff]  ;;  %v4678_v24 = vld [vmem:[%s6543_s5 + $0x18] sm:$0xff]  ;;  %v4677_v25 = vld [vmem:[%s6543_s5 + $0x10] sm:$0xff] }
   0xf   : > { %s4691_s17 = smul.u32 640, %s6699_s24  ;;  %s4581_s18 = sshll.u32 %s6699_s24, 5  ;;  %v4667_v7 = vld [vmem:[%s6540_s2] sm:$0xff]  ;;  %4687 = vmatpush.bf16.msra.mxu2 %v4678_v24  ;;  %v4676_v26 = vld [vmem:[%s6543_s5 + $0x8] sm:$0xff] }
  0x10   : > { %s342_s23 = scalar_lea.vmem %s6539_s1, %s4581_s18  ;;  %v4675_v27 = vld [vmem:[%s6543_s5] sm:$0xff]  ;;  %s6461_s12 = scalar_lea.vmem %s6545_s7, %s4581_s18 }
  0x11   : > { %605 = vmatpush.bf16.msra.mxu0 %v4673_v2  ;;  %4680 = vmatpush.bf16.msra.mxu3 %v4673_v2  ;;  %s4839_s9 = scalar_lea.vmem %s6538_s0, %s4691_s17  ;;  %v4663_v8 = vld [vmem:[%s342_s23] sm:$0xff]  ;;  %v4665_v9 = vld [vmem:[%s342_s23 + $0x10] sm:$0xff]  ;;  %v4664_v11 = vld [vmem:[%s342_s23 + $0x8] sm:$0xff] }
  0x12   : > { %1298 = vmatpush.bf16.msra.mxu1 %v4669_v3  ;;  %v4583_v10 = vld [vmem:[%s4839_s9] sm:$0xff]  ;;  %v4666_v12 = vld [vmem:[%s342_s23 + $0x18] sm:$0xff]  ;;  %v4584_v13 = vld [vmem:[%s4839_s9 + $0x8] sm:$0xff] }
  0x13   : > { %v4624_v14 = vld [vmem:[%s4839_s9 + $0x148] sm:$0xff]  ;;  %v4585_v15 = vld [vmem:[%s4839_s9 + $0x10] sm:$0xff]  ;;  %v4586_v17 = vld [vmem:[%s4839_s9 + $0x18] sm:$0xff]  ;;  %4688 = vmatpush.bf16.msra.mxu2 %v4677_v25 }
  0x14   : > { %v4625_v16 = vld [vmem:[%s4839_s9 + $0x150] sm:$0xff]  ;;  %v4626_v18 = vld [vmem:[%s4839_s9 + $0x158] sm:$0xff]  ;;  %v4587_v19 = vld [vmem:[%s4839_s9 + $0x20] sm:$0xff] }
  0x15   : > { %606 = vmatpush.bf16.msra.mxu0 %v4672_v4  ;;  %4681 = vmatpush.bf16.msra.mxu3 %v4672_v4  ;;  %v4627_v20 = vld [vmem:[%s4839_s9 + $0x160] sm:$0xff]  ;;  %v4588_v21 = vld [vmem:[%s4839_s9 + $0x28] sm:$0xff]  ;;  %v4589_v23 = vld [vmem:[%s4839_s9 + $0x30] sm:$0xff] }
  0x16   : > { %1299 = vmatpush.bf16.msra.mxu1 %v4668_v5  ;;  %v4628_v22 = vld [vmem:[%s4839_s9 + $0x168] sm:$0xff]  ;;  %v4629_v28 = vld [vmem:[%s4839_s9 + $0x170] sm:$0xff]  ;;  %v4590_v29 = vld [vmem:[%s4839_s9 + $0x38] sm:$0xff] }
  0x17   : > { %4689 = vmatpush.bf16.msra.mxu2 %v4676_v26  ;;  %v4888_v30 = vld [vmem:[%s6542_s4] ss:$0 sm:$0xff]  ;;  %v4630_v31 = vld [vmem:[%s4839_s9 + $0x178] sm:$0xff]  ;;  %v4592_v50 = vld [vmem:[%s4839_s9 + $0x48] sm:$0xff] }
  0x18   : > { %v4591_v33 = vld [vmem:[%s4839_s9 + $0x40] sm:$0xff]  ;;  %v4632_v0 = vld [vmem:[%s4839_s9 + $0x188] sm:$0xff]  ;;  %v4593_v2 = vld [vmem:[%s4839_s9 + $0x50] sm:$0xff] }
  0x19   : > { %607 = vmatpush.bf16.msra.mxu0 %v4671_v6  ;;  %4682 = vmatpush.bf16.msra.mxu3 %v4671_v6  ;;  %v4631_v47 = vld [vmem:[%s4839_s9 + $0x180] sm:$0xff] }
  0x1a   : > { %1300 = vmatpush.bf16.msra.mxu1 %v4667_v7 }
  0x1b   : > { %4690 = vmatpush.bf16.msra.mxu2 %v4675_v27 }
  0x1c   : > { %4063 = vmatmul.msk.bf16.vlgmr.msra.gmra.mxu0 %vm587_vm0, %v4663_v8  ;;  %4065 = vmatmul.msk.bf16.vlgmr.msra.gmra.mxu3 %vm587_vm0, %v4665_v9 }
  0x1d   : > { %4683 = vmatpush.bf16.msrb.mxu3 %v4670_v1  ;;  %4403 = vmatmul.msk.bf16.vlgmr.msra.gmra.mxu1 %vm587_vm0, %v4583_v10 }
  0x1e   : > { %2702 = vmatpush.bf16.msrb.mxu0 %v4678_v24 }
  0x21   : > { %4684 = vmatpush.bf16.msrb.mxu3 %v4669_v3 }
  0x22   : > { %2703 = vmatpush.bf16.msrb.mxu0 %v4677_v25 }
  0x25   : > { %4685 = vmatpush.bf16.msrb.mxu3 %v4668_v5 }
  0x26   : > { %2704 = vmatpush.bf16.msrb.mxu0 %v4676_v26 }
  0x29   : > { %4686 = vmatpush.bf16.msrb.mxu3 %v4667_v7 }
  0x2a   : > { %2705 = vmatpush.bf16.msrb.mxu0 %v4675_v27 }
  0x2c   : > { %4064 = vmatmul.msk.bf16.gmra.mxu0 %vm587_vm0, %v4664_v11  ;;  %4066 = vmatmul.msk.bf16.gmra.mxu3 %vm587_vm0, %v4666_v12 }
  0x2d   : > { %4404 = vmatmul.msk.bf16.gmra.mxu1 %vm587_vm0, %v4584_v13 }
  0x3c   : > { %4444 = vmatmul.msk.bf16.vlgmr.msrb.gmra.mxu3 %vm587_vm0, %v4624_v14 }
  0x3d   : > { %4405 = vmatmul.msk.bf16.gmra.mxu1 %vm587_vm0, %v4585_v15  ;;  %v4633_v15 = vld [vmem:[%s4839_s9 + $0x190] sm:$0xff] }
  0x4c   : > { %4445 = vmatmul.msk.bf16.gmra.mxu3 %vm587_vm0, %v4625_v16 }
  0x4d   : > { %4406 = vmatmul.msk.bf16.gmra.mxu1 %vm587_vm0, %v4586_v17  ;;  %v4594_v17 = vld [vmem:[%s4839_s9 + $0x58] sm:$0xff] }
  0x5c   : > { %4446 = vmatmul.msk.bf16.gmra.mxu3 %vm587_vm0, %v4626_v18 }
  0x5d   : > { %4407 = vmatmul.msk.bf16.gmra.mxu1 %vm587_vm0, %v4587_v19 }
  0x6c   : > { %4447 = vmatmul.msk.bf16.gmra.mxu3 %vm587_vm0, %v4627_v20 }
  0x6d   : > { %4408 = vmatmul.msk.bf16.gmra.mxu1 %vm587_vm0, %v4588_v21 }
  0x7c   : > { %4448 = vmatmul.msk.bf16.gmra.mxu3 %vm587_vm0, %v4628_v22 }
  0x7d   : > { %4409 = vmatmul.msk.bf16.gmra.mxu1 %vm587_vm0, %v4589_v23 }
  0x8c   : > { %4449 = vmatmul.msk.bf16.gmra.mxu3 %vm587_vm0, %v4629_v28 }
  0x8d   : > { %4410 = vmatmul.msk.bf16.gmra.mxu1 %vm587_vm0, %v4590_v29 }
  0x99   : > { %v609_v32 = vpop.f32.mrf.mxu0 }
  0x9a   : > { %v1302_v34 = vpop.f32.mrf.mxu1  ;;  %v4893_v35 = vadd.f32 %v4888_v30, %v609_v32 }
  0x9c   : > { %4450 = vmatmul.msk.bf16.gmra.mxu3 %vm587_vm0, %v4630_v31  ;;  %v1702_v37 = vadd.f32 %v1302_v34, %v4893_v35  ;;  %v4634_v31 = vld [vmem:[%s4839_s9 + $0x198] sm:$0xff] }
  0x9d   : > { %4411 = vmatmul.msk.bf16.gmra.mxu1 %vm587_vm0, %v4591_v33  ;;  %v4595_v33 = vld [vmem:[%s4839_s9 + $0x60] sm:$0xff] }
  0x9e   : > { %v2022_v41 = vmul.f32 0.2, %v1702_v37  ;;  %vm1862_vm1 = vcmp.ge.f32.partialorder %v1702_v37, 0.0 }
  0x9f   : > { %v619_v36 = vpop.f32.mrf.mxu3 }
  0xa0   : > { %v2182_v45 = vsel %vm1862_vm1, %v1702_v37, %v2022_v41  ;;  %v4919_v4 = vadd.f32 %v4888_v30, %v619_v36 }
  0xa1   : > { %v611_v38 = vpop.f32.mrf.mxu0 }
  0xa2   : > { %v4899_v39 = vadd.f32 %v4888_v30, %v611_v38  ;;  %v1304_v40 = vpop.f32.mrf.mxu1 }
  0xa4   : > { %v1703_v42 = vadd.f32 %v1304_v40, %v4899_v39 }
  0xa6   : > { %vm1863_vm2 = vcmp.ge.f32.partialorder %v1703_v42, 0.0  ;;  %v2023_v43 = vmul.f32 0.2, %v1703_v42 }
  0xa7   : > { %v621_v44 = vpop.f32.mrf.mxu3 }
  0xa8   : > { %v2183_v46 = vsel %vm1863_vm2, %v1703_v42, %v2023_v43  ;;  %v4924_v5 = vadd.f32 %v4888_v30, %v621_v44 }
  0xa9   : > { %v2351_v48 = vpack.c.bf16 %v2183_v46, %v2182_v45  ;;  %v614_v49 = vpop.f32.mrf.mxu0  ;;  %v4635_v45 = vld [vmem:[%s4839_s9 + $0x1a0] sm:$0xff] }
  0xaa   : > { %v1307_v51 = vpop.f32.mrf.mxu1  ;;  %v4906_v52 = vadd.f32 %v4888_v30, %v614_v49  ;;  %6578 = vst [vmem:[#allocation2_spill] sm:$0xff] %v4924_v5 }
  0xab   : > { %4499 = vmatmul.msk.bf16.vlgmr.msrb.gmra.mxu0 %vm587_vm0, %v2351_v48 }
  0xac   : > { %4451 = vmatmul.msk.bf16.gmra.mxu3 %vm587_vm0, %v4631_v47  ;;  %v1704_v54 = vadd.f32 %v1307_v51, %v4906_v52  ;;  %v4596_v47 = vld [vmem:[%s4839_s9 + $0x68] sm:$0xff] }
  0xad   : > { %4412 = vmatmul.msk.bf16.gmra.mxu1 %vm587_vm0, %v4592_v50 }
  0xae   : > { %v2024_v58 = vmul.f32 0.2, %v1704_v54  ;;  %vm1864_vm3 = vcmp.ge.f32.partialorder %v1704_v54, 0.0 }
  0xaf   : > { %v624_v53 = vpop.f32.mrf.mxu3 }
  0xb0   : > { %v2184_v62 = vsel %vm1864_vm3, %v1704_v54, %v2024_v58  ;;  %v4936_v19 = vadd.f32 %v4888_v30, %v624_v53 }
  0xb1   : > { %v616_v55 = vpop.f32.mrf.mxu0 }
  0xb2   : > { %v4912_v56 = vadd.f32 %v4888_v30, %v616_v55  ;;  %v1309_v57 = vpop.f32.mrf.mxu1 }
  0xb4   : > { %v1705_v59 = vadd.f32 %v1309_v57, %v4912_v56 }
  0xb6   : > { %vm1865_vm4 = vcmp.ge.f32.partialorder %v1705_v59, 0.0  ;;  %v2025_v60 = vmul.f32 0.2, %v1705_v59 }
  0xb7   : > { %v626_v61 = vpop.f32.mrf.mxu3 }
  0xb8   : > { %v2185_v63 = vsel %vm1865_vm4, %v1705_v59, %v2025_v60  ;;  %v4941_v20 = vadd.f32 %v4888_v30, %v626_v61  ;;  %v4636_v60 = vld [vmem:[%s4839_s9 + $0x1a8] sm:$0xff] }
  0xb9   : > { %v2352_v1 = vpack.c.bf16 %v2185_v63, %v2184_v62  ;;  %v4597_v62 = vld [vmem:[%s4839_s9 + $0x70] sm:$0xff] }
  0xba   : > { %v1312_v3 = vpop.f32.mrf.mxu1 }
  0xbb   : > { %4500 = vmatmul.msk.bf16.gmra.mxu0 %vm587_vm0, %v2352_v1  ;;  %v1706_v7 = vadd.f32 %v1312_v3, %v4919_v4 }
  0xbc   : > { %4452 = vmatmul.msk.bf16.gmra.mxu3 %vm587_vm0, %v4632_v0 }
  0xbd   : > { %4413 = vmatmul.msk.bf16.gmra.mxu1 %vm587_vm0, %v4593_v2  ;;  %v2026_v10 = vmul.f32 0.2, %v1706_v7  ;;  %vm1866_vm5 = vcmp.ge.f32.partialorder %v1706_v7, 0.0 }
  0xbf   : > { %v4926_v6 = vpop.f32.mrf.mxu3  ;;  %v2186_v14 = vsel %vm1866_vm5, %v1706_v7, %v2026_v10 }
  0xc2   : > { %v1314_v8 = vpop.f32.mrf.mxu1 }
  0xc3   : > { %v1707_v9 = vadd.f32 %v1314_v8, %v4924_v5 }
  0xc5   : > { %vm1867_vm6 = vcmp.ge.f32.partialorder %v1707_v9, 0.0  ;;  %v2027_v11 = vmul.f32 0.2, %v1707_v9 }
  0xc7   : > { %v4930_v12 = vpop.f32.mrf.mxu3  ;;  %v2187_v13 = vsel %vm1867_vm6, %v1707_v9, %v2027_v11 }
  0xc8   : > { %v2353_v16 = vpack.c.bf16 %v2187_v13, %v2186_v14  ;;  %v4637_v13 = vld [vmem:[%s4839_s9 + $0x1b0] sm:$0xff] }
  0xca   : > { %v1317_v18 = vpop.f32.mrf.mxu1 }
  0xcb   : > { %4501 = vmatmul.msk.bf16.gmra.mxu0 %vm587_vm0, %v2353_v16  ;;  %v1708_v22 = vadd.f32 %v1317_v18, %v4936_v19 }
  0xcc   : > { %4453 = vmatmul.msk.bf16.gmra.mxu3 %vm587_vm0, %v4633_v15  ;;  %v4598_v15 = vld [vmem:[%s4839_s9 + $0x78] sm:$0xff] }
  0xcd   : > { %4414 = vmatmul.msk.bf16.gmra.mxu1 %vm587_vm0, %v4594_v17  ;;  %v2028_v25 = vmul.f32 0.2, %v1708_v22  ;;  %vm1868_vm7 = vcmp.ge.f32.partialorder %v1708_v22, 0.0 }
  0xcf   : > { %v4943_v21 = vpop.f32.mrf.mxu3  ;;  %v2188_v29 = vsel %vm1868_vm7, %v1708_v22, %v2028_v25 }
  0xd2   : > { %v1319_v23 = vpop.f32.mrf.mxu1 }
  0xd3   : > { %v1709_v24 = vadd.f32 %v1319_v23, %v4941_v20 }
  0xd5   : > { %vm1869_vm8 = vcmp.ge.f32.partialorder %v1709_v24, 0.0  ;;  %v2029_v26 = vmul.f32 0.2, %v1709_v24 }
  0xd7   : > { %v4947_v27 = vpop.f32.mrf.mxu3  ;;  %v2189_v28 = vsel %vm1869_vm8, %v1709_v24, %v2029_v26 }
  0xd8   : > { %v2354_v32 = vpack.c.bf16 %v2189_v28, %v2188_v29 }
  0xda   : > { %v1322_v30 = vpop.f32.mrf.mxu1 }
  0xdb   : > { %4502 = vmatmul.msk.bf16.gmra.mxu0 %vm587_vm0, %v2354_v32  ;;  %v1710_v36 = vadd.f32 %v1322_v30, %v4893_v35 }
  0xdc   : > { %4454 = vmatmul.msk.bf16.gmra.mxu3 %vm587_vm0, %v4634_v31  ;;  %v4638_v31 = vld [vmem:[%s4839_s9 + $0x1b8] sm:$0xff] }
  0xdd   : > { %4415 = vmatmul.msk.bf16.gmra.mxu1 %vm587_vm0, %v4595_v33  ;;  %v2030_v40 = vmul.f32 0.2, %v1710_v36  ;;  %vm1870_vm9 = vcmp.ge.f32.partialorder %v1710_v36, 0.0  ;;  %v4599_v33 = vld [vmem:[%s4839_s9 + $0x80] sm:$0xff] }
  0xdf   : > { %v4954_v34 = vpop.f32.mrf.mxu3  ;;  %v2190_v44 = vsel %vm1870_vm9, %v1710_v36, %v2030_v40 }
  0xe2   : > { %v1324_v37 = vpop.f32.mrf.mxu1 }
  0xe3   : > { %v1711_v38 = vadd.f32 %v1324_v37, %v4899_v39 }
  0xe5   : > { %vm1871_vm10 = vcmp.ge.f32.partialorder %v1711_v38, 0.0  ;;  %v2031_v41 = vmul.f32 0.2, %v1711_v38 }
  0xe7   : > { %v4958_v42 = vpop.f32.mrf.mxu3  ;;  %v2191_v43 = vsel %vm1871_vm10, %v1711_v38, %v2031_v41 }
  0xe8   : > { %v2355_v46 = vpack.c.bf16 %v2191_v43, %v2190_v44 }
  0xea   : > { %v1327_v48 = vpop.f32.mrf.mxu1 }
  0xeb   : > { %4503 = vmatmul.msk.bf16.gmra.mxu0 %vm587_vm0, %v2355_v46  ;;  %v1712_v50 = vadd.f32 %v1327_v48, %v4906_v52  ;;  %v4639_v48 = vld [vmem:[%s4839_s9 + $0x1c0] sm:$0xff] }
  0xec   : > { %4455 = vmatmul.msk.bf16.gmra.mxu3 %vm587_vm0, %v4635_v45 }
  0xed   : > { %4416 = vmatmul.msk.bf16.gmra.mxu1 %vm587_vm0, %v4596_v47  ;;  %v2032_v54 = vmul.f32 0.2, %v1712_v50  ;;  %vm1872_vm11 = vcmp.ge.f32.partialorder %v1712_v50, 0.0 }
  0xef   : > { %v4965_v49 = vpop.f32.mrf.mxu3  ;;  %v2192_v59 = vsel %vm1872_vm11, %v1712_v50, %v2032_v54 }
  0xf2   : > { %v1329_v51 = vpop.f32.mrf.mxu1 }
  0xf3   : > { %v1713_v53 = vadd.f32 %v1329_v51, %v4912_v56  ;;  %v4600_v51 = vld [vmem:[%s4839_s9 + $0x88] sm:$0xff] }
  0xf5   : > { %vm1873_vm12 = vcmp.ge.f32.partialorder %v1713_v53, 0.0  ;;  %v2033_v55 = vmul.f32 0.2, %v1713_v53 }
  0xf7   : > { %v4969_v57 = vpop.f32.mrf.mxu3  ;;  %v2193_v58 = vsel %vm1873_vm12, %v1713_v53, %v2033_v55 }
  0xf8   : > { %v2356_v61 = vpack.c.bf16 %v2193_v58, %v2192_v59 }
  0xfa   : > { %v1332_v63 = vpop.f32.mrf.mxu1 }
  0xfb   : > { %4504 = vmatmul.msk.bf16.gmra.mxu0 %vm587_vm0, %v2356_v61  ;;  %v1714_v1 = vadd.f32 %v1332_v63, %v4919_v4 }
  0xfc   : > { %4456 = vmatmul.msk.bf16.gmra.mxu3 %vm587_vm0, %v4636_v60 }
  0xfd   : > { %4417 = vmatmul.msk.bf16.gmra.mxu1 %vm587_vm0, %v4597_v62  ;;  %v2034_v7 = vmul.f32 0.2, %v1714_v1  ;;  %vm1874_vm13 = vcmp.ge.f32.partialorder %v1714_v1, 0.0 }
  0xff   : > { %v4976_v0 = vpop.f32.mrf.mxu3  ;;  %v2194_v11 = vsel %vm1874_vm13, %v1714_v1, %v2034_v7  ;;  %v4640_v7 = vld [vmem:[%s4839_s9 + $0x1c8] sm:$0xff] }
 0x102   : > { %v1334_v2 = vpop.f32.mrf.mxu1 }
 0x103   : > { %v1715_v3 = vadd.f32 %v1334_v2, %v4924_v5 }
 0x105   : > { %vm1875_vm14 = vcmp.ge.f32.partialorder %v1715_v3, 0.0  ;;  %v2035_v8 = vmul.f32 0.2, %v1715_v3 }
 0x107   : > { %v4980_v9 = vpop.f32.mrf.mxu3  ;;  %v2195_v10 = vsel %vm1875_vm14, %v1715_v3, %v2035_v8 }
 0x108   : > { %v2357_v14 = vpack.c.bf16 %v2195_v10, %v2194_v11  ;;  %v4601_v10 = vld [vmem:[%s4839_s9 + $0x90] sm:$0xff] }
 0x10a   : > { %v1337_v16 = vpop.f32.mrf.mxu1 }
 0x10b   : > { %4505 = vmatmul.msk.bf16.gmra.mxu0 %vm587_vm0, %v2357_v14  ;;  %v1716_v18 = vadd.f32 %v1337_v16, %v4936_v19 }
 0x10c   : > { %4457 = vmatmul.msk.bf16.gmra.mxu3 %vm587_vm0, %v4637_v13 }
 0x10d   : > { %4418 = vmatmul.msk.bf16.gmra.mxu1 %vm587_vm0, %v4598_v15  ;;  %v2036_v24 = vmul.f32 0.2, %v1716_v18  ;;  %vm1876_vm15 = vcmp.ge.f32.partialorder %v1716_v18, 0.0 }
 0x10f   : > { %v4987_v17 = vpop.f32.mrf.mxu3  ;;  %v2196_v29 = vsel %vm1876_vm15, %v1716_v18, %v2036_v24 }
 0x112   : > { %v1339_v22 = vpop.f32.mrf.mxu1 }
 0x113   : > { %v1717_v23 = vadd.f32 %v1339_v22, %v4941_v20 }
 0x115   : > { %vm1877_vm1 = vcmp.ge.f32.partialorder %v1717_v23, 0.0  ;;  %v2037_v25 = vmul.f32 0.2, %v1717_v23 }
 0x117   : > { %v4991_v26 = vpop.f32.mrf.mxu3  ;;  %v2197_v28 = vsel %vm1877_vm1, %v1717_v23, %v2037_v25 }
 0x118   : > { %v2358_v32 = vpack.c.bf16 %v2197_v28, %v2196_v29 }
 0x11a   : > { %v1342_v30 = vpop.f32.mrf.mxu1 }
 0x11b   : > { %4506 = vmatmul.msk.bf16.gmra.mxu0 %vm587_vm0, %v2358_v32  ;;  %v1718_v37 = vadd.f32 %v1342_v30, %v4893_v35 }
 0x11c   : > { %4458 = vmatmul.msk.bf16.gmra.mxu3 %vm587_vm0, %v4638_v31  ;;  %v4641_v31 = vld [vmem:[%s4839_s9 + $0x1d0] sm:$0xff] }
 0x11d   : > { %4419 = vmatmul.msk.bf16.gmra.mxu1 %vm587_vm0, %v4599_v33  ;;  %v2038_v41 = vmul.f32 0.2, %v1718_v37  ;;  %vm1878_vm2 = vcmp.ge.f32.partialorder %v1718_v37, 0.0  ;;  %v4602_v33 = vld [vmem:[%s4839_s9 + $0x98] sm:$0xff] }
 0x11f   : > { %v4998_v36 = vpop.f32.mrf.mxu3  ;;  %v2198_v47 = vsel %vm1878_vm2, %v1718_v37, %v2038_v41 }
 0x122   : > { %v1344_v38 = vpop.f32.mrf.mxu1 }
 0x123   : > { %v1719_v40 = vadd.f32 %v1344_v38, %v4899_v39 }
 0x125   : > { %vm1879_vm3 = vcmp.ge.f32.partialorder %v1719_v40, 0.0  ;;  %v2039_v43 = vmul.f32 0.2, %v1719_v40 }
 0x127   : > { %v5002_v44 = vpop.f32.mrf.mxu3  ;;  %v2199_v45 = vsel %vm1879_vm3, %v1719_v40, %v2039_v43 }
 0x128   : > { %v5004_v46 = vpop.f32.mrf.mxu0  ;;  %v2359_v50 = vpack.c.bf16 %v2199_v45, %v2198_v47 }
 0x12a   : > { %v1347_v53 = vpop.f32.mrf.mxu1 }
 0x12b   : > { %4507 = vmatmul.msk.bf16.gmra.mxu0 %vm587_vm0, %v2359_v50  ;;  %v1720_v55 = vadd.f32 %v1347_v53, %v4906_v52 }
 0x12c   : > { %4459 = vmatmul.msk.bf16.gmra.mxu3 %vm587_vm0, %v4639_v48 }
 0x12d   : > { %4420 = vmatmul.msk.bf16.gmra.mxu1 %vm587_vm0, %v4600_v51  ;;  %v2040_v61 = vmul.f32 0.2, %v1720_v55  ;;  %vm1880_vm4 = vcmp.ge.f32.partialorder %v1720_v55, 0.0 }
 0x12f   : > { %v5011_v54 = vpop.f32.mrf.mxu3  ;;  %v2200_v3 = vsel %vm1880_vm4, %v1720_v55, %v2040_v61  ;;  %v4642_v55 = vld [vmem:[%s4839_s9 + $0x1d8] sm:$0xff] }
 0x130   : > { %v5014_v58 = vpop.f32.mrf.mxu0 }
 0x132   : > { %v1349_v59 = vpop.f32.mrf.mxu1 }
 0x133   : > { %v1721_v60 = vadd.f32 %v1349_v59, %v4912_v56 }
 0x135   : > { %vm1881_vm5 = vcmp.ge.f32.partialorder %v1721_v60, 0.0  ;;  %v2041_v62 = vmul.f32 0.2, %v1721_v60 }
 0x137   : > { %v5017_v63 = vpop.f32.mrf.mxu3  ;;  %v2201_v1 = vsel %vm1881_vm5, %v1721_v60, %v2041_v62  ;;  %v4603_v60 = vld [vmem:[%s4839_s9 + $0xa0] sm:$0xff] }
 0x138   : > { %v5019_v2 = vpop.f32.mrf.mxu0  ;;  %v2360_v8 = vpack.c.bf16 %v2201_v1, %v2200_v3  ;;  %v5059_v62 = vld [vmem:[%s6544_s6] ss:$0 sm:$0xff] }
 0x13a   : > { %v1352_v11 = vpop.f32.mrf.mxu1 }
 0x13b   : > { %4508 = vmatmul.msk.bf16.gmra.mxu0 %vm587_vm0, %v2360_v8  ;;  %v1722_v14 = vadd.f32 %v1352_v11, %v4919_v4  ;;  %v2708_v11 = vadd.f32 %v5059_v62, %v5004_v46 }
 0x13c   : > { %4460 = vmatmul.msk.bf16.gmra.mxu3 %vm587_vm0, %v4640_v7 }
 0x13d   : > { %4421 = vmatmul.msk.bf16.gmra.mxu1 %vm587_vm0, %v4601_v10  ;;  %v2042_v22 = vmul.f32 0.2, %v1722_v14  ;;  %vm1882_vm6 = vcmp.ge.f32.partialorder %v1722_v14, 0.0  ;;  %vm3107_vm13 = vcmp.ge.f32.partialorder %v2708_v11, 0.0 }
 0x13f   : > { %v5026_v13 = vpop.f32.mrf.mxu3  ;;  %v2202_v28 = vsel %vm1882_vm6, %v1722_v14, %v2042_v22 }
 0x140   : > { %v5029_v15 = vpop.f32.mrf.mxu0 }
 0x142   : > { %v1354_v16 = vpop.f32.mrf.mxu1 }
 0x143   : > { %v1723_v18 = vadd.f32 %v1354_v16, %v4924_v5 }
 0x145   : > { %vm1883_vm7 = vcmp.ge.f32.partialorder %v1723_v18, 0.0  ;;  %v2043_v23 = vmul.f32 0.2, %v1723_v18 }
 0x147   : > { %v2203_v24 = vsel %vm1883_vm7, %v1723_v18, %v2043_v23  ;;  %v5032_v25 = vpop.f32.mrf.mxu3  ;;  %v3267_v23 = vmul.f32 0.2, %v2708_v11 }
 0x148   : > { %6579 = vst [vmem:[#allocation3_spill] sm:$0xff] %v5032_v25  ;;  %v5034_v29 = vpop.f32.mrf.mxu0  ;;  %v2361_v32 = vpack.c.bf16 %v2203_v24, %v2202_v28 }
 0x14a   : > { %v1357_v30 = vpop.f32.mrf.mxu1 }
 0x14b   : > { %4509 = vmatmul.msk.bf16.gmra.mxu0 %vm587_vm0, %v2361_v32  ;;  %v1724_v38 = vadd.f32 %v1357_v30, %v4936_v19  ;;  %v4643_v30 = vld [vmem:[%s4839_s9 + $0x1e0] sm:$0xff] }
 0x14c   : > { %4461 = vmatmul.msk.bf16.gmra.mxu3 %vm587_vm0, %v4641_v31 }
 0x14d   : > { %4422 = vmatmul.msk.bf16.gmra.mxu1 %vm587_vm0, %v4602_v33  ;;  %v2044_v45 = vmul.f32 0.2, %v1724_v38  ;;  %vm1884_vm8 = vcmp.ge.f32.partialorder %v1724_v38, 0.0 }
 0x14f   : > { %v5041_v37 = vpop.f32.mrf.mxu3  ;;  %v2204_v51 = vsel %vm1884_vm8, %v1724_v38, %v2044_v45 }
 0x150   : > { %v5044_v40 = vpop.f32.mrf.mxu0 }
 0x152   : > { %v1359_v41 = vpop.f32.mrf.mxu1 }
 0x153   : > { %v1725_v43 = vadd.f32 %v1359_v41, %v4941_v20  ;;  %v4604_v41 = vld [vmem:[%s4839_s9 + $0xa8] sm:$0xff] }
 0x155   : > { %vm1885_vm9 = vcmp.ge.f32.partialorder %v1725_v43, 0.0  ;;  %v2045_v47 = vmul.f32 0.2, %v1725_v43 }
 0x157   : > { %v2205_v48 = vsel %vm1885_vm9, %v1725_v43, %v2045_v47  ;;  %v5047_v50 = vpop.f32.mrf.mxu3  ;;  %v2710_v43 = vadd.f32 %v5059_v62, %v5014_v58 }
 0x158   : > { %v5049_v53 = vpop.f32.mrf.mxu0  ;;  %v2362_v59 = vpack.c.bf16 %v2205_v48, %v2204_v51  ;;  %v3427_v51 = vsel %vm3107_vm13, %v2708_v11, %v3267_v23 }
 0x159   : > { %v5084_v58 = vsel %vm587_vm0, %v3427_v51, -inf  ;;  %vm3108_vm1 = vcmp.ge.f32.partialorder %v2710_v43, 0.0 }
 0x15a   : > { %v1362_v61 = vpop.f32.mrf.mxu1 }
 0x15b   : > { %4510 = vmatmul.msk.bf16.gmra.mxu0 %vm587_vm0, %v2362_v59  ;;  %v1726_v3 = vadd.f32 %v1362_v61, %v4893_v35 }
 0x15c   : > { %4462 = vmatmul.msk.bf16.gmra.mxu3 %vm587_vm0, %v4642_v55 }
 0x15d   : > { %4423 = vmatmul.msk.bf16.gmra.mxu1 %vm587_vm0, %v4603_v60  ;;  %v2046_v16 = vmul.f32 0.2, %v1726_v3  ;;  %vm1886_vm10 = vcmp.ge.f32.partialorder %v1726_v3, 0.0  ;;  %v4645_v60 = vld [vmem:[%s4839_s9 + $0x1f0] sm:$0xff] }
 0x15f   : > { %v1557_v1 = vpop.f32.mrf.mxu3  ;;  %v2206_v31 = vsel %vm1886_vm10, %v1726_v3, %v2046_v16 }
 0x160   : > { %v5062_v7 = vpop.f32.mrf.mxu0  ;;  %v1804_v8 = vadd.f32 %v1557_v1, %v4936_v19  ;;  %v3268_v1 = vmul.f32 0.2, %v2710_v43 }
 0x162   : > { %v1364_v10 = vpop.f32.mrf.mxu1  ;;  %v2124_v22 = vmul.f32 0.2, %v1804_v8  ;;  %vm1964_vm12 = vcmp.ge.f32.partialorder %v1804_v8, 0.0 }
 0x163   : > { %v1727_v14 = vadd.f32 %v1364_v10, %v4899_v39 }
 0x164   : > { %v5074_v45 = vsel %vm1964_vm12, %v1804_v8, %v2124_v22 }
 0x165   : > { %vm1887_vm11 = vcmp.ge.f32.partialorder %v1727_v14, 0.0  ;;  %v2047_v18 = vmul.f32 0.2, %v1727_v14  ;;  %6580 = vst [vmem:[#allocation4_spill] sm:$0xff] %v5074_v45 }
 0x167   : > { %v2207_v24 = vsel %vm1887_vm11, %v1727_v14, %v2047_v18  ;;  %v1559_v28 = vpop.f32.mrf.mxu3  ;;  %v3428_v18 = vsel %vm3108_vm1, %v2710_v43, %v3268_v1  ;;  %v4644_v1 = vld [vmem:[%s4839_s9 + $0x1e8] sm:$0xff] }
 0x168   : > { %v1805_v32 = vadd.f32 %v1559_v28, %v4941_v20  ;;  %v2727_v33 = vpop.f32.mrf.mxu0  ;;  %v2363_v38 = vpack.c.bf16 %v2207_v24, %v2206_v31  ;;  %v2713_v24 = vadd.f32 %v5059_v62, %v5019_v2  ;;  %v4606_v2 = vld [vmem:[%s4839_s9 + $0xb8] sm:$0xff] }
 0x169   : > { %v2728_v46 = vadd.f32 %v5059_v62, %v2727_v33 }
 0x16a   : > { %vm1965_vm14 = vcmp.ge.f32.partialorder %v1805_v32, 0.0  ;;  %v2125_v47 = vmul.f32 0.2, %v1805_v32  ;;  %v1367_v48 = vpop.f32.mrf.mxu1  ;;  %v3269_v43 = vmul.f32 0.2, %v2713_v24  ;;  %vm3109_vm6 = vcmp.ge.f32.partialorder %v2713_v24, 0.0 }
 0x16b   : > { %vm3115_vm15 = vcmp.ge.f32.partialorder %v2728_v46, 0.0  ;;  %v3275_v55 = vmul.f32 0.2, %v2728_v46  ;;  %4511 = vmatmul.msk.bf16.gmra.mxu0 %vm587_vm0, %v2363_v38  ;;  %v1728_v11 = vadd.f32 %v1367_v48, %v4906_v52  ;;  %v5098_v38 = vsel %vm587_vm0, %v3428_v18, -inf }
 0x16c   : > { %v5077_v59 = vsel %vm1965_vm14, %v1805_v32, %v2125_v47  ;;  %4463 = vmatmul.msk.bf16.gmra.mxu3 %vm587_vm0, %v4643_v30  ;;  %v2715_v18 = vadd.f32 %v5059_v62, %v5029_v15 }
 0x16d   : > { %6581 = vst [vmem:[#allocation5_spill] sm:$0xff] %v5077_v59  ;;  %v3435_v61 = vsel %vm3115_vm15, %v2728_v46, %v3275_v55  ;;  %4424 = vmatmul.msk.bf16.gmra.mxu1 %vm587_vm0, %v4604_v41  ;;  %v2048_v32 = vmul.f32 0.2, %v1728_v11  ;;  %vm1888_vm3 = vcmp.ge.f32.partialorder %v1728_v11, 0.0 }
 0x16e   : > { %v5087_v3 = vsel %vm587_vm0, %v3435_v61, -inf  ;;  %vm3110_vm9 = vcmp.ge.f32.partialorder %v2715_v18, 0.0 }
 0x16f   : > { %v1562_v10 = vpop.f32.mrf.mxu3  ;;  %v2208_v51 = vsel %vm1888_vm3, %v1728_v11, %v2048_v32 }
 0x170   : > { %v2729_v14 = vpop.f32.mrf.mxu0  ;;  %v1806_v22 = vadd.f32 %v1562_v10, %v4893_v35 }
 0x171   : > { %v2730_v16 = vadd.f32 %v5059_v62, %v2729_v14 }
 0x172   : > { %v1369_v23 = vpop.f32.mrf.mxu1  ;;  %v2126_v46 = vmul.f32 0.2, %v1806_v22  ;;  %vm1966_vm5 = vcmp.ge.f32.partialorder %v1806_v22, 0.0 }
 0x173   : > { %vm3116_vm2 = vcmp.ge.f32.partialorder %v2730_v16, 0.0  ;;  %v3276_v28 = vmul.f32 0.2, %v2730_v16  ;;  %v1729_v31 = vadd.f32 %v1369_v23, %v4912_v56 }
 0x174   : > { %v5111_v23 = vsel %vm1966_vm5, %v1806_v22, %v2126_v46  ;;  %v3270_v22 = vmul.f32 0.2, %v2715_v18 }
 0x175   : > { %v3436_v33 = vsel %vm3116_vm2, %v2730_v16, %v3276_v28  ;;  %vm1889_vm4 = vcmp.ge.f32.partialorder %v1729_v31, 0.0  ;;  %v2049_v30 = vmul.f32 0.2, %v1729_v31  ;;  %v4605_v16 = vld [vmem:[%s4839_s9 + $0xb0] sm:$0xff]  ;;  %6582 = vst [vmem:[#allocation6_spill] sm:$0xff] %v5111_v23 }
 0x176   : > { %v5101_v41 = vsel %vm587_vm0, %v3436_v33, -inf }
 0x177   : > { %v2209_v47 = vsel %vm1889_vm4, %v1729_v31, %v2049_v30  ;;  %v1564_v48 = vpop.f32.mrf.mxu3  ;;  %v3429_v31 = vsel %vm3109_vm6, %v2713_v24, %v3269_v43 }
 0x178   : > { %v1807_v55 = vadd.f32 %v1564_v48, %v4899_v39  ;;  %v2732_v61 = vpop.f32.mrf.mxu0  ;;  %v2364_v10 = vpack.c.bf16 %v2209_v47, %v2208_v51  ;;  %v5121_v15 = vsel %vm587_vm0, %v3429_v31, -inf }
 0x179   : > { %v2733_v14 = vadd.f32 %v5059_v62, %v2732_v61  ;;  %v3430_v61 = vsel %vm3110_vm9, %v2715_v18, %v3270_v22 }
 0x17a   : > { %vm1967_vm7 = vcmp.ge.f32.partialorder %v1807_v55, 0.0  ;;  %v2127_v28 = vmul.f32 0.2, %v1807_v55  ;;  %v1372_v33 = vpop.f32.mrf.mxu1 }
 0x17b   : > { %vm3117_vm8 = vcmp.ge.f32.partialorder %v2733_v14, 0.0  ;;  %v3277_v30 = vmul.f32 0.2, %v2733_v14  ;;  %4512 = vmatmul.msk.bf16.gmra.mxu0 %vm587_vm0, %v2364_v10  ;;  %v1730_v48 = vadd.f32 %v1372_v33, %v4919_v4 }
 0x17c   : > { %v5114_v11 = vsel %vm1967_vm7, %v1807_v55, %v2127_v28  ;;  %4464 = vmatmul.msk.bf16.gmra.mxu3 %vm587_vm0, %v4644_v1 }
 0x17d   : > { %6583 = vst [vmem:[#allocation7_spill] sm:$0xff] %v5114_v11  ;;  %v3437_v47 = vsel %vm3117_vm8, %v2733_v14, %v3277_v30  ;;  %4425 = vmatmul.msk.bf16.gmra.mxu1 %vm587_vm0, %v4605_v16  ;;  %v2718_v14 = vadd.f32 %v5059_v62, %v5034_v29  ;;  %v2050_v31 = vmul.f32 0.2, %v1730_v48  ;;  %vm1890_vm11 = vcmp.ge.f32.partialorder %v1730_v48, 0.0 }
 0x17e   : > { %v5124_v24 = vsel %vm587_vm0, %v3437_v47, -inf  ;;  %v5135_v47 = vsel %vm587_vm0, %v3430_v61, -inf }
 0x17f   : > { %v1567_v43 = vpop.f32.mrf.mxu3  ;;  %vm3111_vm14 = vcmp.ge.f32.partialorder %v2718_v14, 0.0  ;;  %v2210_v32 = vsel %vm1890_vm11, %v1730_v48, %v2050_v31 }
 0x180   : > { %v2734_v51 = vpop.f32.mrf.mxu0  ;;  %v1808_v1 = vadd.f32 %v1567_v43, %v4906_v52  ;;  %v3271_v43 = vmul.f32 0.2, %v2718_v14 }
 0x181   : > { %v2735_v55 = vadd.f32 %v5059_v62, %v2734_v51 }
 0x182   : > { %v1374_v10 = vpop.f32.mrf.mxu1  ;;  %v2128_v18 = vmul.f32 0.2, %v1808_v1  ;;  %vm1968_vm13 = vcmp.ge.f32.partialorder %v1808_v1, 0.0 }
 0x183   : > { %vm3118_vm10 = vcmp.ge.f32.partialorder %v2735_v55, 0.0  ;;  %v3278_v16 = vmul.f32 0.2, %v2735_v55  ;;  %v1731_v28 = vadd.f32 %v1374_v10, %v4924_v5 }
 0x184   : > { %v5148_v8 = vsel %vm1968_vm13, %v1808_v1, %v2128_v18 }
 0x185   : > { %v3438_v30 = vsel %vm3118_vm10, %v2735_v55, %v3278_v16  ;;  %vm1891_vm12 = vcmp.ge.f32.partialorder %v1731_v28, 0.0  ;;  %v2051_v33 = vmul.f32 0.2, %v1731_v28  ;;  %6584 = vst [vmem:[#allocation8_spill] sm:$0xff] %v5148_v8 }
 0x186   : > { %v5138_v22 = vsel %vm587_vm0, %v3438_v30, -inf  ;;  %v2720_v30 = vadd.f32 %v5059_v62, %v5044_v40 }
 0x187   : > { %v2211_v51 = vsel %vm1891_vm12, %v1731_v28, %v2051_v33  ;;  %v1569_v10 = vpop.f32.mrf.mxu3  ;;  %v3431_v28 = vsel %vm3111_vm14, %v2718_v14, %v3271_v43 }
 0x188   : > { %v1809_v55 = vadd.f32 %v1569_v10, %v4912_v56  ;;  %v2737_v16 = vpop.f32.mrf.mxu0  ;;  %v2365_v46 = vpack.c.bf16 %v2211_v51, %v2210_v32  ;;  %v5158_v40 = vsel %vm587_vm0, %v3431_v28, -inf  ;;  %v3272_v1 = vmul.f32 0.2, %v2720_v30 }
 0x189   : > { %v2738_v61 = vadd.f32 %v5059_v62, %v2737_v16  ;;  %vm3112_vm2 = vcmp.ge.f32.partialorder %v2720_v30, 0.0 }
 0x18a   : > { %vm1969_vm15 = vcmp.ge.f32.partialorder %v1809_v55, 0.0  ;;  %v2129_v23 = vmul.f32 0.2, %v1809_v55  ;;  %v1377_v29 = vpop.f32.mrf.mxu1  ;;  %v3432_v51 = vsel %vm3112_vm2, %v2720_v30, %v3272_v1 }
 0x18b   : > { %vm3119_vm1 = vcmp.ge.f32.partialorder %v2738_v61, 0.0  ;;  %v3279_v33 = vmul.f32 0.2, %v2738_v61  ;;  %4513 = vmatmul.msk.bf16.gmra.mxu0 %vm587_vm0, %v2365_v46 }
 0x18c   : > { %v5151_v48 = vsel %vm1969_vm15, %v1809_v55, %v2129_v23  ;;  %4465 = vmatmul.msk.bf16.gmra.mxu3 %vm587_vm0, %v4645_v60  ;;  %v1732_v60 = vadd.f32 %v1377_v29, %v4936_v19  ;;  %v2723_v55 = vadd.f32 %v5059_v62, %v5049_v53  ;;  %v4646_v23 = vld [vmem:[%s4839_s9 + $0x1f8] sm:$0xff] }
 0x18d   : > { %6585 = vst [vmem:[#allocation9_spill] sm:$0xff] %v5151_v48  ;;  %v3439_v31 = vsel %vm3119_vm1, %v2738_v61, %v3279_v33  ;;  %4426 = vmatmul.msk.bf16.gmra.mxu1 %vm587_vm0, %v4606_v2  ;;  %v4607_v48 = vld [vmem:[%s4839_s9 + $0xc0] sm:$0xff] }
 0x18e   : > { %v5161_v14 = vsel %vm587_vm0, %v3439_v31, -inf  ;;  %v2052_v28 = vmul.f32 0.2, %v1732_v60  ;;  %vm1892_vm4 = vcmp.ge.f32.partialorder %v1732_v60, 0.0  ;;  %v5172_v31 = vsel %vm587_vm0, %v3432_v51, -inf }
 0x18f   : > { %v1572_v46 = vpop.f32.mrf.mxu3  ;;  %vm3113_vm7 = vcmp.ge.f32.partialorder %v2723_v55, 0.0 }
 0x190   : > { %v2739_v18 = vpop.f32.mrf.mxu0  ;;  %v1810_v2 = vadd.f32 %v1572_v46, %v4919_v4  ;;  %v3273_v46 = vmul.f32 0.2, %v2723_v55  ;;  %v2212_v32 = vsel %vm1892_vm4, %v1732_v60, %v2052_v28 }
 0x191   : > { %v2740_v43 = vadd.f32 %v5059_v62, %v2739_v18 }
 0x192   : > { %v1379_v10 = vpop.f32.mrf.mxu1  ;;  %v2130_v30 = vmul.f32 0.2, %v1810_v2  ;;  %vm1970_vm6 = vcmp.ge.f32.partialorder %v1810_v2, 0.0  ;;  %v3433_v59 = vsel %vm3113_vm7, %v2723_v55, %v3273_v46 }
 0x193   : > { %vm3120_vm3 = vcmp.ge.f32.partialorder %v2740_v43, 0.0  ;;  %v3280_v16 = vmul.f32 0.2, %v2740_v43  ;;  %v1733_v61 = vadd.f32 %v1379_v10, %v4941_v20  ;;  %v5195_v28 = vsel %vm587_vm0, %v3433_v59, -inf }
 0x194   : > { %v5183_v11 = vsel %vm1970_vm6, %v1810_v2, %v2130_v30 }
 0x195   : > { %v3440_v33 = vsel %vm3120_vm3, %v2740_v43, %v3280_v16  ;;  %vm1893_vm5 = vcmp.ge.f32.partialorder %v1733_v61, 0.0  ;;  %v2053_v29 = vmul.f32 0.2, %v1733_v61  ;;  %6586 = vst [vmem:[#allocation10_spill] sm:$0xff] %v5183_v11 }
 0x196   : > { %v5175_v1 = vsel %vm587_vm0, %v3440_v33, -inf }
 0x197   : > { %v2213_v18 = vsel %vm1893_vm5, %v1733_v61, %v2053_v29  ;;  %v1574_v10 = vpop.f32.mrf.mxu3  ;;  %v2725_v61 = vadd.f32 %v5059_v62, %v5062_v7 }
 0x198   : > { %v1811_v43 = vadd.f32 %v1574_v10, %v4924_v5  ;;  %v2742_v16 = vpop.f32.mrf.mxu0  ;;  %v2366_v8 = vpack.c.bf16 %v2213_v18, %v2212_v32 }
 0x199   : > { %v2743_v51 = vadd.f32 %v5059_v62, %v2742_v16  ;;  %v3274_v7 = vmul.f32 0.2, %v2725_v61  ;;  %vm3114_vm10 = vcmp.ge.f32.partialorder %v2725_v61, 0.0 }
 0x19a   : > { %vm1971_vm8 = vcmp.ge.f32.partialorder %v1811_v43, 0.0  ;;  %v2131_v33 = vmul.f32 0.2, %v1811_v43  ;;  %v1382_v45 = vpop.f32.mrf.mxu1 }
 0x19b   : > { %vm3121_vm9 = vcmp.ge.f32.partialorder %v2743_v51, 0.0  ;;  %v3281_v29 = vmul.f32 0.2, %v2743_v51  ;;  %4514 = vmatmul.msk.bf16.gmra.mxu0 %vm587_vm0, %v2366_v8 }
 0x19c   : > { %v5188_v60 = vsel %vm1971_vm8, %v1811_v43, %v2131_v33  ;;  %4466 = vmatmul.msk.bf16.gmra.mxu3 %vm587_vm0, %v4646_v23  ;;  %v1734_v23 = vadd.f32 %v1382_v45, %v4893_v35  ;;  %v3434_v43 = vsel %vm3114_vm10, %v2725_v61, %v3274_v7 }
 0x19d   : > { %6587 = vst [vmem:[#allocation11_spill] sm:$0xff] %v5188_v60  ;;  %v3441_v2 = vsel %vm3121_vm9, %v2743_v51, %v3281_v29  ;;  %4427 = vmatmul.msk.bf16.gmra.mxu1 %vm587_vm0, %v4607_v48  ;;  %v5207_v45 = vsel %vm587_vm0, %v3434_v43, -inf  ;;  %v4608_v43 = vld [vmem:[%s4839_s9 + $0xc8] sm:$0xff] }
 0x19e   : > { %v5198_v55 = vsel %vm587_vm0, %v3441_v2, -inf  ;;  %v2054_v51 = vmul.f32 0.2, %v1734_v23  ;;  %vm1894_vm12 = vcmp.ge.f32.partialorder %v1734_v23, 0.0 }
 0x19f   : > { %v1577_v30 = vpop.f32.mrf.mxu3 }
 0x1a0   : > { %v2744_v46 = vpop.f32.mrf.mxu0  ;;  %v1812_v10 = vadd.f32 %v1577_v30, %v4936_v19 }
 0x1a1   : > { %v2745_v18 = vadd.f32 %v5059_v62, %v2744_v46 }
 0x1a2   : > { %v1384_v48 = vpop.f32.mrf.mxu1  ;;  %v2132_v2 = vmul.f32 0.2, %v1812_v10  ;;  %vm1972_vm14 = vcmp.ge.f32.partialorder %v1812_v10, 0.0 }
 0x1a3   : > { %vm3122_vm11 = vcmp.ge.f32.partialorder %v2745_v18, 0.0  ;;  %v3282_v59 = vmul.f32 0.2, %v2745_v18  ;;  %v1735_v16 = vadd.f32 %v1384_v48, %v4899_v39  ;;  %v2214_v48 = vsel %vm1894_vm12, %v1734_v23, %v2054_v51  ;;  %v4648_v23 = vld [vmem:[%s4839_s9 + $0x208] sm:$0xff] }
 0x1a4   : > { %v5218_v11 = vsel %vm1972_vm14, %v1812_v10, %v2132_v2 }
 0x1a5   : > { %v3442_v33 = vsel %vm3122_vm11, %v2745_v18, %v3282_v59  ;;  %vm1895_vm13 = vcmp.ge.f32.partialorder %v1735_v16, 0.0  ;;  %v2055_v29 = vmul.f32 0.2, %v1735_v16  ;;  %v4647_v59 = vld [vmem:[%s4839_s9 + $0x200] sm:$0xff]  ;;  %6588 = vst [vmem:[#allocation12_spill] sm:$0xff] %v5218_v11 }
 0x1a6   : > { %v5210_v46 = vsel %vm587_vm0, %v3442_v33, -inf }
 0x1a7   : > { %v2215_v7 = vsel %vm1895_vm13, %v1735_v16, %v2055_v29  ;;  %v1579_v30 = vpop.f32.mrf.mxu3  ;;  %v6590_v29 = vmax.f32 %v5084_v58, %v5087_v3 }
 0x1a8   : > { %v1813_v32 = vadd.f32 %v1579_v30, %v4941_v20  ;;  %v2747_v18 = vpop.f32.mrf.mxu0  ;;  %v2367_v8 = vpack.c.bf16 %v2215_v7, %v2214_v48 }
 0x1a9   : > { %v2748_v53 = vadd.f32 %v5059_v62, %v2747_v18 }
 0x1aa   : > { %vm1973_vm15 = vcmp.ge.f32.partialorder %v1813_v32, 0.0  ;;  %v2133_v33 = vmul.f32 0.2, %v1813_v32  ;;  %v1387_v60 = vpop.f32.mrf.mxu1 }
 0x1ab   : > { %vm3123_vm1 = vcmp.ge.f32.partialorder %v2748_v53, 0.0  ;;  %v3283_v25 = vmul.f32 0.2, %v2748_v53  ;;  %4515 = vmatmul.msk.bf16.gmra.mxu0 %vm587_vm0, %v2367_v8  ;;  %v1736_v8 = vadd.f32 %v1387_v60, %v4906_v52 }
 0x1ac   : > { %v5221_v16 = vsel %vm1973_vm15, %v1813_v32, %v2133_v33  ;;  %4467 = vmatmul.msk.bf16.gmra.mxu3 %vm587_vm0, %v4647_v59  ;;  %v6591_v33 = vmax.f32 %v5098_v38, %v5101_v41 }
 0x1ad   : > { %6589 = vst [vmem:[#allocation13_spill] sm:$0xff] %v5221_v16  ;;  %v3443_v51 = vsel %vm3123_vm1, %v2748_v53, %v3283_v25  ;;  %4428 = vmatmul.msk.bf16.gmra.mxu1 %vm587_vm0, %v4608_v43  ;;  %v2056_v59 = vmul.f32 0.2, %v1736_v8  ;;  %vm1896_vm3 = vcmp.ge.f32.partialorder %v1736_v8, 0.0 }
 0x1ae   : > { %v3590_v10 = vsel %vm587_vm0, %v3443_v51, -inf }
 0x1af   : > { %v5231_v2 = vmax.f32 %v6590_v29, %v3590_v10  ;;  %v1582_v7 = vpop.f32.mrf.mxu3 }
 0x1b0   : > { %v2749_v32 = vpop.f32.mrf.mxu0  ;;  %v1814_v48 = vadd.f32 %v1582_v7, %v4893_v35  ;;  %v2216_v7 = vsel %vm1896_vm3, %v1736_v8, %v2056_v59  ;;  %v6594_v59 = vmax.f32 %v5121_v15, %v5124_v24 }
 0x1b1   : > { %v2750_v30 = vadd.f32 %v5059_v62, %v2749_v32 }
 0x1b2   : > { %v1389_v18 = vpop.f32.mrf.mxu1  ;;  %v2134_v43 = vmul.f32 0.2, %v1814_v48  ;;  %vm1974_vm5 = vcmp.ge.f32.partialorder %v1814_v48, 0.0 }
 0x1b3   : > { %vm3124_vm2 = vcmp.ge.f32.partialorder %v2750_v30, 0.0  ;;  %v3284_v25 = vmul.f32 0.2, %v2750_v30  ;;  %v1737_v53 = vadd.f32 %v1389_v18, %v4912_v56 }
 0x1b4   : > { %v5247_v11 = vsel %vm1974_vm5, %v1814_v48, %v2134_v43 }
 0x1b5   : > { %v3444_v58 = vsel %vm3124_vm2, %v2750_v30, %v3284_v25  ;;  %vm1897_vm4 = vcmp.ge.f32.partialorder %v1737_v53, 0.0  ;;  %v2057_v3 = vmul.f32 0.2, %v1737_v53  ;;  %v4609_v25 = vld [vmem:[%s4839_s9 + $0xd0] sm:$0xff]  ;;  %6592 = vst [vmem:[#allocation14_spill] sm:$0xff] %v5247_v11 }
 0x1b6   : > { %v3629_v60 = vsel %vm587_vm0, %v3444_v58, -inf }
 0x1b7   : > { %v5241_v51 = vmax.f32 %v6591_v33, %v3629_v60  ;;  %v2217_v10 = vsel %vm1897_vm4, %v1737_v53, %v2057_v3  ;;  %v1584_v29 = vpop.f32.mrf.mxu3 }
 0x1b8   : > { %v1815_v32 = vadd.f32 %v1584_v29, %v4899_v39  ;;  %v2752_v18 = vpop.f32.mrf.mxu0  ;;  %v2368_v61 = vpack.c.bf16 %v2217_v10, %v2216_v7 }
 0x1b9   : > { %v2753_v30 = vadd.f32 %v5059_v62, %v2752_v18 }
 0x1ba   : > { %vm1975_vm6 = vcmp.ge.f32.partialorder %v1815_v32, 0.0  ;;  %v2135_v58 = vmul.f32 0.2, %v1815_v32  ;;  %v1392_v16 = vpop.f32.mrf.mxu1 }
 0x1bb   : > { %vm3125_vm7 = vcmp.ge.f32.partialorder %v2753_v30, 0.0  ;;  %v3285_v38 = vmul.f32 0.2, %v2753_v30  ;;  %4516 = vmatmul.msk.bf16.gmra.mxu0 %vm587_vm0, %v2368_v61  ;;  %v1738_v61 = vadd.f32 %v1392_v16, %v4919_v4 }
 0x1bc   : > { %v5250_v41 = vsel %vm1975_vm6, %v1815_v32, %v2135_v58  ;;  %4468 = vmatmul.msk.bf16.gmra.mxu3 %vm587_vm0, %v4648_v23 }
 0x1bd   : > { %6593 = vst [vmem:[#allocation15_spill] sm:$0xff] %v5250_v41  ;;  %v3445_v53 = vsel %vm3125_vm7, %v2753_v30, %v3285_v38  ;;  %4429 = vmatmul.msk.bf16.gmra.mxu1 %vm587_vm0, %v4609_v25  ;;  %v2058_v32 = vmul.f32 0.2, %v1738_v61  ;;  %vm1898_vm9 = vcmp.ge.f32.partialorder %v1738_v61, 0.0  ;;  %v6595_v30 = vmax.f32 %v5135_v47, %v5138_v22 }
 0x1be   : > { %v3668_v48 = vsel %vm587_vm0, %v3445_v53, -inf }
 0x1bf   : > { %v5260_v3 = vmax.f32 %v6594_v59, %v3668_v48  ;;  %v1587_v43 = vpop.f32.mrf.mxu3  ;;  %v2218_v53 = vsel %vm1898_vm9, %v1738_v61, %v2058_v32  ;;  %v6598_v32 = vmax.f32 %v5158_v40, %v5161_v14 }
 0x1c0   : > { %v2754_v60 = vpop.f32.mrf.mxu0  ;;  %v1816_v23 = vadd.f32 %v1587_v43, %v4906_v52  ;;  %v4649_v43 = vld [vmem:[%s4839_s9 + $0x210] sm:$0xff] }
 0x1c1   : > { %v2755_v33 = vadd.f32 %v5059_v62, %v2754_v60 }
 0x1c2   : > { %v1394_v10 = vpop.f32.mrf.mxu1  ;;  %v2136_v18 = vmul.f32 0.2, %v1816_v23  ;;  %vm1976_vm11 = vcmp.ge.f32.partialorder %v1816_v23, 0.0 }
 0x1c3   : > { %vm3126_vm8 = vcmp.ge.f32.partialorder %v2755_v33, 0.0  ;;  %v3286_v29 = vmul.f32 0.2, %v2755_v33  ;;  %v1739_v7 = vadd.f32 %v1394_v10, %v4924_v5  ;;  %v4610_v10 = vld [vmem:[%s4839_s9 + $0xd8] sm:$0xff] }
 0x1c5   : > { %v3446_v15 = vsel %vm3126_vm8, %v2755_v33, %v3286_v29  ;;  %vm1899_vm10 = vcmp.ge.f32.partialorder %v1739_v7, 0.0  ;;  %v2059_v24 = vmul.f32 0.2, %v1739_v7  ;;  %v5276_v29 = vsel %vm1976_vm11, %v1816_v23, %v2136_v18 }
 0x1c6   : > { %v3707_v16 = vsel %vm587_vm0, %v3446_v15, -inf  ;;  %6596 = vst [vmem:[#allocation16_spill] sm:$0xff] %v5276_v29 }
 0x1c7   : > { %v5270_v25 = vmax.f32 %v6595_v30, %v3707_v16  ;;  %v2219_v58 = vsel %vm1899_vm10, %v1739_v7, %v2059_v24  ;;  %v1589_v38 = vpop.f32.mrf.mxu3 }
 0x1c8   : > { %v1817_v48 = vadd.f32 %v1589_v38, %v4912_v56  ;;  %v2757_v59 = vpop.f32.mrf.mxu0  ;;  %v2369_v60 = vpack.c.bf16 %v2219_v58, %v2218_v53 }
 0x1c9   : > { %v2758_v33 = vadd.f32 %v5059_v62, %v2757_v59 }
 0x1ca   : > { %vm1977_vm12 = vcmp.ge.f32.partialorder %v1817_v48, 0.0  ;;  %v2137_v15 = vmul.f32 0.2, %v1817_v48  ;;  %v1397_v8 = vpop.f32.mrf.mxu1 }
 0x1cb   : > { %vm3127_vm13 = vcmp.ge.f32.partialorder %v2758_v33, 0.0  ;;  %v3287_v47 = vmul.f32 0.2, %v2758_v33  ;;  %4517 = vmatmul.msk.bf16.gmra.mxu0 %vm587_vm0, %v2369_v60  ;;  %v1740_v16 = vadd.f32 %v1397_v8, %v4936_v19 }
 0x1cc   : > { %v5279_v22 = vsel %vm1977_vm12, %v1817_v48, %v2137_v15  ;;  %4469 = vmatmul.msk.bf16.gmra.mxu3 %vm587_vm0, %v4649_v43 }
 0x1cd   : > { %6597 = vst [vmem:[#allocation17_spill] sm:$0xff] %v5279_v22  ;;  %v3447_v7 = vsel %vm3127_vm13, %v2758_v33, %v3287_v47  ;;  %4430 = vmatmul.msk.bf16.gmra.mxu1 %vm587_vm0, %v4610_v10  ;;  %v2060_v43 = vmul.f32 0.2, %v1740_v16  ;;  %vm1900_vm15 = vcmp.ge.f32.partialorder %v1740_v16, 0.0  ;;  %v6599_v33 = vmax.f32 %v5172_v31, %v5175_v1 }
 0x1ce   : > { %v3746_v23 = vsel %vm587_vm0, %v3447_v7, -inf }
 0x1cf   : > { %v5289_v24 = vmax.f32 %v6598_v32, %v3746_v23  ;;  %v1592_v18 = vpop.f32.mrf.mxu3  ;;  %v2220_v7 = vsel %vm1900_vm15, %v1740_v16, %v2060_v43  ;;  %v6602_v43 = vmax.f32 %v5195_v28, %v5198_v55 }
 0x1d0   : > { %v2759_v30 = vpop.f32.mrf.mxu0  ;;  %v1818_v38 = vadd.f32 %v1592_v18, %v4919_v4  ;;  %v4650_v18 = vld [vmem:[%s4839_s9 + $0x218] sm:$0xff] }
 0x1d1   : > { %v2760_v58 = vadd.f32 %v5059_v62, %v2759_v30 }
 0x1d2   : > { %v1399_v53 = vpop.f32.mrf.mxu1  ;;  %v2138_v60 = vmul.f32 0.2, %v1818_v38  ;;  %vm1978_vm2 = vcmp.ge.f32.partialorder %v1818_v38, 0.0 }
 0x1d3   : > { %vm3128_vm14 = vcmp.ge.f32.partialorder %v2760_v58, 0.0  ;;  %v3288_v48 = vmul.f32 0.2, %v2760_v58  ;;  %v1741_v59 = vadd.f32 %v1399_v53, %v4941_v20  ;;  %v4611_v53 = vld [vmem:[%s4839_s9 + $0xe0] sm:$0xff] }
 0x1d5   : > { %v3448_v40 = vsel %vm3128_vm14, %v2760_v58, %v3288_v48  ;;  %vm1901_vm1 = vcmp.ge.f32.partialorder %v1741_v59, 0.0  ;;  %v2061_v14 = vmul.f32 0.2, %v1741_v59  ;;  %v5305_v48 = vsel %vm1978_vm2, %v1818_v38, %v2138_v60 }
 0x1d6   : > { %v3785_v8 = vsel %vm587_vm0, %v3448_v40, -inf  ;;  %6600 = vst [vmem:[#allocation18_spill] sm:$0xff] %v5305_v48 }
 0x1d7   : > { %v5299_v10 = vmax.f32 %v6599_v33, %v3785_v8  ;;  %v2221_v15 = vsel %vm1901_vm1, %v1741_v59, %v2061_v14  ;;  %v1594_v47 = vpop.f32.mrf.mxu3 }
 0x1d8   : > { %v1819_v23 = vadd.f32 %v1594_v47, %v4924_v5  ;;  %v2762_v32 = vpop.f32.mrf.mxu0  ;;  %v2370_v30 = vpack.c.bf16 %v2221_v15, %v2220_v7 }
 0x1d9   : > { %v2763_v58 = vadd.f32 %v5059_v62, %v2762_v32 }
 0x1da   : > { %vm1979_vm3 = vcmp.ge.f32.partialorder %v1819_v23, 0.0  ;;  %v2139_v40 = vmul.f32 0.2, %v1819_v23  ;;  %v1402_v61 = vpop.f32.mrf.mxu1 }
 0x1db   : > { %vm3129_vm4 = vcmp.ge.f32.partialorder %v2763_v58, 0.0  ;;  %v3289_v31 = vmul.f32 0.2, %v2763_v58  ;;  %4518 = vmatmul.msk.bf16.gmra.mxu0 %vm587_vm0, %v2370_v30  ;;  %v1742_v8 = vadd.f32 %v1402_v61, %v4893_v35 }
 0x1dc   : > { %v5308_v1 = vsel %vm1979_vm3, %v1819_v23, %v2139_v40  ;;  %4470 = vmatmul.msk.bf16.gmra.mxu3 %vm587_vm0, %v4650_v18 }
 0x1dd   : > { %6601 = vst [vmem:[#allocation19_spill] sm:$0xff] %v5308_v1  ;;  %v3449_v59 = vsel %vm3129_vm4, %v2763_v58, %v3289_v31  ;;  %4431 = vmatmul.msk.bf16.gmra.mxu1 %vm587_vm0, %v4611_v53  ;;  %v2062_v18 = vmul.f32 0.2, %v1742_v8  ;;  %vm1902_vm6 = vcmp.ge.f32.partialorder %v1742_v8, 0.0  ;;  %v6603_v58 = vmax.f32 %v5207_v45, %v5210_v46 }
 0x1de   : > { %v3824_v38 = vsel %vm587_vm0, %v3449_v59, -inf }
 0x1df   : > { %v5318_v14 = vmax.f32 %v6602_v43, %v3824_v38  ;;  %v1597_v60 = vpop.f32.mrf.mxu3  ;;  %v2222_v59 = vsel %vm1902_vm6, %v1742_v8, %v2062_v18 }
 0x1e0   : > { %v2764_v33 = vpop.f32.mrf.mxu0  ;;  %v1820_v47 = vadd.f32 %v1597_v60, %v4936_v19  ;;  %v4651_v60 = vld [vmem:[%s4839_s9 + $0x220] sm:$0xff] }
 0x1e1   : > { %v2765_v15 = vadd.f32 %v5059_v62, %v2764_v33 }
 0x1e2   : > { %v1404_v7 = vpop.f32.mrf.mxu1  ;;  %v2140_v30 = vmul.f32 0.2, %v1820_v47  ;;  %vm1980_vm8 = vcmp.ge.f32.partialorder %v1820_v47, 0.0 }
 0x1e3   : > { %vm3130_vm5 = vcmp.ge.f32.partialorder %v2765_v15, 0.0  ;;  %v3290_v23 = vmul.f32 0.2, %v2765_v15  ;;  %v1743_v32 = vadd.f32 %v1404_v7, %v4899_v39  ;;  %v4612_v7 = vld [vmem:[%s4839_s9 + $0xe8] sm:$0xff] }
 0x1e5   : > { %v3450_v28 = vsel %vm3130_vm5, %v2765_v15, %v3290_v23  ;;  %vm1903_vm7 = vcmp.ge.f32.partialorder %v1743_v32, 0.0  ;;  %v2063_v55 = vmul.f32 0.2, %v1743_v32  ;;  %v5334_v23 = vsel %vm1980_vm8, %v1820_v47, %v2140_v30 }
 0x1e6   : > { %v3863_v61 = vsel %vm587_vm0, %v3450_v28, -inf  ;;  %6604 = vst [vmem:[#allocation20_spill] sm:$0xff] %v5334_v23 }
 0x1e7   : > { %v5328_v53 = vmax.f32 %v6603_v58, %v3863_v61  ;;  %v2223_v40 = vsel %vm1903_vm7, %v1743_v32, %v2063_v55  ;;  %v1599_v31 = vpop.f32.mrf.mxu3 }
 0x1e8   : > { %v1821_v38 = vadd.f32 %v1599_v31, %v4941_v20  ;;  %v2767_v43 = vpop.f32.mrf.mxu0  ;;  %v2371_v33 = vpack.c.bf16 %v2223_v40, %v2222_v59 }
 0x1e9   : > { %v2768_v15 = vadd.f32 %v5059_v62, %v2767_v43 }
 0x1ea   : > { %vm1981_vm9 = vcmp.ge.f32.partialorder %v1821_v38, 0.0  ;;  %v2141_v28 = vmul.f32 0.2, %v1821_v38  ;;  %v1407_v16 = vpop.f32.mrf.mxu1 }
 0x1eb   : > { %vm3131_vm10 = vcmp.ge.f32.partialorder %v2768_v15, 0.0  ;;  %v3291_v45 = vmul.f32 0.2, %v2768_v15  ;;  %4519 = vmatmul.msk.bf16.gmra.mxu0 %vm587_vm0, %v2371_v33  ;;  %v1744_v30 = vadd.f32 %v1407_v16, %v4906_v52 }
 0x1ec   : > { %v5337_v46 = vsel %vm1981_vm9, %v1821_v38, %v2141_v28  ;;  %4471 = vmatmul.msk.bf16.gmra.mxu3 %vm587_vm0, %v4651_v60 }
 0x1ed   : > { %6605 = vst [vmem:[#allocation21_spill] sm:$0xff] %v5337_v46  ;;  %v3451_v32 = vsel %vm3131_vm10, %v2768_v15, %v3291_v45  ;;  %4432 = vmatmul.msk.bf16.gmra.mxu1 %vm587_vm0, %v4612_v7  ;;  %v2064_v43 = vmul.f32 0.2, %v1744_v30  ;;  %vm1904_vm12 = vcmp.ge.f32.partialorder %v1744_v30, 0.0  ;;  %v4653_v7 = vld [vmem:[%s4839_s9 + $0x230] sm:$0xff] }
 0x1ee   : > { %v5344_v47 = vsel %vm587_vm0, %v3451_v32, -inf }
 0x1ef   : > { %v1602_v55 = vpop.f32.mrf.mxu3  ;;  %v2224_v32 = vsel %vm1904_vm12, %v1744_v30, %v2064_v43 }
 0x1f0   : > { %v2769_v61 = vpop.f32.mrf.mxu0  ;;  %v1822_v40 = vadd.f32 %v1602_v55, %v4893_v35 }
 0x1f1   : > { %v2770_v58 = vadd.f32 %v5059_v62, %v2769_v61 }
 0x1f2   : > { %v1409_v31 = vpop.f32.mrf.mxu1  ;;  %v2142_v15 = vmul.f32 0.2, %v1822_v40  ;;  %vm1982_vm14 = vcmp.ge.f32.partialorder %v1822_v40, 0.0 }
 0x1f3   : > { %vm3132_vm11 = vcmp.ge.f32.partialorder %v2770_v58, 0.0  ;;  %v3292_v59 = vmul.f32 0.2, %v2770_v58  ;;  %v1745_v38 = vadd.f32 %v1409_v31, %v4912_v56  ;;  %v4652_v31 = vld [vmem:[%s4839_s9 + $0x228] sm:$0xff] }
 0x1f4   : > { %v5361_v18 = vsel %vm1982_vm14, %v1822_v40, %v2142_v15 }
 0x1f5   : > { %v3452_v60 = vsel %vm3132_vm11, %v2770_v58, %v3292_v59  ;;  %vm1905_vm13 = vcmp.ge.f32.partialorder %v1745_v38, 0.0  ;;  %v2065_v33 = vmul.f32 0.2, %v1745_v38  ;;  %v4613_v59 = vld [vmem:[%s4839_s9 + $0xf0] sm:$0xff]  ;;  %6606 = vst [vmem:[#allocation22_spill] sm:$0xff] %v5361_v18 }
 0x1f6   : > { %v5353_v16 = vsel %vm587_vm0, %v3452_v60, -inf }
 0x1f7   : > { %v2225_v28 = vsel %vm1905_vm13, %v1745_v38, %v2065_v33  ;;  %v1604_v45 = vpop.f32.mrf.mxu3 }
 0x1f8   : > { %v1823_v55 = vadd.f32 %v1604_v45, %v4899_v39  ;;  %v2772_v61 = vpop.f32.mrf.mxu0  ;;  %v2372_v8 = vpack.c.bf16 %v2225_v28, %v2224_v32 }
 0x1f9   : > { %v2773_v58 = vadd.f32 %v5059_v62, %v2772_v61 }
 0x1fa   : > { %vm1983_vm15 = vcmp.ge.f32.partialorder %v1823_v55, 0.0  ;;  %v2143_v60 = vmul.f32 0.2, %v1823_v55  ;;  %v1412_v23 = vpop.f32.mrf.mxu1 }
 0x1fb   : > { %vm3133_vm1 = vcmp.ge.f32.partialorder %v2773_v58, 0.0  ;;  %v3293_v46 = vmul.f32 0.2, %v2773_v58  ;;  %4520 = vmatmul.msk.bf16.gmra.mxu0 %vm587_vm0, %v2372_v8  ;;  %v1746_v28 = vadd.f32 %v1412_v23, %v4919_v4 }
 0x1fc   : > { %v5364_v38 = vsel %vm1983_vm15, %v1823_v55, %v2143_v60  ;;  %4472 = vmatmul.msk.bf16.gmra.mxu3 %vm587_vm0, %v4652_v31 }
 0x1fd   : > { %6607 = vst [vmem:[#allocation23_spill] sm:$0xff] %v5364_v38  ;;  %v3453_v43 = vsel %vm3133_vm1, %v2773_v58, %v3293_v46  ;;  %4433 = vmatmul.msk.bf16.gmra.mxu1 %vm587_vm0, %v4613_v59  ;;  %v2066_v31 = vmul.f32 0.2, %v1746_v28  ;;  %vm1906_vm3 = vcmp.ge.f32.partialorder %v1746_v28, 0.0 }
 0x1fe   : > { %v5371_v40 = vsel %vm587_vm0, %v3453_v43, -inf  ;;  %v4654_v43 = vld [vmem:[%s4839_s9 + $0x238] sm:$0xff] }
 0x1ff   : > { %v1607_v15 = vpop.f32.mrf.mxu3  ;;  %v2226_v30 = vsel %vm1906_vm3, %v1746_v28, %v2066_v31 }
 0x200   : > { %v2774_v8 = vpop.f32.mrf.mxu0  ;;  %v1824_v32 = vadd.f32 %v1607_v15, %v4906_v52 }
 0x201   : > { %v2775_v45 = vadd.f32 %v5059_v62, %v2774_v8 }
 0x202   : > { %v1414_v55 = vpop.f32.mrf.mxu1  ;;  %v2144_v60 = vmul.f32 0.2, %v1824_v32  ;;  %vm1984_vm5 = vcmp.ge.f32.partialorder %v1824_v32, 0.0 }
 0x203   : > { %vm3134_vm2 = vcmp.ge.f32.partialorder %v2775_v45, 0.0  ;;  %v3294_v61 = vmul.f32 0.2, %v2775_v45  ;;  %v1747_v46 = vadd.f32 %v1414_v55, %v4924_v5 }
 0x204   : > { %v5388_v38 = vsel %vm1984_vm5, %v1824_v32, %v2144_v60 }
 0x205   : > { %v3454_v58 = vsel %vm3134_vm2, %v2775_v45, %v3294_v61  ;;  %vm1907_vm4 = vcmp.ge.f32.partialorder %v1747_v46, 0.0  ;;  %v2067_v59 = vmul.f32 0.2, %v1747_v46  ;;  %v4614_v61 = vld [vmem:[%s4839_s9 + $0xf8] sm:$0xff]  ;;  %6608 = vst [vmem:[#allocation24_spill] sm:$0xff] %v5388_v38 }
 0x206   : > { %v5380_v23 = vsel %vm587_vm0, %v3454_v58, -inf }
 0x207   : > { %v2227_v15 = vsel %vm1907_vm4, %v1747_v46, %v2067_v59  ;;  %v1609_v8 = vpop.f32.mrf.mxu3 }
 0x208   : > { %v1825_v33 = vadd.f32 %v1609_v8, %v4912_v56  ;;  %v2777_v55 = vpop.f32.mrf.mxu0  ;;  %v2373_v18 = vpack.c.bf16 %v2227_v15, %v2226_v30 }
 0x209   : > { %v2778_v45 = vadd.f32 %v5059_v62, %v2777_v55 }
 0x20a   : > { %vm1985_vm6 = vcmp.ge.f32.partialorder %v1825_v33, 0.0  ;;  %v2145_v58 = vmul.f32 0.2, %v1825_v33  ;;  %v1417_v48 = vpop.f32.mrf.mxu1 }
 0x20b   : > { %vm3135_vm7 = vcmp.ge.f32.partialorder %v2778_v45, 0.0  ;;  %v3295_v1 = vmul.f32 0.2, %v2778_v45  ;;  %4521 = vmatmul.msk.bf16.gmra.mxu0 %vm587_vm0, %v2373_v18  ;;  %v1748_v60 = vadd.f32 %v1417_v48, %v4936_v19 }
 0x20c   : > { %v5391_v46 = vsel %vm1985_vm6, %v1825_v33, %v2145_v58  ;;  %4473 = vmatmul.msk.bf16.gmra.mxu3 %vm587_vm0, %v4653_v7 }
 0x20d   : > { %6609 = vst [vmem:[#allocation25_spill] sm:$0xff] %v5391_v46  ;;  %v3455_v30 = vsel %vm3135_vm7, %v2778_v45, %v3295_v1  ;;  %4434 = vmatmul.msk.bf16.gmra.mxu1 %vm587_vm0, %v4614_v61  ;;  %v2068_v55 = vmul.f32 0.2, %v1748_v60  ;;  %vm1908_vm9 = vcmp.ge.f32.partialorder %v1748_v60, 0.0 }
 0x20e   : > { %v5398_v32 = vsel %vm587_vm0, %v3455_v30, -inf  ;;  %v4655_v30 = vld [vmem:[%s4839_s9 + $0x240] sm:$0xff] }
 0x20f   : > { %v1612_v59 = vpop.f32.mrf.mxu3  ;;  %v2228_v28 = vsel %vm1908_vm9, %v1748_v60, %v2068_v55 }
 0x210   : > { %v2779_v18 = vpop.f32.mrf.mxu0  ;;  %v1826_v7 = vadd.f32 %v1612_v59, %v4919_v4 }
 0x211   : > { %v2780_v33 = vadd.f32 %v5059_v62, %v2779_v18 }
 0x212   : > { %v1419_v15 = vpop.f32.mrf.mxu1  ;;  %v2146_v58 = vmul.f32 0.2, %v1826_v7  ;;  %vm1986_vm11 = vcmp.ge.f32.partialorder %v1826_v7, 0.0 }
 0x213   : > { %vm3136_vm8 = vcmp.ge.f32.partialorder %v2780_v33, 0.0  ;;  %v3296_v8 = vmul.f32 0.2, %v2780_v33  ;;  %v1749_v1 = vadd.f32 %v1419_v15, %v4941_v20 }
 0x214   : > { %v5415_v46 = vsel %vm1986_vm11, %v1826_v7, %v2146_v58 }
 0x215   : > { %v3456_v45 = vsel %vm3136_vm8, %v2780_v33, %v3296_v8  ;;  %vm1909_vm10 = vcmp.ge.f32.partialorder %v1749_v1, 0.0  ;;  %v2069_v61 = vmul.f32 0.2, %v1749_v1  ;;  %v4615_v8 = vld [vmem:[%s4839_s9 + $0x100] sm:$0xff]  ;;  %6610 = vst [vmem:[#allocation26_spill] sm:$0xff] %v5415_v46 }
 0x216   : > { %v5407_v48 = vsel %vm587_vm0, %v3456_v45, -inf }
 0x217   : > { %v2229_v59 = vsel %vm1909_vm10, %v1749_v1, %v2069_v61  ;;  %v1614_v18 = vpop.f32.mrf.mxu3 }
 0x218   : > { %v1827_v31 = vadd.f32 %v1614_v18, %v4924_v5  ;;  %v2782_v15 = vpop.f32.mrf.mxu0  ;;  %v2374_v38 = vpack.c.bf16 %v2229_v59, %v2228_v28 }
 0x219   : > { %v2783_v33 = vadd.f32 %v5059_v62, %v2782_v15 }
 0x21a   : > { %vm1987_vm12 = vcmp.ge.f32.partialorder %v1827_v31, 0.0  ;;  %v2147_v45 = vmul.f32 0.2, %v1827_v31  ;;  %v1422_v29 = vpop.f32.mrf.mxu1 }
 0x21b   : > { %vm3137_vm13 = vcmp.ge.f32.partialorder %v2783_v33, 0.0  ;;  %v3297_v22 = vmul.f32 0.2, %v2783_v33  ;;  %4522 = vmatmul.msk.bf16.gmra.mxu0 %vm587_vm0, %v2374_v38  ;;  %v1750_v61 = vadd.f32 %v1422_v29, %v4893_v35 }
 0x21c   : > { %v5418_v1 = vsel %vm1987_vm12, %v1827_v31, %v2147_v45  ;;  %4474 = vmatmul.msk.bf16.gmra.mxu3 %vm587_vm0, %v4654_v43  ;;  %v5433_v43 = vld [vmem:[%s6544_s6] ss:$0 sm:$0xff] }
 0x21d   : > { %6611 = vst [vmem:[#allocation27_spill] sm:$0xff] %v5418_v1  ;;  %v3457_v28 = vsel %vm3137_vm13, %v2783_v33, %v3297_v22  ;;  %4435 = vmatmul.msk.bf16.gmra.mxu1 %vm587_vm0, %v4615_v8  ;;  %v2070_v15 = vmul.f32 0.2, %v1750_v61  ;;  %vm1910_vm15 = vcmp.ge.f32.partialorder %v1750_v61, 0.0 }
 0x21e   : > { %v5425_v62 = vsel %vm587_vm0, %v3457_v28, -inf }
 0x21f   : > { %v1617_v55 = vpop.f32.mrf.mxu3  ;;  %v2230_v60 = vsel %vm1910_vm15, %v1750_v61, %v2070_v15  ;;  %v6614_v15 = vmax.f32 %v5231_v2, %v5344_v47  ;;  %v4656_v61 = vld [vmem:[%s4839_s9 + $0x248] sm:$0xff] }
 0x220   : > { %v2784_v38 = vpop.f32.mrf.mxu0  ;;  %v1828_v22 = vadd.f32 %v1617_v55, %v4936_v19 }
 0x221   : > { %v2785_v31 = vadd.f32 %v5433_v43, %v2784_v38 }
 0x222   : > { %v1424_v58 = vpop.f32.mrf.mxu1  ;;  %v2148_v8 = vmul.f32 0.2, %v1828_v22  ;;  %vm1988_vm2 = vcmp.ge.f32.partialorder %v1828_v22, 0.0 }
 0x223   : > { %vm3138_vm14 = vcmp.ge.f32.partialorder %v2785_v31, 0.0  ;;  %v3298_v59 = vmul.f32 0.2, %v2785_v31  ;;  %v1751_v18 = vadd.f32 %v1424_v58, %v4899_v39 }
 0x224   : > { %v5447_v1 = vsel %vm1988_vm2, %v1828_v22, %v2148_v8 }
 0x225   : > { %v3458_v29 = vsel %vm3138_vm14, %v2785_v31, %v3298_v59  ;;  %vm1911_vm1 = vcmp.ge.f32.partialorder %v1751_v18, 0.0  ;;  %v2071_v33 = vmul.f32 0.2, %v1751_v18  ;;  %v4616_v59 = vld [vmem:[%s4839_s9 + $0x108] sm:$0xff]  ;;  %6612 = vst [vmem:[#allocation28_spill] sm:$0xff] %v5447_v1 }
 0x226   : > { %v5439_v45 = vsel %vm587_vm0, %v3458_v29, -inf }
 0x227   : > { %v2231_v55 = vsel %vm1911_vm1, %v1751_v18, %v2071_v33  ;;  %v1619_v38 = vpop.f32.mrf.mxu3 }
 0x228   : > { %v1829_v7 = vadd.f32 %v1619_v38, %v4941_v20  ;;  %v2787_v58 = vpop.f32.mrf.mxu0  ;;  %v2375_v46 = vpack.c.bf16 %v2231_v55, %v2230_v60 }
 0x229   : > { %v2788_v31 = vadd.f32 %v5433_v43, %v2787_v58 }
 0x22a   : > { %vm1989_vm3 = vcmp.ge.f32.partialorder %v1829_v7, 0.0  ;;  %v2149_v29 = vmul.f32 0.2, %v1829_v7  ;;  %v1427_v11 = vpop.f32.mrf.mxu1 }
 0x22b   : > { %vm3139_vm4 = vcmp.ge.f32.partialorder %v2788_v31, 0.0  ;;  %v3299_v41 = vmul.f32 0.2, %v2788_v31  ;;  %4523 = vmatmul.msk.bf16.gmra.mxu0 %vm587_vm0, %v2375_v46  ;;  %v1752_v46 = vadd.f32 %v1427_v11, %v4906_v52 }
 0x22c   : > { %v5450_v18 = vsel %vm1989_vm3, %v1829_v7, %v2149_v29  ;;  %4475 = vmatmul.msk.bf16.gmra.mxu3 %vm587_vm0, %v4655_v30  ;;  %v6615_v29 = vmax.f32 %v5241_v51, %v5353_v16 }
 0x22d   : > { %6613 = vst [vmem:[#allocation29_spill] sm:$0xff] %v5450_v18  ;;  %v3459_v60 = vsel %vm3139_vm4, %v2788_v31, %v3299_v41  ;;  %4436 = vmatmul.msk.bf16.gmra.mxu1 %vm587_vm0, %v4616_v59  ;;  %v2072_v31 = vmul.f32 0.2, %v1752_v46  ;;  %vm1912_vm6 = vcmp.ge.f32.partialorder %v1752_v46, 0.0 }
 0x22e   : > { %v3594_v22 = vsel %vm587_vm0, %v3459_v60, -inf }
 0x22f   : > { %v5460_v33 = vmax.f32 %v6614_v15, %v3594_v22  ;;  %v1622_v8 = vpop.f32.mrf.mxu3 }
 0x230   : > { %v2789_v7 = vpop.f32.mrf.mxu0  ;;  %v1830_v30 = vadd.f32 %v1622_v8, %v4893_v35  ;;  %v2232_v8 = vsel %vm1912_vm6, %v1752_v46, %v2072_v31  ;;  %v6616_v31 = vmax.f32 %v5260_v3, %v5371_v40 }
 0x231   : > { %v2790_v55 = vadd.f32 %v5433_v43, %v2789_v7 }
 0x232   : > { %v1429_v38 = vpop.f32.mrf.mxu1  ;;  %v2150_v59 = vmul.f32 0.2, %v1830_v30  ;;  %vm1990_vm8 = vcmp.ge.f32.partialorder %v1830_v30, 0.0 }
 0x233   : > { %vm3140_vm5 = vcmp.ge.f32.partialorder %v2790_v55, 0.0  ;;  %v3300_v41 = vmul.f32 0.2, %v2790_v55  ;;  %v1753_v58 = vadd.f32 %v1429_v38, %v4912_v56 }
 0x234   : > { %v5476_v1 = vsel %vm1990_vm8, %v1830_v30, %v2150_v59 }
 0x235   : > { %v3460_v2 = vsel %vm3140_vm5, %v2790_v55, %v3300_v41  ;;  %vm1913_vm7 = vcmp.ge.f32.partialorder %v1753_v58, 0.0  ;;  %v2073_v47 = vmul.f32 0.2, %v1753_v58  ;;  %v4617_v41 = vld [vmem:[%s4839_s9 + $0x110] sm:$0xff] }
 0x236   : > { %v3633_v11 = vsel %vm587_vm0, %v3460_v2, -inf }
 0x237   : > { %v5470_v60 = vmax.f32 %v6615_v29, %v3633_v11  ;;  %v2233_v22 = vsel %vm1913_vm7, %v1753_v58, %v2073_v47  ;;  %v1624_v15 = vpop.f32.mrf.mxu3 }
 0x238   : > { %v1831_v7 = vadd.f32 %v1624_v15, %v4899_v39  ;;  %v2792_v38 = vpop.f32.mrf.mxu0  ;;  %v2376_v28 = vpack.c.bf16 %v2233_v22, %v2232_v8 }
 0x239   : > { %v2793_v55 = vadd.f32 %v5433_v43, %v2792_v38 }
 0x23a   : > { %vm1991_vm9 = vcmp.ge.f32.partialorder %v1831_v7, 0.0  ;;  %v2151_v2 = vmul.f32 0.2, %v1831_v7  ;;  %v1432_v18 = vpop.f32.mrf.mxu1 }
 0x23b   : > { %vm3141_vm10 = vcmp.ge.f32.partialorder %v2793_v55, 0.0  ;;  %v3301_v51 = vmul.f32 0.2, %v2793_v55  ;;  %4524 = vmatmul.msk.bf16.gmra.mxu0 %vm587_vm0, %v2376_v28  ;;  %v1754_v28 = vadd.f32 %v1432_v18, %v4919_v4 }
 0x23c   : > { %v5479_v16 = vsel %vm1991_vm9, %v1831_v7, %v2151_v2  ;;  %4476 = vmatmul.msk.bf16.gmra.mxu3 %vm587_vm0, %v4656_v61 }
 0x23d   : > { %v3461_v58 = vsel %vm3141_vm10, %v2793_v55, %v3301_v51  ;;  %4437 = vmatmul.msk.bf16.gmra.mxu1 %vm587_vm0, %v4617_v41  ;;  %v2074_v7 = vmul.f32 0.2, %v1754_v28  ;;  %vm1914_vm12 = vcmp.ge.f32.partialorder %v1754_v28, 0.0  ;;  %v6617_v55 = vmax.f32 %v5270_v25, %v5380_v23 }
 0x23e   : > { %v3672_v30 = vsel %vm587_vm0, %v3461_v58, -inf }
 0x23f   : > { %v5489_v47 = vmax.f32 %v6616_v31, %v3672_v30  ;;  %v1627_v59 = vpop.f32.mrf.mxu3  ;;  %v2234_v58 = vsel %vm1914_vm12, %v1754_v28, %v2074_v7  ;;  %v6618_v7 = vmax.f32 %v5289_v24, %v5398_v32 }
 0x240   : > { %v2794_v11 = vpop.f32.mrf.mxu0  ;;  %v1832_v61 = vadd.f32 %v1627_v59, %v4906_v52  ;;  %v4657_v59 = vld [vmem:[%s4839_s9 + $0x250] sm:$0xff] }
 0x241   : > { %v2795_v29 = vadd.f32 %v5433_v43, %v2794_v11 }
 0x242   : > { %v1434_v22 = vpop.f32.mrf.mxu1  ;;  %v2152_v38 = vmul.f32 0.2, %v1832_v61  ;;  %vm1992_vm14 = vcmp.ge.f32.partialorder %v1832_v61, 0.0 }
 0x243   : > { %vm3142_vm11 = vcmp.ge.f32.partialorder %v2795_v29, 0.0  ;;  %v3302_v15 = vmul.f32 0.2, %v2795_v29  ;;  %v1755_v8 = vadd.f32 %v1434_v22, %v4924_v5  ;;  %v4618_v22 = vld [vmem:[%s4839_s9 + $0x118] sm:$0xff] }
 0x245   : > { %v3462_v3 = vsel %vm3142_vm11, %v2795_v29, %v3302_v15  ;;  %vm1915_vm13 = vcmp.ge.f32.partialorder %v1755_v8, 0.0  ;;  %v2075_v40 = vmul.f32 0.2, %v1755_v8  ;;  %v5505_v15 = vsel %vm1992_vm14, %v1832_v61, %v2152_v38 }
 0x246   : > { %v3711_v18 = vsel %vm587_vm0, %v3462_v3, -inf }
 0x247   : > { %v5499_v41 = vmax.f32 %v6617_v55, %v3711_v18  ;;  %v2235_v2 = vsel %vm1915_vm13, %v1755_v8, %v2075_v40  ;;  %v1629_v51 = vpop.f32.mrf.mxu3 }
 0x248   : > { %v1833_v30 = vadd.f32 %v1629_v51, %v4912_v56  ;;  %v2797_v31 = vpop.f32.mrf.mxu0  ;;  %v2377_v11 = vpack.c.bf16 %v2235_v2, %v2234_v58 }
 0x249   : > { %v2798_v29 = vadd.f32 %v5433_v43, %v2797_v31 }
 0x24a   : > { %vm1993_vm15 = vcmp.ge.f32.partialorder %v1833_v30, 0.0  ;;  %v2153_v3 = vmul.f32 0.2, %v1833_v30  ;;  %v1437_v46 = vpop.f32.mrf.mxu1 }
 0x24b   : > { %vm3143_vm1 = vcmp.ge.f32.partialorder %v2798_v29, 0.0  ;;  %v3303_v25 = vmul.f32 0.2, %v2798_v29  ;;  %4525 = vmatmul.msk.bf16.gmra.mxu0 %vm587_vm0, %v2377_v11  ;;  %v1756_v18 = vadd.f32 %v1437_v46, %v4936_v19 }
 0x24c   : > { %v5508_v23 = vsel %vm1993_vm15, %v1833_v30, %v2153_v3  ;;  %4477 = vmatmul.msk.bf16.gmra.mxu3 %vm587_vm0, %v4657_v59 }
 0x24d   : > { %v3463_v8 = vsel %vm3143_vm1, %v2798_v29, %v3303_v25  ;;  %4438 = vmatmul.msk.bf16.gmra.mxu1 %vm587_vm0, %v4618_v22  ;;  %v2076_v59 = vmul.f32 0.2, %v1756_v18  ;;  %vm1916_vm3 = vcmp.ge.f32.partialorder %v1756_v18, 0.0  ;;  %v6619_v29 = vmax.f32 %v5299_v10, %v5407_v48 }
 0x24e   : > { %v3750_v61 = vsel %vm587_vm0, %v3463_v8, -inf }
 0x24f   : > { %v5518_v40 = vmax.f32 %v6618_v7, %v3750_v61  ;;  %v1632_v38 = vpop.f32.mrf.mxu3  ;;  %v2236_v8 = vsel %vm1916_vm3, %v1756_v18, %v2076_v59  ;;  %v6622_v59 = vmax.f32 %v5318_v14, %v5425_v62 }
 0x250   : > { %v2799_v55 = vpop.f32.mrf.mxu0  ;;  %v1834_v51 = vadd.f32 %v1632_v38, %v4919_v4  ;;  %v4658_v38 = vld [vmem:[%s4839_s9 + $0x258] sm:$0xff] }
 0x251   : > { %v2800_v2 = vadd.f32 %v5433_v43, %v2799_v55 }
 0x252   : > { %v1439_v58 = vpop.f32.mrf.mxu1  ;;  %v2154_v11 = vmul.f32 0.2, %v1834_v51  ;;  %vm1994_vm5 = vcmp.ge.f32.partialorder %v1834_v51, 0.0 }
 0x253   : > { %vm3144_vm2 = vcmp.ge.f32.partialorder %v2800_v2, 0.0  ;;  %v3304_v30 = vmul.f32 0.2, %v2800_v2  ;;  %v1757_v31 = vadd.f32 %v1439_v58, %v4941_v20  ;;  %v4619_v58 = vld [vmem:[%s4839_s9 + $0x120] sm:$0xff] }
 0x255   : > { %v3464_v24 = vsel %vm3144_vm2, %v2800_v2, %v3304_v30  ;;  %vm1917_vm4 = vcmp.ge.f32.partialorder %v1757_v31, 0.0  ;;  %v2077_v32 = vmul.f32 0.2, %v1757_v31  ;;  %v5534_v30 = vsel %vm1994_vm5, %v1834_v51, %v2154_v11 }
 0x256   : > { %v3789_v46 = vsel %vm587_vm0, %v3464_v24, -inf  ;;  %6620 = vst [vmem:[#allocation30_spill] sm:$0xff] %v5534_v30 }
 0x257   : > { %v5528_v22 = vmax.f32 %v6619_v29, %v3789_v46  ;;  %v2237_v3 = vsel %vm1917_vm4, %v1757_v31, %v2077_v32  ;;  %v1634_v25 = vpop.f32.mrf.mxu3 }
 0x258   : > { %v1835_v61 = vadd.f32 %v1634_v25, %v4924_v5  ;;  %v2802_v7 = vpop.f32.mrf.mxu0  ;;  %v2378_v55 = vpack.c.bf16 %v2237_v3, %v2236_v8 }
 0x259   : > { %v2803_v2 = vadd.f32 %v5433_v43, %v2802_v7 }
 0x25a   : > { %vm1995_vm6 = vcmp.ge.f32.partialorder %v1835_v61, 0.0  ;;  %v2155_v24 = vmul.f32 0.2, %v1835_v61  ;;  %v1442_v28 = vpop.f32.mrf.mxu1 }
 0x25b   : > { %vm3145_vm7 = vcmp.ge.f32.partialorder %v2803_v2, 0.0  ;;  %v3305_v10 = vmul.f32 0.2, %v2803_v2  ;;  %4526 = vmatmul.msk.bf16.gmra.mxu0 %vm587_vm0, %v2378_v55  ;;  %v1758_v46 = vadd.f32 %v1442_v28, %v4893_v35 }
 0x25c   : > { %v5537_v48 = vsel %vm1995_vm6, %v1835_v61, %v2155_v24  ;;  %4478 = vmatmul.msk.bf16.gmra.mxu3 %vm587_vm0, %v4658_v38 }
 0x25d   : > { %6621 = vst [vmem:[#allocation31_spill] sm:$0xff] %v5537_v48  ;;  %v3465_v31 = vsel %vm3145_vm7, %v2803_v2, %v3305_v10  ;;  %4439 = vmatmul.msk.bf16.gmra.mxu1 %vm587_vm0, %v4619_v58  ;;  %v2078_v38 = vmul.f32 0.2, %v1758_v46  ;;  %vm1918_vm9 = vcmp.ge.f32.partialorder %v1758_v46, 0.0  ;;  %v6623_v2 = vmax.f32 %v5328_v53, %v5439_v45 }
 0x25e   : > { %v3828_v51 = vsel %vm587_vm0, %v3465_v31, -inf }
 0x25f   : > { %v5547_v32 = vmax.f32 %v6622_v59, %v3828_v51  ;;  %v1637_v11 = vpop.f32.mrf.mxu3  ;;  %v2238_v31 = vsel %vm1918_vm9, %v1758_v46, %v2078_v38  ;;  %v4622_v38 = vld [vmem:[%s4839_s9 + $0x138] sm:$0xff] }
 0x260   : > { %v2804_v29 = vpop.f32.mrf.mxu0  ;;  %v1836_v25 = vadd.f32 %v1637_v11, %v4936_v19  ;;  %v4659_v11 = vld [vmem:[%s4839_s9 + $0x260] sm:$0xff] }
 0x261   : > { %v2805_v3 = vadd.f32 %v5433_v43, %v2804_v29 }
 0x262   : > { %v1444_v8 = vpop.f32.mrf.mxu1  ;;  %v2156_v55 = vmul.f32 0.2, %v1836_v25  ;;  %vm1996_vm11 = vcmp.ge.f32.partialorder %v1836_v25, 0.0 }
 0x263   : > { %vm3146_vm8 = vcmp.ge.f32.partialorder %v2805_v3, 0.0  ;;  %v3306_v61 = vmul.f32 0.2, %v2805_v3  ;;  %v1759_v7 = vadd.f32 %v1444_v8, %v4899_v39  ;;  %v4620_v8 = vld [vmem:[%s4839_s9 + $0x128] sm:$0xff] }
 0x265   : > { %v3466_v14 = vsel %vm3146_vm8, %v2805_v3, %v3306_v61  ;;  %vm1919_vm10 = vcmp.ge.f32.partialorder %v1759_v7, 0.0  ;;  %v2079_v62 = vmul.f32 0.2, %v1759_v7  ;;  %v5563_v61 = vsel %vm1996_vm11, %v1836_v25, %v2156_v55 }
 0x266   : > { %v3867_v28 = vsel %vm587_vm0, %v3466_v14, -inf  ;;  %6624 = vst [vmem:[#allocation32_spill] sm:$0xff] %v5563_v61 }
 0x267   : > { %v5557_v58 = vmax.f32 %v6623_v2, %v3867_v28  ;;  %v2239_v24 = vsel %vm1919_vm10, %v1759_v7, %v2079_v62  ;;  %v1639_v10 = vpop.f32.mrf.mxu3 }
 0x268   : > { %v1837_v51 = vadd.f32 %v1639_v10, %v4941_v20  ;;  %v2807_v59 = vpop.f32.mrf.mxu0  ;;  %v2379_v29 = vpack.c.bf16 %v2239_v24, %v2238_v31 }
 0x269   : > { %v2808_v3 = vadd.f32 %v5433_v43, %v2807_v59 }
 0x26a   : > { %vm1997_vm12 = vcmp.ge.f32.partialorder %v1837_v51, 0.0  ;;  %v2157_v14 = vmul.f32 0.2, %v1837_v51  ;;  %v1447_v18 = vpop.f32.mrf.mxu1 }
 0x26b   : > { %vm3147_vm13 = vcmp.ge.f32.partialorder %v2808_v3, 0.0  ;;  %v3307_v53 = vmul.f32 0.2, %v2808_v3  ;;  %4527 = vmatmul.msk.bf16.gmra.mxu0 %vm587_vm0, %v2379_v29  ;;  %v1760_v62 = vadd.f32 %v1447_v18, %v4906_v52 }
 0x26c   : > { %v5566_v45 = vsel %vm1997_vm12, %v1837_v51, %v2157_v14  ;;  %4479 = vmatmul.msk.bf16.gmra.mxu3 %vm587_vm0, %v4659_v11  ;;  %v4660_v14 = vld [vmem:[%s4839_s9 + $0x268] sm:$0xff] }
 0x26d   : > { %6625 = vst [vmem:[#allocation33_spill] sm:$0xff] %v5566_v45  ;;  %v3467_v7 = vsel %vm3147_vm13, %v2808_v3, %v3307_v53  ;;  %4440 = vmatmul.msk.bf16.gmra.mxu1 %vm587_vm0, %v4620_v8  ;;  %v2080_v31 = vmul.f32 0.2, %v1760_v62  ;;  %vm1920_vm15 = vcmp.ge.f32.partialorder %v1760_v62, 0.0  ;;  %v4623_v45 = vld [vmem:[%s4839_s9 + $0x140] sm:$0xff] }
 0x26e   : > { %v5573_v25 = vsel %vm587_vm0, %v3467_v7, -inf }
 0x26f   : > { %v2240_v3 = vsel %vm1920_vm15, %v1760_v62, %v2080_v31 }
 0x270   : > { %v2809_v55 = vpop.f32.mrf.mxu0 }
 0x271   : > { %v2810_v28 = vadd.f32 %v5433_v43, %v2809_v55  ;;  %v4621_v55 = vld [vmem:[%s4839_s9 + $0x130] sm:$0xff] }
 0x272   : > { %v1449_v2 = vpop.f32.mrf.mxu1 }
 0x273   : > { %vm3148_vm14 = vcmp.ge.f32.partialorder %v2810_v28, 0.0  ;;  %v3308_v24 = vmul.f32 0.2, %v2810_v28  ;;  %v1761_v10 = vadd.f32 %v1449_v2, %v4912_v56 }
 0x275   : > { %v3468_v51 = vsel %vm3148_vm14, %v2810_v28, %v3308_v24  ;;  %vm1921_vm1 = vcmp.ge.f32.partialorder %v1761_v10, 0.0  ;;  %v2081_v59 = vmul.f32 0.2, %v1761_v10 }
 0x276   : > { %v5581_v11 = vsel %vm587_vm0, %v3468_v51, -inf }
 0x277   : > { %v2241_v29 = vsel %vm1921_vm1, %v1761_v10, %v2081_v59 }
 0x278   : > { %v2812_v8 = vpop.f32.mrf.mxu0  ;;  %v2380_v53 = vpack.c.bf16 %v2241_v29, %v2240_v3 }
 0x279   : > { %v2813_v7 = vadd.f32 %v5433_v43, %v2812_v8 }
 0x27a   : > { %v1452_v2 = vpop.f32.mrf.mxu1 }
 0x27b   : > { %vm3149_vm2 = vcmp.ge.f32.partialorder %v2813_v7, 0.0  ;;  %v3309_v46 = vmul.f32 0.2, %v2813_v7  ;;  %4528 = vmatmul.msk.bf16.gmra.mxu0 %vm587_vm0, %v2380_v53  ;;  %v1762_v10 = vadd.f32 %v1452_v2, %v4919_v4 }
 0x27c   : > { %4480 = vmatmul.msk.bf16.gmra.mxu3 %vm587_vm0, %v4660_v14 }
 0x27d   : > { %v3469_v28 = vsel %vm3149_vm2, %v2813_v7, %v3309_v46  ;;  %4441 = vmatmul.msk.bf16.gmra.mxu1 %vm587_vm0, %v4621_v55  ;;  %v2082_v3 = vmul.f32 0.2, %v1762_v10  ;;  %vm1922_vm4 = vcmp.ge.f32.partialorder %v1762_v10, 0.0 }
 0x27e   : > { %v5592_v24 = vsel %vm587_vm0, %v3469_v28, -inf }
 0x27f   : > { %v2242_v2 = vsel %vm1922_vm4, %v1762_v10, %v2082_v3 }
 0x280   : > { %v2814_v31 = vpop.f32.mrf.mxu0 }
 0x281   : > { %v2815_v51 = vadd.f32 %v5433_v43, %v2814_v31  ;;  %v4661_v31 = vld [vmem:[%s4839_s9 + $0x270] sm:$0xff] }
 0x282   : > { %v1454_v59 = vpop.f32.mrf.mxu1 }
 0x283   : > { %vm3150_vm3 = vcmp.ge.f32.partialorder %v2815_v51, 0.0  ;;  %v3310_v29 = vmul.f32 0.2, %v2815_v51  ;;  %v1763_v46 = vadd.f32 %v1454_v59, %v4924_v5 }
 0x285   : > { %v3470_v8 = vsel %vm3150_vm3, %v2815_v51, %v3310_v29  ;;  %vm1923_vm5 = vcmp.ge.f32.partialorder %v1763_v46, 0.0  ;;  %v2083_v14 = vmul.f32 0.2, %v1763_v46 }
 0x286   : > { %v5600_v53 = vsel %vm587_vm0, %v3470_v8, -inf }
 0x287   : > { %v2243_v55 = vsel %vm1923_vm5, %v1763_v46, %v2083_v14 }
 0x288   : > { %v2817_v28 = vpop.f32.mrf.mxu0  ;;  %v2381_v62 = vpack.c.bf16 %v2243_v55, %v2242_v2 }
 0x289   : > { %v2818_v18 = vadd.f32 %v5433_v43, %v2817_v28 }
 0x28a   : > { %v1457_v59 = vpop.f32.mrf.mxu1 }
 0x28b   : > { %vm3151_vm6 = vcmp.ge.f32.partialorder %v2818_v18, 0.0  ;;  %v3311_v61 = vmul.f32 0.2, %v2818_v18  ;;  %4529 = vmatmul.msk.bf16.gmra.mxu0 %vm587_vm0, %v2381_v62  ;;  %v1764_v46 = vadd.f32 %v1457_v59, %v4936_v19 }
 0x28c   : > { %4481 = vmatmul.msk.bf16.gmra.mxu3 %vm587_vm0, %v4661_v31 }
 0x28d   : > { %v3471_v51 = vsel %vm3151_vm6, %v2818_v18, %v3311_v61  ;;  %4442 = vmatmul.msk.bf16.gmra.mxu1 %vm587_vm0, %v4622_v38  ;;  %v2084_v18 = vmul.f32 0.2, %v1764_v46  ;;  %vm1924_vm8 = vcmp.ge.f32.partialorder %v1764_v46, 0.0 }
 0x28e   : > { %v5611_v29 = vsel %vm587_vm0, %v3471_v51, -inf }
 0x28f   : > { %v2244_v59 = vsel %vm1924_vm8, %v1764_v46, %v2084_v18 }
 0x290   : > { %v2819_v3 = vpop.f32.mrf.mxu0 }
 0x291   : > { %v2820_v8 = vadd.f32 %v5433_v43, %v2819_v3  ;;  %v4662_v3 = vld [vmem:[%s4839_s9 + $0x278] sm:$0xff] }
 0x292   : > { %v1459_v14 = vpop.f32.mrf.mxu1 }
 0x293   : > { %vm3152_vm7 = vcmp.ge.f32.partialorder %v2820_v8, 0.0  ;;  %v3312_v62 = vmul.f32 0.2, %v2820_v8  ;;  %v1765_v61 = vadd.f32 %v1459_v14, %v4941_v20 }
 0x295   : > { %v3472_v38 = vsel %vm3152_vm7, %v2820_v8, %v3312_v62  ;;  %vm1925_vm9 = vcmp.ge.f32.partialorder %v1765_v61, 0.0  ;;  %v2085_v55 = vmul.f32 0.2, %v1765_v61 }
 0x296   : > { %v5619_v2 = vsel %vm587_vm0, %v3472_v38, -inf }
 0x297   : > { %v2245_v31 = vsel %vm1925_vm9, %v1765_v61, %v2085_v55 }
 0x298   : > { %v2822_v51 = vpop.f32.mrf.mxu0  ;;  %v2382_v10 = vpack.c.bf16 %v2245_v31, %v2244_v59 }
 0x299   : > { %v2823_v7 = vadd.f32 %v5433_v43, %v2822_v51 }
 0x29a   : > { %v1462_v14 = vpop.f32.mrf.mxu1 }
 0x29b   : > { %vm3153_vm10 = vcmp.ge.f32.partialorder %v2823_v7, 0.0  ;;  %v3313_v30 = vmul.f32 0.2, %v2823_v7  ;;  %4530 = vmatmul.msk.bf16.gmra.mxu0 %vm587_vm0, %v2382_v10  ;;  %v1766_v61 = vadd.f32 %v1462_v14, %v4893_v35 }
 0x29c   : > { %4482 = vmatmul.msk.bf16.gmra.mxu3 %vm587_vm0, %v4662_v3 }
 0x29d   : > { %v3473_v8 = vsel %vm3153_vm10, %v2823_v7, %v3313_v30  ;;  %4443 = vmatmul.msk.bf16.gmra.mxu1 %vm587_vm0, %v4623_v45  ;;  %v2086_v59 = vmul.f32 0.2, %v1766_v61  ;;  %vm1926_vm12 = vcmp.ge.f32.partialorder %v1766_v61, 0.0 }
 0x29e   : > { %v5630_v62 = vsel %vm587_vm0, %v3473_v8, -inf }
 0x29f   : > { %v2246_v14 = vsel %vm1926_vm12, %v1766_v61, %v2086_v59 }
 0x2a0   : > { %v2824_v18 = vpop.f32.mrf.mxu0 }
 0x2a1   : > { %v2825_v38 = vadd.f32 %v5433_v43, %v2824_v18 }
 0x2a2   : > { %v1464_v55 = vpop.f32.mrf.mxu1 }
 0x2a3   : > { %vm3154_vm11 = vcmp.ge.f32.partialorder %v2825_v38, 0.0  ;;  %v3314_v31 = vmul.f32 0.2, %v2825_v38  ;;  %v1767_v10 = vadd.f32 %v1464_v55, %v4899_v39 }
 0x2a5   : > { %v3474_v30 = vsel %vm3154_vm11, %v2825_v38, %v3314_v31  ;;  %vm1927_vm13 = vcmp.ge.f32.partialorder %v1767_v10, 0.0  ;;  %v2087_v45 = vmul.f32 0.2, %v1767_v10 }
 0x2a6   : > { %v5638_v7 = vsel %vm587_vm0, %v3474_v30, -inf  ;;  %v6626_v30 = vmax.f32 %v5460_v33, %v5573_v25  ;;  %v6627_v33 = vmax.f32 %v5470_v60, %v5581_v11 }
 0x2a7   : > { %v2247_v3 = vsel %vm1927_vm13, %v1767_v10, %v2087_v45 }
 0x2a8   : > { %v2827_v8 = vpop.f32.mrf.mxu0  ;;  %v2383_v18 = vpack.c.bf16 %v2247_v3, %v2246_v14 }
 0x2a9   : > { %v2828_v46 = vadd.f32 %v5433_v43, %v2827_v8 }
 0x2aa   : > { %v1467_v28 = vpop.f32.mrf.mxu1 }
 0x2ab   : > { %vm3155_vm14 = vcmp.ge.f32.partialorder %v2828_v46, 0.0  ;;  %v3315_v55 = vmul.f32 0.2, %v2828_v46  ;;  %4531 = vmatmul.msk.bf16.gmra.mxu0 %vm587_vm0, %v2383_v18  ;;  %v1768_v10 = vadd.f32 %v1467_v28, %v4906_v52 }
 0x2ad   : > { %v3475_v38 = vsel %vm3155_vm14, %v2828_v46, %v3315_v55  ;;  %v2088_v8 = vmul.f32 0.2, %v1768_v10  ;;  %vm1928_vm1 = vcmp.ge.f32.partialorder %v1768_v10, 0.0 }
 0x2ae   : > { %v3598_v31 = vsel %vm587_vm0, %v3475_v38, -inf }
 0x2af   : > { %v5648_v48 = vmax.f32 %v6626_v30, %v3598_v31  ;;  %v2248_v38 = vsel %vm1928_vm1, %v1768_v10, %v2088_v8 }
 0x2b0   : > { %v2829_v61 = vpop.f32.mrf.mxu0 }
 0x2b1   : > { %v2830_v59 = vadd.f32 %v5433_v43, %v2829_v61 }
 0x2b2   : > { %v1469_v45 = vpop.f32.mrf.mxu1 }
 0x2b3   : > { %vm3156_vm15 = vcmp.ge.f32.partialorder %v2830_v59, 0.0  ;;  %v3316_v3 = vmul.f32 0.2, %v2830_v59  ;;  %v1769_v14 = vadd.f32 %v1469_v45, %v4912_v56 }
 0x2b5   : > { %v3476_v46 = vsel %vm3156_vm15, %v2830_v59, %v3316_v3  ;;  %vm1929_vm2 = vcmp.ge.f32.partialorder %v1769_v14, 0.0  ;;  %v2089_v18 = vmul.f32 0.2, %v1769_v14 }
 0x2b6   : > { %v3637_v55 = vsel %vm587_vm0, %v3476_v46, -inf  ;;  %v6628_v46 = vmax.f32 %v5489_v47, %v5592_v24  ;;  %v6629_v47 = vmax.f32 %v5499_v41, %v5600_v53 }
 0x2b7   : > { %v5657_v25 = vmax.f32 %v6627_v33, %v3637_v55  ;;  %v2249_v28 = vsel %vm1929_vm2, %v1769_v14, %v2089_v18 }
 0x2b8   : > { %v2832_v31 = vpop.f32.mrf.mxu0  ;;  %v2384_v30 = vpack.c.bf16 %v2249_v28, %v2248_v38 }
 0x2b9   : > { %v2833_v61 = vadd.f32 %v5433_v43, %v2832_v31 }
 0x2ba   : > { %v1472_v51 = vpop.f32.mrf.mxu1 }
 0x2bb   : > { %vm3157_vm3 = vcmp.ge.f32.partialorder %v2833_v61, 0.0  ;;  %v3317_v45 = vmul.f32 0.2, %v2833_v61  ;;  %4532 = vmatmul.msk.bf16.gmra.mxu0 %vm587_vm0, %v2384_v30  ;;  %v1770_v11 = vadd.f32 %v1472_v51, %v4919_v4 }
 0x2bd   : > { %v3477_v59 = vsel %vm3157_vm3, %v2833_v61, %v3317_v45  ;;  %v2090_v33 = vmul.f32 0.2, %v1770_v11  ;;  %vm1930_vm5 = vcmp.ge.f32.partialorder %v1770_v11, 0.0 }
 0x2be   : > { %v3676_v3 = vsel %vm587_vm0, %v3477_v59, -inf }
 0x2bf   : > { %v5665_v60 = vmax.f32 %v6628_v46, %v3676_v3  ;;  %v2250_v30 = vsel %vm1930_vm5, %v1770_v11, %v2090_v33 }
 0x2c0   : > { %v2834_v10 = vpop.f32.mrf.mxu0 }
 0x2c1   : > { %v2835_v14 = vadd.f32 %v5433_v43, %v2834_v10 }
 0x2c2   : > { %v1474_v8 = vpop.f32.mrf.mxu1 }
 0x2c3   : > { %vm3158_vm4 = vcmp.ge.f32.partialorder %v2835_v14, 0.0  ;;  %v3318_v18 = vmul.f32 0.2, %v2835_v14  ;;  %v1771_v55 = vadd.f32 %v1474_v8, %v4924_v5  ;;  %v6630_v8 = vmax.f32 %v5518_v40, %v5611_v29 }
 0x2c4   : > { %v1787_v29 = vadd.f32 %v4947_v27, %v4924_v5  ;;  %v1803_v27 = vadd.f32 %v5047_v50, %v4924_v5 }
 0x2c5   : > { %v3478_v28 = vsel %vm3158_vm4, %v2835_v14, %v3318_v18  ;;  %vm1931_vm6 = vcmp.ge.f32.partialorder %v1771_v55, 0.0  ;;  %v2091_v38 = vmul.f32 0.2, %v1771_v55 }
 0x2c6   : > { %v3715_v31 = vsel %vm587_vm0, %v3478_v28, -inf  ;;  %vm1947_vm12 = vcmp.ge.f32.partialorder %v1787_v29, 0.0  ;;  %v2123_v50 = vmul.f32 0.2, %v1803_v27  ;;  %vm1963_vm2 = vcmp.ge.f32.partialorder %v1803_v27, 0.0 }
 0x2c7   : > { %v5674_v24 = vmax.f32 %v6629_v47, %v3715_v31  ;;  %v2251_v51 = vsel %vm1931_vm6, %v1771_v55, %v2091_v38  ;;  %v1786_v38 = vadd.f32 %v4943_v21, %v4919_v4 }
 0x2c8   : > { %v2837_v61 = vpop.f32.mrf.mxu0  ;;  %v2385_v45 = vpack.c.bf16 %v2251_v51, %v2250_v30  ;;  %v1794_v51 = vadd.f32 %v4987_v17, %v4919_v4 }
 0x2c9   : > { %v2838_v59 = vadd.f32 %v5433_v43, %v2837_v61  ;;  %v1795_v61 = vadd.f32 %v4991_v26, %v4924_v5  ;;  %v2106_v17 = vmul.f32 0.2, %v1786_v38  ;;  %vm1946_vm11 = vcmp.ge.f32.partialorder %v1786_v38, 0.0 }
 0x2ca   : > { %v1477_v3 = vpop.f32.mrf.mxu1  ;;  %v2107_v26 = vmul.f32 0.2, %v1787_v29  ;;  %vm1954_vm13 = vcmp.ge.f32.partialorder %v1794_v51, 0.0 }
 0x2cb   : > { %vm3159_vm7 = vcmp.ge.f32.partialorder %v2838_v59, 0.0  ;;  %v3319_v46 = vmul.f32 0.2, %v2838_v59  ;;  %4533 = vmatmul.msk.bf16.gmra.mxu0 %vm587_vm0, %v2385_v45  ;;  %v1772_v53 = vadd.f32 %v1477_v3, %v4936_v19  ;;  %v6631_v45 = vmax.f32 %v5528_v22, %v5619_v2 }
 0x2cc   : > { %v1802_v3 = vadd.f32 %v5041_v37, %v4919_v4  ;;  %v2115_v2 = vmul.f32 0.2, %v1795_v61  ;;  %vm1955_vm15 = vcmp.ge.f32.partialorder %v1795_v61, 0.0 }
 0x2cd   : > { %v3479_v10 = vsel %vm3159_vm7, %v2838_v59, %v3319_v46  ;;  %v2092_v31 = vmul.f32 0.2, %v1772_v53  ;;  %vm1932_vm9 = vcmp.ge.f32.partialorder %v1772_v53, 0.0 }
 0x2ce   : > { %v3754_v14 = vsel %vm587_vm0, %v3479_v10, -inf  ;;  %v2122_v37 = vmul.f32 0.2, %v1802_v3  ;;  %vm1962_vm1 = vcmp.ge.f32.partialorder %v1802_v3, 0.0 }
 0x2cf   : > { %v5682_v41 = vmax.f32 %v6630_v8, %v3754_v14  ;;  %v2252_v46 = vsel %vm1932_vm9, %v1772_v53, %v2092_v31 }
 0x2d0   : > { %v2839_v11 = vpop.f32.mrf.mxu0 }
 0x2d1   : > { %v2840_v18 = vadd.f32 %v5433_v43, %v2839_v11  ;;  %v2114_v11 = vmul.f32 0.2, %v1794_v51 }
 0x2d2   : > { %v1479_v55 = vpop.f32.mrf.mxu1 }
 0x2d3   : > { %vm3160_vm8 = vcmp.ge.f32.partialorder %v2840_v18, 0.0  ;;  %v3320_v33 = vmul.f32 0.2, %v2840_v18  ;;  %v1773_v28 = vadd.f32 %v1479_v55, %v4941_v20  ;;  %v5714_v31 = vsel %vm1954_vm13, %v1794_v51, %v2114_v11 }
 0x2d4   : > { %v5730_v51 = vsel %vm1963_vm2, %v1803_v27, %v2123_v50  ;;  %v1789_v27 = vadd.f32 %v4958_v42, %v4941_v20  ;;  %v1796_v11 = vadd.f32 %v4998_v36, %v4936_v19 }
 0x2d5   : > { %v3480_v47 = vsel %vm3160_vm8, %v2840_v18, %v3320_v33  ;;  %vm1933_vm10 = vcmp.ge.f32.partialorder %v1773_v28, 0.0  ;;  %v2093_v40 = vmul.f32 0.2, %v1773_v28  ;;  %v5709_v33 = vsel %vm1946_vm11, %v1786_v38, %v2106_v17 }
 0x2d6   : > { %v3793_v30 = vsel %vm587_vm0, %v3480_v47, -inf  ;;  %v6632_v47 = vmax.f32 %v5547_v32, %v5630_v62  ;;  %vm1949_vm7 = vcmp.ge.f32.partialorder %v1789_v27, 0.0  ;;  %v2109_v36 = vmul.f32 0.2, %v1789_v27 }
 0x2d7   : > { %v5699_v21 = vmax.f32 %v6631_v45, %v3793_v30  ;;  %v2253_v59 = vsel %vm1933_vm10, %v1773_v28, %v2093_v40  ;;  %v5712_v28 = vsel %vm1947_vm12, %v1787_v29, %v2107_v26  ;;  %v5723_v45 = vsel %vm1955_vm15, %v1795_v61, %v2115_v2 }
 0x2d8   : > { %v2842_v10 = vpop.f32.mrf.mxu0  ;;  %v2386_v14 = vpack.c.bf16 %v2253_v59, %v2252_v46  ;;  %v5728_v29 = vsel %vm1962_vm1, %v1802_v3, %v2122_v37  ;;  %v1797_v2 = vadd.f32 %v5002_v44, %v4941_v20  ;;  %vm1956_vm8 = vcmp.ge.f32.partialorder %v1796_v11, 0.0 }
 0x2d9   : > { %v2843_v8 = vadd.f32 %v5433_v43, %v2842_v10 }
 0x2da   : > { %v1482_v22 = vpop.f32.mrf.mxu1  ;;  %vm1957_vm10 = vcmp.ge.f32.partialorder %v1797_v2, 0.0 }
 0x2db   : > { %vm3161_vm14 = vcmp.ge.f32.partialorder %v2843_v8, 0.0  ;;  %v3321_v18 = vmul.f32 0.2, %v2843_v8  ;;  %4534 = vmatmul.msk.bf16.gmra.mxu0 %vm587_vm0, %v2386_v14  ;;  %v1774_v59 = vadd.f32 %v1482_v22, %v4893_v35  ;;  %v1788_v14 = vadd.f32 %v4954_v34, %v4936_v19 }
 0x2dd   : > { %v3481_v53 = vsel %vm3161_vm14, %v2843_v8, %v3321_v18  ;;  %v2094_v8 = vmul.f32 0.2, %v1774_v59  ;;  %vm1934_vm4 = vcmp.ge.f32.partialorder %v1774_v59, 0.0  ;;  %v6633_v18 = vmax.f32 %v5557_v58, %v5638_v7 }
 0x2de   : > { %v3832_v55 = vsel %vm587_vm0, %v3481_v53, -inf  ;;  %vm1948_vm6 = vcmp.ge.f32.partialorder %v1788_v14, 0.0 }
 0x2df   : > { %v5719_v40 = vmax.f32 %v6632_v47, %v3832_v55  ;;  %v2254_v50 = vsel %vm1934_vm4, %v1774_v59, %v2094_v8  ;;  %v2108_v55 = vmul.f32 0.2, %v1788_v14 }
 0x2e0   : > { %v2844_v46 = vpop.f32.mrf.mxu0 }
 0x2e1   : > { %v2845_v10 = vadd.f32 %v5433_v43, %v2844_v46  ;;  %v2116_v46 = vmul.f32 0.2, %v1796_v11  ;;  %v5755_v59 = vsel %vm1948_vm6, %v1788_v14, %v2108_v55 }
 0x2e2   : > { %v1484_v62 = vpop.f32.mrf.mxu1 }
 0x2e3   : > { %vm3162_vm3 = vcmp.ge.f32.partialorder %v2845_v10, 0.0  ;;  %v3322_v17 = vmul.f32 0.2, %v2845_v10  ;;  %v1775_v61 = vadd.f32 %v1484_v62, %v4899_v39  ;;  %v2117_v62 = vmul.f32 0.2, %v1797_v2 }
 0x2e5   : > { %v3482_v26 = vsel %vm3162_vm3, %v2845_v10, %v3322_v17  ;;  %vm1935_vm5 = vcmp.ge.f32.partialorder %v1775_v61, 0.0  ;;  %v2095_v3 = vmul.f32 0.2, %v1775_v61  ;;  %v5757_v17 = vsel %vm1949_vm7, %v1789_v27, %v2109_v36 }
 0x2e6   : > { %v3871_v22 = vsel %vm587_vm0, %v3482_v26, -inf  ;;  %v1798_v36 = vadd.f32 %v5011_v54, %v4893_v35 }
 0x2e7   : > { %v5748_v34 = vmax.f32 %v6633_v18, %v3871_v22  ;;  %v2255_v37 = vsel %vm1935_vm5, %v1775_v61, %v2095_v3  ;;  %v5759_v61 = vsel %vm1956_vm8, %v1796_v11, %v2116_v46  ;;  %v5765_v3 = vsel %vm1957_vm10, %v1797_v2, %v2117_v62 }
 0x2e8   : > { %v2847_v53 = vpop.f32.mrf.mxu0  ;;  %v2387_v47 = vpack.c.bf16 %v2255_v37, %v2254_v50  ;;  %v2118_v54 = vmul.f32 0.2, %v1798_v36  ;;  %vm1958_vm1 = vcmp.ge.f32.partialorder %v1798_v36, 0.0 }
 0x2e9   : > { %v2848_v42 = vadd.f32 %v5433_v43, %v2847_v53  ;;  %v1790_v53 = vadd.f32 %v4965_v49, %v4893_v35 }
 0x2ea   : > { %v1487_v10 = vpop.f32.mrf.mxu1 }
 0x2eb   : > { %vm3163_vm9 = vcmp.ge.f32.partialorder %v2848_v42, 0.0  ;;  %v3323_v44 = vmul.f32 0.2, %v2848_v42  ;;  %4535 = vmatmul.msk.bf16.gmra.mxu0 %vm587_vm0, %v2387_v47  ;;  %v1776_v22 = vadd.f32 %v1487_v10, %v4906_v52  ;;  %v1799_v10 = vadd.f32 %v5017_v63, %v4899_v39 }
 0x2ec   : > { %vm1950_vm14 = vcmp.ge.f32.partialorder %v1790_v53, 0.0 }
 0x2ed   : > { %v3483_v58 = vsel %vm3163_vm9, %v2848_v42, %v3323_v44  ;;  %v2096_v55 = vmul.f32 0.2, %v1776_v22  ;;  %vm1936_vm12 = vcmp.ge.f32.partialorder %v1776_v22, 0.0  ;;  %v1791_v42 = vadd.f32 %v4969_v57, %v4899_v39 }
 0x2ee   : > { %v5753_v7 = vsel %vm587_vm0, %v3483_v58, -inf  ;;  %vm1959_vm3 = vcmp.ge.f32.partialorder %v1799_v10, 0.0 }
 0x2ef   : > { %v2256_v44 = vsel %vm1936_vm12, %v1776_v22, %v2096_v55  ;;  %vm1951_vm15 = vcmp.ge.f32.partialorder %v1791_v42, 0.0  ;;  %v2111_v57 = vmul.f32 0.2, %v1791_v42 }
 0x2f0   : > { %v2849_v18 = vpop.f32.mrf.mxu0 }
 0x2f1   : > { %v2850_v14 = vadd.f32 %v5433_v43, %v2849_v18  ;;  %v2110_v18 = vmul.f32 0.2, %v1790_v53  ;;  %v5792_v55 = vsel %vm1951_vm15, %v1791_v42, %v2111_v57 }
 0x2f2   : > { %v1489_v27 = vpop.f32.mrf.mxu1 }
 0x2f3   : > { %vm3164_vm11 = vcmp.ge.f32.partialorder %v2850_v14, 0.0  ;;  %v3324_v11 = vmul.f32 0.2, %v2850_v14  ;;  %v1777_v50 = vadd.f32 %v1489_v27, %v4912_v56 }
 0x2f5   : > { %v3484_v2 = vsel %vm3164_vm11, %v2850_v14, %v3324_v11  ;;  %vm1937_vm13 = vcmp.ge.f32.partialorder %v1777_v50, 0.0  ;;  %v2097_v47 = vmul.f32 0.2, %v1777_v50 }
 0x2f6   : > { %v5779_v46 = vsel %vm587_vm0, %v3484_v2, -inf  ;;  %v2119_v2 = vmul.f32 0.2, %v1799_v10 }
 0x2f7   : > { %v2257_v62 = vsel %vm1937_vm13, %v1777_v50, %v2097_v47  ;;  %v5790_v50 = vsel %vm1950_vm14, %v1790_v53, %v2110_v18  ;;  %v5808_v53 = vld [vmem:[%s6544_s6] ss:$0 sm:$0xff] }
 0x2f8   : > { %v2852_v58 = vpop.f32.mrf.mxu0  ;;  %v2388_v14 = vpack.c.bf16 %v2257_v62, %v2256_v44  ;;  %v5800_v44 = vsel %vm1959_vm3, %v1799_v10, %v2119_v2  ;;  %v1784_v10 = vadd.f32 %v4926_v6, %v4906_v52  ;;  %v1785_v2 = vadd.f32 %v4930_v12, %v4912_v56 }
 0x2f9   : > { %v2853_v27 = vadd.f32 %v5433_v43, %v2852_v58  ;;  %v5794_v43 = vsel %vm1958_vm1, %v1798_v36, %v2118_v54 }
 0x2fa   : > { %v1492_v11 = vpop.f32.mrf.mxu1  ;;  %vm1944_vm7 = vcmp.ge.f32.partialorder %v1784_v10, 0.0  ;;  %vm1945_vm8 = vcmp.ge.f32.partialorder %v1785_v2, 0.0  ;;  %v2105_v37 = vmul.f32 0.2, %v1785_v2 }
 0x2fb   : > { %vm3165_vm2 = vcmp.ge.f32.partialorder %v2853_v27, 0.0  ;;  %v3325_v32 = vmul.f32 0.2, %v2853_v27  ;;  %4536 = vmatmul.msk.bf16.gmra.mxu0 %vm587_vm0, %v2388_v14  ;;  %v1778_v58 = vadd.f32 %v1492_v11, %v4919_v4  ;;  %v2104_v14 = vmul.f32 0.2, %v1784_v10 }
 0x2fd   : > { %v3485_v63 = vsel %vm3165_vm2, %v2853_v27, %v3325_v32  ;;  %v2098_v57 = vmul.f32 0.2, %v1778_v58  ;;  %vm1938_vm5 = vcmp.ge.f32.partialorder %v1778_v58, 0.0 }
 0x2fe   : > { %v5788_v22 = vsel %vm587_vm0, %v3485_v63, -inf  ;;  %v1792_v63 = vadd.f32 %v4976_v0, %v4906_v52 }
 0x2ff   : > { %v2258_v12 = vsel %vm1938_vm5, %v1778_v58, %v2098_v57  ;;  %v2265_v57 = vsel %vm1945_vm8, %v1785_v2, %v2105_v37 }
 0x300   : > { %v2854_v32 = vpop.f32.mrf.mxu0  ;;  %vm1952_vm9 = vcmp.ge.f32.partialorder %v1792_v63, 0.0 }
 0x301   : > { %v2855_v42 = vadd.f32 %v5808_v53, %v2854_v32 }
 0x302   : > { %v1494_v36 = vpop.f32.mrf.mxu1 }
 0x303   : > { %vm3166_vm4 = vcmp.ge.f32.partialorder %v2855_v42, 0.0  ;;  %v3326_v18 = vmul.f32 0.2, %v2855_v42  ;;  %v1779_v27 = vadd.f32 %v1494_v36, %v4924_v5  ;;  %v1793_v36 = vadd.f32 %v4980_v9, %v4912_v56 }
 0x304   : > { %v2112_v9 = vmul.f32 0.2, %v1792_v63 }
 0x305   : > { %v3486_v54 = vsel %vm3166_vm4, %v2855_v42, %v3326_v18  ;;  %vm1939_vm6 = vcmp.ge.f32.partialorder %v1779_v27, 0.0  ;;  %v2099_v11 = vmul.f32 0.2, %v1779_v27  ;;  %v1800_v42 = vadd.f32 %v5026_v13, %v4906_v52  ;;  %v6634_v18 = vld [vmem:[#allocation3_spill] sm:$0xff] }
 0x306   : > { %v5819_v32 = vsel %vm587_vm0, %v3486_v54, -inf  ;;  %v1801_v49 = vadd.f32 %v6634_v18, %v4912_v56  ;;  %v2113_v6 = vmul.f32 0.2, %v1793_v36  ;;  %vm1953_vm11 = vcmp.ge.f32.partialorder %v1793_v36, 0.0 }
 0x307   : > { %v2259_v47 = vsel %vm1939_vm6, %v1779_v27, %v2099_v11  ;;  %v2120_v13 = vmul.f32 0.2, %v1800_v42  ;;  %vm1960_vm12 = vcmp.ge.f32.partialorder %v1800_v42, 0.0  ;;  %v5836_v18 = vsel %vm1952_vm9, %v1792_v63, %v2112_v9 }
 0x308   : > { %v2857_v8 = vpop.f32.mrf.mxu0  ;;  %v2389_v0 = vpack.c.bf16 %v2259_v47, %v2258_v12  ;;  %v2121_v11 = vmul.f32 0.2, %v1801_v49  ;;  %vm1961_vm13 = vcmp.ge.f32.partialorder %v1801_v49, 0.0  ;;  %v2273_v26 = vsel %vm1953_vm11, %v1793_v36, %v2113_v6 }
 0x309   : > { %v2858_v54 = vadd.f32 %v5808_v53, %v2857_v8  ;;  %v2264_v8 = vsel %vm1944_vm7, %v1784_v10, %v2104_v14  ;;  %v2396_v5 = vpack.c.bf16 %v2273_v26, %v5836_v18 }
 0x30a   : > { %v1497_v38 = vpop.f32.mrf.mxu1  ;;  %v2392_v62 = vpack.c.bf16 %v2265_v57, %v2264_v8 }
 0x30b   : > { %vm3167_vm10 = vcmp.ge.f32.partialorder %v2858_v54, 0.0  ;;  %v3327_v27 = vmul.f32 0.2, %v2858_v54  ;;  %4537 = vmatmul.msk.bf16.gmra.mxu0 %vm587_vm0, %v2389_v0  ;;  %v1780_v0 = vadd.f32 %v1497_v38, %v4936_v19 }
 0x30d   : > { %v3487_v58 = vsel %vm3167_vm10, %v2858_v54, %v3327_v27  ;;  %v5842_v54 = vsel %vm1960_vm12, %v1800_v42, %v2120_v13  ;;  %v5844_v27 = vsel %vm1961_vm13, %v1801_v49, %v2121_v11  ;;  %v2100_v2 = vmul.f32 0.2, %v1780_v0 }
 0x30e   : > { %v5832_v47 = vsel %vm587_vm0, %v3487_v58, -inf  ;;  %v2400_v37 = vpack.c.bf16 %v5844_v27, %v5842_v54  ;;  %vm1940_vm15 = vcmp.ge.f32.partialorder %v1780_v0, 0.0  ;;  %v6643_v54 = vmax.f32 %v5665_v60, %v5788_v22 }
 0x30f   : > { %v3757_v12 = vmax.f32 %v5682_v41, %v5832_v47 }
 0x310   : > { %v2859_v30 = vpop.f32.mrf.mxu0 }
 0x311   : > { %v2860_v14 = vadd.f32 %v5808_v53, %v2859_v30  ;;  %v2260_v30 = vsel %vm1940_vm15, %v1780_v0, %v2100_v2 }
 0x312   : > { %v1499_v10 = vpop.f32.mrf.mxu1 }
 0x313   : > { %vm3168_vm14 = vcmp.ge.f32.partialorder %v2860_v14, 0.0  ;;  %v3328_v63 = vmul.f32 0.2, %v2860_v14  ;;  %v1781_v38 = vadd.f32 %v1499_v10, %v4941_v20 }
 0x315   : > { %v3488_v36 = vsel %vm3168_vm14, %v2860_v14, %v3328_v63  ;;  %vm1941_vm1 = vcmp.ge.f32.partialorder %v1781_v38, 0.0  ;;  %v2101_v6 = vmul.f32 0.2, %v1781_v38 }
 0x316   : > { %v5851_v26 = vsel %vm587_vm0, %v3488_v36, -inf }
 0x317   : > { %v3796_v49 = vmax.f32 %v5699_v21, %v5851_v26  ;;  %v2261_v42 = vsel %vm1941_vm1, %v1781_v38, %v2101_v6 }
 0x318   : > { %v2862_v9 = vpop.f32.mrf.mxu0  ;;  %v2390_v13 = vpack.c.bf16 %v2261_v42, %v2260_v30 }
 0x319   : > { %v2863_v11 = vadd.f32 %v5808_v53, %v2862_v9 }
 0x31a   : > { %v1502_v58 = vpop.f32.mrf.mxu1  ;;  %4538 = vmatmul.msk.bf16.vlgmr.msra.gmra.mxu2 %vm587_vm0, %v2390_v13 }
 0x31b   : > { %vm3169_vm2 = vcmp.ge.f32.partialorder %v2863_v11, 0.0  ;;  %v3329_v8 = vmul.f32 0.2, %v2863_v11  ;;  %v1782_v10 = vadd.f32 %v1502_v58, %v4893_v35 }
 0x31d   : > { %v3489_v57 = vsel %vm3169_vm2, %v2863_v11, %v3329_v8  ;;  %v2102_v38 = vmul.f32 0.2, %v1782_v10  ;;  %vm1942_vm4 = vcmp.ge.f32.partialorder %v1782_v10, 0.0 }
 0x31e   : > { %v3834_v18 = vsel %vm587_vm0, %v3489_v57, -inf  ;;  %v6635_v57 = vpack.c.bf16 %v5712_v28, %v5709_v33 }
 0x31f   : > { %v3835_v14 = vmax.f32 %v5719_v40, %v3834_v18  ;;  %v2262_v40 = vsel %vm1942_vm4, %v1782_v10, %v2102_v38 }
 0x320   : > { %v2864_v63 = vpop.f32.mrf.mxu0 }
 0x321   : > { %v2865_v0 = vadd.f32 %v5808_v53, %v2864_v63  ;;  %v6636_v63 = vpack.c.bf16 %v5757_v17, %v5755_v59  ;;  %v6638_v59 = vpack.c.bf16 %v5723_v45, %v5714_v31 }
 0x322   : > { %v1504_v2 = vpop.f32.mrf.mxu1 }
 0x323   : > { %vm3170_vm3 = vcmp.ge.f32.partialorder %v2865_v0, 0.0  ;;  %v3330_v36 = vmul.f32 0.2, %v2865_v0  ;;  %v1783_v6 = vadd.f32 %v1504_v2, %v4899_v39 }
 0x325   : > { %v3490_v30 = vsel %vm3170_vm3, %v2865_v0, %v3330_v36  ;;  %vm1943_vm5 = vcmp.ge.f32.partialorder %v1783_v6, 0.0  ;;  %v2103_v42 = vmul.f32 0.2, %v1783_v6  ;;  %v6637_v0 = vpack.c.bf16 %v5792_v55, %v5790_v50 }
 0x326   : > { %v3873_v9 = vsel %vm587_vm0, %v3490_v30, -inf  ;;  %v6639_v50 = vpack.c.bf16 %v5765_v3, %v5759_v61 }
 0x327   : > { %v3874_v13 = vmax.f32 %v5748_v34, %v3873_v9  ;;  %v2263_v11 = vsel %vm1943_vm5, %v1783_v6, %v2103_v42 }
 0x328   : > { %v2391_v58 = vpack.c.bf16 %v2263_v11, %v2262_v40  ;;  %v2867_v8 = vpop.f32.mrf.mxu0 }
 0x329   : > { %v2868_v40 = vadd.f32 %v5808_v53, %v2867_v8 }
 0x32a   : > { %4539 = vmatmul.msk.bf16.gmra.mxu2 %vm587_vm0, %v2391_v58 }
 0x32b   : > { %vm3171_vm9 = vcmp.ge.f32.partialorder %v2868_v40, 0.0 }
 0x330   : > { %v2869_v18 = vpop.f32.mrf.mxu0 }
 0x338   : > { %v5874_v34 = vpop.f32.mrf.mxu0 }
 0x33a   : > { %4540 = vmatmul.msk.bf16.gmra.mxu2 %vm587_vm0, %v2392_v62 }
 0x340   : > { %v5876_v10 = vpop.f32.mrf.mxu0 }
 0x348   : > { %v5882_v62 = vpop.f32.mrf.mxu0 }
 0x34a   : > { %4541 = vmatmul.msk.bf16.gmra.mxu2 %vm587_vm0, %v6635_v57 }
 0x350   : > { %v5884_v33 = vpop.f32.mrf.mxu0 }
 0x358   : > { %v2882_v28 = vpop.f32.mrf.mxu0 }
 0x359   : > { %v2883_v2 = vadd.f32 %v5808_v53, %v2882_v28  ;;  %v3331_v28 = vmul.f32 0.2, %v2868_v40 }
 0x35a   : > { %4542 = vmatmul.msk.bf16.gmra.mxu2 %vm587_vm0, %v6636_v63 }
 0x35b   : > { %v3337_v36 = vmul.f32 0.2, %v2883_v2  ;;  %vm3177_vm6 = vcmp.ge.f32.partialorder %v2883_v2, 0.0 }
 0x35d   : > { %v3497_v55 = vsel %vm3177_vm6, %v2883_v2, %v3337_v36  ;;  %v3491_v2 = vsel %vm3171_vm9, %v2868_v40, %v3331_v28  ;;  %v2870_v36 = vadd.f32 %v5808_v53, %v2869_v18 }
 0x35e   : > { %v3836_v31 = vsel %vm587_vm0, %v3497_v55, -inf  ;;  %v6640_v55 = vpack.c.bf16 %v5800_v44, %v5794_v43  ;;  %v3602_v18 = vsel %vm587_vm0, %v3491_v2, -inf  ;;  %v6641_v44 = vmax.f32 %v5648_v48, %v5753_v7 }
 0x35f   : > { %v5900_v11 = vmax.f32 %v3835_v14, %v3836_v31  ;;  %vm3172_vm12 = vcmp.ge.f32.partialorder %v2870_v36, 0.0 }
 0x360   : > { %v2884_v17 = vpop.f32.mrf.mxu0 }
 0x368   : > { %v2887_v38 = vpop.f32.mrf.mxu0 }
 0x369   : > { %v2888_v57 = vadd.f32 %v5808_v53, %v2887_v38 }
 0x36a   : > { %4543 = vmatmul.msk.bf16.gmra.mxu2 %vm587_vm0, %v6637_v0 }
 0x36b   : > { %v3339_v8 = vmul.f32 0.2, %v2888_v57  ;;  %vm3179_vm11 = vcmp.ge.f32.partialorder %v2888_v57, 0.0 }
 0x370   : > { %v2889_v9 = vpop.f32.mrf.mxu0 }
 0x371   : > { %v2890_v31 = vadd.f32 %v5808_v53, %v2889_v9 }
 0x373   : > { %vm3180_vm14 = vcmp.ge.f32.partialorder %v2890_v31, 0.0 }
 0x37a   : > { %4544 = vmatmul.msk.bf16.gmra.mxu2 %vm587_vm0, %v2396_v5  ;;  %v2885_v5 = vadd.f32 %v5808_v53, %v2884_v17 }
 0x37c   : > { %v3338_v45 = vmul.f32 0.2, %v2885_v5  ;;  %vm3178_vm8 = vcmp.ge.f32.partialorder %v2885_v5, 0.0 }
 0x37e   : > { %v3498_v58 = vsel %vm3178_vm8, %v2885_v5, %v3338_v45  ;;  %v2892_v5 = vpop.f32.mrf.mxu0 }
 0x37f   : > { %v3875_v17 = vsel %vm587_vm0, %v3498_v58, -inf  ;;  %v3340_v58 = vmul.f32 0.2, %v2890_v31 }
 0x386   : > { %v2894_v7 = vpop.f32.mrf.mxu0 }
 0x38a   : > { %4545 = vmatmul.msk.bf16.gmra.mxu2 %vm587_vm0, %v6638_v59 }
 0x39a   : > { %4546 = vmatmul.msk.bf16.gmra.mxu2 %vm587_vm0, %v6639_v50  ;;  %v5911_v50 = vmax.f32 %v3874_v13, %v3875_v17 }
 0x39d   : > { %v2902_v6 = vpop.f32.mrf.mxu2 }
 0x39e   : > { %v2903_v30 = vadd.f32 %v5808_v53, %v2902_v6 }
 0x3a0   : > { %vm3185_vm7 = vcmp.ge.f32.partialorder %v2903_v30, 0.0  ;;  %v3345_v42 = vmul.f32 0.2, %v2903_v30 }
 0x3a2   : > { %v3505_v61 = vsel %vm3185_vm7, %v2903_v30, %v3345_v42  ;;  %v3499_v30 = vsel %vm3179_vm11, %v2888_v57, %v3339_v8  ;;  %v3332_v42 = vmul.f32 0.2, %v2870_v36  ;;  %v3500_v8 = vsel %vm3180_vm14, %v2890_v31, %v3340_v58 }
 0x3a3   : > { %v5903_v3 = vsel %vm587_vm0, %v3505_v61, -inf  ;;  %v3604_v43 = vsel %vm587_vm0, %v3499_v30, -inf  ;;  %v3603_v61 = vmax.f32 %v6641_v44, %v3602_v18 }
 0x3a4   : > { %v3839_v63 = vmax.f32 %v5900_v11, %v5903_v3  ;;  %v3492_v9 = vsel %vm3172_vm12, %v2870_v36, %v3332_v42  ;;  %v3643_v36 = vsel %vm587_vm0, %v3500_v8, -inf  ;;  %v2875_v42 = vadd.f32 %v5808_v53, %v5876_v10 }
 0x3a5   : > { %v2904_v0 = vpop.f32.mrf.mxu2  ;;  %v3605_v28 = vmax.f32 %v3603_v61, %v3604_v43  ;;  %v3641_v48 = vsel %vm587_vm0, %v3492_v9, -inf  ;;  %v2878_v8 = vadd.f32 %v5808_v53, %v5882_v62  ;;  %v6644_v62 = vmax.f32 %v5674_v24, %v5819_v32 }
 0x3a6   : > { %v2905_v59 = vadd.f32 %v5808_v53, %v2904_v0  ;;  %v2873_v0 = vadd.f32 %v5808_v53, %v5874_v34  ;;  %v6642_v34 = vmax.f32 %v5657_v25, %v5779_v46  ;;  %v2895_v25 = vadd.f32 %v5808_v53, %v2894_v7 }
 0x3a7   : > { %v3334_v9 = vmul.f32 0.2, %v2875_v42  ;;  %vm3174_vm3 = vcmp.ge.f32.partialorder %v2875_v42, 0.0  ;;  %vm3175_vm6 = vcmp.ge.f32.partialorder %v2878_v8, 0.0 }
 0x3a8   : > { %vm3186_vm10 = vcmp.ge.f32.partialorder %v2905_v59, 0.0  ;;  %v3346_v14 = vmul.f32 0.2, %v2905_v59  ;;  %vm3173_vm15 = vcmp.ge.f32.partialorder %v2873_v0, 0.0  ;;  %v3642_v18 = vmax.f32 %v6642_v34, %v3641_v48 }
 0x3a9   : > { %vm3182_vm5 = vcmp.ge.f32.partialorder %v2895_v25, 0.0 }
 0x3aa   : > { %v3506_v38 = vsel %vm3186_vm10, %v2905_v59, %v3346_v14  ;;  %4547 = vmatmul.msk.bf16.gmra.mxu2 %vm587_vm0, %v6640_v55  ;;  %v2893_v14 = vadd.f32 %v5808_v53, %v2892_v5  ;;  %v3333_v55 = vmul.f32 0.2, %v2873_v0 }
 0x3ab   : > { %v5918_v6 = vsel %vm587_vm0, %v3506_v38, -inf }
 0x3ac   : > { %v3878_v45 = vmax.f32 %v5911_v50, %v5918_v6  ;;  %vm3181_vm2 = vcmp.ge.f32.partialorder %v2893_v14, 0.0  ;;  %v3493_v5 = vsel %vm3173_vm15, %v2873_v0, %v3333_v55  ;;  %v6653_v50 = vld [vmem:[#allocation8_spill] sm:$0xff] }
 0x3ad   : > { %v2907_v13 = vpop.f32.mrf.mxu2  ;;  %v3680_v58 = vsel %vm587_vm0, %v3493_v5, -inf }
 0x3ae   : > { %v2908_v40 = vadd.f32 %v5808_v53, %v2907_v13  ;;  %v3341_v13 = vmul.f32 0.2, %v2893_v14  ;;  %v3681_v27 = vmax.f32 %v6643_v54, %v3680_v58 }
 0x3b0   : > { %vm3187_vm13 = vcmp.ge.f32.partialorder %v2908_v40, 0.0  ;;  %v3347_v57 = vmul.f32 0.2, %v2908_v40  ;;  %v3501_v61 = vsel %vm3181_vm2, %v2893_v14, %v3341_v13 }
 0x3b1   : > { %v3682_v0 = vsel %vm587_vm0, %v3501_v61, -inf }
 0x3b2   : > { %v3507_v59 = vsel %vm3187_vm13, %v2908_v40, %v3347_v57  ;;  %v3644_v40 = vmax.f32 %v3642_v18, %v3643_v36  ;;  %v3683_v14 = vmax.f32 %v3681_v27, %v3682_v0  ;;  %v3335_v36 = vmul.f32 0.2, %v2878_v8 }
 0x3b3   : > { %v3606_v17 = vsel %vm587_vm0, %v3507_v59, -inf }
 0x3b4   : > { %v5933_v2 = vmax.f32 %v3605_v28, %v3606_v17  ;;  %v2897_v28 = vpop.f32.mrf.mxu0  ;;  %v3494_v17 = vsel %vm3174_vm3, %v2875_v42, %v3334_v9 }
 0x3b5   : > { %v2909_v38 = vpop.f32.mrf.mxu2  ;;  %v2898_v55 = vadd.f32 %v5808_v53, %v2897_v28  ;;  %v3719_v60 = vsel %vm587_vm0, %v3494_v17, -inf }
 0x3b6   : > { %v2910_v30 = vadd.f32 %v5808_v53, %v2909_v38  ;;  %v3720_v13 = vmax.f32 %v6644_v62, %v3719_v60 }
 0x3b7   : > { %vm3183_vm8 = vcmp.ge.f32.partialorder %v2898_v55, 0.0 }
 0x3b8   : > { %vm3188_vm1 = vcmp.ge.f32.partialorder %v2910_v30, 0.0  ;;  %v3348_v31 = vmul.f32 0.2, %v2910_v30 }
 0x3ba   : > { %v3508_v43 = vsel %vm3188_vm1, %v2910_v30, %v3348_v31  ;;  %4548 = vmatmul.msk.bf16.gmra.mxu2 %vm587_vm0, %v2400_v37  ;;  %v3342_v37 = vmul.f32 0.2, %v2895_v25  ;;  %v3343_v31 = vmul.f32 0.2, %v2898_v55 }
 0x3bb   : > { %v3645_v44 = vsel %vm587_vm0, %v3508_v43, -inf  ;;  %v2880_v43 = vadd.f32 %v5808_v53, %v5884_v33 }
 0x3bc   : > { %v5949_v46 = vmax.f32 %v3644_v40, %v3645_v44  ;;  %v3502_v38 = vsel %vm3182_vm5, %v2895_v25, %v3342_v37  ;;  %v2899_v42 = vpop.f32.mrf.mxu0  ;;  %v3495_v40 = vsel %vm3175_vm6, %v2878_v8, %v3335_v36  ;;  %v6645_v25 = vpack.c.bf16 %v5730_v51, %v5728_v29  ;;  %v6647_v36 = vld [vmem:[#allocation4_spill] sm:$0xff] }
 0x3bd   : > { %v2912_v57 = vpop.f32.mrf.mxu2  ;;  %v3721_v18 = vsel %vm587_vm0, %v3502_v38, -inf  ;;  %v3503_v24 = vsel %vm3183_vm8, %v2898_v55, %v3343_v31  ;;  %v2900_v32 = vadd.f32 %v5808_v53, %v2899_v42  ;;  %v3758_v9 = vsel %vm587_vm0, %v3495_v40, -inf }
 0x3be   : > { %v2913_v10 = vadd.f32 %v5808_v53, %v2912_v57  ;;  %v3722_v44 = vmax.f32 %v3720_v13, %v3721_v18  ;;  %v3336_v0 = vmul.f32 0.2, %v2880_v43  ;;  %vm3176_vm9 = vcmp.ge.f32.partialorder %v2880_v43, 0.0 }
 0x3bf   : > { %v3760_v28 = vsel %vm587_vm0, %v3503_v24, -inf  ;;  %v3759_v29 = vmax.f32 %v3757_v12, %v3758_v9  ;;  %v3344_v51 = vmul.f32 0.2, %v2900_v32  ;;  %vm3184_vm11 = vcmp.ge.f32.partialorder %v2900_v32, 0.0 }
 0x3c0   : > { %vm3189_vm4 = vcmp.ge.f32.partialorder %v2913_v10, 0.0  ;;  %v3349_v59 = vmul.f32 0.2, %v2913_v10  ;;  %v3496_v27 = vsel %vm3176_vm9, %v2880_v43, %v3336_v0 }
 0x3c1   : > { %v3761_v37 = vmax.f32 %v3759_v29, %v3760_v28  ;;  %v3504_v8 = vsel %vm3184_vm11, %v2900_v32, %v3344_v51 }
 0x3c2   : > { %v3509_v48 = vsel %vm3189_vm4, %v2913_v10, %v3349_v59  ;;  %v3799_v41 = vsel %vm587_vm0, %v3504_v8, -inf }
 0x3c3   : > { %v3684_v7 = vsel %vm587_vm0, %v3509_v48, -inf  ;;  %v3797_v48 = vsel %vm587_vm0, %v3496_v27, -inf }
 0x3c4   : > { %v5961_v30 = vmax.f32 %v3683_v14, %v3684_v7  ;;  %v3798_v47 = vmax.f32 %v3796_v49, %v3797_v48 }
 0x3c5   : > { %v2914_v22 = vpop.f32.mrf.mxu2 }
 0x3c6   : > { %v2915_v34 = vadd.f32 %v5808_v53, %v2914_v22  ;;  %v3800_v55 = vmax.f32 %v3798_v47, %v3799_v41  ;;  %v6646_v22 = vld [vmem:[#allocation5_spill] sm:$0xff] }
 0x3c8   : > { %vm3190_vm7 = vcmp.ge.f32.partialorder %v2915_v34, 0.0  ;;  %v3350_v5 = vmul.f32 0.2, %v2915_v34 }
 0x3ca   : > { %v3510_v61 = vsel %vm3190_vm7, %v2915_v34, %v3350_v5  ;;  %4549 = vmatmul.msk.bf16.gmra.mxu2 %vm587_vm0, %v6645_v25  ;;  %v6648_v34 = vpack.c.bf16 %v6646_v22, %v6647_v36  ;;  %v6650_v25 = vld [vmem:[#allocation6_spill] sm:$0xff] }
 0x3cb   : > { %v3723_v58 = vsel %vm587_vm0, %v3510_v61, -inf  ;;  %v6649_v61 = vld [vmem:[#allocation7_spill] sm:$0xff] }
 0x3cc   : > { %v5977_v57 = vmax.f32 %v3722_v44, %v3723_v58  ;;  %v6651_v58 = vpack.c.bf16 %v6649_v61, %v6650_v25 }
 0x3cd   : > { %v2917_v10 = vpop.f32.mrf.mxu2 }
 0x3ce   : > { %v2918_v33 = vadd.f32 %v5808_v53, %v2917_v10 }
 0x3d0   : > { %vm3191_vm10 = vcmp.ge.f32.partialorder %v2918_v33, 0.0  ;;  %v3351_v54 = vmul.f32 0.2, %v2918_v33 }
 0x3d2   : > { %v3511_v59 = vsel %vm3191_vm10, %v2918_v33, %v3351_v54  ;;  %v6652_v54 = vld [vmem:[#allocation9_spill] sm:$0xff] }
 0x3d3   : > { %v3762_v17 = vsel %vm587_vm0, %v3511_v59, -inf  ;;  %v6654_v6 = vpack.c.bf16 %v6652_v54, %v6653_v50 }
 0x3d4   : > { %v5986_v14 = vmax.f32 %v3761_v37, %v3762_v17 }
 0x3d5   : > { %v2919_v7 = vpop.f32.mrf.mxu2 }
 0x3d6   : > { %v2920_v38 = vadd.f32 %v5808_v53, %v2919_v7 }
 0x3d8   : > { %vm3192_vm12 = vcmp.ge.f32.partialorder %v2920_v38, 0.0  ;;  %v3352_v12 = vmul.f32 0.2, %v2920_v38 }
 0x3da   : > { %v3512_v60 = vsel %vm3192_vm12, %v2920_v38, %v3352_v12  ;;  %4550 = vmatmul.msk.bf16.gmra.mxu2 %vm587_vm0, %v6648_v34  ;;  %v6655_v12 = vld [vmem:[#allocation11_spill] sm:$0xff] }
 0x3db   : > { %v3801_v18 = vsel %vm587_vm0, %v3512_v60, -inf }
 0x3dc   : > { %v5999_v62 = vmax.f32 %v3800_v55, %v3801_v18  ;;  %v6656_v55 = vld [vmem:[#allocation10_spill] sm:$0xff] }
 0x3dd   : > { %v2922_v13 = vpop.f32.mrf.mxu2  ;;  %v6657_v60 = vpack.c.bf16 %v6655_v12, %v6656_v55 }
 0x3de   : > { %v2923_v31 = vadd.f32 %v5808_v53, %v2922_v13 }
 0x3e0   : > { %vm3193_vm13 = vcmp.ge.f32.partialorder %v2923_v31, 0.0  ;;  %v3353_v5 = vmul.f32 0.2, %v2923_v31 }
 0x3e2   : > { %v3513_v21 = vsel %vm3193_vm13, %v2923_v31, %v3353_v5 }
 0x3e3   : > { %v3840_v26 = vsel %vm587_vm0, %v3513_v21, -inf }
 0x3e4   : > { %v6006_v49 = vmax.f32 %v3839_v63, %v3840_v26 }
 0x3e5   : > { %v2924_v42 = vpop.f32.mrf.mxu2 }
 0x3e6   : > { %v2925_v40 = vadd.f32 %v5808_v53, %v2924_v42 }
 0x3e8   : > { %vm3194_vm14 = vcmp.ge.f32.partialorder %v2925_v40, 0.0  ;;  %v3354_v43 = vmul.f32 0.2, %v2925_v40 }
 0x3ea   : > { %v3514_v44 = vsel %vm3194_vm14, %v2925_v40, %v3354_v43  ;;  %4551 = vmatmul.msk.bf16.gmra.mxu2 %vm587_vm0, %v6651_v58  ;;  %v6658_v40 = vld [vmem:[#allocation13_spill] sm:$0xff]  ;;  %v6659_v43 = vld [vmem:[#allocation12_spill] sm:$0xff] }
 0x3eb   : > { %v3879_v24 = vsel %vm587_vm0, %v3514_v44, -inf  ;;  %v6660_v44 = vpack.c.bf16 %v6658_v40, %v6659_v43 }
 0x3ec   : > { %v6017_v32 = vmax.f32 %v3878_v45, %v3879_v24 }
 0x3ed   : > { %v2927_v11 = vpop.f32.mrf.mxu2 }
 0x3ee   : > { %v2928_v3 = vadd.f32 %v5808_v53, %v2927_v11 }
 0x3f0   : > { %vm3195_vm15 = vcmp.ge.f32.partialorder %v2928_v3, 0.0  ;;  %v3355_v63 = vmul.f32 0.2, %v2928_v3 }
 0x3f2   : > { %v3515_v9 = vsel %vm3195_vm15, %v2928_v3, %v3355_v63 }
 0x3f3   : > { %v3608_v10 = vsel %vm587_vm0, %v3515_v9, -inf }
 0x3f4   : > { %v3609_v0 = vmax.f32 %v5933_v2, %v3608_v10 }
 0x3f5   : > { %v2929_v33 = vpop.f32.mrf.mxu2 }
 0x3f6   : > { %v2930_v28 = vadd.f32 %v5808_v53, %v2929_v33 }
 0x3f8   : > { %vm3196_vm1 = vcmp.ge.f32.partialorder %v2930_v28, 0.0  ;;  %v3356_v29 = vmul.f32 0.2, %v2930_v28 }
 0x3fa   : > { %v3516_v51 = vsel %vm3196_vm1, %v2930_v28, %v3356_v29  ;;  %4552 = vmatmul.msk.bf16.gmra.mxu2 %vm587_vm0, %v6654_v6  ;;  %v6661_v28 = vld [vmem:[#allocation15_spill] sm:$0xff]  ;;  %v6662_v29 = vld [vmem:[#allocation14_spill] sm:$0xff] }
 0x3fb   : > { %v3647_v45 = vsel %vm587_vm0, %v3516_v51, -inf  ;;  %v6663_v51 = vpack.c.bf16 %v6661_v28, %v6662_v29 }
 0x3fc   : > { %v3648_v27 = vmax.f32 %v5949_v46, %v3647_v45 }
 0x3fd   : > { %v2932_v37 = vpop.f32.mrf.mxu2 }
 0x3fe   : > { %v2933_v59 = vadd.f32 %v5808_v53, %v2932_v37 }
 0x400   : > { %vm3197_vm2 = vcmp.ge.f32.partialorder %v2933_v59, 0.0  ;;  %v3357_v2 = vmul.f32 0.2, %v2933_v59 }
 0x402   : > { %v3517_v17 = vsel %vm3197_vm2, %v2933_v59, %v3357_v2 }
 0x403   : > { %v3686_v8 = vsel %vm587_vm0, %v3517_v17, -inf }
 0x404   : > { %v3687_v48 = vmax.f32 %v5961_v30, %v3686_v8 }
 0x405   : > { %v2934_v7 = vpop.f32.mrf.mxu2 }
 0x406   : > { %v2935_v38 = vadd.f32 %v5808_v53, %v2934_v7 }
 0x408   : > { %vm3198_vm3 = vcmp.ge.f32.partialorder %v2935_v38, 0.0  ;;  %v3358_v41 = vmul.f32 0.2, %v2935_v38 }
 0x40a   : > { %v3518_v47 = vsel %vm3198_vm3, %v2935_v38, %v3358_v41  ;;  %4553 = vmatmul.msk.bf16.gmra.mxu2 %vm587_vm0, %v6657_v60  ;;  %v6664_v38 = vld [vmem:[#allocation17_spill] sm:$0xff]  ;;  %v6665_v41 = vld [vmem:[#allocation16_spill] sm:$0xff] }
 0x40b   : > { %v3725_v46 = vsel %vm587_vm0, %v3518_v47, -inf  ;;  %v6666_v47 = vpack.c.bf16 %v6664_v38, %v6665_v41 }
 0x40c   : > { %v3726_v22 = vmax.f32 %v5977_v57, %v3725_v46 }
 0x40d   : > { %v2937_v36 = vpop.f32.mrf.mxu2 }
 0x40e   : > { %v2938_v34 = vadd.f32 %v5808_v53, %v2937_v36 }
 0x410   : > { %vm3199_vm4 = vcmp.ge.f32.partialorder %v2938_v34, 0.0  ;;  %v3359_v30 = vmul.f32 0.2, %v2938_v34 }
 0x412   : > { %v3519_v18 = vsel %vm3199_vm4, %v2938_v34, %v3359_v30 }
 0x413   : > { %v3764_v13 = vsel %vm587_vm0, %v3519_v18, -inf }
 0x414   : > { %v3765_v31 = vmax.f32 %v5986_v14, %v3764_v13 }
 0x415   : > { %v2939_v5 = vpop.f32.mrf.mxu2 }
 0x416   : > { %v2940_v21 = vadd.f32 %v5808_v53, %v2939_v5 }
 0x418   : > { %vm3200_vm5 = vcmp.ge.f32.partialorder %v2940_v21, 0.0  ;;  %v3360_v26 = vmul.f32 0.2, %v2940_v21 }
 0x41a   : > { %v3520_v42 = vsel %vm3200_vm5, %v2940_v21, %v3360_v26  ;;  %4554 = vmatmul.msk.bf16.gmra.mxu2 %vm587_vm0, %v6660_v44  ;;  %v6667_v21 = vld [vmem:[#allocation19_spill] sm:$0xff]  ;;  %v6668_v26 = vld [vmem:[#allocation18_spill] sm:$0xff] }
 0x41b   : > { %v3803_v57 = vsel %vm587_vm0, %v3520_v42, -inf }
 0x41c   : > { %v3804_v61 = vmax.f32 %v5999_v62, %v3803_v57 }
 0x41d   : > { %v2942_v25 = vpop.f32.mrf.mxu2 }
 0x41e   : > { %v2943_v58 = vadd.f32 %v5808_v53, %v2942_v25 }
 0x420   : > { %vm3201_vm6 = vcmp.ge.f32.partialorder %v2943_v58, 0.0  ;;  %v3361_v14 = vmul.f32 0.2, %v2943_v58 }
 0x422   : > { %v3521_v24 = vsel %vm3201_vm6, %v2943_v58, %v3361_v14 }
 0x423   : > { %v3842_v11 = vsel %vm587_vm0, %v3521_v24, -inf }
 0x424   : > { %v3843_v3 = vmax.f32 %v6006_v49, %v3842_v11 }
 0x425   : > { %v2944_v63 = vpop.f32.mrf.mxu2 }
 0x426   : > { %v2945_v9 = vadd.f32 %v5808_v53, %v2944_v63 }
 0x428   : > { %vm3202_vm7 = vcmp.ge.f32.partialorder %v2945_v9, 0.0  ;;  %v3362_v10 = vmul.f32 0.2, %v2945_v9 }
 0x42a   : > { %v3522_v33 = vsel %vm3202_vm7, %v2945_v9, %v3362_v10  ;;  %4555 = vmatmul.msk.bf16.gmra.mxu2 %vm587_vm0, %v6663_v51  ;;  %v6670_v9 = vld [vmem:[#allocation21_spill] sm:$0xff]  ;;  %v6671_v10 = vld [vmem:[#allocation20_spill] sm:$0xff] }
 0x42b   : > { %v3881_v62 = vsel %vm587_vm0, %v3522_v33, -inf }
 0x42c   : > { %v3882_v54 = vmax.f32 %v6017_v32, %v3881_v62 }
 0x42d   : > { %v2947_v50 = vpop.f32.mrf.mxu2 }
 0x42e   : > { %v2948_v6 = vadd.f32 %v5808_v53, %v2947_v50 }
 0x430   : > { %vm3203_vm8 = vcmp.ge.f32.partialorder %v2948_v6, 0.0  ;;  %v3363_v49 = vmul.f32 0.2, %v2948_v6 }
 0x432   : > { %v3523_v45 = vsel %vm3203_vm8, %v2948_v6, %v3363_v49 }
 0x433   : > { %v3610_v37 = vsel %vm587_vm0, %v3523_v45, -inf }
 0x434   : > { %v6061_v59 = vmax.f32 %v3609_v0, %v3610_v37 }
 0x435   : > { %v2949_v2 = vpop.f32.mrf.mxu2 }
 0x436   : > { %v2950_v17 = vadd.f32 %v5808_v53, %v2949_v2 }
 0x438   : > { %vm3204_vm9 = vcmp.ge.f32.partialorder %v2950_v17, 0.0  ;;  %v3364_v8 = vmul.f32 0.2, %v2950_v17 }
 0x43a   : > { %v3524_v7 = vsel %vm3204_vm9, %v2950_v17, %v3364_v8  ;;  %4556 = vmatmul.msk.bf16.gmra.mxu2 %vm587_vm0, %v6666_v47  ;;  %v6673_v17 = vld [vmem:[#allocation23_spill] sm:$0xff]  ;;  %v6674_v8 = vld [vmem:[#allocation22_spill] sm:$0xff] }
 0x43b   : > { %v3649_v32 = vsel %vm587_vm0, %v3524_v7, -inf }
 0x43c   : > { %v6069_v12 = vmax.f32 %v3648_v27, %v3649_v32  ;;  %v6669_v27 = vpack.c.bf16 %v6667_v21, %v6668_v26 }
 0x43d   : > { %v2952_v55 = vpop.f32.mrf.mxu2 }
 0x43e   : > { %v2953_v60 = vadd.f32 %v5808_v53, %v2952_v55 }
 0x440   : > { %vm3205_vm10 = vcmp.ge.f32.partialorder %v2953_v60, 0.0  ;;  %v3365_v0 = vmul.f32 0.2, %v2953_v60 }
 0x442   : > { %v3525_v46 = vsel %vm3205_vm10, %v2953_v60, %v3365_v0 }
 0x443   : > { %v3688_v36 = vsel %vm587_vm0, %v3525_v46, -inf }
 0x444   : > { %v6073_v34 = vmax.f32 %v3687_v48, %v3688_v36 }
 0x445   : > { %v2954_v30 = vpop.f32.mrf.mxu2 }
 0x446   : > { %v2955_v18 = vadd.f32 %v5808_v53, %v2954_v30 }
 0x448   : > { %vm3206_vm11 = vcmp.ge.f32.partialorder %v2955_v18, 0.0  ;;  %v3366_v13 = vmul.f32 0.2, %v2955_v18 }
 0x44a   : > { %v3526_v5 = vsel %vm3206_vm11, %v2955_v18, %v3366_v13  ;;  %4557 = vmatmul.msk.bf16.gmra.mxu2 %vm587_vm0, %v6669_v27  ;;  %v6677_v18 = vld [vmem:[#allocation24_spill] sm:$0xff] }
 0x44b   : > { %v3727_v42 = vsel %vm587_vm0, %v3526_v5, -inf }
 0x44c   : > { %v6081_v40 = vmax.f32 %v3726_v22, %v3727_v42  ;;  %v6672_v22 = vpack.c.bf16 %v6670_v9, %v6671_v10 }
 0x44d   : > { %v2957_v43 = vpop.f32.mrf.mxu2 }
 0x44e   : > { %v2958_v44 = vadd.f32 %v5808_v53, %v2957_v43 }
 0x450   : > { %vm3207_vm12 = vcmp.ge.f32.partialorder %v2958_v44, 0.0  ;;  %v3367_v48 = vmul.f32 0.2, %v2958_v44 }
 0x452   : > { %v3527_v57 = vsel %vm3207_vm12, %v2958_v44, %v3367_v48 }
 0x453   : > { %v3766_v25 = vsel %vm587_vm0, %v3527_v57, -inf }
 0x454   : > { %v6085_v58 = vmax.f32 %v3765_v31, %v3766_v25 }
 0x455   : > { %v2959_v14 = vpop.f32.mrf.mxu2 }
 0x456   : > { %v2960_v24 = vadd.f32 %v5808_v53, %v2959_v14 }
 0x458   : > { %vm3208_vm13 = vcmp.ge.f32.partialorder %v2960_v24, 0.0  ;;  %v3368_v11 = vmul.f32 0.2, %v2960_v24 }
 0x45a   : > { %v3528_v63 = vsel %vm3208_vm13, %v2960_v24, %v3368_v11  ;;  %4558 = vmatmul.msk.bf16.gmra.mxu2 %vm587_vm0, %v6672_v22  ;;  %v6679_v24 = vld [vmem:[#allocation27_spill] sm:$0xff]  ;;  %v6680_v11 = vld [vmem:[#allocation26_spill] sm:$0xff] }
 0x45b   : > { %v3805_v33 = vsel %vm587_vm0, %v3528_v63, -inf  ;;  %v6681_v63 = vpack.c.bf16 %v6679_v24, %v6680_v11 }
 0x45c   : > { %v6093_v28 = vmax.f32 %v3804_v61, %v3805_v33  ;;  %v6675_v61 = vpack.c.bf16 %v6673_v17, %v6674_v8  ;;  %v6683_v17 = vld [vmem:[#allocation28_spill] sm:$0xff] }
 0x45d   : > { %v2962_v29 = vpop.f32.mrf.mxu2 }
 0x45e   : > { %v2963_v51 = vadd.f32 %v5808_v53, %v2962_v29 }
 0x460   : > { %vm3209_vm14 = vcmp.ge.f32.partialorder %v2963_v51, 0.0  ;;  %v3369_v31 = vmul.f32 0.2, %v2963_v51 }
 0x462   : > { %v3529_v62 = vsel %vm3209_vm14, %v2963_v51, %v3369_v31 }
 0x463   : > { %v3844_v50 = vsel %vm587_vm0, %v3529_v62, -inf }
 0x464   : > { %v6097_v6 = vmax.f32 %v3843_v3, %v3844_v50 }
 0x465   : > { %v2964_v49 = vpop.f32.mrf.mxu2 }
 0x466   : > { %v2965_v45 = vadd.f32 %v5808_v53, %v2964_v49 }
 0x468   : > { %vm3210_vm15 = vcmp.ge.f32.partialorder %v2965_v45, 0.0  ;;  %v3370_v37 = vmul.f32 0.2, %v2965_v45 }
 0x46a   : > { %v3530_v2 = vsel %vm3210_vm15, %v2965_v45, %v3370_v37  ;;  %4559 = vmatmul.msk.bf16.gmra.mxu2 %vm587_vm0, %v6675_v61 }
 0x46b   : > { %v3883_v7 = vsel %vm587_vm0, %v3530_v2, -inf  ;;  %v6682_v2 = vld [vmem:[#allocation29_spill] sm:$0xff] }
 0x46c   : > { %v6105_v38 = vmax.f32 %v3882_v54, %v3883_v7  ;;  %v6676_v54 = vld [vmem:[#allocation25_spill] sm:$0xff]  ;;  %v6684_v8 = vpack.c.bf16 %v6682_v2, %v6683_v17 }
 0x46d   : > { %v2967_v41 = vpop.f32.mrf.mxu2  ;;  %v6678_v13 = vpack.c.bf16 %v6676_v54, %v6677_v18 }
 0x46e   : > { %v2968_v47 = vadd.f32 %v5808_v53, %v2967_v41 }
 0x470   : > { %vm3211_vm1 = vcmp.ge.f32.partialorder %v2968_v47, 0.0  ;;  %v3371_v3 = vmul.f32 0.2, %v2968_v47 }
 0x472   : > { %v3531_v32 = vsel %vm3211_vm1, %v2968_v47, %v3371_v3 }
 0x473   : > { %v6109_v55 = vsel %vm587_vm0, %v3531_v32, -inf }
 0x474   : > { %v3613_v60 = vmax.f32 %v6061_v59, %v6109_v55 }
 0x475   : > { %v2969_v0 = vpop.f32.mrf.mxu2 }
 0x476   : > { %v2970_v46 = vadd.f32 %v5808_v53, %v2969_v0  ;;  %v1642_v0 = vpop.f32.mrf.mxu3 }
 0x478   : > { %vm3212_vm2 = vcmp.ge.f32.partialorder %v2970_v46, 0.0  ;;  %v3372_v36 = vmul.f32 0.2, %v2970_v46 }
 0x47a   : > { %v3532_v30 = vsel %vm3212_vm2, %v2970_v46, %v3372_v36  ;;  %4560 = vmatmul.msk.bf16.gmra.mxu2 %vm587_vm0, %v6678_v13  ;;  %v6685_v13 = vpack.c.bf16 %v5479_v16, %v5476_v1 }
 0x47b   : > { %v6119_v5 = vsel %vm587_vm0, %v3532_v30, -inf }
 0x47c   : > { %v3652_v21 = vmax.f32 %v6069_v12, %v6119_v5 }
 0x47d   : > { %v2972_v26 = vpop.f32.mrf.mxu2 }
 0x47e   : > { %v2973_v59 = vadd.f32 %v5808_v53, %v2972_v26 }
 0x480   : > { %vm3213_vm3 = vcmp.ge.f32.partialorder %v2973_v59, 0.0  ;;  %v3373_v27 = vmul.f32 0.2, %v2973_v59 }
 0x482   : > { %v3533_v42 = vsel %vm3213_vm3, %v2973_v59, %v3373_v27 }
 0x483   : > { %v6125_v43 = vsel %vm587_vm0, %v3533_v42, -inf  ;;  %v1644_v42 = vpop.f32.mrf.mxu3 }
 0x484   : > { %v3691_v44 = vmax.f32 %v6073_v34, %v6125_v43 }
 0x485   : > { %v2974_v48 = vpop.f32.mrf.mxu2 }
 0x486   : > { %v2975_v57 = vadd.f32 %v5808_v53, %v2974_v48 }
 0x488   : > { %vm3214_vm4 = vcmp.ge.f32.partialorder %v2975_v57, 0.0  ;;  %v3374_v25 = vmul.f32 0.2, %v2975_v57 }
 0x48a   : > { %v3534_v14 = vsel %vm3214_vm4, %v2975_v57, %v3374_v25  ;;  %4561 = vmatmul.msk.bf16.gmra.mxu2 %vm587_vm0, %v6681_v63 }
 0x48b   : > { %v6135_v9 = vsel %vm587_vm0, %v3534_v14, -inf  ;;  %v6176_v11 = vpop.f32.mrf.mxu3 }
 0x48c   : > { %v3730_v10 = vmax.f32 %v6081_v40, %v6135_v9 }
 0x48d   : > { %v2977_v22 = vpop.f32.mrf.mxu2 }
 0x48e   : > { %v2978_v33 = vadd.f32 %v5808_v53, %v2977_v22 }
 0x490   : > { %vm3215_vm5 = vcmp.ge.f32.partialorder %v2978_v33, 0.0  ;;  %v3375_v29 = vmul.f32 0.2, %v2978_v33 }
 0x492   : > { %v3535_v51 = vsel %vm3215_vm5, %v2978_v33, %v3375_v29  ;;  %v6686_v33 = vpack.c.bf16 %v5508_v23, %v5505_v15 }
 0x493   : > { %v6141_v31 = vsel %vm587_vm0, %v3535_v51, -inf }
 0x494   : > { %v3769_v62 = vmax.f32 %v6085_v58, %v6141_v31  ;;  %v1838_v31 = vadd.f32 %v1642_v0, %v4893_v35 }
 0x495   : > { %v2979_v50 = vpop.f32.mrf.mxu2 }
 0x496   : > { %v2980_v49 = vadd.f32 %v5808_v53, %v2979_v50  ;;  %vm1998_vm1 = vcmp.ge.f32.partialorder %v1838_v31, 0.0 }
 0x498   : > { %vm3216_vm6 = vcmp.ge.f32.partialorder %v2980_v49, 0.0  ;;  %v3376_v45 = vmul.f32 0.2, %v2980_v49 }
 0x49a   : > { %v3536_v37 = vsel %vm3216_vm6, %v2980_v49, %v3376_v45  ;;  %4562 = vmatmul.msk.bf16.gmra.mxu2 %vm587_vm0, %v6684_v8  ;;  %v1649_v45 = vpop.f32.mrf.mxu3  ;;  %v6688_v8 = vld [vmem:[#allocation30_spill] sm:$0xff] }
 0x49b   : > { %v6151_v61 = vsel %vm587_vm0, %v3536_v37, -inf }
 0x49c   : > { %v3808_v7 = vmax.f32 %v6093_v28, %v6151_v61 }
 0x49d   : > { %v2982_v41 = vpop.f32.mrf.mxu2 }
 0x49e   : > { %v2983_v47 = vadd.f32 %v5808_v53, %v2982_v41 }
 0x4a0   : > { %vm3217_vm7 = vcmp.ge.f32.partialorder %v2983_v47, 0.0  ;;  %v3377_v3 = vmul.f32 0.2, %v2983_v47 }
 0x4a2   : > { %v3537_v32 = vsel %vm3217_vm7, %v2983_v47, %v3377_v3  ;;  %v6201_v3 = vpop.f32.mrf.mxu3 }
 0x4a3   : > { %v6157_v55 = vsel %vm587_vm0, %v3537_v32, -inf }
 0x4a4   : > { %v3847_v46 = vmax.f32 %v6097_v6, %v6157_v55 }
 0x4a5   : > { %v2984_v36 = vpop.f32.mrf.mxu2 }
 0x4a6   : > { %v2985_v30 = vadd.f32 %v5808_v53, %v2984_v36 }
 0x4a8   : > { %vm3218_vm8 = vcmp.ge.f32.partialorder %v2985_v30, 0.0  ;;  %v3378_v54 = vmul.f32 0.2, %v2985_v30 }
 0x4aa   : > { %v3538_v18 = vsel %vm3218_vm8, %v2985_v30, %v3378_v54  ;;  %4563 = vmatmul.msk.bf16.gmra.mxu2 %vm587_vm0, %v6685_v13  ;;  %v1654_v13 = vpop.f32.mrf.mxu3 }
 0x4ab   : > { %v6167_v26 = vsel %vm587_vm0, %v3538_v18, -inf }
 0x4ac   : > { %v3886_v59 = vmax.f32 %v6105_v38, %v6167_v26 }
 0x4ad   : > { %v2987_v27 = vpop.f32.mrf.mxu2 }
 0x4ae   : > { %v2988_v48 = vadd.f32 %v5808_v53, %v2987_v27 }
 0x4b0   : > { %vm3219_vm9 = vcmp.ge.f32.partialorder %v2988_v48, 0.0  ;;  %v3379_v57 = vmul.f32 0.2, %v2988_v48 }
 0x4b2   : > { %v3539_v25 = vsel %vm3219_vm9, %v2988_v48, %v3379_v57  ;;  %v6691_v48 = vld [vmem:[#allocation32_spill] sm:$0xff] }
 0x4b3   : > { %v3614_v14 = vsel %vm587_vm0, %v3539_v25, -inf }
 0x4b4   : > { %v6173_v24 = vmax.f32 %v3613_v60, %v3614_v14 }
 0x4b5   : > { %v2989_v1 = vpop.f32.mrf.mxu2 }
 0x4b6   : > { %v2990_v16 = vadd.f32 %v5808_v53, %v2989_v1 }
 0x4b8   : > { %vm3220_vm10 = vcmp.ge.f32.partialorder %v2990_v16, 0.0  ;;  %v3380_v63 = vmul.f32 0.2, %v2990_v16 }
 0x4ba   : > { %v3540_v22 = vsel %vm3220_vm10, %v2990_v16, %v3380_v63  ;;  %4564 = vmatmul.msk.bf16.gmra.mxu2 %vm587_vm0, %v6686_v33  ;;  %v6229_v16 = vpop.f32.mrf.mxu3 }
 0x4bb   : > { %v3653_v29 = vsel %vm587_vm0, %v3540_v22, -inf  ;;  %v2158_v22 = vmul.f32 0.2, %v1838_v31 }
 0x4bc   : > { %v6186_v60 = vmax.f32 %v3652_v21, %v3653_v29  ;;  %v6687_v21 = vld [vmem:[#allocation31_spill] sm:$0xff] }
 0x4bd   : > { %v2992_v51 = vpop.f32.mrf.mxu2  ;;  %v6689_v41 = vpack.c.bf16 %v6687_v21, %v6688_v8 }
 0x4be   : > { %v2993_v50 = vadd.f32 %v5808_v53, %v2992_v51 }
 0x4c0   : > { %vm3221_vm11 = vcmp.ge.f32.partialorder %v2993_v50, 0.0  ;;  %v3381_v49 = vmul.f32 0.2, %v2993_v50 }
 0x4c2   : > { %v3541_v37 = vsel %vm3221_vm11, %v2993_v50, %v3381_v49 }
 0x4c3   : > { %v3692_v2 = vsel %vm587_vm0, %v3541_v37, -inf  ;;  %v1659_v37 = vpop.f32.mrf.mxu3 }
 0x4c4   : > { %v6193_v15 = vmax.f32 %v3691_v44, %v3692_v2 }
 0x4c5   : > { %v2994_v23 = vpop.f32.mrf.mxu2 }
 0x4c6   : > { %v2995_v17 = vadd.f32 %v5808_v53, %v2994_v23  ;;  %v1841_v23 = vadd.f32 %v1649_v45, %v4912_v56 }
 0x4c8   : > { %vm3222_vm12 = vcmp.ge.f32.partialorder %v2995_v17, 0.0  ;;  %v3382_v12 = vmul.f32 0.2, %v2995_v17  ;;  %v2161_v8 = vmul.f32 0.2, %v1841_v23  ;;  %vm2001_vm6 = vcmp.ge.f32.partialorder %v1841_v23, 0.0 }
 0x4ca   : > { %v3542_v5 = vsel %vm3222_vm12, %v2995_v17, %v3382_v12  ;;  %4565 = vmatmul.msk.bf16.gmra.mxu2 %vm587_vm0, %v6689_v41 }
 0x4cb   : > { %v3731_v47 = vsel %vm587_vm0, %v3542_v5, -inf  ;;  %v6257_v38 = vpop.f32.mrf.mxu3 }
 0x4cc   : > { %v6206_v34 = vmax.f32 %v3730_v10, %v3731_v47  ;;  %v6690_v10 = vld [vmem:[#allocation33_spill] sm:$0xff] }
 0x4cd   : > { %v2997_v43 = vpop.f32.mrf.mxu2  ;;  %v6692_v57 = vpack.c.bf16 %v6690_v10, %v6691_v48 }
 0x4ce   : > { %v2998_v44 = vadd.f32 %v5808_v53, %v2997_v43 }
 0x4d0   : > { %vm3223_vm13 = vcmp.ge.f32.partialorder %v2998_v44, 0.0  ;;  %v3383_v32 = vmul.f32 0.2, %v2998_v44 }
 0x4d2   : > { %v3543_v36 = vsel %vm3223_vm13, %v2998_v44, %v3383_v32 }
 0x4d3   : > { %v3770_v30 = vsel %vm587_vm0, %v3543_v36, -inf  ;;  %v1664_v48 = vpop.f32.mrf.mxu3 }
 0x4d4   : > { %v6213_v54 = vmax.f32 %v3769_v62, %v3770_v30  ;;  %v1839_v62 = vadd.f32 %v1644_v42, %v4899_v39 }
 0x4d5   : > { %v2999_v18 = vpop.f32.mrf.mxu2 }
 0x4d6   : > { %v3000_v27 = vadd.f32 %v5808_v53, %v2999_v18  ;;  %v2159_v33 = vmul.f32 0.2, %v1839_v62  ;;  %vm1999_vm2 = vcmp.ge.f32.partialorder %v1839_v62, 0.0 }
 0x4d8   : > { %vm3224_vm14 = vcmp.ge.f32.partialorder %v3000_v27, 0.0  ;;  %v3384_v40 = vmul.f32 0.2, %v3000_v27  ;;  %v2319_v0 = vsel %vm1999_vm2, %v1839_v62, %v2159_v33 }
 0x4da   : > { %v3544_v9 = vsel %vm3224_vm14, %v3000_v27, %v3384_v40  ;;  %4566 = vmatmul.msk.bf16.gmra.mxu2 %vm587_vm0, %v6692_v57  ;;  %v1842_v27 = vadd.f32 %v6201_v3, %v4919_v4  ;;  %v6693_v40 = vld [vmem:[#allocation2_spill] sm:$0xff] }
 0x4db   : > { %v3809_v25 = vsel %vm587_vm0, %v3544_v9, -inf  ;;  %v1843_v9 = vadd.f32 %v1654_v13, %v6693_v40 }
 0x4dc   : > { %v6224_v58 = vmax.f32 %v3808_v7, %v3809_v25  ;;  %v2318_v7 = vsel %vm1998_vm1, %v1838_v31, %v2158_v22  ;;  %v2162_v31 = vmul.f32 0.2, %v1842_v27  ;;  %vm2002_vm9 = vcmp.ge.f32.partialorder %v1842_v27, 0.0 }
 0x4dd   : > { %v3002_v14 = vpop.f32.mrf.mxu2  ;;  %v2419_v50 = vpack.c.bf16 %v2319_v0, %v2318_v7  ;;  %v2163_v62 = vmul.f32 0.2, %v1843_v9  ;;  %vm2003_vm10 = vcmp.ge.f32.partialorder %v1843_v9, 0.0 }
 0x4de   : > { %v3003_v1 = vadd.f32 %v5808_v53, %v3002_v14  ;;  %v6240_v53 = vld [vmem:[%s6544_s6] ss:$0 sm:$0xff]  ;;  %v2322_v3 = vsel %vm2002_vm9, %v1842_v27, %v2162_v31  ;;  %v1846_v27 = vadd.f32 %v6257_v38, %v4893_v35 }
 0x4df   : > { %v2323_v22 = vsel %vm2003_vm10, %v1843_v9, %v2163_v62  ;;  %v1847_v9 = vadd.f32 %v1664_v48, %v4899_v39 }
 0x4e0   : > { %vm3225_vm15 = vcmp.ge.f32.partialorder %v3003_v1, 0.0  ;;  %v3385_v63 = vmul.f32 0.2, %v3003_v1  ;;  %v2166_v31 = vmul.f32 0.2, %v1846_v27  ;;  %vm2006_vm2 = vcmp.ge.f32.partialorder %v1846_v27, 0.0 }
 0x4e1   : > { %v2167_v62 = vmul.f32 0.2, %v1847_v9 }
 0x4e2   : > { %v3545_v29 = vsel %vm3225_vm15, %v3003_v1, %v3385_v63 }
 0x4e3   : > { %v3848_v28 = vsel %vm587_vm0, %v3545_v29, -inf  ;;  %v2421_v29 = vpack.c.bf16 %v2323_v22, %v2322_v3 }
 0x4e4   : > { %v6235_v61 = vmax.f32 %v3847_v46, %v3848_v28  ;;  %v1840_v46 = vadd.f32 %v6176_v11, %v4906_v52  ;;  %v2321_v11 = vsel %vm2001_vm6, %v1841_v23, %v2161_v8  ;;  %v1667_v28 = vpop.f32.mrf.mxu3 }
 0x4e5   : > { %v3004_v42 = vpop.f32.mrf.mxu2 }
 0x4e6   : > { %v3005_v51 = vadd.f32 %v6240_v53, %v3004_v42  ;;  %v2160_v21 = vmul.f32 0.2, %v1840_v46  ;;  %vm2000_vm5 = vcmp.ge.f32.partialorder %v1840_v46, 0.0 }
 0x4e8   : > { %vm3226_vm3 = vcmp.ge.f32.partialorder %v3005_v51, 0.0  ;;  %v3386_v49 = vmul.f32 0.2, %v3005_v51 }
 0x4ea   : > { %v3546_v2 = vsel %vm3226_vm3, %v3005_v51, %v3386_v49  ;;  %4567 = vmatmul.msk.bf16.gmra.mxu2 %vm587_vm0, %v2419_v50  ;;  %v1844_v50 = vadd.f32 %v6229_v16, %v4936_v19  ;;  %v1845_v49 = vadd.f32 %v1659_v37, %v4941_v20  ;;  %vm2007_vm3 = vcmp.ge.f32.partialorder %v1847_v9, 0.0 }
 0x4eb   : > { %v3887_v6 = vsel %vm587_vm0, %v3546_v2, -inf  ;;  %v2327_v38 = vsel %vm2007_vm3, %v1847_v9, %v2167_v62 }
 0x4ec   : > { %v6248_v55 = vmax.f32 %v3886_v59, %v3887_v6  ;;  %v2320_v59 = vsel %vm2000_vm5, %v1840_v46, %v2160_v21  ;;  %v2164_v23 = vmul.f32 0.2, %v1844_v50  ;;  %vm2004_vm13 = vcmp.ge.f32.partialorder %v1844_v50, 0.0 }
 0x4ed   : > { %v3007_v17 = vpop.f32.mrf.mxu2  ;;  %v2420_v44 = vpack.c.bf16 %v2321_v11, %v2320_v59  ;;  %vm2005_vm14 = vcmp.ge.f32.partialorder %v1845_v49, 0.0 }
 0x4ee   : > { %v3008_v12 = vadd.f32 %v6240_v53, %v3007_v17  ;;  %v2165_v17 = vmul.f32 0.2, %v1845_v49  ;;  %v2324_v16 = vsel %vm2004_vm13, %v1844_v50, %v2164_v23 }
 0x4f0   : > { %vm3227_vm4 = vcmp.ge.f32.partialorder %v3008_v12, 0.0  ;;  %v3387_v5 = vmul.f32 0.2, %v3008_v12 }
 0x4f2   : > { %v3547_v41 = vsel %vm3227_vm4, %v3008_v12, %v3387_v5  ;;  %v1669_v12 = vpop.f32.mrf.mxu3 }
 0x4f3   : > { %v6255_v47 = vsel %vm587_vm0, %v3547_v41, -inf  ;;  %v2325_v41 = vsel %vm2005_vm14, %v1845_v49, %v2165_v17 }
 0x4f4   : > { %v3617_v26 = vmax.f32 %v6173_v24, %v6255_v47  ;;  %v2422_v11 = vpack.c.bf16 %v2325_v41, %v2324_v16 }
 0x4f5   : > { %v3009_v45 = vpop.f32.mrf.mxu2 }
 0x4f6   : > { %v3010_v43 = vadd.f32 %v6240_v53, %v3009_v45 }
 0x4f8   : > { %vm3228_vm7 = vcmp.ge.f32.partialorder %v3010_v43, 0.0  ;;  %v3388_v32 = vmul.f32 0.2, %v3010_v43 }
 0x4fa   : > { %v3548_v36 = vsel %vm3228_vm7, %v3010_v43, %v3388_v32  ;;  %4568 = vmatmul.msk.bf16.gmra.mxu2 %vm587_vm0, %v2420_v44  ;;  %v1672_v32 = vpop.f32.mrf.mxu3 }
 0x4fb   : > { %v6264_v30 = vsel %vm587_vm0, %v3548_v36, -inf  ;;  %v1850_v47 = vadd.f32 %v1672_v32, %v4919_v4 }
 0x4fc   : > { %v3656_v18 = vmax.f32 %v6186_v60, %v6264_v30 }
 0x4fd   : > { %v3012_v10 = vpop.f32.mrf.mxu2  ;;  %vm2010_vm10 = vcmp.ge.f32.partialorder %v1850_v47, 0.0 }
 0x4fe   : > { %v3013_v57 = vadd.f32 %v6240_v53, %v3012_v10 }
 0x500   : > { %vm3229_vm8 = vcmp.ge.f32.partialorder %v3013_v57, 0.0  ;;  %v3389_v25 = vmul.f32 0.2, %v3013_v57 }
 0x502   : > { %v3549_v14 = vsel %vm3229_vm8, %v3013_v57, %v3389_v25  ;;  %v1674_v48 = vpop.f32.mrf.mxu3 }
 0x503   : > { %v6273_v1 = vsel %vm587_vm0, %v3549_v14, -inf }
 0x504   : > { %v3695_v63 = vmax.f32 %v6193_v15, %v6273_v1 }
 0x505   : > { %v3014_v13 = vpop.f32.mrf.mxu2 }
 0x506   : > { %v3015_v33 = vadd.f32 %v6240_v53, %v3014_v13  ;;  %v2326_v13 = vsel %vm2006_vm2, %v1846_v27, %v2166_v31 }
 0x508   : > { %vm3230_vm11 = vcmp.ge.f32.partialorder %v3015_v33, 0.0  ;;  %v3390_v7 = vmul.f32 0.2, %v3015_v33 }
 0x50a   : > { %v3550_v0 = vsel %vm3230_vm11, %v3015_v33, %v3390_v7  ;;  %4569 = vmatmul.msk.bf16.gmra.mxu2 %vm587_vm0, %v2421_v29  ;;  %v2423_v7 = vpack.c.bf16 %v2327_v38, %v2326_v13  ;;  %v2170_v38 = vmul.f32 0.2, %v1850_v47 }
 0x50b   : > { %v6280_v42 = vsel %vm587_vm0, %v3550_v0, -inf }
 0x50c   : > { %v3734_v51 = vmax.f32 %v6206_v34, %v6280_v42  ;;  %v2330_v30 = vsel %vm2010_vm10, %v1850_v47, %v2170_v38 }
 0x50d   : > { %v3017_v2 = vpop.f32.mrf.mxu2 }
 0x50e   : > { %v3018_v6 = vadd.f32 %v6240_v53, %v3017_v2 }
 0x510   : > { %vm3231_vm12 = vcmp.ge.f32.partialorder %v3018_v6, 0.0  ;;  %v3391_v46 = vmul.f32 0.2, %v3018_v6 }
 0x512   : > { %v3551_v5 = vsel %vm3231_vm12, %v3018_v6, %v3391_v46  ;;  %v1848_v6 = vadd.f32 %v1667_v28, %v4906_v52  ;;  %v1849_v46 = vadd.f32 %v1669_v12, %v4912_v56 }
 0x513   : > { %v6289_v21 = vsel %vm587_vm0, %v3551_v5, -inf  ;;  %v1677_v5 = vpop.f32.mrf.mxu3 }
 0x514   : > { %v3773_v8 = vmax.f32 %v6213_v54, %v6289_v21  ;;  %v2168_v41 = vmul.f32 0.2, %v1848_v6  ;;  %vm2008_vm6 = vcmp.ge.f32.partialorder %v1848_v6, 0.0  ;;  %vm2009_vm7 = vcmp.ge.f32.partialorder %v1849_v46, 0.0 }
 0x515   : > { %v3019_v37 = vpop.f32.mrf.mxu2  ;;  %v1852_v15 = vadd.f32 %v1677_v5, %v4936_v19 }
 0x516   : > { %v3020_v59 = vadd.f32 %v6240_v53, %v3019_v37  ;;  %v2169_v37 = vmul.f32 0.2, %v1849_v46  ;;  %v2328_v28 = vsel %vm2008_vm6, %v1848_v6, %v2168_v41 }
 0x517   : > { %vm2012_vm14 = vcmp.ge.f32.partialorder %v1852_v15, 0.0 }
 0x518   : > { %vm3232_vm15 = vcmp.ge.f32.partialorder %v3020_v59, 0.0  ;;  %v3392_v45 = vmul.f32 0.2, %v3020_v59  ;;  %v2329_v12 = vsel %vm2009_vm7, %v1849_v46, %v2169_v37 }
 0x519   : > { %v2424_v9 = vpack.c.bf16 %v2329_v12, %v2328_v28 }
 0x51a   : > { %v3552_v43 = vsel %vm3232_vm15, %v3020_v59, %v3392_v45  ;;  %4570 = vmatmul.msk.bf16.gmra.mxu2 %vm587_vm0, %v2422_v11 }
 0x51b   : > { %v6296_v44 = vsel %vm587_vm0, %v3552_v43, -inf }
 0x51c   : > { %v3812_v36 = vmax.f32 %v6224_v58, %v6296_v44 }
 0x51d   : > { %v3022_v10 = vpop.f32.mrf.mxu2 }
 0x51e   : > { %v3023_v57 = vadd.f32 %v6240_v53, %v3022_v10 }
 0x520   : > { %vm3233_vm1 = vcmp.ge.f32.partialorder %v3023_v57, 0.0  ;;  %v3393_v25 = vmul.f32 0.2, %v3023_v57 }
 0x522   : > { %v3553_v14 = vsel %vm3233_vm1, %v3023_v57, %v3393_v25  ;;  %v1679_v57 = vpop.f32.mrf.mxu3 }
 0x523   : > { %v6305_v3 = vsel %vm587_vm0, %v3553_v14, -inf  ;;  %v1853_v1 = vadd.f32 %v1679_v57, %v4941_v20 }
 0x524   : > { %v3851_v22 = vmax.f32 %v6235_v61, %v6305_v3 }
 0x525   : > { %v3024_v33 = vpop.f32.mrf.mxu2  ;;  %vm2013_vm15 = vcmp.ge.f32.partialorder %v1853_v1, 0.0 }
 0x526   : > { %v3025_v29 = vadd.f32 %v6240_v53, %v3024_v33 }
 0x528   : > { %vm3234_vm4 = vcmp.ge.f32.partialorder %v3025_v29, 0.0  ;;  %v3394_v0 = vmul.f32 0.2, %v3025_v29 }
 0x52a   : > { %v3554_v50 = vsel %vm3234_vm4, %v3025_v29, %v3394_v0  ;;  %4571 = vmatmul.msk.bf16.gmra.mxu2 %vm587_vm0, %v2423_v7  ;;  %v1682_v0 = vpop.f32.mrf.mxu3 }
 0x52b   : > { %v6312_v49 = vsel %vm587_vm0, %v3554_v50, -inf  ;;  %v1854_v21 = vadd.f32 %v1682_v0, %v4893_v35 }
 0x52c   : > { %v3890_v2 = vmax.f32 %v6248_v55, %v6312_v49 }
 0x52d   : > { %v3027_v23 = vpop.f32.mrf.mxu2  ;;  %vm2014_vm3 = vcmp.ge.f32.partialorder %v1854_v21, 0.0 }
 0x52e   : > { %v3028_v17 = vadd.f32 %v6240_v53, %v3027_v23 }
 0x530   : > { %vm3235_vm5 = vcmp.ge.f32.partialorder %v3028_v17, 0.0  ;;  %v3395_v16 = vmul.f32 0.2, %v3028_v17 }
 0x532   : > { %v3555_v59 = vsel %vm3235_vm5, %v3028_v17, %v3395_v16  ;;  %v1684_v16 = vpop.f32.mrf.mxu3 }
 0x533   : > { %v3618_v11 = vsel %vm587_vm0, %v3555_v59, -inf  ;;  %v2172_v59 = vmul.f32 0.2, %v1852_v15 }
 0x534   : > { %v6323_v45 = vmax.f32 %v3617_v26, %v3618_v11  ;;  %v1851_v26 = vadd.f32 %v1674_v48, %v6693_v40  ;;  %v2173_v11 = vmul.f32 0.2, %v1853_v1 }
 0x535   : > { %v3029_v43 = vpop.f32.mrf.mxu2  ;;  %v2332_v42 = vsel %vm2012_vm14, %v1852_v15, %v2172_v59 }
 0x536   : > { %v3030_v27 = vadd.f32 %v6240_v53, %v3029_v43  ;;  %v2171_v33 = vmul.f32 0.2, %v1851_v26  ;;  %vm2011_vm11 = vcmp.ge.f32.partialorder %v1851_v26, 0.0 }
 0x538   : > { %vm3236_vm8 = vcmp.ge.f32.partialorder %v3030_v27, 0.0  ;;  %v3396_v10 = vmul.f32 0.2, %v3030_v27 }
 0x53a   : > { %v3556_v25 = vsel %vm3236_vm8, %v3030_v27, %v3396_v10  ;;  %4572 = vmatmul.msk.bf16.gmra.mxu2 %vm587_vm0, %v2424_v9  ;;  %v1687_v9 = vpop.f32.mrf.mxu3 }
 0x53b   : > { %v3657_v31 = vsel %vm587_vm0, %v3556_v25, -inf  ;;  %v1856_v3 = vadd.f32 %v1687_v9, %v4906_v52 }
 0x53c   : > { %v6331_v24 = vmax.f32 %v3656_v18, %v3657_v31  ;;  %v2331_v18 = vsel %vm2011_vm11, %v1851_v26, %v2171_v33 }
 0x53d   : > { %v3032_v62 = vpop.f32.mrf.mxu2  ;;  %v2425_v50 = vpack.c.bf16 %v2331_v18, %v2330_v30  ;;  %vm2016_vm7 = vcmp.ge.f32.partialorder %v1856_v3, 0.0 }
 0x53e   : > { %v3033_v14 = vadd.f32 %v6240_v53, %v3032_v62  ;;  %v2174_v62 = vmul.f32 0.2, %v1854_v21 }
 0x540   : > { %vm3237_vm9 = vcmp.ge.f32.partialorder %v3033_v14, 0.0  ;;  %v3397_v13 = vmul.f32 0.2, %v3033_v14  ;;  %v2334_v35 = vsel %vm2014_vm3, %v1854_v21, %v2174_v62 }
 0x542   : > { %v3557_v29 = vsel %vm3237_vm9, %v3033_v14, %v3397_v13  ;;  %v1689_v13 = vpop.f32.mrf.mxu3 }
 0x543   : > { %v3696_v7 = vsel %vm587_vm0, %v3557_v29, -inf }
 0x544   : > { %v6340_v60 = vmax.f32 %v3695_v63, %v3696_v7 }
 0x545   : > { %v3034_v32 = vpop.f32.mrf.mxu2 }
 0x546   : > { %v3035_v48 = vadd.f32 %v6240_v53, %v3034_v32 }
 0x548   : > { %vm3238_vm12 = vcmp.ge.f32.partialorder %v3035_v48, 0.0  ;;  %v3398_v6 = vmul.f32 0.2, %v3035_v48 }
 0x54a   : > { %v3558_v46 = vsel %vm3238_vm12, %v3035_v48, %v3398_v6  ;;  %4573 = vmatmul.msk.bf16.gmra.mxu2 %vm587_vm0, %v2425_v50  ;;  %v1692_v18 = vpop.f32.mrf.mxu3  ;;  %v2176_v6 = vmul.f32 0.2, %v1856_v3 }
 0x54b   : > { %v3735_v23 = vsel %vm587_vm0, %v3558_v46, -inf }
 0x54c   : > { %v6348_v17 = vmax.f32 %v3734_v51, %v3735_v23  ;;  %v2333_v51 = vsel %vm2013_vm15, %v1853_v1, %v2173_v11  ;;  %v2336_v49 = vsel %vm2016_vm7, %v1856_v3, %v2176_v6 }
 0x54d   : > { %v3037_v63 = vpop.f32.mrf.mxu2  ;;  %v2426_v27 = vpack.c.bf16 %v2333_v51, %v2332_v42  ;;  %v1858_v42 = vadd.f32 %v1692_v18, %v4919_v4 }
 0x54e   : > { %v3038_v41 = vadd.f32 %v6240_v53, %v3037_v63 }
 0x54f   : > { %v2178_v9 = vmul.f32 0.2, %v1858_v42  ;;  %vm2018_vm12 = vcmp.ge.f32.partialorder %v1858_v42, 0.0 }
 0x550   : > { %vm3239_vm13 = vcmp.ge.f32.partialorder %v3038_v41, 0.0  ;;  %v3399_v37 = vmul.f32 0.2, %v3038_v41 }
 0x552   : > { %v3559_v28 = vsel %vm3239_vm13, %v3038_v41, %v3399_v37 }
 0x553   : > { %v3774_v12 = vsel %vm587_vm0, %v3559_v28, -inf }
 0x554   : > { %v6357_v34 = vmax.f32 %v3773_v8, %v3774_v12  ;;  %v1855_v8 = vadd.f32 %v1684_v16, %v4899_v39 }
 0x555   : > { %v3039_v5 = vpop.f32.mrf.mxu2 }
 0x556   : > { %v3040_v43 = vadd.f32 %v6240_v53, %v3039_v5  ;;  %v2175_v14 = vmul.f32 0.2, %v1855_v8  ;;  %vm2015_vm4 = vcmp.ge.f32.partialorder %v1855_v8, 0.0 }
 0x558   : > { %vm3240_vm1 = vcmp.ge.f32.partialorder %v3040_v43, 0.0  ;;  %v3400_v10 = vmul.f32 0.2, %v3040_v43  ;;  %v2335_v39 = vsel %vm2015_vm4, %v1855_v8, %v2175_v14  ;;  %v2338_v8 = vsel %vm2018_vm12, %v1858_v42, %v2178_v9 }
 0x559   : > { %v2427_v29 = vpack.c.bf16 %v2335_v39, %v2334_v35 }
 0x55a   : > { %v3560_v57 = vsel %vm3240_vm1, %v3040_v43, %v3400_v10  ;;  %4574 = vmatmul.msk.bf16.gmra.mxu2 %vm587_vm0, %v2426_v27 }
 0x55b   : > { %v3813_v25 = vsel %vm587_vm0, %v3560_v57, -inf }
 0x55c   : > { %v6365_v54 = vmax.f32 %v3812_v36, %v3813_v25 }
 0x55d   : > { %v3042_v31 = vpop.f32.mrf.mxu2 }
 0x55e   : > { %v3043_v47 = vadd.f32 %v6240_v53, %v3042_v31 }
 0x560   : > { %vm3241_vm2 = vcmp.ge.f32.partialorder %v3043_v47, 0.0  ;;  %v3401_v26 = vmul.f32 0.2, %v3043_v47 }
 0x562   : > { %v3561_v38 = vsel %vm3241_vm2, %v3043_v47, %v3401_v26 }
 0x563   : > { %v3852_v33 = vsel %vm587_vm0, %v3561_v38, -inf }
 0x564   : > { %v6374_v58 = vmax.f32 %v3851_v22, %v3852_v33  ;;  %v1857_v22 = vadd.f32 %v1689_v13, %v4912_v56  ;;  %v1694_v56 = vpop.f32.mrf.mxu3 }
 0x565   : > { %v3044_v44 = vpop.f32.mrf.mxu2  ;;  %v1859_v11 = vadd.f32 %v1694_v56, %v6693_v40 }
 0x566   : > { %v3045_v36 = vadd.f32 %v6240_v53, %v3044_v44  ;;  %v2177_v46 = vmul.f32 0.2, %v1857_v22  ;;  %vm2017_vm8 = vcmp.ge.f32.partialorder %v1857_v22, 0.0 }
 0x567   : > { %v2179_v43 = vmul.f32 0.2, %v1859_v11  ;;  %vm2019_vm11 = vcmp.ge.f32.partialorder %v1859_v11, 0.0 }
 0x568   : > { %vm3242_vm5 = vcmp.ge.f32.partialorder %v3045_v36, 0.0  ;;  %v3402_v7 = vmul.f32 0.2, %v3045_v36  ;;  %v2337_v52 = vsel %vm2017_vm8, %v1857_v22, %v2177_v46  ;;  %vm3907_vm8 = vcmask 519168  }
 0x569   : > { %v2428_v63 = vpack.c.bf16 %v2337_v52, %v2336_v49  ;;  %v2339_v40 = vsel %vm2019_vm11, %v1859_v11, %v2179_v43 }
 0x56a   : > { %v3562_v0 = vsel %vm3242_vm5, %v3045_v36, %v3402_v7  ;;  %4575 = vmatmul.msk.bf16.gmra.mxu2 %vm587_vm0, %v2427_v29  ;;  %v2429_v4 = vpack.c.bf16 %v2339_v40, %v2338_v8 }
 0x56b   : > { %v3891_v30 = vsel %vm587_vm0, %v3562_v0, -inf }
 0x56c   : > { %v6382_v61 = vmax.f32 %v3890_v2, %v3891_v30  ;;  %v1697_v51 = vpop.f32.mrf.mxu3 }
 0x56d   : > { %v3047_v32 = vpop.f32.mrf.mxu2  ;;  %v1860_v35 = vadd.f32 %v1697_v51, %v4936_v19 }
 0x56e   : > { %v3048_v48 = vadd.f32 %v6240_v53, %v3047_v32 }
 0x56f   : > { %v2180_v29 = vmul.f32 0.2, %v1860_v35  ;;  %vm2020_vm1 = vcmp.ge.f32.partialorder %v1860_v35, 0.0 }
 0x570   : > { %vm3243_vm6 = vcmp.ge.f32.partialorder %v3048_v48, 0.0  ;;  %v3403_v50 = vmul.f32 0.2, %v3048_v48 }
 0x571   : > { %v2340_v3 = vsel %vm2020_vm1, %v1860_v35, %v2180_v29 }
 0x572   : > { %v3563_v23 = vsel %vm3243_vm6, %v3048_v48, %v3403_v50 }
 0x573   : > { %v6388_v15 = vsel %vm587_vm0, %v3563_v23, -inf }
 0x574   : > { %v3621_v55 = vmax.f32 %v6323_v45, %v6388_v15  ;;  %v1699_v47 = vpop.f32.mrf.mxu3 }
 0x575   : > { %v3049_v2 = vpop.f32.mrf.mxu2  ;;  %v1861_v13 = vadd.f32 %v1699_v47, %v4941_v20 }
 0x576   : > { %v3050_v1 = vadd.f32 %v6240_v53, %v3049_v2 }
 0x577   : > { %v2181_v44 = vmul.f32 0.2, %v1861_v13  ;;  %vm2021_vm15 = vcmp.ge.f32.partialorder %v1861_v13, 0.0 }
 0x578   : > { %vm3244_vm9 = vcmp.ge.f32.partialorder %v3050_v1, 0.0  ;;  %v3404_v16 = vmul.f32 0.2, %v3050_v1 }
 0x579   : > { %v2341_v30 = vsel %vm2021_vm15, %v1861_v13, %v2181_v44 }
 0x57a   : > { %v3564_v41 = vsel %vm3244_vm9, %v3050_v1, %v3404_v16  ;;  %4576 = vmatmul.msk.bf16.gmra.mxu2 %vm587_vm0, %v2428_v63  ;;  %v2430_v22 = vpack.c.bf16 %v2341_v30, %v2340_v3 }
 0x57b   : > { %v6395_v37 = vsel %vm587_vm0, %v3564_v41, -inf }
 0x57c   : > { %v3660_v59 = vmax.f32 %v6331_v24, %v6395_v37 }
 0x57d   : > { %v3052_v28 = vpop.f32.mrf.mxu2 }
 0x57e   : > { %v3053_v12 = vadd.f32 %v6240_v53, %v3052_v28 }
 0x580   : > { %vm3245_vm10 = vcmp.ge.f32.partialorder %v3053_v12, 0.0  ;;  %v3405_v5 = vmul.f32 0.2, %v3053_v12 }
 0x582   : > { %v3565_v27 = vsel %vm3245_vm10, %v3053_v12, %v3405_v5 }
 0x583   : > { %v6403_v10 = vsel %vm587_vm0, %v3565_v27, -inf }
 0x584   : > { %v3699_v57 = vmax.f32 %v6340_v60, %v6403_v10 }
 0x585   : > { %v3054_v25 = vpop.f32.mrf.mxu2 }
 0x586   : > { %v3055_v21 = vadd.f32 %v6240_v53, %v3054_v25 }
 0x588   : > { %vm3246_vm13 = vcmp.ge.f32.partialorder %v3055_v21, 0.0  ;;  %v3406_v31 = vmul.f32 0.2, %v3055_v21 }
 0x58a   : > { %v3566_v26 = vsel %vm3246_vm13, %v3055_v21, %v3406_v31  ;;  %4577 = vmatmul.msk.bf16.gmra.mxu2 %vm587_vm0, %v2429_v4 }
 0x58b   : > { %v6410_v62 = vsel %vm587_vm0, %v3566_v26, -inf }
 0x58c   : > { %v3738_v14 = vmax.f32 %v6348_v17, %v6410_v62 }
 0x58d   : > { %v3057_v38 = vpop.f32.mrf.mxu2 }
 0x58e   : > { %v3058_v33 = vadd.f32 %v6240_v53, %v3057_v38 }
 0x590   : > { %vm3247_vm14 = vcmp.ge.f32.partialorder %v3058_v33, 0.0  ;;  %v3407_v39 = vmul.f32 0.2, %v3058_v33 }
 0x592   : > { %v3567_v36 = vsel %vm3247_vm14, %v3058_v33, %v3407_v39 }
 0x593   : > { %v6418_v7 = vsel %vm587_vm0, %v3567_v36, -inf }
 0x594   : > { %v3777_v0 = vmax.f32 %v6357_v34, %v6418_v7 }
 0x595   : > { %v3059_v20 = vpop.f32.mrf.mxu2 }
 0x596   : > { %v3060_v18 = vadd.f32 %v6240_v53, %v3059_v20 }
 0x598   : > { %vm3248_vm2 = vcmp.ge.f32.partialorder %v3060_v18, 0.0  ;;  %v3408_v19 = vmul.f32 0.2, %v3060_v18 }
 0x59a   : > { %v3568_v32 = vsel %vm3248_vm2, %v3060_v18, %v3408_v19  ;;  %4578 = vmatmul.msk.bf16.gmra.mxu2 %vm587_vm0, %v2430_v22 }
 0x59b   : > { %v6425_v48 = vsel %vm587_vm0, %v3568_v32, -inf }
 0x59c   : > { %v3816_v50 = vmax.f32 %v6365_v54, %v6425_v48 }
 0x59d   : > { %v3062_v6 = vpop.f32.mrf.mxu2 }
 0x59e   : > { %v3063_v46 = vadd.f32 %v6240_v53, %v3062_v6 }
 0x5a0   : > { %vm3249_vm3 = vcmp.ge.f32.partialorder %v3063_v46, 0.0  ;;  %v3409_v23 = vmul.f32 0.2, %v3063_v46 }
 0x5a2   : > { %v3569_v49 = vsel %vm3249_vm3, %v3063_v46, %v3409_v23 }
 0x5a3   : > { %v6431_v52 = vsel %vm587_vm0, %v3569_v49, -inf }
 0x5a4   : > { %v3855_v2 = vmax.f32 %v6374_v58, %v6431_v52 }
 0x5a5   : > { %v3064_v56 = vpop.f32.mrf.mxu2 }
 0x5a6   : > { %v3065_v1 = vadd.f32 %v6240_v53, %v3064_v56 }
 0x5a8   : > { %vm3250_vm4 = vcmp.ge.f32.partialorder %v3065_v1, 0.0  ;;  %v3410_v63 = vmul.f32 0.2, %v3065_v1 }
 0x5aa   : > { %v3570_v16 = vsel %vm3250_vm4, %v3065_v1, %v3410_v63 }
 0x5ab   : > { %v6437_v41 = vsel %vm587_vm0, %v3570_v16, -inf }
 0x5ac   : > { %v3894_v11 = vmax.f32 %v6382_v61, %v6437_v41 }
 0x5ad   : > { %v3067_v28 = vpop.f32.mrf.mxu2 }
 0x5ae   : > { %v3068_v9 = vadd.f32 %v6240_v53, %v3067_v28 }
 0x5b0   : > { %v3411_v25 = vmul.f32 0.2, %v3068_v9  ;;  %vm3251_vm5 = vcmp.ge.f32.partialorder %v3068_v9, 0.0 }
 0x5b2   : > { %v3571_v21 = vsel %vm3251_vm5, %v3068_v9, %v3411_v25 }
 0x5b3   : > { %v3622_v47 = vsel %vm587_vm0, %v3571_v21, -inf }
 0x5b4   : > { %v3623_v38 = vmax.f32 %v3621_v55, %v3622_v47 }
 0x5b5   : > { %v3069_v12 = vpop.f32.mrf.mxu2 }
 0x5b6   : > { %v3070_v8 = vadd.f32 %v6240_v53, %v3069_v12 }
 0x5b8   : > { %v3412_v26 = vmul.f32 0.2, %v3070_v8  ;;  %vm3252_vm7 = vcmp.ge.f32.partialorder %v3070_v8, 0.0 }
 0x5ba   : > { %v3572_v44 = vsel %vm3252_vm7, %v3070_v8, %v3412_v26 }
 0x5bb   : > { %v3661_v15 = vsel %vm587_vm0, %v3572_v44, -inf }
 0x5bc   : > { %v3662_v18 = vmax.f32 %v3660_v59, %v3661_v15 }
 0x5bd   : > { %v3072_v42 = vpop.f32.mrf.mxu2 }
 0x5be   : > { %v3073_v35 = vadd.f32 %v6240_v53, %v3072_v42 }
 0x5c0   : > { %v3413_v55 = vmul.f32 0.2, %v3073_v35  ;;  %vm3253_vm10 = vcmp.ge.f32.partialorder %v3073_v35, 0.0 }
 0x5c2   : > { %v3573_v32 = vsel %vm3253_vm10, %v3073_v35, %v3413_v55 }
 0x5c3   : > { %v3700_v56 = vsel %vm587_vm0, %v3573_v32, -inf }
 0x5c4   : > { %v3701_v37 = vmax.f32 %v3699_v57, %v3700_v56 }
 0x5c5   : > { %v3074_v51 = vpop.f32.mrf.mxu2 }
 0x5c6   : > { %v3075_v22 = vadd.f32 %v6240_v53, %v3074_v51 }
 0x5c8   : > { %v3414_v1 = vmul.f32 0.2, %v3075_v22  ;;  %vm3254_vm12 = vcmp.ge.f32.partialorder %v3075_v22, 0.0 }
 0x5ca   : > { %v3574_v28 = vsel %vm3254_vm12, %v3075_v22, %v3414_v1 }
 0x5cb   : > { %v3739_v25 = vsel %vm587_vm0, %v3574_v28, -inf }
 0x5cc   : > { %v3740_v10 = vmax.f32 %v3738_v14, %v3739_v25 }
 0x5cd   : > { %v3077_v5 = vpop.f32.mrf.mxu2 }
 0x5ce   : > { %v3078_v63 = vadd.f32 %v6240_v53, %v3077_v5 }
 0x5d0   : > { %v3415_v21 = vmul.f32 0.2, %v3078_v63  ;;  %vm3255_vm14 = vcmp.ge.f32.partialorder %v3078_v63, 0.0 }
 0x5d5   : > { %v6441_v43 = vpop.f32.mrf.mxu2 }
 0x5d6   : > { %v3080_v5 = vadd.f32 %v6240_v53, %v6441_v43 }
 0x5d8   : > { %vm3256_vm1 = vcmp.ge.f32.partialorder %v3080_v5, 0.0 }
 0x5dd   : > { %v6443_v27 = vpop.f32.mrf.mxu2 }
 0x5de   : > { %v3083_v43 = vadd.f32 %v6240_v53, %v6443_v27 }
 0x5e0   : > { %v3417_v15 = vmul.f32 0.2, %v3083_v43  ;;  %vm3257_vm3 = vcmp.ge.f32.partialorder %v3083_v43, 0.0 }
 0x5e5   : > { %v6446_v40 = vpop.f32.mrf.mxu2 }
 0x5e6   : > { %v3085_v27 = vadd.f32 %v6240_v53, %v6446_v40 }
 0x5e8   : > { %vm3258_vm5 = vcmp.ge.f32.partialorder %v3085_v27, 0.0 }
 0x5ed   : > { %v3087_v4 = vpop.f32.mrf.mxu2 }
 0x5ee   : > { %v3088_v31 = vadd.f32 %v6240_v53, %v3087_v4  ;;  %v3575_v4 = vsel %vm3255_vm14, %v3078_v63, %v3415_v21 }
 0x5f0   : > { %vm3259_vm6 = vcmp.ge.f32.partialorder %v3088_v31, 0.0  ;;  %v3419_v13 = vmul.f32 0.2, %v3088_v31 }
 0x5f2   : > { %v3579_v33 = vsel %vm3259_vm6, %v3088_v31, %v3419_v13 }
 0x5f3   : > { %v3624_v39 = vsel %vm587_vm0, %v3579_v33, -inf  ;;  %v3416_v33 = vmul.f32 0.2, %v3080_v5 }
 0x5f4   : > { %v3625_v36 = vmax.f32 %v3623_v38, %v3624_v39  ;;  %v3778_v38 = vsel %vm587_vm0, %v3575_v4, -inf }
 0x5f5   : > { %v3089_v29 = vpop.f32.mrf.mxu2  ;;  %v3779_v62 = vmax.f32 %v3777_v0, %v3778_v38  ;;  %v3576_v39 = vsel %vm3256_vm1, %v3080_v5, %v3416_v33 }
 0x5f6   : > { %v3899_v30 = vpack.c.bf16 %v3625_v36, %v3625_v36  ;;  %v3090_v45 = vadd.f32 %v6240_v53, %v3089_v29 }
 0x5f8   : > { %3908 = vst.msk [vmem:[%s6461_s12] sm:$0xf] %vm3907_vm8, %v3899_v30  ;;  %vm3260_vm9 = vcmp.ge.f32.partialorder %v3090_v45, 0.0  ;;  %v3420_v20 = vmul.f32 0.2, %v3090_v45 }
 0x5fa   : > { %v3580_v3 = vsel %vm3260_vm9, %v3090_v45, %v3420_v20  ;;  %v3817_v45 = vsel %vm587_vm0, %v3576_v39, -inf  ;;  %v3577_v20 = vsel %vm3257_vm3, %v3083_v43, %v3417_v15 }
 0x5fb   : > { %v3663_v19 = vsel %vm587_vm0, %v3580_v3, -inf  ;;  %v3818_v7 = vmax.f32 %v3816_v50, %v3817_v45  ;;  %v3856_v32 = vsel %vm587_vm0, %v3577_v20, -inf }
 0x5fc   : > { %v3664_v6 = vmax.f32 %v3662_v18, %v3663_v19  ;;  %v3857_v48 = vmax.f32 %v3855_v2, %v3856_v32 }
 0x5fd   : > { %v3092_v46 = vpop.f32.mrf.mxu2 }
 0x5fe   : > { %v3900_v23 = vpack.c.bf16 %v3664_v6, %v3664_v6  ;;  %v3093_v49 = vadd.f32 %v6240_v53, %v3092_v46  ;;  %v3418_v6 = vmul.f32 0.2, %v3085_v27 }
 0x600   : > { %3909 = vst.msk [vmem:[%s6461_s12 + $0x4] sm:$0xf] %vm3907_vm8, %v3900_v23  ;;  %vm3261_vm11 = vcmp.ge.f32.partialorder %v3093_v49, 0.0  ;;  %v3421_v24 = vmul.f32 0.2, %v3093_v49  ;;  %v3578_v46 = vsel %vm3258_vm5, %v3085_v27, %v3418_v6 }
 0x602   : > { %v3581_v59 = vsel %vm3261_vm11, %v3093_v49, %v3421_v24  ;;  %v3895_v24 = vsel %vm587_vm0, %v3578_v46, -inf }
 0x603   : > { %v3702_v16 = vsel %vm587_vm0, %v3581_v59, -inf  ;;  %v3896_v58 = vmax.f32 %v3894_v11, %v3895_v24 }
 0x604   : > { %v3703_v12 = vmax.f32 %v3701_v37, %v3702_v16 }
 0x605   : > { %v3094_v42 = vpop.f32.mrf.mxu2 }
 0x606   : > { %v3901_v51 = vpack.c.bf16 %v3703_v12, %v3703_v12  ;;  %v3095_v9 = vadd.f32 %v6240_v53, %v3094_v42 }
 0x608   : > { %3910 = vst.msk [vmem:[%s6461_s12 + $0x8] sm:$0xf] %vm3907_vm8, %v3901_v51  ;;  %vm3262_vm13 = vcmp.ge.f32.partialorder %v3095_v9, 0.0  ;;  %v3422_v60 = vmul.f32 0.2, %v3095_v9 }
 0x60a   : > { %v3582_v57 = vsel %vm3262_vm13, %v3095_v9, %v3422_v60 }
 0x60b   : > { %v3741_v8 = vsel %vm587_vm0, %v3582_v57, -inf }
 0x60c   : > { %v3742_v31 = vmax.f32 %v3740_v10, %v3741_v8 }
 0x60d   : > { %v3097_v47 = vpop.f32.mrf.mxu2 }
 0x60e   : > { %v3902_v26 = vpack.c.bf16 %v3742_v31, %v3742_v31  ;;  %v3098_v13 = vadd.f32 %v6240_v53, %v3097_v47 }
 0x610   : > { %3911 = vst.msk [vmem:[%s6461_s12 + $0xc] sm:$0xf] %vm3907_vm8, %v3902_v26  ;;  %vm3263_vm15 = vcmp.ge.f32.partialorder %v3098_v13, 0.0  ;;  %v3423_v17 = vmul.f32 0.2, %v3098_v13 }
 0x612   : > { %v3583_v14 = vsel %vm3263_vm15, %v3098_v13, %v3423_v17 }
 0x613   : > { %v3780_v35 = vsel %vm587_vm0, %v3583_v14, -inf }
 0x614   : > { %v3781_v44 = vmax.f32 %v3779_v62, %v3780_v35 }
 0x615   : > { %v3099_v36 = vpop.f32.mrf.mxu2 }
 0x616   : > { %v3903_v29 = vpack.c.bf16 %v3781_v44, %v3781_v44  ;;  %v3100_v30 = vadd.f32 %v6240_v53, %v3099_v36 }
 0x618   : > { %3912 = vst.msk [vmem:[%s6461_s12 + $0x10] sm:$0xf] %vm3907_vm8, %v3903_v29  ;;  %vm3264_vm2 = vcmp.ge.f32.partialorder %v3100_v30, 0.0  ;;  %v3424_v34 = vmul.f32 0.2, %v3100_v30 }
 0x61a   : > { %v3584_v0 = vsel %vm3264_vm2, %v3100_v30, %v3424_v34 }
 0x61b   : > { %v3819_v55 = vsel %vm587_vm0, %v3584_v0, -inf }
 0x61c   : > { %v3820_v18 = vmax.f32 %v3818_v7, %v3819_v55 }
 0x61d   : > { %v3102_v3 = vpop.f32.mrf.mxu2 }
 0x61e   : > { %v3904_v22 = vpack.c.bf16 %v3820_v18, %v3820_v18  ;;  %v3103_v19 = vadd.f32 %v6240_v53, %v3102_v3 }
 0x620   : > { %3913 = vst.msk [vmem:[%s6461_s12 + $0x14] sm:$0xf] %vm3907_vm8, %v3904_v22  ;;  %vm3265_vm4 = vcmp.ge.f32.partialorder %v3103_v19, 0.0  ;;  %v3425_v54 = vmul.f32 0.2, %v3103_v19 }
 0x622   : > { %v3585_v50 = vsel %vm3265_vm4, %v3103_v19, %v3425_v54 }
 0x623   : > { %v3858_v40 = vsel %vm587_vm0, %v3585_v50, -inf }
 0x624   : > { %v3859_v23 = vmax.f32 %v3857_v48, %v3858_v40 }
 0x625   : > { %v3104_v49 = vpop.f32.mrf.mxu2 }
 0x626   : > { %v3905_v56 = vpack.c.bf16 %v3859_v23, %v3859_v23  ;;  %v3105_v1 = vadd.f32 %v6240_v53, %v3104_v49 }
 0x628   : > { %3914 = vst.msk [vmem:[%s6461_s12 + $0x18] sm:$0xf] %vm3907_vm8, %v3905_v56  ;;  %vm3266_vm6 = vcmp.ge.f32.partialorder %v3105_v1, 0.0  ;;  %v3426_v37 = vmul.f32 0.2, %v3105_v1 }
 0x62a   : > { %v3586_v52 = vsel %vm3266_vm6, %v3105_v1, %v3426_v37 }
 0x62b   : > { %v3897_v2 = vsel %vm587_vm0, %v3586_v52, -inf }
 0x62c   : > { %v3898_v59 = vmax.f32 %v3896_v58, %v3897_v2 }
 0x62e   : > { %v3906_v63 = vpack.c.bf16 %v3898_v59, %v3898_v59 }
 0x630   : > { %3915 = vst.msk [vmem:[%s6461_s12 + $0x1c] sm:$0xf] %vm3907_vm8, %v3906_v63 }
 0x631 PF: > { %s17_s26 = sadd.s32 1, %s4743_s26   ;;  %s6694_s24 = smov %s4739_s25 }
 0x632   : > { %p14_p5 = scmp.ge.s32.totalorder %s17_s26, 4   ;;  %s6695_s25 = smov %s6697_s27 }
 0x634   :  { %16 = sbr.rel (!%p14_p5) target bundleno = 2 (0x2), region = 81 }

// kernel: dgcnn_forward.12
= control target key start
LH: loop header
LB: loop body
LE: loop exit
PB: predicated region body
PF: predicated region fallthrough
CT: control target
= control target key end

     0   :  { %s3372_s18 = smov 0   ;;  %s3374_s19 = smov 0   ;;  %s4475_s0 = inlined_call_operand.vmem [shape: bf16[2,20,64,64], index: 0, kind: input, shape index: {}]   ;;  %s4476_s1 = inlined_call_operand.vmem [shape: bf16[2,64,64], index: 1, kind: input, shape index: {}]   ;;  %s4477_s2 = inlined_call_operand.vmem [shape: bf16[64,64], index: 2, kind: input, shape index: {}]   ;;  %s4478_s3 = inlined_call_operand.vmem [shape: bf16[64,64], index: 3, kind: input, shape index: {}]   ;;  %s4479_s4 = inlined_call_operand.vmem [shape: f32[1,64], index: 4, kind: input, shape index: {}]   ;;  %s4480_s5 = inlined_call_operand.vmem [shape: bf16[2,64,64], index: 5, kind: output, shape index: {}]  }
   0x1   :  { %s3376_s20 = smov 0  }
   0x2 LB: > { %s27_s21 = sadd.s32 1, %s3336_s19  ;;  %p2726_p0 = scmp.ge.s32.totalorder %s3340_s20, 1  ;;  %s3340_s20 = sphi %s3376_s20, %s15_s20   ;;  %s3336_s19 = sphi %s3374_s19, %s4482_s19   ;;  %s3332_s18 = sphi %s3372_s18, %s4481_s18  }
   0x3   : > { %p29_p1 = scmp.ge.s32.totalorder %s27_s21, 2  ;;  %p225_p2 = scmp.lt.s32.totalorder %s3340_s20, 3 }
   0x5   : > { %s4484_s21 = smov (%p29_p1, %s27_s21), 0  ;;  %p226_p3 = pnand %p2726_p0, %p225_p2 }
   0x6   : > { %p271_p4 = scmp.lt.s32.totalorder (!%p226_p3), %s3332_s18, 1 }
   0x7   : > { %229 = sbr.rel (%p226_p3) target bundleno = 502 (0x1f6), region = 40 }
   0xc   : > { %v3279_v0 = vld [vmem:[%s4478_s3 + $0x18] sm:$0xff]  ;;  %v3278_v2 = vld [vmem:[%s4478_s3 + $0x10] sm:$0xff]  ;;  %s4486_s18 = smov (!%p271_p4, %s3332_s18), 1  ;;  %v3277_v4 = vld [vmem:[%s4478_s3 + $0x8] sm:$0xff]  ;;  %vm533_vm0 = vcmask 523264  }
   0xd   : > { %v3275_v1 = vld [vmem:[%s4477_s2 + $0x18] sm:$0xff]  ;;  %550 = vmatpush.bf16.msra.mxu0 %v3279_v0  ;;  %v3274_v3 = vld [vmem:[%s4477_s2 + $0x10] sm:$0xff]  ;;  %v3273_v5 = vld [vmem:[%s4477_s2 + $0x8] sm:$0xff]  ;;  %s3292_s9 = smul.u32 640, %s4486_s18  ;;  %s3186_s10 = sshll.u32 %s4486_s18, 5 }
   0xe   : > { %3280 = vmatpush.bf16.msra.mxu1 %v3275_v1  ;;  %3281 = vmatpush.bf16.msra.mxu2 %v3275_v1  ;;  %v3276_v6 = vld [vmem:[%s4478_s3] sm:$0xff]  ;;  %s3428_s24 = scalar_lea.vmem %s4476_s1, %s3186_s10  ;;  %s4433_s29 = scalar_lea.vmem %s4480_s5, %s3186_s10 }
   0xf   : > { %3282 = vmatpush.bf16.msra.mxu3 %v3275_v1  ;;  %v3272_v7 = vld [vmem:[%s4477_s2] sm:$0xff]  ;;  %s3421_s17 = scalar_lea.vmem %s4475_s0, %s3292_s9  ;;  %v3269_v12 = vld [vmem:[%s3428_s24 + $0x8] sm:$0xff]  ;;  %v3270_v16 = vld [vmem:[%s3428_s24 + $0x10] sm:$0xff] }
  0x10   : > { %v3268_v8 = vld [vmem:[%s3428_s24] sm:$0xff]  ;;  %v3205_v9 = vld [vmem:[%s3421_s17 + $0x88] sm:$0xff]  ;;  %v3226_v10 = vld [vmem:[%s3421_s17 + $0x130] sm:$0xff] }
  0x11   : > { %551 = vmatpush.bf16.msra.mxu0 %v3278_v2  ;;  %v3247_v11 = vld [vmem:[%s3421_s17 + $0x1d8] sm:$0xff]  ;;  %v3206_v13 = vld [vmem:[%s3421_s17 + $0x90] sm:$0xff]  ;;  %v3248_v15 = vld [vmem:[%s3421_s17 + $0x1e0] sm:$0xff] }
  0x12   : > { %3283 = vmatpush.bf16.msra.mxu1 %v3274_v3  ;;  %3284 = vmatpush.bf16.msra.mxu2 %v3274_v3  ;;  %v3227_v14 = vld [vmem:[%s3421_s17 + $0x138] sm:$0xff]  ;;  %v3228_v18 = vld [vmem:[%s3421_s17 + $0x140] sm:$0xff]  ;;  %v3249_v19 = vld [vmem:[%s3421_s17 + $0x1e8] sm:$0xff] }
  0x13   : > { %3285 = vmatpush.bf16.msra.mxu3 %v3274_v3  ;;  %v3207_v17 = vld [vmem:[%s3421_s17 + $0x98] sm:$0xff]  ;;  %v3208_v21 = vld [vmem:[%s3421_s17 + $0xa0] sm:$0xff]  ;;  %v3229_v22 = vld [vmem:[%s3421_s17 + $0x148] sm:$0xff] }
  0x14   : > { %v3271_v20 = vld [vmem:[%s3428_s24 + $0x18] sm:$0xff]  ;;  %v3250_v23 = vld [vmem:[%s3421_s17 + $0x1f0] sm:$0xff]  ;;  %v3188_v24 = vld [vmem:[%s3421_s17] sm:$0xff] }
  0x15   : > { %552 = vmatpush.bf16.msra.mxu0 %v3277_v4  ;;  %v3209_v25 = vld [vmem:[%s3421_s17 + $0xa8] sm:$0xff]  ;;  %v3230_v26 = vld [vmem:[%s3421_s17 + $0x150] sm:$0xff]  ;;  %v3251_v27 = vld [vmem:[%s3421_s17 + $0x1f8] sm:$0xff] }
  0x16   : > { %3286 = vmatpush.bf16.msra.mxu1 %v3273_v5  ;;  %3287 = vmatpush.bf16.msra.mxu2 %v3273_v5  ;;  %v3189_v28 = vld [vmem:[%s3421_s17 + $0x8] sm:$0xff]  ;;  %v3210_v29 = vld [vmem:[%s3421_s17 + $0xb0] sm:$0xff]  ;;  %v3231_v30 = vld [vmem:[%s3421_s17 + $0x158] sm:$0xff] }
  0x17   : > { %3288 = vmatpush.bf16.msra.mxu3 %v3273_v5  ;;  %v3252_v31 = vld [vmem:[%s3421_s17 + $0x200] sm:$0xff]  ;;  %v3190_v32 = vld [vmem:[%s3421_s17 + $0x10] sm:$0xff]  ;;  %v3211_v33 = vld [vmem:[%s3421_s17 + $0xb8] sm:$0xff] }
  0x18   : > { %v3232_v34 = vld [vmem:[%s3421_s17 + $0x160] sm:$0xff]  ;;  %v3253_v35 = vld [vmem:[%s3421_s17 + $0x208] sm:$0xff]  ;;  %v3191_v36 = vld [vmem:[%s3421_s17 + $0x18] sm:$0xff] }
  0x19   : > { %553 = vmatpush.bf16.msra.mxu0 %v3276_v6  ;;  %v3212_v37 = vld [vmem:[%s3421_s17 + $0xc0] sm:$0xff]  ;;  %v3233_v38 = vld [vmem:[%s3421_s17 + $0x168] sm:$0xff]  ;;  %v3254_v39 = vld [vmem:[%s3421_s17 + $0x210] sm:$0xff] }
  0x1a   : > { %3289 = vmatpush.bf16.msra.mxu1 %v3272_v7  ;;  %3290 = vmatpush.bf16.msra.mxu2 %v3272_v7  ;;  %v3192_v40 = vld [vmem:[%s3421_s17 + $0x20] sm:$0xff]  ;;  %v3213_v41 = vld [vmem:[%s3421_s17 + $0xc8] sm:$0xff]  ;;  %v3234_v44 = vld [vmem:[%s3421_s17 + $0x170] sm:$0xff] }
  0x1b   : > { %3291 = vmatpush.bf16.msra.mxu3 %v3272_v7  ;;  %v3255_v45 = vld [vmem:[%s3421_s17 + $0x218] sm:$0xff]  ;;  %v3507_v50 = vld [vmem:[%s4479_s4] ss:$0 sm:$0xff]  ;;  %v3193_v53 = vld [vmem:[%s3421_s17 + $0x28] sm:$0xff] }
  0x1c   : > { %2764 = vmatmul.msk.bf16.vlgmr.msra.gmra.mxu0 %vm533_vm0, %v3268_v8  ;;  %v3214_v54 = vld [vmem:[%s3421_s17 + $0xd0] sm:$0xff]  ;;  %v3235_v57 = vld [vmem:[%s3421_s17 + $0x178] sm:$0xff]  ;;  %v3256_v58 = vld [vmem:[%s3421_s17 + $0x220] sm:$0xff] }
  0x1d   : > { %1243 = vmatpush.bf16.msrb.mxu0 %v3275_v1  ;;  %3121 = vmatmul.msk.bf16.vlgmr.msra.gmra.mxu1 %vm533_vm0, %v3205_v9  ;;  %v3194_v8 = vld [vmem:[%s3421_s17 + $0x30] sm:$0xff]  ;;  %v3215_v9 = vld [vmem:[%s3421_s17 + $0xd8] sm:$0xff] }
  0x1e   : > { %3142 = vmatmul.msk.bf16.vlgmr.msra.gmra.mxu2 %vm533_vm0, %v3226_v10  ;;  %3163 = vmatmul.msk.bf16.vlgmr.msra.gmra.mxu3 %vm533_vm0, %v3247_v11 }
  0x21   : > { %1244 = vmatpush.bf16.msrb.mxu0 %v3274_v3 }
  0x25   : > { %1245 = vmatpush.bf16.msrb.mxu0 %v3273_v5 }
  0x29   : > { %1246 = vmatpush.bf16.msrb.mxu0 %v3272_v7 }
  0x2c   : > { %2765 = vmatmul.msk.bf16.gmra.mxu0 %vm533_vm0, %v3269_v12 }
  0x2d   : > { %3122 = vmatmul.msk.bf16.gmra.mxu1 %vm533_vm0, %v3206_v13  ;;  %v3236_v13 = vld [vmem:[%s3421_s17 + $0x180] sm:$0xff] }
  0x2e   : > { %3143 = vmatmul.msk.bf16.gmra.mxu2 %vm533_vm0, %v3227_v14  ;;  %3164 = vmatmul.msk.bf16.gmra.mxu3 %vm533_vm0, %v3248_v15  ;;  %v3257_v14 = vld [vmem:[%s3421_s17 + $0x228] sm:$0xff] }
  0x3c   : > { %2766 = vmatmul.msk.bf16.gmra.mxu0 %vm533_vm0, %v3270_v16 }
  0x3d   : > { %3123 = vmatmul.msk.bf16.gmra.mxu1 %vm533_vm0, %v3207_v17 }
  0x3e   : > { %3144 = vmatmul.msk.bf16.gmra.mxu2 %vm533_vm0, %v3228_v18  ;;  %3165 = vmatmul.msk.bf16.gmra.mxu3 %vm533_vm0, %v3249_v19 }
  0x4c   : > { %2767 = vmatmul.msk.bf16.gmra.mxu0 %vm533_vm0, %v3271_v20 }
  0x4d   : > { %3124 = vmatmul.msk.bf16.gmra.mxu1 %vm533_vm0, %v3208_v21 }
  0x4e   : > { %3145 = vmatmul.msk.bf16.gmra.mxu2 %vm533_vm0, %v3229_v22  ;;  %3166 = vmatmul.msk.bf16.gmra.mxu3 %vm533_vm0, %v3250_v23 }
  0x5c   : > { %3104 = vmatmul.msk.bf16.vlgmr.msrb.gmra.mxu0 %vm533_vm0, %v3188_v24 }
  0x5d   : > { %3125 = vmatmul.msk.bf16.gmra.mxu1 %vm533_vm0, %v3209_v25 }
  0x5e   : > { %3146 = vmatmul.msk.bf16.gmra.mxu2 %vm533_vm0, %v3230_v26  ;;  %3167 = vmatmul.msk.bf16.gmra.mxu3 %vm533_vm0, %v3251_v27 }
  0x6c   : > { %3105 = vmatmul.msk.bf16.gmra.mxu0 %vm533_vm0, %v3189_v28 }
  0x6d   : > { %3126 = vmatmul.msk.bf16.gmra.mxu1 %vm533_vm0, %v3210_v29 }
  0x6e   : > { %3147 = vmatmul.msk.bf16.gmra.mxu2 %vm533_vm0, %v3231_v30  ;;  %3168 = vmatmul.msk.bf16.gmra.mxu3 %vm533_vm0, %v3252_v31 }
  0x7c   : > { %3106 = vmatmul.msk.bf16.gmra.mxu0 %vm533_vm0, %v3190_v32 }
  0x7d   : > { %3127 = vmatmul.msk.bf16.gmra.mxu1 %vm533_vm0, %v3211_v33 }
  0x7e   : > { %3148 = vmatmul.msk.bf16.gmra.mxu2 %vm533_vm0, %v3232_v34  ;;  %3169 = vmatmul.msk.bf16.gmra.mxu3 %vm533_vm0, %v3253_v35 }
  0x8c   : > { %3107 = vmatmul.msk.bf16.gmra.mxu0 %vm533_vm0, %v3191_v36 }
  0x8d   : > { %3128 = vmatmul.msk.bf16.gmra.mxu1 %vm533_vm0, %v3212_v37  ;;  %v3195_v37 = vld [vmem:[%s3421_s17 + $0x38] sm:$0xff] }
  0x8e   : > { %3149 = vmatmul.msk.bf16.gmra.mxu2 %vm533_vm0, %v3233_v38  ;;  %3170 = vmatmul.msk.bf16.gmra.mxu3 %vm533_vm0, %v3254_v39  ;;  %v3216_v38 = vld [vmem:[%s3421_s17 + $0xe0] sm:$0xff] }
  0x99   : > { %v555_v42 = vpop.f32.mrf.mxu0 }
  0x9a   : > { %v1333_v43 = vpop.f32.mrf.mxu1  ;;  %v3526_v61 = vadd.f32 %v3507_v50, %v555_v42 }
  0x9c   : > { %3108 = vmatmul.msk.bf16.gmra.mxu0 %vm533_vm0, %v3192_v40 }
  0x9d   : > { %3129 = vmatmul.msk.bf16.gmra.mxu1 %vm533_vm0, %v3213_v41 }
  0x9e   : > { %3150 = vmatmul.msk.bf16.gmra.mxu2 %vm533_vm0, %v3234_v44  ;;  %3171 = vmatmul.msk.bf16.gmra.mxu3 %vm533_vm0, %v3255_v45  ;;  %v3258_v44 = vld [vmem:[%s3421_s17 + $0x230] sm:$0xff] }
  0xa1   : > { %v1438_v46 = vpop.f32.mrf.mxu2  ;;  %v3502_v47 = vpop.f32.mrf.mxu3 }
  0xa2   : > { %v557_v48 = vpop.f32.mrf.mxu0  ;;  %v1335_v49 = vpop.f32.mrf.mxu1 }
  0xa3   : > { %v3538_v5 = vadd.f32 %v3507_v50, %v557_v48 }
  0xa9   : > { %v1440_v51 = vpop.f32.mrf.mxu2  ;;  %v3509_v52 = vpop.f32.mrf.mxu3 }
  0xaa   : > { %v560_v55 = vpop.f32.mrf.mxu0  ;;  %v1338_v56 = vpop.f32.mrf.mxu1 }
  0xab   : > { %v3516_v59 = vadd.f32 %v3507_v50, %v560_v55 }
  0xac   : > { %3109 = vmatmul.msk.bf16.gmra.mxu0 %vm533_vm0, %v3193_v53 }
  0xad   : > { %3130 = vmatmul.msk.bf16.gmra.mxu1 %vm533_vm0, %v3214_v54  ;;  %v3521_v60 = vadd.f32 %v1333_v43, %v3516_v59  ;;  %v3237_v43 = vld [vmem:[%s3421_s17 + $0x188] sm:$0xff] }
  0xae   : > { %3151 = vmatmul.msk.bf16.gmra.mxu2 %vm533_vm0, %v3235_v57  ;;  %3172 = vmatmul.msk.bf16.gmra.mxu3 %vm533_vm0, %v3256_v58 }
  0xb1   : > { %v3528_v62 = vpop.f32.mrf.mxu2  ;;  %v1548_v63 = vpop.f32.mrf.mxu3 }
  0xb2   : > { %v1768_v0 = vadd.f32 %v1548_v63, %v3526_v61  ;;  %v562_v1 = vpop.f32.mrf.mxu0  ;;  %v1340_v2 = vpop.f32.mrf.mxu1 }
  0xb3   : > { %v3532_v3 = vadd.f32 %v3507_v50, %v562_v1 }
  0xb4   : > { %v2088_v18 = vmul.f32 0.2, %v1768_v0  ;;  %vm1928_vm1 = vcmp.ge.f32.partialorder %v1768_v0, 0.0 }
  0xb5   : > { %v3535_v4 = vadd.f32 %v1335_v49, %v3532_v3 }
  0xb6   : > { %v2248_v26 = vsel %vm1928_vm1, %v1768_v0, %v2088_v18 }
  0xb7   : > { %v2317_v31 = vsel %vm533_vm0, %v2248_v26, -inf }
  0xb9   : > { %v3540_v6 = vpop.f32.mrf.mxu2  ;;  %v1550_v7 = vpop.f32.mrf.mxu3 }
  0xba   : > { %v1769_v10 = vadd.f32 %v1550_v7, %v3538_v5  ;;  %v565_v11 = vpop.f32.mrf.mxu0  ;;  %v1343_v12 = vpop.f32.mrf.mxu1 }
  0xbb   : > { %v3548_v15 = vadd.f32 %v3507_v50, %v565_v11 }
  0xbc   : > { %3110 = vmatmul.msk.bf16.gmra.mxu0 %vm533_vm0, %v3194_v8  ;;  %v2089_v33 = vmul.f32 0.2, %v1769_v10  ;;  %vm1929_vm3 = vcmp.ge.f32.partialorder %v1769_v10, 0.0 }
  0xbd   : > { %3131 = vmatmul.msk.bf16.gmra.mxu1 %vm533_vm0, %v3215_v9  ;;  %v3553_v16 = vadd.f32 %v1338_v56, %v3548_v15  ;;  %v3556_v17 = vadd.f32 %v1438_v46, %v3548_v15 }
  0xbe   : > { %3152 = vmatmul.msk.bf16.gmra.mxu2 %vm533_vm0, %v3236_v13  ;;  %3173 = vmatmul.msk.bf16.gmra.mxu3 %vm533_vm0, %v3257_v14  ;;  %v2249_v48 = vsel %vm1929_vm3, %v1769_v10, %v2089_v33 }
  0xbf   : > { %v2356_v57 = vsel %vm533_vm0, %v2249_v48, -inf }
  0xc1   : > { %v1448_v19 = vpop.f32.mrf.mxu2  ;;  %v1553_v20 = vpop.f32.mrf.mxu3 }
  0xc2   : > { %v1728_v21 = vadd.f32 %v1448_v19, %v3526_v61  ;;  %v1770_v22 = vadd.f32 %v1553_v20, %v3516_v59  ;;  %v567_v23 = vpop.f32.mrf.mxu0  ;;  %v1345_v24 = vpop.f32.mrf.mxu1 }
  0xc3   : > { %v3563_v25 = vadd.f32 %v3507_v50, %v567_v23 }
  0xc4   : > { %vm1888_vm2 = vcmp.ge.f32.partialorder %v1728_v21, 0.0  ;;  %v2048_v27 = vmul.f32 0.2, %v1728_v21  ;;  %v2090_v0 = vmul.f32 0.2, %v1770_v22  ;;  %vm1930_vm6 = vcmp.ge.f32.partialorder %v1770_v22, 0.0 }
  0xc5   : > { %v3566_v28 = vadd.f32 %v1340_v2, %v3563_v25  ;;  %v3569_v29 = vadd.f32 %v1440_v51, %v3563_v25 }
  0xc6   : > { %v2208_v30 = vsel %vm1888_vm2, %v1728_v21, %v2048_v27  ;;  %v2250_v14 = vsel %vm1930_vm6, %v1770_v22, %v2090_v0 }
  0xc7   : > { %v2307_v32 = vsel %vm533_vm0, %v2208_v30, -inf }
  0xc8   : > { %v2290_v34 = vmax.f32 %v2307_v32, %v2317_v31 }
  0xc9   : > { %v1450_v35 = vpop.f32.mrf.mxu2  ;;  %v1555_v36 = vpop.f32.mrf.mxu3 }
  0xca   : > { %v1729_v39 = vadd.f32 %v1450_v35, %v3538_v5  ;;  %v3577_v40 = vadd.f32 %v1555_v36, %v3532_v3  ;;  %v570_v41 = vpop.f32.mrf.mxu0  ;;  %v1348_v42 = vpop.f32.mrf.mxu1 }
  0xcb   : > { %v3582_v45 = vadd.f32 %v3507_v50, %v570_v41  ;;  %v1688_v46 = vadd.f32 %v1348_v42, %v3526_v61  ;;  %v3238_v41 = vld [vmem:[%s3421_s17 + $0x190] sm:$0xff]  ;;  %v3259_v42 = vld [vmem:[%s3421_s17 + $0x238] sm:$0xff] }
  0xcc   : > { %vm1889_vm4 = vcmp.ge.f32.partialorder %v1729_v39, 0.0  ;;  %v2049_v49 = vmul.f32 0.2, %v1729_v39  ;;  %3111 = vmatmul.msk.bf16.gmra.mxu0 %vm533_vm0, %v3195_v37  ;;  %v2091_v26 = vmul.f32 0.2, %v3577_v40  ;;  %vm1931_vm9 = vcmp.ge.f32.partialorder %v3577_v40, 0.0 }
  0xcd   : > { %vm1848_vm5 = vcmp.ge.f32.partialorder %v1688_v46, 0.0  ;;  %v2008_v51 = vmul.f32 0.2, %v1688_v46  ;;  %3132 = vmatmul.msk.bf16.gmra.mxu1 %vm533_vm0, %v3216_v38  ;;  %v3588_v53 = vadd.f32 %v1343_v12, %v3582_v45  ;;  %v3592_v54 = vadd.f32 %v3528_v62, %v3582_v45 }
  0xce   : > { %v2209_v55 = vsel %vm1889_vm4, %v1729_v39, %v2049_v49  ;;  %3153 = vmatmul.msk.bf16.gmra.mxu2 %vm533_vm0, %v3237_v43  ;;  %3174 = vmatmul.msk.bf16.gmra.mxu3 %vm533_vm0, %v3258_v44  ;;  %v3598_v56 = vadd.f32 %v3502_v47, %v3582_v45  ;;  %v2251_v43 = vsel %vm1931_vm9, %v3577_v40, %v2091_v26 }
  0xcf   : > { %v2346_v58 = vsel %vm533_vm0, %v2209_v55, -inf  ;;  %v2168_v63 = vsel %vm1848_vm5, %v1688_v46, %v2008_v51  ;;  %v2434_v51 = vsel %vm533_vm0, %v2251_v43, -inf }
  0xd0   : > { %v2329_v1 = vmax.f32 %v2346_v58, %v2356_v57  ;;  %v2297_v2 = vsel %vm533_vm0, %v2168_v63, -inf }
  0xd1   : > { %v3603_v62 = vmax.f32 %v2290_v34, %v2297_v2  ;;  %v1453_v7 = vpop.f32.mrf.mxu2  ;;  %v1558_v8 = vpop.f32.mrf.mxu3  ;;  %v3217_v34 = vld [vmem:[%s3421_s17 + $0xe8] sm:$0xff] }
  0xd2   : > { %v1730_v9 = vadd.f32 %v1453_v7, %v3516_v59  ;;  %v3607_v10 = vadd.f32 %v1558_v8, %v3548_v15  ;;  %v572_v47 = vpop.f32.mrf.mxu0  ;;  %v1350_v11 = vpop.f32.mrf.mxu1 }
  0xd3   : > { %v3610_v12 = vadd.f32 %v3507_v50, %v572_v47  ;;  %v1689_v13 = vadd.f32 %v1350_v11, %v3538_v5  ;;  %v2395_v50 = vsel %vm533_vm0, %v2250_v14, -inf }
  0xd4   : > { %vm1890_vm7 = vcmp.ge.f32.partialorder %v1730_v9, 0.0  ;;  %v2050_v18 = vmul.f32 0.2, %v1730_v9  ;;  %v2092_v40 = vmul.f32 0.2, %v3607_v10  ;;  %vm1932_vm13 = vcmp.ge.f32.partialorder %v3607_v10, 0.0 }
  0xd5   : > { %vm1849_vm8 = vcmp.ge.f32.partialorder %v1689_v13, 0.0  ;;  %v2009_v19 = vmul.f32 0.2, %v1689_v13  ;;  %v3614_v20 = vadd.f32 %v1345_v24, %v3610_v12  ;;  %v3618_v23 = vadd.f32 %v3540_v6, %v3610_v12  ;;  %v3196_v6 = vld [vmem:[%s3421_s17 + $0x40] sm:$0xff] }
  0xd6   : > { %v2210_v21 = vsel %vm1890_vm7, %v1730_v9, %v2050_v18  ;;  %v3631_v35 = vadd.f32 %v3509_v52, %v3610_v12 }
  0xd7   : > { %v2385_v22 = vsel %vm533_vm0, %v2210_v21, -inf  ;;  %v2169_v27 = vsel %vm1849_vm8, %v1689_v13, %v2009_v19  ;;  %v2252_v19 = vsel %vm1932_vm13, %v3607_v10, %v2092_v40  ;;  %v3260_v40 = vld [vmem:[%s3421_s17 + $0x240] sm:$0xff] }
  0xd8   : > { %v2368_v30 = vmax.f32 %v2385_v22, %v2395_v50  ;;  %v2336_v24 = vsel %vm533_vm0, %v2169_v27, -inf }
  0xd9   : > { %v3625_v31 = vmax.f32 %v2329_v1, %v2336_v24  ;;  %v1455_v32 = vpop.f32.mrf.mxu2  ;;  %v1560_v33 = vpop.f32.mrf.mxu3 }
  0xda   : > { %v1731_v36 = vadd.f32 %v1455_v32, %v3532_v3  ;;  %v3635_v37 = vadd.f32 %v1560_v33, %v3563_v25  ;;  %v1248_v38 = vpop.f32.mrf.mxu0  ;;  %v1353_v39 = vpop.f32.mrf.mxu1 }
  0xdb   : > { %v1648_v44 = vadd.f32 %v1248_v38, %v3526_v61  ;;  %v1690_v46 = vadd.f32 %v1353_v39, %v3516_v59 }
  0xdc   : > { %vm1891_vm10 = vcmp.ge.f32.partialorder %v1731_v36, 0.0  ;;  %v2051_v48 = vmul.f32 0.2, %v1731_v36  ;;  %3112 = vmatmul.msk.bf16.gmra.mxu0 %vm533_vm0, %v3196_v6  ;;  %v2093_v32 = vmul.f32 0.2, %v3635_v37  ;;  %vm1933_vm2 = vcmp.ge.f32.partialorder %v3635_v37, 0.0 }
  0xdd   : > { %vm1808_vm11 = vcmp.ge.f32.partialorder %v1648_v44, 0.0  ;;  %v1968_v52 = vmul.f32 0.2, %v1648_v44  ;;  %vm1850_vm12 = vcmp.ge.f32.partialorder %v1690_v46, 0.0  ;;  %v2010_v49 = vmul.f32 0.2, %v1690_v46  ;;  %3133 = vmatmul.msk.bf16.gmra.mxu1 %vm533_vm0, %v3217_v34 }
  0xde   : > { %v2211_v55 = vsel %vm1891_vm10, %v1731_v36, %v2051_v48  ;;  %3154 = vmatmul.msk.bf16.gmra.mxu2 %vm533_vm0, %v3238_v41  ;;  %3175 = vmatmul.msk.bf16.gmra.mxu3 %vm533_vm0, %v3259_v42 }
  0xdf   : > { %v2424_v57 = vsel %vm533_vm0, %v2211_v55, -inf  ;;  %v2128_v58 = vsel %vm1808_vm11, %v1648_v44, %v1968_v52  ;;  %v2170_v63 = vsel %vm1850_vm12, %v1690_v46, %v2010_v49  ;;  %v3197_v44 = vld [vmem:[%s3421_s17 + $0x48] sm:$0xff]  ;;  %v3218_v46 = vld [vmem:[%s3421_s17 + $0xf0] sm:$0xff]  ;;  %v3239_v55 = vld [vmem:[%s3421_s17 + $0x198] sm:$0xff] }
  0xe0   : > { %v2407_v0 = vmax.f32 %v2424_v57, %v2434_v51  ;;  %v3651_v1 = vsel %vm533_vm0, %v2128_v58, -inf  ;;  %v2375_v2 = vsel %vm533_vm0, %v2170_v63, -inf  ;;  %v2253_v57 = vsel %vm1933_vm2, %v3635_v37, %v2093_v32 }
  0xe1   : > { %v2294_v7 = vmax.f32 %v3603_v62, %v3651_v1  ;;  %v3656_v8 = vmax.f32 %v2368_v30, %v2375_v2  ;;  %v1458_v9 = vpop.f32.mrf.mxu2  ;;  %v1563_v47 = vpop.f32.mrf.mxu3  ;;  %v2473_v30 = vsel %vm533_vm0, %v2252_v19, -inf  ;;  %v2512_v37 = vsel %vm533_vm0, %v2253_v57, -inf }
  0xe2   : > { %v1732_v11 = vadd.f32 %v1458_v9, %v3548_v15  ;;  %v1774_v13 = vadd.f32 %v1563_v47, %v3582_v45  ;;  %v1250_v14 = vpop.f32.mrf.mxu0  ;;  %v1355_v18 = vpop.f32.mrf.mxu1 }
  0xe3   : > { %v1649_v21 = vadd.f32 %v1250_v14, %v3538_v5  ;;  %v1691_v50 = vadd.f32 %v1355_v18, %v3532_v3 }
  0xe4   : > { %vm1892_vm14 = vcmp.ge.f32.partialorder %v1732_v11, 0.0  ;;  %v2052_v26 = vmul.f32 0.2, %v1732_v11  ;;  %vm1934_vm3 = vcmp.ge.f32.partialorder %v1774_v13, 0.0 }
  0xe5   : > { %vm1809_vm15 = vcmp.ge.f32.partialorder %v1649_v21, 0.0  ;;  %v1969_v22 = vmul.f32 0.2, %v1649_v21  ;;  %vm1851_vm1 = vcmp.ge.f32.partialorder %v1691_v50, 0.0  ;;  %v2011_v27 = vmul.f32 0.2, %v1691_v50 }
  0xe6   : > { %v2212_v24 = vsel %vm1892_vm14, %v1732_v11, %v2052_v26 }
  0xe7   : > { %v2463_v33 = vsel %vm533_vm0, %v2212_v24, -inf  ;;  %v2129_v10 = vsel %vm1809_vm15, %v1649_v21, %v1969_v22  ;;  %v2171_v6 = vsel %vm1851_vm1, %v1691_v50, %v2011_v27 }
  0xe8   : > { %v2446_v34 = vmax.f32 %v2463_v33, %v2473_v30  ;;  %v3668_v36 = vsel %vm533_vm0, %v2129_v10, -inf  ;;  %v2414_v38 = vsel %vm533_vm0, %v2171_v6, -inf }
  0xe9   : > { %v2333_v39 = vmax.f32 %v3625_v31, %v3668_v36  ;;  %v3673_v41 = vmax.f32 %v2407_v0, %v2414_v38  ;;  %v1460_v42 = vpop.f32.mrf.mxu2  ;;  %v1565_v43 = vpop.f32.mrf.mxu3  ;;  %v2094_v0 = vmul.f32 0.2, %v1774_v13 }
  0xea   : > { %v1733_v48 = vadd.f32 %v1460_v42, %v3563_v25  ;;  %v3679_v52 = vadd.f32 %v1565_v43, %v3610_v12  ;;  %v1253_v49 = vpop.f32.mrf.mxu0  ;;  %v1358_v51 = vpop.f32.mrf.mxu1 }
  0xeb   : > { %v1650_v58 = vadd.f32 %v1253_v49, %v3516_v59  ;;  %v1692_v63 = vadd.f32 %v1358_v51, %v3548_v15  ;;  %v2254_v21 = vsel %vm1934_vm3, %v1774_v13, %v2094_v0 }
  0xec   : > { %vm1893_vm4 = vcmp.ge.f32.partialorder %v1733_v48, 0.0  ;;  %v2053_v2 = vmul.f32 0.2, %v1733_v48  ;;  %3113 = vmatmul.msk.bf16.gmra.mxu0 %vm533_vm0, %v3197_v44  ;;  %v3706_v13 = vsel %vm533_vm0, %v2254_v21, -inf  ;;  %vm1935_vm11 = vcmp.ge.f32.partialorder %v3679_v52, 0.0  ;;  %v3219_v21 = vld [vmem:[%s3421_s17 + $0xf8] sm:$0xff] }
  0xed   : > { %vm1810_vm5 = vcmp.ge.f32.partialorder %v1650_v58, 0.0  ;;  %v1970_v9 = vmul.f32 0.2, %v1650_v58  ;;  %vm1852_vm6 = vcmp.ge.f32.partialorder %v1692_v63, 0.0  ;;  %v2012_v47 = vmul.f32 0.2, %v1692_v63  ;;  %3134 = vmatmul.msk.bf16.gmra.mxu1 %vm533_vm0, %v3218_v46 }
  0xee   : > { %v2213_v11 = vsel %vm1893_vm4, %v1733_v48, %v2053_v2  ;;  %3155 = vmatmul.msk.bf16.gmra.mxu2 %vm533_vm0, %v3239_v55  ;;  %3176 = vmatmul.msk.bf16.gmra.mxu3 %vm533_vm0, %v3260_v40  ;;  %v2095_v49 = vmul.f32 0.2, %v3679_v52 }
  0xef   : > { %v2502_v14 = vsel %vm533_vm0, %v2213_v11, -inf  ;;  %v2130_v18 = vsel %vm1810_vm5, %v1650_v58, %v1970_v9  ;;  %v2172_v19 = vsel %vm1852_vm6, %v1692_v63, %v2012_v47 }
  0xf0   : > { %v2485_v50 = vmax.f32 %v2502_v14, %v2512_v37  ;;  %v3696_v26 = vsel %vm533_vm0, %v2130_v18, -inf  ;;  %v2453_v22 = vsel %vm533_vm0, %v2172_v19, -inf  ;;  %v3198_v19 = vld [vmem:[%s3421_s17 + $0x50] sm:$0xff] }
  0xf1   : > { %v2372_v27 = vmax.f32 %v3656_v8, %v3696_v26  ;;  %v3701_v30 = vmax.f32 %v2446_v34, %v2453_v22  ;;  %v1463_v24 = vpop.f32.mrf.mxu2  ;;  %v1568_v32 = vpop.f32.mrf.mxu3 }
  0xf2   : > { %v1734_v33 = vadd.f32 %v1463_v24, %v3582_v45  ;;  %v1776_v10 = vadd.f32 %v1568_v32, %v3526_v61  ;;  %v1255_v6 = vpop.f32.mrf.mxu0  ;;  %v1360_v38 = vpop.f32.mrf.mxu1  ;;  %v3240_v24 = vld [vmem:[%s3421_s17 + $0x1a0] sm:$0xff]  ;;  %v3261_v32 = vld [vmem:[%s3421_s17 + $0x248] sm:$0xff] }
  0xf3   : > { %v1651_v42 = vadd.f32 %v1255_v6, %v3532_v3  ;;  %v1693_v43 = vadd.f32 %v1360_v38, %v3563_v25 }
  0xf4   : > { %vm1894_vm7 = vcmp.ge.f32.partialorder %v1734_v33, 0.0  ;;  %v2054_v44 = vmul.f32 0.2, %v1734_v33  ;;  %vm1936_vm8 = vcmp.ge.f32.partialorder %v1776_v10, 0.0  ;;  %v2096_v34 = vmul.f32 0.2, %v1776_v10 }
  0xf5   : > { %vm1811_vm9 = vcmp.ge.f32.partialorder %v1651_v42, 0.0  ;;  %v1971_v46 = vmul.f32 0.2, %v1651_v42  ;;  %vm1853_vm10 = vcmp.ge.f32.partialorder %v1693_v43, 0.0  ;;  %v2013_v48 = vmul.f32 0.2, %v1693_v43 }
  0xf6   : > { %v2214_v51 = vsel %vm1894_vm7, %v1734_v33, %v2054_v44  ;;  %v2256_v55 = vsel %vm1936_vm8, %v1776_v10, %v2096_v34  ;;  %v2255_v33 = vsel %vm1935_vm11, %v3679_v52, %v2095_v49 }
  0xf7   : > { %v2541_v40 = vsel %vm533_vm0, %v2214_v51, -inf  ;;  %v2319_v57 = vsel %vm533_vm0, %v2256_v55, -inf  ;;  %v2131_v58 = vsel %vm1811_vm9, %v1651_v42, %v1971_v46  ;;  %v2173_v63 = vsel %vm1853_vm10, %v1693_v43, %v2013_v48 }
  0xf8   : > { %v2524_v0 = vmax.f32 %v2541_v40, %v3706_v13  ;;  %v3718_v2 = vmax.f32 %v2294_v7, %v2319_v57  ;;  %v3721_v9 = vsel %vm533_vm0, %v2131_v58, -inf  ;;  %v2492_v47 = vsel %vm533_vm0, %v2173_v63, -inf }
  0xf9   : > { %v2411_v11 = vmax.f32 %v3673_v41, %v3721_v9  ;;  %v3726_v37 = vmax.f32 %v2485_v50, %v2492_v47  ;;  %v1465_v14 = vpop.f32.mrf.mxu2  ;;  %v1570_v18 = vpop.f32.mrf.mxu3  ;;  %v2590_v43 = vsel %vm533_vm0, %v2255_v33, -inf }
  0xfa   : > { %v1735_v22 = vadd.f32 %v1465_v14, %v3610_v12  ;;  %v1777_v62 = vadd.f32 %v1570_v18, %v3538_v5  ;;  %v1258_v1 = vpop.f32.mrf.mxu0  ;;  %v1363_v7 = vpop.f32.mrf.mxu1 }
  0xfb   : > { %v1652_v10 = vadd.f32 %v1258_v1, %v3548_v15  ;;  %v1694_v50 = vadd.f32 %v1363_v7, %v3582_v45 }
  0xfc   : > { %vm1895_vm12 = vcmp.ge.f32.partialorder %v1735_v22, 0.0  ;;  %v2055_v6 = vmul.f32 0.2, %v1735_v22  ;;  %vm1937_vm13 = vcmp.ge.f32.partialorder %v1777_v62, 0.0  ;;  %v2097_v38 = vmul.f32 0.2, %v1777_v62  ;;  %3114 = vmatmul.msk.bf16.gmra.mxu0 %vm533_vm0, %v3198_v19 }
  0xfd   : > { %vm1812_vm14 = vcmp.ge.f32.partialorder %v1652_v10, 0.0  ;;  %v1972_v13 = vmul.f32 0.2, %v1652_v10  ;;  %vm1854_vm15 = vcmp.ge.f32.partialorder %v1694_v50, 0.0  ;;  %v2014_v42 = vmul.f32 0.2, %v1694_v50  ;;  %3135 = vmatmul.msk.bf16.gmra.mxu1 %vm533_vm0, %v3219_v21 }
  0xfe   : > { %v2215_v44 = vsel %vm1895_vm12, %v1735_v22, %v2055_v6  ;;  %v2257_v52 = vsel %vm1937_vm13, %v1777_v62, %v2097_v38  ;;  %3156 = vmatmul.msk.bf16.gmra.mxu2 %vm533_vm0, %v3240_v24  ;;  %3177 = vmatmul.msk.bf16.gmra.mxu3 %vm533_vm0, %v3261_v32 }
  0xff   : > { %v2580_v34 = vsel %vm533_vm0, %v2215_v44, -inf  ;;  %v2358_v46 = vsel %vm533_vm0, %v2257_v52, -inf  ;;  %v2132_v48 = vsel %vm1812_vm14, %v1652_v10, %v1972_v13  ;;  %v2174_v49 = vsel %vm1854_vm15, %v1694_v50, %v2014_v42 }
 0x100   : > { %v2563_v51 = vmax.f32 %v2580_v34, %v2590_v43  ;;  %v3749_v55 = vmax.f32 %v2333_v39, %v2358_v46  ;;  %v3752_v40 = vsel %vm533_vm0, %v2132_v48, -inf  ;;  %v2531_v57 = vsel %vm533_vm0, %v2174_v49, -inf  ;;  %v3199_v46 = vld [vmem:[%s3421_s17 + $0x58] sm:$0xff]  ;;  %v3220_v48 = vld [vmem:[%s3421_s17 + $0x100] sm:$0xff]  ;;  %v3241_v49 = vld [vmem:[%s3421_s17 + $0x1a8] sm:$0xff] }
 0x101   : > { %v2450_v58 = vmax.f32 %v3701_v30, %v3752_v40  ;;  %v3757_v63 = vmax.f32 %v2524_v0, %v2531_v57  ;;  %v1468_v47 = vpop.f32.mrf.mxu2  ;;  %v1573_v14 = vpop.f32.mrf.mxu3  ;;  %v3262_v57 = vld [vmem:[%s3421_s17 + $0x250] sm:$0xff] }
 0x102   : > { %v1736_v18 = vadd.f32 %v1468_v47, %v3526_v61  ;;  %v1778_v19 = vadd.f32 %v1573_v14, %v3516_v59  ;;  %v1260_v21 = vpop.f32.mrf.mxu0  ;;  %v1365_v31 = vpop.f32.mrf.mxu1 }
 0x103   : > { %v1653_v36 = vadd.f32 %v1260_v21, %v3563_v25  ;;  %v1695_v39 = vadd.f32 %v1365_v31, %v3610_v12 }
 0x104   : > { %vm1896_vm1 = vcmp.ge.f32.partialorder %v1736_v18, 0.0  ;;  %v2056_v22 = vmul.f32 0.2, %v1736_v18  ;;  %vm1938_vm2 = vcmp.ge.f32.partialorder %v1778_v19, 0.0  ;;  %v2098_v62 = vmul.f32 0.2, %v1778_v19 }
 0x105   : > { %vm1813_vm3 = vcmp.ge.f32.partialorder %v1653_v36, 0.0  ;;  %v1973_v1 = vmul.f32 0.2, %v1653_v36  ;;  %vm1855_vm4 = vcmp.ge.f32.partialorder %v1695_v39, 0.0  ;;  %v2015_v0 = vmul.f32 0.2, %v1695_v39 }
 0x106   : > { %v2216_v7 = vsel %vm1896_vm1, %v1736_v18, %v2056_v22  ;;  %v2258_v24 = vsel %vm1938_vm2, %v1778_v19, %v2098_v62 }
 0x107   : > { %v2309_v32 = vsel %vm533_vm0, %v2216_v7, -inf  ;;  %v2397_v33 = vsel %vm533_vm0, %v2258_v24, -inf  ;;  %v2133_v10 = vsel %vm1813_vm3, %v1653_v36, %v1973_v1  ;;  %v2175_v50 = vsel %vm1855_vm4, %v1695_v39, %v2015_v0 }
 0x108   : > { %v2298_v6 = vmax.f32 %v3718_v2, %v2309_v32  ;;  %v3769_v38 = vmax.f32 %v2372_v27, %v2397_v33  ;;  %v3772_v13 = vsel %vm533_vm0, %v2133_v10, -inf  ;;  %v2570_v42 = vsel %vm533_vm0, %v2175_v50, -inf }
 0x109   : > { %v2489_v43 = vmax.f32 %v3726_v37, %v3772_v13  ;;  %v3777_v44 = vmax.f32 %v2563_v51, %v2570_v42  ;;  %v1470_v52 = vpop.f32.mrf.mxu2  ;;  %v1575_v34 = vpop.f32.mrf.mxu3 }
 0x10a   : > { %v1737_v2 = vadd.f32 %v1470_v52, %v3538_v5  ;;  %v1779_v8 = vadd.f32 %v1575_v34, %v3532_v3  ;;  %v1263_v26 = vpop.f32.mrf.mxu0  ;;  %v1368_v27 = vpop.f32.mrf.mxu1 }
 0x10b   : > { %v1654_v47 = vadd.f32 %v1263_v26, %v3582_v45  ;;  %v1696_v14 = vadd.f32 %v1368_v27, %v3526_v61 }
 0x10c   : > { %vm1897_vm5 = vcmp.ge.f32.partialorder %v1737_v2, 0.0  ;;  %v2057_v18 = vmul.f32 0.2, %v1737_v2  ;;  %vm1939_vm6 = vcmp.ge.f32.partialorder %v1779_v8, 0.0  ;;  %v2099_v51 = vmul.f32 0.2, %v1779_v8  ;;  %3115 = vmatmul.msk.bf16.gmra.mxu0 %vm533_vm0, %v3199_v46 }
 0x10d   : > { %vm1814_vm7 = vcmp.ge.f32.partialorder %v1654_v47, 0.0  ;;  %v1974_v19 = vmul.f32 0.2, %v1654_v47  ;;  %vm1856_vm8 = vcmp.ge.f32.partialorder %v1696_v14, 0.0  ;;  %v2016_v21 = vmul.f32 0.2, %v1696_v14  ;;  %3136 = vmatmul.msk.bf16.gmra.mxu1 %vm533_vm0, %v3220_v48 }
 0x10e   : > { %v2217_v31 = vsel %vm1897_vm5, %v1737_v2, %v2057_v18  ;;  %v2259_v36 = vsel %vm1939_vm6, %v1779_v8, %v2099_v51  ;;  %3157 = vmatmul.msk.bf16.gmra.mxu2 %vm533_vm0, %v3241_v49  ;;  %3178 = vmatmul.msk.bf16.gmra.mxu3 %vm533_vm0, %v3262_v57 }
 0x10f   : > { %v2348_v39 = vsel %vm533_vm0, %v2217_v31, -inf  ;;  %v2436_v22 = vsel %vm533_vm0, %v2259_v36, -inf  ;;  %v2134_v62 = vsel %vm1814_vm7, %v1654_v47, %v1974_v19  ;;  %v2176_v1 = vsel %vm1856_vm8, %v1696_v14, %v2016_v21 }
 0x110   : > { %v2337_v0 = vmax.f32 %v3749_v55, %v2348_v39  ;;  %v3797_v7 = vmax.f32 %v2411_v11, %v2436_v22  ;;  %v3800_v24 = vsel %vm533_vm0, %v2134_v62, -inf  ;;  %v2299_v32 = vsel %vm533_vm0, %v2176_v1, -inf  ;;  %v3200_v22 = vld [vmem:[%s3421_s17 + $0x60] sm:$0xff]  ;;  %v3221_v62 = vld [vmem:[%s3421_s17 + $0x108] sm:$0xff]  ;;  %v3242_v1 = vld [vmem:[%s3421_s17 + $0x1b0] sm:$0xff] }
 0x111   : > { %v2528_v33 = vmax.f32 %v3757_v63, %v3800_v24  ;;  %v3805_v10 = vmax.f32 %v2298_v6, %v2299_v32  ;;  %v1473_v50 = vpop.f32.mrf.mxu2  ;;  %v1578_v42 = vpop.f32.mrf.mxu3  ;;  %v3263_v32 = vld [vmem:[%s3421_s17 + $0x258] sm:$0xff] }
 0x112   : > { %v1738_v52 = vadd.f32 %v1473_v50, %v3516_v59  ;;  %v1780_v55 = vadd.f32 %v1578_v42, %v3548_v15  ;;  %v1265_v34 = vpop.f32.mrf.mxu0  ;;  %v1370_v41 = vpop.f32.mrf.mxu1 }
 0x113   : > { %v1655_v9 = vadd.f32 %v1265_v34, %v3610_v12  ;;  %v1697_v11 = vadd.f32 %v1370_v41, %v3538_v5 }
 0x114   : > { %vm1898_vm9 = vcmp.ge.f32.partialorder %v1738_v52, 0.0  ;;  %v2058_v46 = vmul.f32 0.2, %v1738_v52  ;;  %vm1940_vm10 = vcmp.ge.f32.partialorder %v1780_v55, 0.0  ;;  %v2100_v48 = vmul.f32 0.2, %v1780_v55 }
 0x115   : > { %vm1815_vm11 = vcmp.ge.f32.partialorder %v1655_v9, 0.0  ;;  %v1975_v2 = vmul.f32 0.2, %v1655_v9  ;;  %vm1857_vm12 = vcmp.ge.f32.partialorder %v1697_v11, 0.0  ;;  %v2017_v6 = vmul.f32 0.2, %v1697_v11 }
 0x116   : > { %v2218_v8 = vsel %vm1898_vm9, %v1738_v52, %v2058_v46  ;;  %v2260_v26 = vsel %vm1940_vm10, %v1780_v55, %v2100_v48 }
 0x117   : > { %v2387_v27 = vsel %vm533_vm0, %v2218_v8, -inf  ;;  %v2475_v49 = vsel %vm533_vm0, %v2260_v26, -inf  ;;  %v2135_v57 = vsel %vm1815_vm11, %v1655_v9, %v1975_v2  ;;  %v2177_v47 = vsel %vm1857_vm12, %v1697_v11, %v2017_v6 }
 0x118   : > { %v2376_v14 = vmax.f32 %v3769_v38, %v2387_v27  ;;  %v3817_v18 = vmax.f32 %v2450_v58, %v2475_v49  ;;  %v3820_v51 = vsel %vm533_vm0, %v2135_v57, -inf  ;;  %v2338_v19 = vsel %vm533_vm0, %v2177_v47, -inf }
 0x119   : > { %v2567_v21 = vmax.f32 %v3777_v44, %v3820_v51  ;;  %v3825_v31 = vmax.f32 %v2337_v0, %v2338_v19  ;;  %v1475_v36 = vpop.f32.mrf.mxu2  ;;  %v1580_v39 = vpop.f32.mrf.mxu3 }
 0x11a   : > { %v1739_v38 = vadd.f32 %v1475_v36, %v3532_v3  ;;  %v1781_v30 = vadd.f32 %v1580_v39, %v3563_v25  ;;  %v1268_v40 = vpop.f32.mrf.mxu0  ;;  %v1373_v58 = vpop.f32.mrf.mxu1 }
 0x11b   : > { %v1656_v50 = vadd.f32 %v1268_v40, %v3526_v61  ;;  %v1698_v42 = vadd.f32 %v1373_v58, %v3516_v59 }
 0x11c   : > { %vm1899_vm13 = vcmp.ge.f32.partialorder %v1739_v38, 0.0  ;;  %v2059_v52 = vmul.f32 0.2, %v1739_v38  ;;  %vm1941_vm14 = vcmp.ge.f32.partialorder %v1781_v30, 0.0  ;;  %v2101_v0 = vmul.f32 0.2, %v1781_v30  ;;  %3116 = vmatmul.msk.bf16.gmra.mxu0 %vm533_vm0, %v3200_v22 }
 0x11d   : > { %vm1816_vm15 = vcmp.ge.f32.partialorder %v1656_v50, 0.0  ;;  %v1976_v55 = vmul.f32 0.2, %v1656_v50  ;;  %vm1858_vm1 = vcmp.ge.f32.partialorder %v1698_v42, 0.0  ;;  %v2018_v34 = vmul.f32 0.2, %v1698_v42  ;;  %3137 = vmatmul.msk.bf16.gmra.mxu1 %vm533_vm0, %v3221_v62 }
 0x11e   : > { %v2219_v41 = vsel %vm1899_vm13, %v1739_v38, %v2059_v52  ;;  %v2261_v9 = vsel %vm1941_vm14, %v1781_v30, %v2101_v0  ;;  %3158 = vmatmul.msk.bf16.gmra.mxu2 %vm533_vm0, %v3242_v1  ;;  %3179 = vmatmul.msk.bf16.gmra.mxu3 %vm533_vm0, %v3263_v32 }
 0x11f   : > { %v2426_v11 = vsel %vm533_vm0, %v2219_v41, -inf  ;;  %v2514_v46 = vsel %vm533_vm0, %v2261_v9, -inf  ;;  %v2136_v48 = vsel %vm1816_vm15, %v1656_v50, %v1976_v55  ;;  %v2178_v2 = vsel %vm1858_vm1, %v1698_v42, %v2018_v34 }
 0x120   : > { %v2415_v6 = vmax.f32 %v3797_v7, %v2426_v11  ;;  %v3845_v8 = vmax.f32 %v2489_v43, %v2514_v46  ;;  %v3848_v26 = vsel %vm533_vm0, %v2136_v48, -inf  ;;  %v2377_v27 = vsel %vm533_vm0, %v2178_v2, -inf  ;;  %v3201_v46 = vld [vmem:[%s3421_s17 + $0x68] sm:$0xff]  ;;  %v3222_v48 = vld [vmem:[%s3421_s17 + $0x110] sm:$0xff]  ;;  %v3243_v2 = vld [vmem:[%s3421_s17 + $0x1b8] sm:$0xff] }
 0x121   : > { %v2302_v49 = vmax.f32 %v3805_v10, %v3848_v26  ;;  %v3853_v57 = vmax.f32 %v2376_v14, %v2377_v27  ;;  %v1478_v47 = vpop.f32.mrf.mxu2  ;;  %v1583_v19 = vpop.f32.mrf.mxu3  ;;  %v3264_v27 = vld [vmem:[%s3421_s17 + $0x260] sm:$0xff] }
 0x122   : > { %v1740_v36 = vadd.f32 %v1478_v47, %v3548_v15  ;;  %v1782_v7 = vadd.f32 %v1583_v19, %v3582_v45  ;;  %v1270_v39 = vpop.f32.mrf.mxu0  ;;  %v1375_v37 = vpop.f32.mrf.mxu1 }
 0x123   : > { %v1657_v13 = vadd.f32 %v1270_v39, %v3538_v5  ;;  %v1699_v43 = vadd.f32 %v1375_v37, %v3532_v3 }
 0x124   : > { %vm1900_vm2 = vcmp.ge.f32.partialorder %v1740_v36, 0.0  ;;  %v2060_v22 = vmul.f32 0.2, %v1740_v36  ;;  %vm1942_vm3 = vcmp.ge.f32.partialorder %v1782_v7, 0.0  ;;  %v2102_v62 = vmul.f32 0.2, %v1782_v7 }
 0x125   : > { %vm1817_vm4 = vcmp.ge.f32.partialorder %v1657_v13, 0.0  ;;  %v1977_v38 = vmul.f32 0.2, %v1657_v13  ;;  %vm1859_vm5 = vcmp.ge.f32.partialorder %v1699_v43, 0.0  ;;  %v2019_v14 = vmul.f32 0.2, %v1699_v43 }
 0x126   : > { %v2220_v30 = vsel %vm1900_vm2, %v1740_v36, %v2060_v22  ;;  %v2262_v40 = vsel %vm1942_vm3, %v1782_v7, %v2102_v62 }
 0x127   : > { %v2465_v58 = vsel %vm533_vm0, %v2220_v30, -inf  ;;  %v2553_v1 = vsel %vm533_vm0, %v2262_v40, -inf  ;;  %v2137_v32 = vsel %vm1817_vm4, %v1657_v13, %v1977_v38  ;;  %v2179_v50 = vsel %vm1859_vm5, %v1699_v43, %v2019_v14 }
 0x128   : > { %v2454_v42 = vmax.f32 %v3817_v18, %v2465_v58  ;;  %v3865_v52 = vmax.f32 %v2528_v33, %v2553_v1  ;;  %v3868_v0 = vsel %vm533_vm0, %v2137_v32, -inf  ;;  %v2416_v55 = vsel %vm533_vm0, %v2179_v50, -inf }
 0x129   : > { %v2341_v34 = vmax.f32 %v3825_v31, %v3868_v0  ;;  %v3873_v41 = vmax.f32 %v2415_v6, %v2416_v55  ;;  %v1480_v9 = vpop.f32.mrf.mxu2  ;;  %v1585_v11 = vpop.f32.mrf.mxu3 }
 0x12a   : > { %v1741_v18 = vadd.f32 %v1480_v9, %v3563_v25  ;;  %v1783_v63 = vadd.f32 %v1585_v11, %v3610_v12  ;;  %v1273_v24 = vpop.f32.mrf.mxu0  ;;  %v1378_v33 = vpop.f32.mrf.mxu1 }
 0x12b   : > { %v1658_v47 = vadd.f32 %v1273_v24, %v3516_v59  ;;  %v1700_v19 = vadd.f32 %v1378_v33, %v3548_v15 }
 0x12c   : > { %vm1901_vm6 = vcmp.ge.f32.partialorder %v1741_v18, 0.0  ;;  %v2061_v36 = vmul.f32 0.2, %v1741_v18  ;;  %vm1943_vm7 = vcmp.ge.f32.partialorder %v1783_v63, 0.0  ;;  %v2103_v6 = vmul.f32 0.2, %v1783_v63  ;;  %3117 = vmatmul.msk.bf16.gmra.mxu0 %vm533_vm0, %v3201_v46 }
 0x12d   : > { %vm1818_vm8 = vcmp.ge.f32.partialorder %v1658_v47, 0.0  ;;  %v1978_v7 = vmul.f32 0.2, %v1658_v47  ;;  %vm1860_vm9 = vcmp.ge.f32.partialorder %v1700_v19, 0.0  ;;  %v2020_v39 = vmul.f32 0.2, %v1700_v19  ;;  %3138 = vmatmul.msk.bf16.gmra.mxu1 %vm533_vm0, %v3222_v48 }
 0x12e   : > { %v2221_v37 = vsel %vm1901_vm6, %v1741_v18, %v2061_v36  ;;  %v2263_v13 = vsel %vm1943_vm7, %v1783_v63, %v2103_v6  ;;  %3159 = vmatmul.msk.bf16.gmra.mxu2 %vm533_vm0, %v3243_v2  ;;  %3180 = vmatmul.msk.bf16.gmra.mxu3 %vm533_vm0, %v3264_v27 }
 0x12f   : > { %v2504_v43 = vsel %vm533_vm0, %v2221_v37, -inf  ;;  %v2592_v22 = vsel %vm533_vm0, %v2263_v13, -inf  ;;  %v2138_v62 = vsel %vm1818_vm8, %v1658_v47, %v1978_v7  ;;  %v2180_v38 = vsel %vm1860_vm9, %v1700_v19, %v2020_v39 }
 0x130   : > { %v2493_v14 = vmax.f32 %v3845_v8, %v2504_v43  ;;  %v3893_v30 = vmax.f32 %v2567_v21, %v2592_v22  ;;  %v3896_v40 = vsel %vm533_vm0, %v2138_v62, -inf  ;;  %v2455_v58 = vsel %vm533_vm0, %v2180_v38, -inf  ;;  %v3202_v22 = vld [vmem:[%s3421_s17 + $0x70] sm:$0xff]  ;;  %v3223_v62 = vld [vmem:[%s3421_s17 + $0x118] sm:$0xff]  ;;  %v3244_v38 = vld [vmem:[%s3421_s17 + $0x1c0] sm:$0xff] }
 0x131   : > { %v2380_v1 = vmax.f32 %v3853_v57, %v3896_v40  ;;  %v3901_v32 = vmax.f32 %v2454_v42, %v2455_v58  ;;  %v1483_v50 = vpop.f32.mrf.mxu2  ;;  %v1588_v55 = vpop.f32.mrf.mxu3  ;;  %v3265_v58 = vld [vmem:[%s3421_s17 + $0x268] sm:$0xff] }
 0x132   : > { %v1742_v9 = vadd.f32 %v1483_v50, %v3582_v45  ;;  %v1784_v8 = vadd.f32 %v1588_v55, %v3526_v61  ;;  %v1275_v11 = vpop.f32.mrf.mxu0  ;;  %v1380_v44 = vpop.f32.mrf.mxu1 }
 0x133   : > { %v1659_v51 = vadd.f32 %v1275_v11, %v3532_v3  ;;  %v1701_v21 = vadd.f32 %v1380_v44, %v3563_v25 }
 0x134   : > { %vm1902_vm10 = vcmp.ge.f32.partialorder %v1742_v9, 0.0  ;;  %v2062_v46 = vmul.f32 0.2, %v1742_v9  ;;  %vm1944_vm11 = vcmp.ge.f32.partialorder %v1784_v8, 0.0  ;;  %v2104_v48 = vmul.f32 0.2, %v1784_v8 }
 0x135   : > { %vm1819_vm12 = vcmp.ge.f32.partialorder %v1659_v51, 0.0  ;;  %v1979_v18 = vmul.f32 0.2, %v1659_v51  ;;  %vm1861_vm13 = vcmp.ge.f32.partialorder %v1701_v21, 0.0  ;;  %v2021_v42 = vmul.f32 0.2, %v1701_v21 }
 0x136   : > { %v2222_v63 = vsel %vm1902_vm10, %v1742_v9, %v2062_v46  ;;  %v2264_v24 = vsel %vm1944_vm11, %v1784_v8, %v2104_v48 }
 0x137   : > { %v2543_v33 = vsel %vm533_vm0, %v2222_v63, -inf  ;;  %v2321_v2 = vsel %vm533_vm0, %v2264_v24, -inf  ;;  %v2139_v27 = vsel %vm1819_vm12, %v1659_v51, %v1979_v18  ;;  %v2181_v47 = vsel %vm1861_vm13, %v1701_v21, %v2021_v42 }
 0x138   : > { %v2532_v19 = vmax.f32 %v3865_v52, %v2543_v33  ;;  %v3913_v36 = vmax.f32 %v2302_v49, %v2321_v2  ;;  %v3916_v6 = vsel %vm533_vm0, %v2139_v27, -inf  ;;  %v2494_v7 = vsel %vm533_vm0, %v2181_v47, -inf }
 0x139   : > { %v2419_v39 = vmax.f32 %v3873_v41, %v3916_v6  ;;  %v3921_v37 = vmax.f32 %v2493_v14, %v2494_v7  ;;  %v1485_v13 = vpop.f32.mrf.mxu2  ;;  %v1590_v43 = vpop.f32.mrf.mxu3 }
 0x13a   : > { %v1743_v52 = vadd.f32 %v1485_v13, %v3610_v12  ;;  %v1785_v10 = vadd.f32 %v1590_v43, %v3538_v5  ;;  %v1278_v26 = vpop.f32.mrf.mxu0  ;;  %v1383_v49 = vpop.f32.mrf.mxu1 }
 0x13b   : > { %v1660_v50 = vadd.f32 %v1278_v26, %v3548_v15  ;;  %v1702_v55 = vadd.f32 %v1383_v49, %v3582_v45 }
 0x13c   : > { %vm1903_vm14 = vcmp.ge.f32.partialorder %v1743_v52, 0.0  ;;  %v2063_v9 = vmul.f32 0.2, %v1743_v52  ;;  %vm1945_vm15 = vcmp.ge.f32.partialorder %v1785_v10, 0.0  ;;  %v2105_v14 = vmul.f32 0.2, %v1785_v10  ;;  %3118 = vmatmul.msk.bf16.gmra.mxu0 %vm533_vm0, %v3202_v22 }
 0x13d   : > { %vm1820_vm1 = vcmp.ge.f32.partialorder %v1660_v50, 0.0  ;;  %v1980_v8 = vmul.f32 0.2, %v1660_v50  ;;  %vm1862_vm2 = vcmp.ge.f32.partialorder %v1702_v55, 0.0  ;;  %v2022_v11 = vmul.f32 0.2, %v1702_v55  ;;  %3139 = vmatmul.msk.bf16.gmra.mxu1 %vm533_vm0, %v3223_v62 }
 0x13e   : > { %v2223_v44 = vsel %vm1903_vm14, %v1743_v52, %v2063_v9  ;;  %v2265_v51 = vsel %vm1945_vm15, %v1785_v10, %v2105_v14  ;;  %3160 = vmatmul.msk.bf16.gmra.mxu2 %vm533_vm0, %v3244_v38  ;;  %3181 = vmatmul.msk.bf16.gmra.mxu3 %vm533_vm0, %v3265_v58 }
 0x13f   : > { %v2582_v21 = vsel %vm533_vm0, %v2223_v44, -inf  ;;  %v2360_v46 = vsel %vm533_vm0, %v2265_v51, -inf  ;;  %v2140_v48 = vsel %vm1820_vm1, %v1660_v50, %v1980_v8  ;;  %v2182_v18 = vsel %vm1862_vm2, %v1702_v55, %v2022_v11 }
 0x140   : > { %v2571_v42 = vmax.f32 %v3893_v30, %v2582_v21  ;;  %v3941_v63 = vmax.f32 %v2341_v34, %v2360_v46  ;;  %v3944_v24 = vsel %vm533_vm0, %v2140_v48, -inf  ;;  %v2533_v33 = vsel %vm533_vm0, %v2182_v18, -inf  ;;  %v3203_v46 = vld [vmem:[%s3421_s17 + $0x78] sm:$0xff]  ;;  %v3224_v48 = vld [vmem:[%s3421_s17 + $0x120] sm:$0xff]  ;;  %v3245_v18 = vld [vmem:[%s3421_s17 + $0x1c8] sm:$0xff] }
 0x141   : > { %v2458_v2 = vmax.f32 %v3901_v32, %v3944_v24  ;;  %v3949_v27 = vmax.f32 %v2532_v19, %v2533_v33  ;;  %v1488_v47 = vpop.f32.mrf.mxu2  ;;  %v1593_v7 = vpop.f32.mrf.mxu3  ;;  %v3266_v33 = vld [vmem:[%s3421_s17 + $0x270] sm:$0xff] }
 0x142   : > { %v1744_v13 = vadd.f32 %v1488_v47, %v3526_v61  ;;  %v1786_v30 = vadd.f32 %v1593_v7, %v3516_v59  ;;  %v1280_v43 = vpop.f32.mrf.mxu0  ;;  %v1385_v31 = vpop.f32.mrf.mxu1 }
 0x143   : > { %v1661_v0 = vadd.f32 %v1280_v43, %v3563_v25  ;;  %v1703_v34 = vadd.f32 %v1385_v31, %v3610_v12 }
 0x144   : > { %vm1904_vm3 = vcmp.ge.f32.partialorder %v1744_v13, 0.0  ;;  %v2064_v22 = vmul.f32 0.2, %v1744_v13  ;;  %vm1946_vm4 = vcmp.ge.f32.partialorder %v1786_v30, 0.0  ;;  %v2106_v62 = vmul.f32 0.2, %v1786_v30 }
 0x145   : > { %vm1821_vm5 = vcmp.ge.f32.partialorder %v1661_v0, 0.0  ;;  %v1981_v52 = vmul.f32 0.2, %v1661_v0  ;;  %vm1863_vm6 = vcmp.ge.f32.partialorder %v1703_v34, 0.0  ;;  %v2023_v19 = vmul.f32 0.2, %v1703_v34 }
 0x146   : > { %v2224_v10 = vsel %vm1904_vm3, %v1744_v13, %v2064_v22  ;;  %v2266_v26 = vsel %vm1946_vm4, %v1786_v30, %v2106_v62 }
 0x147   : > { %v2311_v49 = vsel %vm533_vm0, %v2224_v10, -inf  ;;  %v2399_v38 = vsel %vm533_vm0, %v2266_v26, -inf  ;;  %v2141_v58 = vsel %vm1821_vm5, %v1661_v0, %v1981_v52  ;;  %v2183_v50 = vsel %vm1863_vm6, %v1703_v34, %v2023_v19 }
 0x148   : > { %v2306_v55 = vmax.f32 %v3913_v36, %v2311_v49  ;;  %v3961_v9 = vmax.f32 %v2380_v1, %v2399_v38  ;;  %v3964_v14 = vsel %vm533_vm0, %v2141_v58, -inf  ;;  %v2572_v8 = vsel %vm533_vm0, %v2183_v50, -inf }
 0x149   : > { %v2497_v11 = vmax.f32 %v3921_v37, %v3964_v14  ;;  %v3969_v44 = vmax.f32 %v2571_v42, %v2572_v8  ;;  %v1490_v51 = vpop.f32.mrf.mxu2  ;;  %v1595_v21 = vpop.f32.mrf.mxu3 }
 0x14a   : > { %v1745_v36 = vadd.f32 %v1490_v51, %v3538_v5  ;;  %v1787_v57 = vadd.f32 %v1595_v21, %v3532_v3  ;;  %v1283_v40 = vpop.f32.mrf.mxu0  ;;  %v1388_v1 = vpop.f32.mrf.mxu1 }
 0x14b   : > { %v1662_v47 = vadd.f32 %v1283_v40, %v3582_v45  ;;  %v1704_v7 = vadd.f32 %v1388_v1, %v3526_v61 }
 0x14c   : > { %vm1905_vm7 = vcmp.ge.f32.partialorder %v1745_v36, 0.0  ;;  %v2065_v13 = vmul.f32 0.2, %v1745_v36  ;;  %vm1947_vm8 = vcmp.ge.f32.partialorder %v1787_v57, 0.0  ;;  %v2107_v42 = vmul.f32 0.2, %v1787_v57  ;;  %3119 = vmatmul.msk.bf16.gmra.mxu0 %vm533_vm0, %v3203_v46 }
 0x14d   : > { %vm1822_vm9 = vcmp.ge.f32.partialorder %v1662_v47, 0.0  ;;  %v1982_v30 = vmul.f32 0.2, %v1662_v47  ;;  %vm1864_vm10 = vcmp.ge.f32.partialorder %v1704_v7, 0.0  ;;  %v2024_v43 = vmul.f32 0.2, %v1704_v7  ;;  %3140 = vmatmul.msk.bf16.gmra.mxu1 %vm533_vm0, %v3224_v48 }
 0x14e   : > { %v2225_v31 = vsel %vm1905_vm7, %v1745_v36, %v2065_v13  ;;  %v2267_v0 = vsel %vm1947_vm8, %v1787_v57, %v2107_v42  ;;  %3161 = vmatmul.msk.bf16.gmra.mxu2 %vm533_vm0, %v3245_v18  ;;  %3182 = vmatmul.msk.bf16.gmra.mxu3 %vm533_vm0, %v3266_v33 }
 0x14f   : > { %v2350_v34 = vsel %vm533_vm0, %v2225_v31, -inf  ;;  %v2438_v22 = vsel %vm533_vm0, %v2267_v0, -inf  ;;  %v2142_v62 = vsel %vm1822_vm9, %v1662_v47, %v1982_v30  ;;  %v2184_v52 = vsel %vm1864_vm10, %v1704_v7, %v2024_v43 }
 0x150   : > { %v2345_v19 = vmax.f32 %v3941_v63, %v2350_v34  ;;  %v3989_v10 = vmax.f32 %v2419_v39, %v2438_v22  ;;  %v3992_v26 = vsel %vm533_vm0, %v2142_v62, -inf  ;;  %v2301_v49 = vsel %vm533_vm0, %v2184_v52, -inf  ;;  %v3204_v22 = vld [vmem:[%s3421_s17 + $0x80] sm:$0xff]  ;;  %v3225_v62 = vld [vmem:[%s3421_s17 + $0x128] sm:$0xff]  ;;  %v3246_v52 = vld [vmem:[%s3421_s17 + $0x1d0] sm:$0xff] }
 0x151   : > { %v2536_v38 = vmax.f32 %v3949_v27, %v3992_v26  ;;  %v3997_v58 = vmax.f32 %v2306_v55, %v2301_v49  ;;  %v1493_v50 = vpop.f32.mrf.mxu2  ;;  %v1598_v8 = vpop.f32.mrf.mxu3  ;;  %v3267_v49 = vld [vmem:[%s3421_s17 + $0x278] sm:$0xff] }
 0x152   : > { %v1746_v51 = vadd.f32 %v1493_v50, %v3516_v59  ;;  %v1788_v63 = vadd.f32 %v1598_v8, %v3548_v15  ;;  %v1285_v21 = vpop.f32.mrf.mxu0  ;;  %v1390_v41 = vpop.f32.mrf.mxu1 }
 0x153   : > { %v1663_v6 = vadd.f32 %v1285_v21, %v3610_v12  ;;  %v1705_v39 = vadd.f32 %v1390_v41, %v3538_v5 }
 0x154   : > { %vm1906_vm11 = vcmp.ge.f32.partialorder %v1746_v51, 0.0  ;;  %v2066_v46 = vmul.f32 0.2, %v1746_v51  ;;  %vm1948_vm12 = vcmp.ge.f32.partialorder %v1788_v63, 0.0  ;;  %v2108_v48 = vmul.f32 0.2, %v1788_v63 }
 0x155   : > { %vm1823_vm13 = vcmp.ge.f32.partialorder %v1663_v6, 0.0  ;;  %v1983_v36 = vmul.f32 0.2, %v1663_v6  ;;  %vm1865_vm14 = vcmp.ge.f32.partialorder %v1705_v39, 0.0  ;;  %v2025_v55 = vmul.f32 0.2, %v1705_v39 }
 0x156   : > { %v2226_v57 = vsel %vm1906_vm11, %v1746_v51, %v2066_v46  ;;  %v2268_v40 = vsel %vm1948_vm12, %v1788_v63, %v2108_v48 }
 0x157   : > { %v2389_v1 = vsel %vm533_vm0, %v2226_v57, -inf  ;;  %v2477_v18 = vsel %vm533_vm0, %v2268_v40, -inf  ;;  %v2143_v33 = vsel %vm1823_vm13, %v1663_v6, %v1983_v36  ;;  %v2185_v47 = vsel %vm1865_vm14, %v1705_v39, %v2025_v55 }
 0x158   : > { %v2384_v7 = vmax.f32 %v3961_v9, %v2389_v1  ;;  %v4009_v13 = vmax.f32 %v2458_v2, %v2477_v18  ;;  %v4012_v42 = vsel %vm533_vm0, %v2143_v33, -inf  ;;  %v2340_v30 = vsel %vm533_vm0, %v2185_v47, -inf }
 0x159   : > { %v2575_v43 = vmax.f32 %v3969_v44, %v4012_v42  ;;  %v4017_v31 = vmax.f32 %v2345_v19, %v2340_v30  ;;  %v1495_v0 = vpop.f32.mrf.mxu2  ;;  %v1600_v34 = vpop.f32.mrf.mxu3 }
 0x15a   : > { %v1747_v9 = vadd.f32 %v1495_v0, %v3532_v3  ;;  %v1789_v32 = vadd.f32 %v1600_v34, %v3563_v25  ;;  %v1288_v24 = vpop.f32.mrf.mxu0  ;;  %v1393_v2 = vpop.f32.mrf.mxu1 }
 0x15b   : > { %v1664_v50 = vadd.f32 %v1288_v24, %v3526_v61  ;;  %v1706_v8 = vadd.f32 %v1393_v2, %v3516_v59 }
 0x15c   : > { %vm1907_vm15 = vcmp.ge.f32.partialorder %v1747_v9, 0.0  ;;  %v2067_v51 = vmul.f32 0.2, %v1747_v9  ;;  %vm1949_vm1 = vcmp.ge.f32.partialorder %v1789_v32, 0.0  ;;  %v2109_v19 = vmul.f32 0.2, %v1789_v32  ;;  %3120 = vmatmul.msk.bf16.gmra.mxu0 %vm533_vm0, %v3204_v22 }
 0x15d   : > { %vm1824_vm2 = vcmp.ge.f32.partialorder %v1664_v50, 0.0  ;;  %v1984_v63 = vmul.f32 0.2, %v1664_v50  ;;  %vm1866_vm3 = vcmp.ge.f32.partialorder %v1706_v8, 0.0  ;;  %v2026_v21 = vmul.f32 0.2, %v1706_v8  ;;  %3141 = vmatmul.msk.bf16.gmra.mxu1 %vm533_vm0, %v3225_v62 }
 0x15e   : > { %v2227_v41 = vsel %vm1907_vm15, %v1747_v9, %v2067_v51  ;;  %v2269_v6 = vsel %vm1949_vm1, %v1789_v32, %v2109_v19  ;;  %3162 = vmatmul.msk.bf16.gmra.mxu2 %vm533_vm0, %v3246_v52  ;;  %3183 = vmatmul.msk.bf16.gmra.mxu3 %vm533_vm0, %v3267_v49 }
 0x15f   : > { %v2428_v39 = vsel %vm533_vm0, %v2227_v41, -inf  ;;  %v2516_v46 = vsel %vm533_vm0, %v2269_v6, -inf  ;;  %v2144_v48 = vsel %vm1824_vm2, %v1664_v50, %v1984_v63  ;;  %v2186_v36 = vsel %vm1866_vm3, %v1706_v8, %v2026_v21 }
 0x160   : > { %v2423_v55 = vmax.f32 %v3989_v10, %v2428_v39  ;;  %v4037_v57 = vmax.f32 %v2497_v11, %v2516_v46  ;;  %v4040_v40 = vsel %vm533_vm0, %v2144_v48, -inf  ;;  %v2379_v1 = vsel %vm533_vm0, %v2186_v36, -inf }
 0x161   : > { %v2310_v18 = vmax.f32 %v3997_v58, %v4040_v40  ;;  %v4045_v33 = vmax.f32 %v2384_v7, %v2379_v1  ;;  %v1498_v47 = vpop.f32.mrf.mxu2  ;;  %v1603_v30 = vpop.f32.mrf.mxu3 }
 0x162   : > { %v1748_v0 = vadd.f32 %v1498_v47, %v3548_v15  ;;  %v1790_v10 = vadd.f32 %v1603_v30, %v3582_v45  ;;  %v1290_v34 = vpop.f32.mrf.mxu0  ;;  %v1395_v37 = vpop.f32.mrf.mxu1 }
 0x163   : > { %v1665_v14 = vadd.f32 %v1290_v34, %v3538_v5  ;;  %v1707_v11 = vadd.f32 %v1395_v37, %v3532_v3 }
 0x164   : > { %vm1908_vm4 = vcmp.ge.f32.partialorder %v1748_v0, 0.0  ;;  %v2068_v22 = vmul.f32 0.2, %v1748_v0  ;;  %vm1950_vm5 = vcmp.ge.f32.partialorder %v1790_v10, 0.0  ;;  %v2110_v62 = vmul.f32 0.2, %v1790_v10 }
 0x165   : > { %vm1825_vm6 = vcmp.ge.f32.partialorder %v1665_v14, 0.0  ;;  %v1985_v9 = vmul.f32 0.2, %v1665_v14  ;;  %vm1867_vm7 = vcmp.ge.f32.partialorder %v1707_v11, 0.0  ;;  %v2027_v7 = vmul.f32 0.2, %v1707_v11 }
 0x166   : > { %v2228_v32 = vsel %vm1908_vm4, %v1748_v0, %v2068_v22  ;;  %v2270_v24 = vsel %vm1950_vm5, %v1790_v10, %v2110_v62 }
 0x167   : > { %v2467_v2 = vsel %vm533_vm0, %v2228_v32, -inf  ;;  %v2555_v52 = vsel %vm533_vm0, %v2270_v24, -inf  ;;  %v2145_v49 = vsel %vm1825_vm6, %v1665_v14, %v1985_v9  ;;  %v2187_v50 = vsel %vm1867_vm7, %v1707_v11, %v2027_v7 }
 0x168   : > { %v2462_v8 = vmax.f32 %v4009_v13, %v2467_v2  ;;  %v4057_v51 = vmax.f32 %v2536_v38, %v2555_v52  ;;  %v4060_v19 = vsel %vm533_vm0, %v2145_v49, -inf  ;;  %v2418_v63 = vsel %vm533_vm0, %v2187_v50, -inf }
 0x169   : > { %v2349_v21 = vmax.f32 %v4017_v31, %v4060_v19  ;;  %v4065_v41 = vmax.f32 %v2423_v55, %v2418_v63  ;;  %v1500_v6 = vpop.f32.mrf.mxu2  ;;  %v1605_v39 = vpop.f32.mrf.mxu3 }
 0x16a   : > { %v1749_v46 = vadd.f32 %v1500_v6, %v3563_v25  ;;  %v1791_v13 = vadd.f32 %v1605_v39, %v3610_v12  ;;  %v1293_v48 = vpop.f32.mrf.mxu0  ;;  %v1398_v27 = vpop.f32.mrf.mxu1 }
 0x16b   : > { %v1666_v26 = vadd.f32 %v1293_v48, %v3516_v59  ;;  %v1708_v38 = vadd.f32 %v1398_v27, %v3548_v15 }
 0x16c   : > { %vm1909_vm8 = vcmp.ge.f32.partialorder %v1749_v46, 0.0  ;;  %v2069_v36 = vmul.f32 0.2, %v1749_v46  ;;  %vm1951_vm9 = vcmp.ge.f32.partialorder %v1791_v13, 0.0  ;;  %v2111_v1 = vmul.f32 0.2, %v1791_v13 }
 0x16d   : > { %vm1826_vm10 = vcmp.ge.f32.partialorder %v1666_v26, 0.0  ;;  %v1986_v47 = vmul.f32 0.2, %v1666_v26  ;;  %vm1868_vm11 = vcmp.ge.f32.partialorder %v1708_v38, 0.0  ;;  %v2028_v55 = vmul.f32 0.2, %v1708_v38 }
 0x16e   : > { %v2229_v30 = vsel %vm1909_vm8, %v1749_v46, %v2069_v36  ;;  %v2271_v0 = vsel %vm1951_vm9, %v1791_v13, %v2111_v1 }
 0x16f   : > { %v2506_v10 = vsel %vm533_vm0, %v2229_v30, -inf  ;;  %v2594_v34 = vsel %vm533_vm0, %v2271_v0, -inf  ;;  %v2146_v37 = vsel %vm1826_vm10, %v1666_v26, %v1986_v47  ;;  %v2188_v14 = vsel %vm1868_vm11, %v1708_v38, %v2028_v55 }
 0x170   : > { %v2501_v11 = vmax.f32 %v4037_v57, %v2506_v10  ;;  %v4077_v22 = vmax.f32 %v2575_v43, %v2594_v34  ;;  %v4080_v62 = vsel %vm533_vm0, %v2146_v37, -inf  ;;  %v2457_v9 = vsel %vm533_vm0, %v2188_v14, -inf }
 0x171   : > { %v2388_v7 = vmax.f32 %v4045_v33, %v4080_v62  ;;  %v4085_v32 = vmax.f32 %v2462_v8, %v2457_v9  ;;  %v1503_v24 = vpop.f32.mrf.mxu2  ;;  %v1608_v2 = vpop.f32.mrf.mxu3 }
 0x172   : > { %v1750_v52 = vadd.f32 %v1503_v24, %v3582_v45  ;;  %v1792_v57 = vadd.f32 %v1608_v2, %v3526_v61  ;;  %v1295_v49 = vpop.f32.mrf.mxu0  ;;  %v1400_v44 = vpop.f32.mrf.mxu1 }
 0x173   : > { %v1667_v42 = vadd.f32 %v1295_v49, %v3532_v3  ;;  %v1709_v43 = vadd.f32 %v1400_v44, %v3563_v25 }
 0x174   : > { %vm1910_vm12 = vcmp.ge.f32.partialorder %v1750_v52, 0.0  ;;  %v2070_v50 = vmul.f32 0.2, %v1750_v52  ;;  %vm1952_vm13 = vcmp.ge.f32.partialorder %v1792_v57, 0.0  ;;  %v2112_v63 = vmul.f32 0.2, %v1792_v57 }
 0x175   : > { %vm1827_vm14 = vcmp.ge.f32.partialorder %v1667_v42, 0.0  ;;  %v1987_v6 = vmul.f32 0.2, %v1667_v42  ;;  %vm1869_vm15 = vcmp.ge.f32.partialorder %v1709_v43, 0.0  ;;  %v2029_v8 = vmul.f32 0.2, %v1709_v43 }
 0x176   : > { %v2230_v39 = vsel %vm1910_vm12, %v1750_v52, %v2070_v50  ;;  %v2272_v46 = vsel %vm1952_vm13, %v1792_v57, %v2112_v63 }
 0x177   : > { %v2545_v13 = vsel %vm533_vm0, %v2230_v39, -inf  ;;  %v2323_v48 = vsel %vm533_vm0, %v2272_v46, -inf  ;;  %v2147_v27 = vsel %vm1827_vm14, %v1667_v42, %v1987_v6  ;;  %v2189_v26 = vsel %vm1869_vm15, %v1709_v43, %v2029_v8 }
 0x178   : > { %v2540_v38 = vmax.f32 %v4057_v51, %v2545_v13  ;;  %v4097_v36 = vmax.f32 %v2310_v18, %v2323_v48  ;;  %v4100_v1 = vsel %vm533_vm0, %v2147_v27, -inf  ;;  %v2496_v47 = vsel %vm533_vm0, %v2189_v26, -inf }
 0x179   : > { %v2427_v55 = vmax.f32 %v4065_v41, %v4100_v1  ;;  %v4105_v30 = vmax.f32 %v2501_v11, %v2496_v47  ;;  %v1505_v0 = vpop.f32.mrf.mxu2  ;;  %v1610_v10 = vpop.f32.mrf.mxu3 }
 0x17a   : > { %v1751_v34 = vadd.f32 %v1505_v0, %v3610_v12  ;;  %v1793_v51 = vadd.f32 %v1610_v10, %v3538_v5  ;;  %v1298_v37 = vpop.f32.mrf.mxu0  ;;  %v1403_v58 = vpop.f32.mrf.mxu1 }
 0x17b   : > { %v1668_v40 = vadd.f32 %v1298_v37, %v3548_v15  ;;  %v1710_v18 = vadd.f32 %v1403_v58, %v3582_v45 }
 0x17c   : > { %vm1911_vm1 = vcmp.ge.f32.partialorder %v1751_v34, 0.0  ;;  %v2071_v14 = vmul.f32 0.2, %v1751_v34  ;;  %vm1953_vm2 = vcmp.ge.f32.partialorder %v1793_v51, 0.0  ;;  %v2113_v9 = vmul.f32 0.2, %v1793_v51 }
 0x17d   : > { %vm1828_vm3 = vcmp.ge.f32.partialorder %v1668_v40, 0.0  ;;  %v1988_v24 = vmul.f32 0.2, %v1668_v40  ;;  %vm1870_vm4 = vcmp.ge.f32.partialorder %v1710_v18, 0.0  ;;  %v2030_v11 = vmul.f32 0.2, %v1710_v18 }
 0x17e   : > { %v2231_v2 = vsel %vm1911_vm1, %v1751_v34, %v2071_v14  ;;  %v2273_v52 = vsel %vm1953_vm2, %v1793_v51, %v2113_v9 }
 0x17f   : > { %v2584_v57 = vsel %vm533_vm0, %v2231_v2, -inf  ;;  %v2362_v49 = vsel %vm533_vm0, %v2273_v52, -inf  ;;  %v2148_v44 = vsel %vm1828_vm3, %v1668_v40, %v1988_v24  ;;  %v2190_v42 = vsel %vm1870_vm4, %v1710_v18, %v2030_v11 }
 0x180   : > { %v2579_v43 = vmax.f32 %v4077_v22, %v2584_v57  ;;  %v4117_v50 = vmax.f32 %v2349_v21, %v2362_v49  ;;  %v4120_v63 = vsel %vm533_vm0, %v2148_v44, -inf  ;;  %v2535_v6 = vsel %vm533_vm0, %v2190_v42, -inf }
 0x181   : > { %v2466_v8 = vmax.f32 %v4085_v32, %v4120_v63  ;;  %v4125_v39 = vmax.f32 %v2540_v38, %v2535_v6  ;;  %v1508_v46 = vpop.f32.mrf.mxu2  ;;  %v1613_v13 = vpop.f32.mrf.mxu3 }
 0x182   : > { %v1752_v48 = vadd.f32 %v1508_v46, %v3526_v61  ;;  %v1794_v22 = vadd.f32 %v1613_v13, %v3516_v59  ;;  %v1300_v27 = vpop.f32.mrf.mxu0  ;;  %v1405_v31 = vpop.f32.mrf.mxu1 }
 0x183   : > { %v1669_v19 = vadd.f32 %v1300_v27, %v3563_v25  ;;  %v1711_v21 = vadd.f32 %v1405_v31, %v3610_v12 }
 0x184   : > { %vm1912_vm5 = vcmp.ge.f32.partialorder %v1752_v48, 0.0  ;;  %v2072_v26 = vmul.f32 0.2, %v1752_v48  ;;  %vm1954_vm6 = vcmp.ge.f32.partialorder %v1794_v22, 0.0  ;;  %v2114_v47 = vmul.f32 0.2, %v1794_v22 }
 0x185   : > { %vm1829_vm7 = vcmp.ge.f32.partialorder %v1669_v19, 0.0  ;;  %v1989_v0 = vmul.f32 0.2, %v1669_v19  ;;  %vm1871_vm8 = vcmp.ge.f32.partialorder %v1711_v21, 0.0  ;;  %v2031_v38 = vmul.f32 0.2, %v1711_v21 }
 0x186   : > { %v2232_v10 = vsel %vm1912_vm5, %v1752_v48, %v2072_v26  ;;  %v2274_v34 = vsel %vm1954_vm6, %v1794_v22, %v2114_v47  ;;  %vm1842_vm6 = vcmp.ge.f32.partialorder %v3521_v60, 0.0 }
 0x187   : > { %v2313_v51 = vsel %vm533_vm0, %v2232_v10, -inf  ;;  %v2401_v37 = vsel %vm533_vm0, %v2274_v34, -inf  ;;  %v2149_v58 = vsel %vm1829_vm7, %v1669_v19, %v1989_v0  ;;  %v2191_v40 = vsel %vm1871_vm8, %v1711_v21, %v2031_v38 }
 0x188   : > { %v2314_v18 = vmax.f32 %v4097_v36, %v2313_v51  ;;  %v4137_v14 = vmax.f32 %v2388_v7, %v2401_v37  ;;  %v4140_v9 = vsel %vm533_vm0, %v2149_v58, -inf  ;;  %v2574_v24 = vsel %vm533_vm0, %v2191_v40, -inf }
 0x189   : > { %v2505_v11 = vmax.f32 %v4105_v30, %v4140_v9  ;;  %v4145_v2 = vmax.f32 %v2579_v43, %v2574_v24  ;;  %v1510_v52 = vpop.f32.mrf.mxu2  ;;  %v1615_v57 = vpop.f32.mrf.mxu3 }
 0x18a   : > { %v1753_v49 = vadd.f32 %v1510_v52, %v3538_v5  ;;  %v1795_v36 = vadd.f32 %v1615_v57, %v3532_v3  ;;  %v1303_v44 = vpop.f32.mrf.mxu0  ;;  %v1408_v33 = vpop.f32.mrf.mxu1 }
 0x18b   : > { %v1670_v62 = vadd.f32 %v1303_v44, %v3582_v45  ;;  %v1712_v7 = vadd.f32 %v1408_v33, %v3526_v61 }
 0x18c   : > { %vm1913_vm9 = vcmp.ge.f32.partialorder %v1753_v49, 0.0  ;;  %v2073_v42 = vmul.f32 0.2, %v1753_v49  ;;  %vm1955_vm10 = vcmp.ge.f32.partialorder %v1795_v36, 0.0  ;;  %v2115_v6 = vmul.f32 0.2, %v1795_v36 }
 0x18d   : > { %vm1830_vm11 = vcmp.ge.f32.partialorder %v1670_v62, 0.0  ;;  %v1990_v46 = vmul.f32 0.2, %v1670_v62  ;;  %vm1872_vm12 = vcmp.ge.f32.partialorder %v1712_v7, 0.0  ;;  %v2032_v43 = vmul.f32 0.2, %v1712_v7 }
 0x18e   : > { %v2233_v13 = vsel %vm1913_vm9, %v1753_v49, %v2073_v42  ;;  %v2275_v48 = vsel %vm1955_vm10, %v1795_v36, %v2115_v6 }
 0x18f   : > { %v2352_v22 = vsel %vm533_vm0, %v2233_v13, -inf  ;;  %v2440_v27 = vsel %vm533_vm0, %v2275_v48, -inf  ;;  %v2150_v31 = vsel %vm1830_vm11, %v1670_v62, %v1990_v46  ;;  %v2192_v19 = vsel %vm1872_vm12, %v1712_v7, %v2032_v43 }
 0x190   : > { %v2353_v21 = vmax.f32 %v4117_v50, %v2352_v22  ;;  %v4157_v26 = vmax.f32 %v2427_v55, %v2440_v27  ;;  %v4160_v47 = vsel %vm533_vm0, %v2150_v31, -inf  ;;  %v2303_v0 = vsel %vm533_vm0, %v2192_v19, -inf }
 0x191   : > { %v2544_v38 = vmax.f32 %v4125_v39, %v4160_v47  ;;  %v4165_v10 = vmax.f32 %v2314_v18, %v2303_v0  ;;  %v1513_v34 = vpop.f32.mrf.mxu2  ;;  %v1618_v51 = vpop.f32.mrf.mxu3  ;;  %vm1843_vm11 = vcmp.ge.f32.partialorder %v3535_v4, 0.0  ;;  %vm1844_vm12 = vcmp.ge.f32.partialorder %v3553_v16, 0.0 }
 0x192   : > { %v1754_v37 = vadd.f32 %v1513_v34, %v3516_v59  ;;  %v1796_v50 = vadd.f32 %v1618_v51, %v3548_v15  ;;  %v1305_v58 = vpop.f32.mrf.mxu0  ;;  %v1410_v41 = vpop.f32.mrf.mxu1 }
 0x193   : > { %v1671_v1 = vadd.f32 %v1305_v58, %v3610_v12  ;;  %v1713_v55 = vadd.f32 %v1410_v41, %v3538_v5 }
 0x194   : > { %vm1914_vm13 = vcmp.ge.f32.partialorder %v1754_v37, 0.0  ;;  %v2074_v40 = vmul.f32 0.2, %v1754_v37  ;;  %vm1956_vm14 = vcmp.ge.f32.partialorder %v1796_v50, 0.0  ;;  %v2116_v24 = vmul.f32 0.2, %v1796_v50 }
 0x195   : > { %vm1831_vm15 = vcmp.ge.f32.partialorder %v1671_v1, 0.0  ;;  %v1991_v52 = vmul.f32 0.2, %v1671_v1  ;;  %vm1873_vm1 = vcmp.ge.f32.partialorder %v1713_v55, 0.0  ;;  %v2033_v18 = vmul.f32 0.2, %v1713_v55 }
 0x196   : > { %v2234_v57 = vsel %vm1914_vm13, %v1754_v37, %v2074_v40  ;;  %v2276_v49 = vsel %vm1956_vm14, %v1796_v50, %v2116_v24 }
 0x197   : > { %v2391_v36 = vsel %vm533_vm0, %v2234_v57, -inf  ;;  %v2479_v44 = vsel %vm533_vm0, %v2276_v49, -inf  ;;  %v2151_v33 = vsel %vm1831_vm15, %v1671_v1, %v1991_v52  ;;  %v2193_v62 = vsel %vm1873_vm1, %v1713_v55, %v2033_v18 }
 0x198   : > { %v2392_v7 = vmax.f32 %v4137_v14, %v2391_v36  ;;  %v4177_v42 = vmax.f32 %v2466_v8, %v2479_v44  ;;  %v4180_v6 = vsel %vm533_vm0, %v2151_v33, -inf  ;;  %v2342_v46 = vsel %vm533_vm0, %v2193_v62, -inf }
 0x199   : > { %v2583_v43 = vmax.f32 %v4145_v2, %v4180_v6  ;;  %v4185_v13 = vmax.f32 %v2353_v21, %v2342_v46  ;;  %v1515_v48 = vpop.f32.mrf.mxu2  ;;  %v1620_v22 = vpop.f32.mrf.mxu3  ;;  %v2002_v62 = vmul.f32 0.2, %v3521_v60 }
 0x19a   : > { %v1755_v27 = vadd.f32 %v1515_v48, %v3532_v3  ;;  %v1797_v14 = vadd.f32 %v1620_v22, %v3563_v25  ;;  %v1308_v31 = vpop.f32.mrf.mxu0  ;;  %v1413_v32 = vpop.f32.mrf.mxu1 }
 0x19b   : > { %v1672_v63 = vadd.f32 %v1308_v31, %v3526_v61  ;;  %v1714_v8 = vadd.f32 %v1413_v32, %v3516_v59  ;;  %v2003_v31 = vmul.f32 0.2, %v3535_v4  ;;  %v2162_v39 = vsel %vm1842_vm6, %v3521_v60, %v2002_v62 }
 0x19c   : > { %vm1915_vm2 = vcmp.ge.f32.partialorder %v1755_v27, 0.0  ;;  %v2075_v19 = vmul.f32 0.2, %v1755_v27  ;;  %vm1957_vm3 = vcmp.ge.f32.partialorder %v1797_v14, 0.0  ;;  %v2117_v0 = vmul.f32 0.2, %v1797_v14 }
 0x19d   : > { %vm1832_vm4 = vcmp.ge.f32.partialorder %v1672_v63, 0.0  ;;  %v1992_v34 = vmul.f32 0.2, %v1672_v63  ;;  %vm1874_vm5 = vcmp.ge.f32.partialorder %v1714_v8, 0.0  ;;  %v2034_v21 = vmul.f32 0.2, %v1714_v8 }
 0x19e   : > { %v2235_v51 = vsel %vm1915_vm2, %v1755_v27, %v2075_v19  ;;  %v2277_v37 = vsel %vm1957_vm3, %v1797_v14, %v2117_v0  ;;  %vm1884_vm2 = vcmp.ge.f32.partialorder %v3556_v17, 0.0 }
 0x19f   : > { %v2430_v50 = vsel %vm533_vm0, %v2235_v51, -inf  ;;  %v2518_v58 = vsel %vm533_vm0, %v2277_v37, -inf  ;;  %v2152_v41 = vsel %vm1832_vm4, %v1672_v63, %v1992_v34  ;;  %v2194_v1 = vsel %vm1874_vm5, %v1714_v8, %v2034_v21 }
 0x1a0   : > { %v2431_v55 = vmax.f32 %v4157_v26, %v2430_v50  ;;  %v4197_v40 = vmax.f32 %v2505_v11, %v2518_v58  ;;  %v4200_v24 = vsel %vm533_vm0, %v2152_v41, -inf  ;;  %v2381_v52 = vsel %vm533_vm0, %v2194_v1, -inf }
 0x1a1   : > { %v2318_v18 = vmax.f32 %v4165_v10, %v4200_v24  ;;  %v4205_v57 = vmax.f32 %v2392_v7, %v2381_v52  ;;  %v1518_v49 = vpop.f32.mrf.mxu2  ;;  %v1623_v36 = vpop.f32.mrf.mxu3 }
 0x1a2   : > { %v1756_v44 = vadd.f32 %v1518_v49, %v3548_v15  ;;  %v1798_v26 = vadd.f32 %v1623_v36, %v3582_v45  ;;  %v1310_v33 = vpop.f32.mrf.mxu0  ;;  %v1415_v30 = vpop.f32.mrf.mxu1  ;;  %v2004_v36 = vmul.f32 0.2, %v3553_v16 }
 0x1a3   : > { %v1673_v9 = vadd.f32 %v1310_v33, %v3538_v5  ;;  %v1715_v11 = vadd.f32 %v1415_v30, %v3532_v3 }
 0x1a4   : > { %vm1916_vm7 = vcmp.ge.f32.partialorder %v1756_v44, 0.0  ;;  %v2076_v46 = vmul.f32 0.2, %v1756_v44  ;;  %vm1958_vm8 = vcmp.ge.f32.partialorder %v1798_v26, 0.0  ;;  %v2118_v7 = vmul.f32 0.2, %v1798_v26 }
 0x1a5   : > { %vm1833_vm9 = vcmp.ge.f32.partialorder %v1673_v9, 0.0  ;;  %v1993_v48 = vmul.f32 0.2, %v1673_v9  ;;  %vm1875_vm10 = vcmp.ge.f32.partialorder %v1715_v11, 0.0  ;;  %v2035_v22 = vmul.f32 0.2, %v1715_v11 }
 0x1a6   : > { %v2236_v27 = vsel %vm1916_vm7, %v1756_v44, %v2076_v46  ;;  %v2278_v14 = vsel %vm1958_vm8, %v1798_v26, %v2118_v7  ;;  %vm1845_vm7 = vcmp.ge.f32.partialorder %v3566_v28, 0.0  ;;  %vm1885_vm8 = vcmp.ge.f32.partialorder %v3569_v29, 0.0 }
 0x1a7   : > { %v2469_v32 = vsel %vm533_vm0, %v2236_v27, -inf  ;;  %v2557_v63 = vsel %vm533_vm0, %v2278_v14, -inf  ;;  %v2153_v8 = vsel %vm1833_vm9, %v1673_v9, %v1993_v48  ;;  %v2195_v19 = vsel %vm1875_vm10, %v1715_v11, %v2035_v22 }
 0x1a8   : > { %v2470_v0 = vmax.f32 %v4177_v42, %v2469_v32  ;;  %v4221_v34 = vmax.f32 %v2544_v38, %v2557_v63  ;;  %v4224_v21 = vsel %vm533_vm0, %v2153_v8, -inf  ;;  %v2420_v51 = vsel %vm533_vm0, %v2195_v19, -inf }
 0x1a9   : > { %v2357_v37 = vmax.f32 %v4185_v13, %v4224_v21  ;;  %v4229_v50 = vmax.f32 %v2431_v55, %v2420_v51  ;;  %v1520_v58 = vpop.f32.mrf.mxu2  ;;  %v1625_v41 = vpop.f32.mrf.mxu3  ;;  %v2163_v38 = vsel %vm1843_vm11, %v3535_v4, %v2003_v31  ;;  %v2044_v4 = vmul.f32 0.2, %v3556_v17 }
 0x1aa   : > { %v1757_v1 = vadd.f32 %v1520_v58, %v3563_v25  ;;  %v1799_v42 = vadd.f32 %v1625_v41, %v3610_v12  ;;  %v1313_v52 = vpop.f32.mrf.mxu0  ;;  %v1418_v47 = vpop.f32.mrf.mxu1  ;;  %v2373_v32 = vsel %vm533_vm0, %v2162_v39, -inf  ;;  %v2412_v2 = vsel %vm533_vm0, %v2163_v38, -inf }
 0x1ab   : > { %v1674_v49 = vadd.f32 %v1313_v52, %v3516_v59  ;;  %v1716_v55 = vadd.f32 %v1418_v47, %v3548_v15 }
 0x1ac   : > { %vm1917_vm13 = vcmp.ge.f32.partialorder %v1757_v1, 0.0  ;;  %v2077_v44 = vmul.f32 0.2, %v1757_v1  ;;  %vm1959_vm14 = vcmp.ge.f32.partialorder %v1799_v42, 0.0  ;;  %v2119_v26 = vmul.f32 0.2, %v1799_v42 }
 0x1ad   : > { %vm1834_vm15 = vcmp.ge.f32.partialorder %v1674_v49, 0.0  ;;  %v1994_v33 = vmul.f32 0.2, %v1674_v49  ;;  %vm1876_vm1 = vcmp.ge.f32.partialorder %v1716_v55, 0.0  ;;  %v2036_v60 = vmul.f32 0.2, %v1716_v55 }
 0x1ae   : > { %v2237_v30 = vsel %vm1917_vm13, %v1757_v1, %v2077_v44  ;;  %v2279_v9 = vsel %vm1959_vm14, %v1799_v42, %v2119_v26  ;;  %v2204_v1 = vsel %vm1884_vm2, %v3556_v17, %v2044_v4  ;;  %vm1846_vm13 = vcmp.ge.f32.partialorder %v3588_v53, 0.0 }
 0x1af   : > { %v2508_v11 = vsel %vm533_vm0, %v2237_v30, -inf  ;;  %v2596_v62 = vsel %vm533_vm0, %v2279_v9, -inf  ;;  %v2154_v46 = vsel %vm1834_vm15, %v1674_v49, %v1994_v33  ;;  %v2196_v7 = vsel %vm1876_vm1, %v1716_v55, %v2036_v60 }
 0x1b0   : > { %v2509_v48 = vmax.f32 %v4197_v40, %v2508_v11  ;;  %v4251_v22 = vmax.f32 %v2583_v43, %v2596_v62  ;;  %v2371_v27 = vsel %vm533_vm0, %v2154_v46, -inf  ;;  %v2459_v14 = vsel %vm533_vm0, %v2196_v7, -inf }
 0x1b1   : > { %v2396_v31 = vmax.f32 %v4205_v57, %v2371_v27  ;;  %v4257_v63 = vmax.f32 %v2470_v0, %v2459_v14  ;;  %v1523_v8 = vpop.f32.mrf.mxu2  ;;  %v1628_v19 = vpop.f32.mrf.mxu3  ;;  %v2164_v43 = vsel %vm1844_vm12, %v3553_v16, %v2004_v36  ;;  %v2005_v49 = vmul.f32 0.2, %v3566_v28 }
 0x1b2   : > { %v1758_v51 = vadd.f32 %v1523_v8, %v3582_v45  ;;  %v1800_v40 = vadd.f32 %v1628_v19, %v3526_v61  ;;  %v1315_v58 = vpop.f32.mrf.mxu0  ;;  %v1420_v6 = vpop.f32.mrf.mxu1  ;;  %v2451_v46 = vsel %vm533_vm0, %v2164_v43, -inf  ;;  %v4289_v7 = vsel %vm533_vm0, %v2204_v1, -inf }
 0x1b3   : > { %v4265_v41 = vmax.f32 %v2396_v31, %v2373_v32  ;;  %v1675_v57 = vadd.f32 %v1315_v58, %v3532_v3  ;;  %v1717_v0 = vadd.f32 %v1420_v6, %v3563_v25  ;;  %v2045_v27 = vmul.f32 0.2, %v3569_v29 }
 0x1b4   : > { %vm1918_vm3 = vcmp.ge.f32.partialorder %v1758_v51, 0.0  ;;  %v2078_v42 = vmul.f32 0.2, %v1758_v51  ;;  %vm1960_vm4 = vcmp.ge.f32.partialorder %v1800_v40, 0.0  ;;  %v2120_v52 = vmul.f32 0.2, %v1800_v40 }
 0x1b5   : > { %vm1835_vm5 = vcmp.ge.f32.partialorder %v1675_v57, 0.0  ;;  %v1995_v39 = vmul.f32 0.2, %v1675_v57  ;;  %vm1877_vm6 = vcmp.ge.f32.partialorder %v1717_v0, 0.0  ;;  %v2037_v47 = vmul.f32 0.2, %v1717_v0 }
 0x1b6   : > { %v2238_v38 = vsel %vm1918_vm3, %v1758_v51, %v2078_v42  ;;  %v2280_v16 = vsel %vm1960_vm4, %v1800_v40, %v2120_v52  ;;  %v2165_v31 = vsel %vm1845_vm7, %v3566_v28, %v2005_v49  ;;  %v4306_v6 = vsel %vm1885_vm8, %v3569_v29, %v2045_v27 }
 0x1b7   : > { %v2547_v55 = vsel %vm533_vm0, %v2238_v38, -inf  ;;  %v2325_v36 = vsel %vm533_vm0, %v2280_v16, -inf  ;;  %v2155_v44 = vsel %vm1835_vm5, %v1675_v57, %v1995_v39  ;;  %v2197_v17 = vsel %vm1877_vm6, %v1717_v0, %v2037_v47 }
 0x1b8   : > { %v2548_v26 = vmax.f32 %v4221_v34, %v2547_v55  ;;  %v4280_v33 = vmax.f32 %v2318_v18, %v2325_v36  ;;  %v2410_v60 = vsel %vm533_vm0, %v2155_v44, -inf  ;;  %v2498_v30 = vsel %vm533_vm0, %v2197_v17, -inf }
 0x1b9   : > { %v2435_v9 = vmax.f32 %v4229_v50, %v2410_v60  ;;  %v4285_v4 = vmax.f32 %v2509_v48, %v2498_v30  ;;  %v1525_v11 = vpop.f32.mrf.mxu2  ;;  %v1630_v62 = vpop.f32.mrf.mxu3  ;;  %vm1886_vm14 = vcmp.ge.f32.partialorder %v3592_v54, 0.0  ;;  %v2006_v49 = vmul.f32 0.2, %v3588_v53 }
 0x1ba   : > { %v1759_v34 = vadd.f32 %v1525_v11, %v3610_v12  ;;  %v1801_v10 = vadd.f32 %v1630_v62, %v3538_v5  ;;  %v1318_v24 = vpop.f32.mrf.mxu0  ;;  %v1423_v18 = vpop.f32.mrf.mxu1  ;;  %v2046_v55 = vmul.f32 0.2, %v3592_v54  ;;  %vm1926_vm15 = vcmp.ge.f32.partialorder %v3598_v56, 0.0 }
 0x1bb   : > { %v4295_v50 = vmax.f32 %v2435_v9, %v2412_v2  ;;  %v1676_v48 = vadd.f32 %v1318_v24, %v3548_v15  ;;  %v1718_v14 = vadd.f32 %v1423_v18, %v3582_v45  ;;  %v2490_v2 = vsel %vm533_vm0, %v2165_v31, -inf }
 0x1bc   : > { %vm1919_vm9 = vcmp.ge.f32.partialorder %v1759_v34, 0.0  ;;  %v2079_v32 = vmul.f32 0.2, %v1759_v34  ;;  %vm1961_vm10 = vcmp.ge.f32.partialorder %v1801_v10, 0.0  ;;  %v2121_v8 = vmul.f32 0.2, %v1801_v10 }
 0x1bd   : > { %vm1836_vm11 = vcmp.ge.f32.partialorder %v1676_v48, 0.0  ;;  %v1996_v19 = vmul.f32 0.2, %v1676_v48  ;;  %vm1878_vm12 = vcmp.ge.f32.partialorder %v1718_v14, 0.0  ;;  %v2038_v51 = vmul.f32 0.2, %v1718_v14 }
 0x1be   : > { %v2239_v40 = vsel %vm1919_vm9, %v1759_v34, %v2079_v32  ;;  %v2281_v58 = vsel %vm1961_vm10, %v1801_v10, %v2121_v8  ;;  %v2166_v62 = vsel %vm1846_vm13, %v3588_v53, %v2006_v49  ;;  %vm1847_vm5 = vcmp.ge.f32.partialorder %v3614_v20, 0.0 }
 0x1bf   : > { %v2586_v43 = vsel %vm533_vm0, %v2239_v40, -inf  ;;  %v2364_v28 = vsel %vm533_vm0, %v2281_v58, -inf  ;;  %v2156_v57 = vsel %vm1836_vm11, %v1676_v48, %v1996_v19  ;;  %v2198_v0 = vsel %vm1878_vm12, %v1718_v14, %v2038_v51 }
 0x1c0   : > { %v2587_v1 = vmax.f32 %v4251_v22, %v2586_v43  ;;  %v4314_v42 = vmax.f32 %v2357_v37, %v2364_v28  ;;  %v2449_v52 = vsel %vm533_vm0, %v2156_v57, -inf  ;;  %v2537_v39 = vsel %vm533_vm0, %v2198_v0, -inf }
 0x1c1   : > { %v2474_v29 = vmax.f32 %v4257_v63, %v2449_v52  ;;  %v4319_v47 = vmax.f32 %v2548_v26, %v2537_v39  ;;  %v1528_v38 = vpop.f32.mrf.mxu2  ;;  %v1633_v16 = vpop.f32.mrf.mxu3  ;;  %v2206_v51 = vsel %vm1886_vm14, %v3592_v54, %v2046_v55  ;;  %v2529_v40 = vsel %vm533_vm0, %v2166_v62, -inf }
 0x1c2   : > { %v1760_v22 = vadd.f32 %v1528_v38, %v3526_v61  ;;  %v1802_v13 = vadd.f32 %v1633_v16, %v3516_v59  ;;  %v1320_v21 = vpop.f32.mrf.mxu0  ;;  %v1425_v37 = vpop.f32.mrf.mxu1  ;;  %vm1887_vm6 = vcmp.ge.f32.partialorder %v3618_v23, 0.0  ;;  %vm1927_vm11 = vcmp.ge.f32.partialorder %v3631_v35, 0.0 }
 0x1c3   : > { %v4327_v36 = vmax.f32 %v2474_v29, %v2451_v46  ;;  %v1677_v63 = vadd.f32 %v1320_v21, %v3563_v25  ;;  %v1719_v44 = vadd.f32 %v1425_v37, %v3610_v12  ;;  %v2086_v46 = vmul.f32 0.2, %v3598_v56 }
 0x1c4   : > { %vm1920_vm1 = vcmp.ge.f32.partialorder %v1760_v22, 0.0  ;;  %v2080_v17 = vmul.f32 0.2, %v1760_v22  ;;  %vm1962_vm2 = vcmp.ge.f32.partialorder %v1802_v13, 0.0  ;;  %v2122_v26 = vmul.f32 0.2, %v1802_v13 }
 0x1c5   : > { %vm1837_vm3 = vcmp.ge.f32.partialorder %v1677_v63, 0.0  ;;  %v1997_v60 = vmul.f32 0.2, %v1677_v63  ;;  %vm1879_vm4 = vcmp.ge.f32.partialorder %v1719_v44, 0.0  ;;  %v2039_v30 = vmul.f32 0.2, %v1719_v44 }
 0x1c6   : > { %v2240_v9 = vsel %vm1920_vm1, %v1760_v22, %v2080_v17  ;;  %v2282_v11 = vsel %vm1962_vm2, %v1802_v13, %v2122_v26  ;;  %v2539_v26 = vsel %vm533_vm0, %v2206_v51, -inf }
 0x1c7   : > { %v2315_v34 = vsel %vm533_vm0, %v2240_v9, -inf  ;;  %v4338_v10 = vsel %vm533_vm0, %v2282_v11, -inf  ;;  %v2157_v24 = vsel %vm1837_vm3, %v1677_v63, %v1997_v60  ;;  %v2199_v18 = vsel %vm1879_vm4, %v1719_v44, %v2039_v30 }
 0x1c8   : > { %v2322_v27 = vmax.f32 %v4280_v33, %v2315_v34  ;;  %v2400_v48 = vmax.f32 %v4265_v41, %v4338_v10  ;;  %v2488_v14 = vsel %vm533_vm0, %v2157_v24, -inf  ;;  %v2576_v31 = vsel %vm533_vm0, %v2199_v18, -inf }
 0x1c9   : > { %v2513_v53 = vmax.f32 %v4285_v4, %v2488_v14  ;;  %v4346_v32 = vmax.f32 %v2587_v1, %v2576_v31  ;;  %v1530_v8 = vpop.f32.mrf.mxu2  ;;  %v1635_v19 = vpop.f32.mrf.mxu3  ;;  %v2246_v4 = vsel %vm1926_vm15, %v3598_v56, %v2086_v46  ;;  %v2007_v56 = vmul.f32 0.2, %v3614_v20 }
 0x1ca   : > { %v1761_v33 = vadd.f32 %v1530_v8, %v3538_v5  ;;  %v1803_v58 = vadd.f32 %v1635_v19, %v3532_v3  ;;  %v1323_v43 = vpop.f32.mrf.mxu0  ;;  %v1428_v28 = vpop.f32.mrf.mxu1  ;;  %v2549_v11 = vsel %vm533_vm0, %v2246_v4, -inf }
 0x1cb   : > { %v4358_v57 = vmax.f32 %v2513_v53, %v2490_v2  ;;  %v1678_v0 = vadd.f32 %v1323_v43, %v3582_v45  ;;  %v1720_v54 = vadd.f32 %v1428_v28, %v3526_v61  ;;  %v2047_v2 = vmul.f32 0.2, %v3618_v23 }
 0x1cc   : > { %vm1921_vm7 = vcmp.ge.f32.partialorder %v1761_v33, 0.0  ;;  %v2081_v1 = vmul.f32 0.2, %v1761_v33  ;;  %vm1963_vm8 = vcmp.ge.f32.partialorder %v1803_v58, 0.0  ;;  %v2123_v52 = vmul.f32 0.2, %v1803_v58 }
 0x1cd   : > { %vm1838_vm9 = vcmp.ge.f32.partialorder %v1678_v0, 0.0  ;;  %v1998_v39 = vmul.f32 0.2, %v1678_v0  ;;  %vm1880_vm10 = vcmp.ge.f32.partialorder %v1720_v54, 0.0  ;;  %v2040_v29 = vmul.f32 0.2, %v1720_v54 }
 0x1ce   : > { %v2241_v38 = vsel %vm1921_vm7, %v1761_v33, %v2081_v1  ;;  %v2283_v16 = vsel %vm1963_vm8, %v1803_v58, %v2123_v52  ;;  %v2167_v34 = vsel %vm1847_vm5, %v3614_v20, %v2007_v56  ;;  %vm2608_vm5 = vcmask 519168  }
 0x1cf   : > { %v2354_v22 = vsel %vm533_vm0, %v2241_v38, -inf  ;;  %v4367_v13 = vsel %vm533_vm0, %v2283_v16, -inf  ;;  %v2158_v21 = vsel %vm1838_vm9, %v1678_v0, %v1998_v39  ;;  %v2200_v37 = vsel %vm1880_vm10, %v1720_v54, %v2040_v29 }
 0x1d0   : > { %v2361_v49 = vmax.f32 %v4314_v42, %v2354_v22  ;;  %v2439_v55 = vmax.f32 %v4295_v50, %v4367_v13  ;;  %v2527_v63 = vsel %vm533_vm0, %v2158_v21, -inf  ;;  %v2305_v44 = vsel %vm533_vm0, %v2200_v37, -inf }
 0x1d1   : > { %v2552_v17 = vmax.f32 %v4319_v47, %v2527_v63  ;;  %v4376_v60 = vmax.f32 %v2322_v27, %v2305_v44  ;;  %v1533_v30 = vpop.f32.mrf.mxu2  ;;  %v1638_v9 = vpop.f32.mrf.mxu3  ;;  %v2207_v47 = vsel %vm1887_vm6, %v3618_v23, %v2047_v2  ;;  %v2087_v23 = vmul.f32 0.2, %v3631_v35 }
 0x1d2   : > { %v1762_v62 = vadd.f32 %v1533_v30, %v3516_v59  ;;  %v1804_v42 = vadd.f32 %v1638_v9, %v3548_v15  ;;  %v1325_v46 = vpop.f32.mrf.mxu0  ;;  %v1430_v24 = vpop.f32.mrf.mxu1  ;;  %v2568_v39 = vsel %vm533_vm0, %v2167_v34, -inf  ;;  %v2578_v29 = vsel %vm533_vm0, %v2207_v47, -inf }
 0x1d3   : > { %v2554_v18 = vmax.f32 %v2552_v17, %v2529_v40  ;;  %v1679_v27 = vadd.f32 %v1325_v46, %v3610_v12  ;;  %v1721_v14 = vadd.f32 %v1430_v24, %v3538_v5  ;;  %v2247_v63 = vsel %vm1927_vm11, %v3631_v35, %v2087_v23 }
 0x1d4   : > { %vm1922_vm12 = vcmp.ge.f32.partialorder %v1762_v62, 0.0  ;;  %v2082_v31 = vmul.f32 0.2, %v1762_v62  ;;  %vm1964_vm13 = vcmp.ge.f32.partialorder %v1804_v42, 0.0  ;;  %v2124_v53 = vmul.f32 0.2, %v1804_v42 }
 0x1d5   : > { %v2556_v8 = vmax.f32 %v2554_v18, %v2539_v26  ;;  %vm1839_vm14 = vcmp.ge.f32.partialorder %v1679_v27, 0.0  ;;  %v1999_v19 = vmul.f32 0.2, %v1679_v27  ;;  %vm1881_vm15 = vcmp.ge.f32.partialorder %v1721_v14, 0.0 }
 0x1d6   : > { %v2242_v20 = vsel %vm1922_vm12, %v1762_v62, %v2082_v31  ;;  %v2284_v51 = vsel %vm1964_vm13, %v1804_v42, %v2124_v53  ;;  %v2041_v33 = vmul.f32 0.2, %v1721_v14  ;;  %v2500_v31 = vsel %vm533_vm0, %v4306_v6, -inf }
 0x1d7   : > { %v2393_v40 = vsel %vm533_vm0, %v2242_v20, -inf  ;;  %v2481_v58 = vsel %vm533_vm0, %v2284_v51, -inf  ;;  %v2159_v43 = vsel %vm1839_vm14, %v1679_v27, %v1999_v19  ;;  %v4393_v28 = vmax.f32 %v2556_v8, %v2549_v11 }
 0x1d8   : > { %v2402_v4 = vmax.f32 %v2400_v48, %v2393_v40  ;;  %v2478_v0 = vmax.f32 %v4327_v36, %v2481_v58  ;;  %v2566_v54 = vsel %vm533_vm0, %v2159_v43, -inf  ;;  %v2201_v1 = vsel %vm1881_vm15, %v1721_v14, %v2041_v33 }
 0x1d9   : > { %v2591_v52 = vmax.f32 %v4346_v32, %v2566_v54  ;;  %v2344_v38 = vsel %vm533_vm0, %v2201_v1, -inf  ;;  %v1535_v16 = vpop.f32.mrf.mxu2  ;;  %v1640_v56 = vpop.f32.mrf.mxu3 }
 0x1da   : > { %v4404_v2 = vmax.f32 %v2361_v49, %v2344_v38  ;;  %v1763_v41 = vadd.f32 %v1535_v16, %v3532_v3  ;;  %v1805_v10 = vadd.f32 %v1640_v56, %v3563_v25  ;;  %v1328_v36 = vpop.f32.mrf.mxu0  ;;  %v1433_v48 = vpop.f32.mrf.mxu1  ;;  %v2480_v22 = vmax.f32 %v2478_v0, %v4289_v7 }
 0x1db   : > { %v2593_v21 = vmax.f32 %v2591_v52, %v2568_v39  ;;  %v1680_v32 = vadd.f32 %v1328_v36, %v3526_v61  ;;  %v1722_v37 = vadd.f32 %v1433_v48, %v3516_v59  ;;  %v2588_v61 = vsel %vm533_vm0, %v2247_v63, -inf }
 0x1dc   : > { %vm1923_vm1 = vcmp.ge.f32.partialorder %v1763_v41, 0.0  ;;  %v2083_v49 = vmul.f32 0.2, %v1763_v41  ;;  %vm1965_vm2 = vcmp.ge.f32.partialorder %v1805_v10, 0.0  ;;  %v2125_v44 = vmul.f32 0.2, %v1805_v10 }
 0x1dd   : > { %v2595_v17 = vmax.f32 %v2593_v21, %v2578_v29  ;;  %vm1840_vm3 = vcmp.ge.f32.partialorder %v1680_v32, 0.0  ;;  %v2000_v26 = vmul.f32 0.2, %v1680_v32  ;;  %vm1882_vm4 = vcmp.ge.f32.partialorder %v1722_v37, 0.0 }
 0x1de   : > { %v2243_v30 = vsel %vm1923_vm1, %v1763_v41, %v2083_v49  ;;  %v2285_v9 = vsel %vm1965_vm2, %v1805_v10, %v2125_v44  ;;  %v2042_v7 = vmul.f32 0.2, %v1722_v37 }
 0x1df   : > { %v2432_v59 = vsel %vm533_vm0, %v2243_v30, -inf  ;;  %v2520_v11 = vsel %vm533_vm0, %v2285_v9, -inf  ;;  %v2160_v62 = vsel %vm1840_vm3, %v1680_v32, %v2000_v26  ;;  %v4417_v35 = vmax.f32 %v2595_v17, %v2588_v61 }
 0x1e0   : > { %v2441_v42 = vmax.f32 %v2439_v55, %v2432_v59  ;;  %v2517_v46 = vmax.f32 %v4358_v57, %v2520_v11  ;;  %v2295_v34 = vsel %vm533_vm0, %v2160_v62, -inf  ;;  %v2202_v47 = vsel %vm1882_vm4, %v1722_v37, %v2042_v7 }
 0x1e1   : > { %v2326_v24 = vmax.f32 %v4376_v60, %v2295_v34  ;;  %v2383_v18 = vsel %vm533_vm0, %v2202_v47, -inf  ;;  %v1538_v27 = vpop.f32.mrf.mxu2  ;;  %v1643_v14 = vpop.f32.mrf.mxu3 }
 0x1e2   : > { %v2404_v50 = vmax.f32 %v2402_v4, %v2383_v18  ;;  %v1764_v57 = vadd.f32 %v1538_v27, %v3548_v15  ;;  %v1806_v13 = vadd.f32 %v1643_v14, %v3582_v45  ;;  %v1330_v55 = vpop.f32.mrf.mxu0  ;;  %v1435_v60 = vpop.f32.mrf.mxu1  ;;  %v2519_v53 = vmax.f32 %v2517_v46, %v2500_v31 }
 0x1e3   : > { %v2600_v8 = vpack.c.bf16 %v2326_v24, %v2326_v24  ;;  %v1681_v19 = vadd.f32 %v1330_v55, %v3538_v5  ;;  %v1723_v6 = vadd.f32 %v1435_v60, %v3532_v3 }
 0x1e4   : > { %v2602_v20 = vpack.c.bf16 %v2404_v50, %v2404_v50  ;;  %vm1924_vm6 = vcmp.ge.f32.partialorder %v1764_v57, 0.0  ;;  %v2084_v51 = vmul.f32 0.2, %v1764_v57  ;;  %vm1966_vm7 = vcmp.ge.f32.partialorder %v1806_v13, 0.0 }
 0x1e5   : > { %2609 = vst.msk [vmem:[%s4433_s29] sm:$0xf] %vm2608_vm5, %v2600_v8  ;;  %v2126_v33 = vmul.f32 0.2, %v1806_v13  ;;  %vm1841_vm8 = vcmp.ge.f32.partialorder %v1681_v19, 0.0  ;;  %vm1883_vm9 = vcmp.ge.f32.partialorder %v1723_v6, 0.0 }
 0x1e6   : > { %v2244_v15 = vsel %vm1924_vm6, %v1764_v57, %v2084_v51  ;;  %2611 = vst.msk [vmem:[%s4433_s29 + $0x8] sm:$0xf] %vm2608_vm5, %v2602_v20  ;;  %v2001_v45 = vmul.f32 0.2, %v1681_v19  ;;  %v2043_v23 = vmul.f32 0.2, %v1723_v6 }
 0x1e7   : > { %v2471_v40 = vsel %vm533_vm0, %v2244_v15, -inf  ;;  %v2286_v58 = vsel %vm1966_vm7, %v1806_v13, %v2126_v33 }
 0x1e8   : > { %v2482_v5 = vmax.f32 %v2480_v22, %v2471_v40  ;;  %v2559_v3 = vsel %vm533_vm0, %v2286_v58, -inf  ;;  %v2161_v43 = vsel %vm1841_vm8, %v1681_v19, %v2001_v45  ;;  %v2203_v4 = vsel %vm1883_vm9, %v1723_v6, %v2043_v23 }
 0x1e9   : > { %v2560_v0 = vmax.f32 %v4393_v28, %v2559_v3  ;;  %v2334_v54 = vsel %vm533_vm0, %v2161_v43, -inf  ;;  %v2422_v1 = vsel %vm533_vm0, %v2203_v4, -inf  ;;  %v1540_v52 = vpop.f32.mrf.mxu2  ;;  %v1645_v39 = vpop.f32.mrf.mxu3 }
 0x1ea   : > { %v2604_v29 = vpack.c.bf16 %v2482_v5, %v2482_v5  ;;  %v2365_v38 = vmax.f32 %v4404_v2, %v2334_v54  ;;  %v2443_v16 = vmax.f32 %v2441_v42, %v2422_v1  ;;  %v1765_v56 = vadd.f32 %v1540_v52, %v3563_v25 }
 0x1eb   : > { %v2606_v41 = vpack.c.bf16 %v2560_v0, %v2560_v0  ;;  %v1807_v10 = vadd.f32 %v1645_v39, %v3610_v12 }
 0x1ec   : > { %2613 = vst.msk [vmem:[%s4433_s29 + $0x10] sm:$0xf] %vm2608_vm5, %v2604_v29  ;;  %v2601_v28 = vpack.c.bf16 %v2365_v38, %v2365_v38  ;;  %v2603_v36 = vpack.c.bf16 %v2443_v16, %v2443_v16  ;;  %vm1925_vm10 = vcmp.ge.f32.partialorder %v1765_v56, 0.0  ;;  %v2085_v48 = vmul.f32 0.2, %v1765_v56 }
 0x1ed   : > { %2615 = vst.msk [vmem:[%s4433_s29 + $0x18] sm:$0xf] %vm2608_vm5, %v2606_v41  ;;  %vm1967_vm11 = vcmp.ge.f32.partialorder %v1807_v10, 0.0  ;;  %v2127_v22 = vmul.f32 0.2, %v1807_v10 }
 0x1ee   : > { %2610 = vst.msk [vmem:[%s4433_s29 + $0x4] sm:$0xf] %vm2608_vm5, %v2601_v28  ;;  %v2245_v2 = vsel %vm1925_vm10, %v1765_v56, %v2085_v48 }
 0x1ef   : > { %2612 = vst.msk [vmem:[%s4433_s29 + $0xc] sm:$0xf] %vm2608_vm5, %v2603_v36  ;;  %v2510_v25 = vsel %vm533_vm0, %v2245_v2, -inf  ;;  %v2287_v12 = vsel %vm1967_vm11, %v1807_v10, %v2127_v22 }
 0x1f0   : > { %v2521_v21 = vmax.f32 %v2519_v53, %v2510_v25  ;;  %v2598_v32 = vsel %vm533_vm0, %v2287_v12, -inf }
 0x1f1   : > { %v2599_v37 = vmax.f32 %v4417_v35, %v2598_v32 }
 0x1f2   : > { %v2605_v63 = vpack.c.bf16 %v2521_v21, %v2521_v21 }
 0x1f3   : > { %v2607_v49 = vpack.c.bf16 %v2599_v37, %v2599_v37 }
 0x1f4   : > { %2614 = vst.msk [vmem:[%s4433_s29 + $0x14] sm:$0xf] %vm2608_vm5, %v2605_v63 }
 0x1f5   : > { %2616 = vst.msk [vmem:[%s4433_s29 + $0x1c] sm:$0xf] %vm2608_vm5, %v2607_v49 }
 0x1f6 PF: > { %s15_s20 = sadd.s32 1, %s3340_s20   ;;  %s4481_s18 = smov %s3336_s19 }
 0x1f7   : > { %p12_p5 = scmp.ge.s32.totalorder %s15_s20, 4   ;;  %s4482_s19 = smov %s4484_s21 }
 0x1f9   :  { %14 = sbr.rel (!%p12_p5) target bundleno = 2 (0x2), region = 73 }

// kernel: dgcnn_forward.13
= control target key start
LH: loop header
LB: loop body
LE: loop exit
PB: predicated region body
PF: predicated region fallthrough
CT: control target
= control target key end

     0   :  { %s1522_s0 = inlined_call_operand.vmem [shape: bf16[2,64,64], index: 0, kind: input, shape index: {}]   ;;  %s1523_s1 = inlined_call_operand.vmem [shape: bf16[2,64,64], index: 1, kind: input, shape index: {}]   ;;  %s1524_s2 = inlined_call_operand.vmem [shape: bf16[2,64,64], index: 2, kind: input, shape index: {}]   ;;  %s1525_s3 = inlined_call_operand.vmem [shape: bf16[64,128], index: 3, kind: input, shape index: {}]   ;;  %s1526_s4 = inlined_call_operand.vmem [shape: bf16[64,128], index: 4, kind: input, shape index: {}]   ;;  %s1527_s5 = inlined_call_operand.vmem [shape: bf16[64,128], index: 5, kind: input, shape index: {}]   ;;  %s1528_s6 = inlined_call_operand.vmem [shape: f32[1,128], index: 6, kind: input, shape index: {}]   ;;  %s1529_s7 = inlined_call_operand.hbm [shape: f32[2,64,128], index: 7, kind: output, shape index: {0}]   ;;  %s1530_s8 = inlined_call_operand.vmem [shape: f32[2,1,128], index: 8, kind: output, shape index: {1}]  }
   0x1   :  { %1531 = sst [smem:[#allocation5_spill]] %s1523_s1 }
   0x2   :  { %14 = vsyncpa [#allocation3], 0 }
   0x3   :  { %16 = vsyncpa [#allocation3 + $0x1], 0  ;;  %s1306_s27 = smov 0   ;;  %s1308_s28 = smov 0  }
   0x4   :  { %s1310_s29 = smov 0   ;;  %s1312_s30 = smov 0  }
   0x5   :  { %s1314_s9 = smov 0   ;;  %s1316_s10 = smov 0  }
   0x6 LB: > { %s956_s11 = sadd.s32 4294967295, %s1257_s10   ;;  %s957_s12 = sadd.s32 4294967294, %s1257_s10   ;;  %s1257_s10 = sphi %s1316_s10, %s22_s10   ;;  %s1253_s9 = sphi %s1314_s9, %s1539_s9   ;;  %s1249_s30 = sphi %s1312_s30, %s1538_s30   ;;  %s1245_s29 = sphi %s1310_s29, %s1537_s29   ;;  %s1241_s28 = sphi %s1308_s28, %s1536_s28   ;;  %s1237_s27 = sphi %s1306_s27, %s1535_s27  }
   0x7   : > { %s34_s13 = sadd.s32 1, %s1253_s9  ;;  %s211_s14 = sadd.s32 1, %s1245_s29 }
   0x8   : > { %p36_p0 = scmp.ge.s32.totalorder %s34_s13, 2  ;;  %p221_p1 = scmp.ne.s32.totalorder %s1245_s29, %s1241_s28 }
   0x9   : > { %p222_p2 = scmp.eq.s32.totalorder %s956_s11, 1  ;;  %p227_p3 = scmp.ne.s32.totalorder %s1241_s28, %s1237_s27 }
   0xa   : > { %s1541_s13 = smov (%p36_p0, %s34_s13), 0  ;;  %p228_p5 = scmp.eq.s32.totalorder %s957_s12, 1 }
   0xb   : > { %p1346_p4 = por %p222_p2, %p221_p1  ;;  %s206_s16 = ssub.s32 %s1253_s9, %s1541_s13 }
   0xc   : > { %p960_p6 = scmp.ge.s32.totalorder %s1257_s10, 1  ;;  %p209_p7 = scmp.eq.s32.totalorder %s206_s16, 0 }
   0xd   : > { %p1353_p8 = por %p228_p5, %p227_p3  ;;  %p323_p9 = scmp.lt.s32.totalorder %s1257_s10, 3 }
   0xe   : > { %s1359_s18 = scalar_select %p209_p7, %s1245_s29, %s211_s14  }
   0xf   : > { %p324_p10 = pnand %p960_p6, %p323_p9 }
  0x10   : > { %p383_p11 = scmp.lt.s32.totalorder (!%p324_p10), %s1249_s30, 1  ;;  %s1534_s1 = sld [smem:[#allocation5_spill]] (!%p324_p10) }
  0x11   : > { %327 = sbr.rel (%p324_p10) target bundleno = 238 (0xee), region = 48  ;;  %s1108_s23 = sshll.u32 (!%p324_p10), %s1249_s30, 6 }
  0x12   : > { %s815_s11 = scalar_lea.hbm (!%p324_p10), %s1529_s7, %s1108_s23  ;;  %s1199_s23 = scalar_lea.hbm (!%p324_p10), %s1529_s7, 128 }
  0x16   : > { %v1091_v0 = vld [vmem:[%s1526_s4 + $0x18] sm:$0xff]  ;;  %v1090_v3 = vld [vmem:[%s1526_s4 + $0x10] sm:$0xff]  ;;  %s1381_s19 = scalar_select %p383_p11, %s1249_s30, 1  ;;  %v1089_v6 = vld [vmem:[%s1526_s4 + $0x8] sm:$0xff]  ;;  %vm501_vm0 = vcmask 523264  }
  0x17   : > { %v1087_v1 = vld [vmem:[%s1525_s3 + $0x18] sm:$0xff]  ;;  %518 = vmatpush.bf16.msra.mxu0 %v1091_v0  ;;  %1109 = vmatpush.bf16.msra.mxu3 %v1091_v0  ;;  %v1086_v4 = vld [vmem:[%s1525_s3 + $0x10] sm:$0xff]  ;;  %v1085_v7 = vld [vmem:[%s1525_s3 + $0x8] sm:$0xff] }
  0x18   : > { %v1095_v2 = vld [vmem:[%s1527_s5 + $0x18] sm:$0xff]  ;;  %1113 = vmatpush.bf16.msra.mxu1 %v1087_v1  ;;  %v1094_v5 = vld [vmem:[%s1527_s5 + $0x10] sm:$0xff]  ;;  %v1093_v8 = vld [vmem:[%s1527_s5 + $0x8] sm:$0xff]  ;;  %s1081_s26 = sshll.u32 %s1381_s19, 5 }
  0x19   : > { %1117 = vmatpush.bf16.msra.mxu2 %v1095_v2  ;;  %v1088_v9 = vld [vmem:[%s1526_s4] sm:$0xff]  ;;  %s1399_s20 = scalar_lea.vmem %s1534_s1, %s1081_s26  ;;  %s1410_s12 = scalar_lea.vmem %s1522_s0, %s1081_s26 }
  0x1a   : > { %v1084_v10 = vld [vmem:[%s1525_s3] sm:$0xff]  ;;  %s1415_s1 = scalar_lea.vmem %s1524_s2, %s1081_s26  ;;  %v1101_v13 = vld [vmem:[%s1399_s20 + $0x8] sm:$0xff]  ;;  %v1102_v16 = vld [vmem:[%s1399_s20 + $0x10] sm:$0xff]  ;;  %s374_s26 = sand.u32 1, %s1241_s28  }
  0x1b   : > { %519 = vmatpush.bf16.msra.mxu0 %v1090_v3  ;;  %1110 = vmatpush.bf16.msra.mxu3 %v1090_v3  ;;  %v1092_v11 = vld [vmem:[%s1527_s5] sm:$0xff]  ;;  %v1097_v14 = vld [vmem:[%s1410_s12 + $0x8] sm:$0xff]  ;;  %v1098_v18 = vld [vmem:[%s1410_s12 + $0x10] sm:$0xff]  ;;  %s799_s14 = scalar_lea.sflag [#allocation3], %s374_s26 }
  0x1c   : > { %1114 = vmatpush.bf16.msra.mxu1 %v1086_v4  ;;  %v1100_v12 = vld [vmem:[%s1399_s20] sm:$0xff]  ;;  %v1105_v15 = vld [vmem:[%s1415_s1 + $0x8] sm:$0xff]  ;;  %v1106_v19 = vld [vmem:[%s1415_s1 + $0x10] sm:$0xff] }
  0x1d   : > { %1118 = vmatpush.bf16.msra.mxu2 %v1094_v5  ;;  %v1096_v17 = vld [vmem:[%s1410_s12] sm:$0xff]  ;;  %v1103_v20 = vld [vmem:[%s1399_s20 + $0x18] sm:$0xff] }
  0x1e   : > { %v1104_v21 = vld [vmem:[%s1415_s1] sm:$0xff]  ;;  %v1099_v22 = vld [vmem:[%s1410_s12 + $0x18] sm:$0xff]  ;;  %s818_s12 = sshll.u32 %s815_s11, 4  ;;  %s819_s12 = int_to_ptr.hbm [resolvable:$true] %s818_s12 }
  0x1f   : > { %520 = vmatpush.bf16.msra.mxu0 %v1089_v6  ;;  %1111 = vmatpush.bf16.msra.mxu3 %v1089_v6  ;;  %v1107_v23 = vld [vmem:[%s1415_s1 + $0x18] sm:$0xff]  ;;  %v1445_v29 = vld [vmem:[%s1528_s6] ss:$0 sm:$0xff]  ;;  %s961_s1 = sshll.u32 %s374_s26, 6  ;;  %s1193_s16 = sshra.s32 %s819_s12, 4  ;;  %s1194_s16 = int_to_ptr.hbm [resolvable:$true] %s1193_s16 }
  0x20   : > { %1115 = vmatpush.bf16.msra.mxu1 %v1085_v7  ;;  %s1452_s22 = scalar_lea.vmem [#allocation2], %s961_s1  ;;  %s1195_s21 = scalar_lea.hbm %s1194_s16, 64 }
  0x21   : > { %1119 = vmatpush.bf16.msra.mxu2 %v1093_v8  ;;  %s816_s30 = sshll.u32 %s1452_s22, 4  ;;  %p1196_p12 = scmp.ne.s32.totalorder %s1194_s16, %s1195_s21  ;;  %s817_s30 = int_to_ptr.vmem [resolvable:$true] %s816_s30 }
  0x22   : > { %p1200_p1 = scmp.lt.s32.totalorder %s1194_s16, %s1529_s7  ;;  %p1201_p2 = scmp.lt.s32.totalorder %s1199_s23, %s1195_s21 }
  0x23   : > { %521 = vmatpush.bf16.msra.mxu0 %v1088_v9  ;;  %1112 = vmatpush.bf16.msra.mxu3 %v1088_v9  ;;  %p1197_p13 = pnand %p1196_p12, %p1346_p4 }
  0x24   : > { %1116 = vmatpush.bf16.msra.mxu1 %v1084_v10  ;;  %p1202_p3 = por %p1201_p2, %p1200_p1 }
  0x25   : > { %1120 = vmatpush.bf16.msra.mxu2 %v1092_v11  ;;  %p1198_p0 = pneg %p1197_p13 }
  0x26   : > { %1000 = vmatmul.msk.bf16.vlgmr.msra.gmra.mxu0 %vm501_vm0, %v1100_v12  ;;  %1001 = vmatmul.msk.bf16.vlgmr.msra.gmra.mxu3 %vm501_vm0, %v1101_v13 }
  0x27   : > { %603 = vmatpush.bf16.msrb.mxu0 %v1087_v1  ;;  %1037 = vmatmul.msk.bf16.vlgmr.msra.gmra.mxu1 %vm501_vm0, %v1097_v14  ;;  %p1203_p5 = pnand %p1202_p3, %p1198_p0 }
  0x28   : > { %1073 = vmatmul.msk.bf16.vlgmr.msra.gmra.mxu2 %vm501_vm0, %v1105_v15 }
  0x2b   : > { %604 = vmatpush.bf16.msrb.mxu0 %v1086_v4 }
  0x2f   : > { %605 = vmatpush.bf16.msrb.mxu0 %v1085_v7 }
  0x33   : > { %606 = vmatpush.bf16.msrb.mxu0 %v1084_v10 }
  0x36   : > { %1002 = vmatmul.msk.bf16.gmra.mxu3 %vm501_vm0, %v1102_v16  ;;  %1036 = vmatmul.msk.bf16.vlgmr.msrb.gmra.mxu0 %vm501_vm0, %v1096_v17 }
  0x37   : > { %696 = vmatpush.bf16.msra.mxu0 %v1095_v2  ;;  %1038 = vmatmul.msk.bf16.gmra.mxu1 %vm501_vm0, %v1098_v18 }
  0x38   : > { %1074 = vmatmul.msk.bf16.gmra.mxu2 %vm501_vm0, %v1106_v19 }
  0x3b   : > { %697 = vmatpush.bf16.msra.mxu0 %v1094_v5 }
  0x3f   : > { %698 = vmatpush.bf16.msra.mxu0 %v1093_v8 }
  0x43   : > { %699 = vmatpush.bf16.msra.mxu0 %v1092_v11 }
  0x46   : > { %1003 = vmatmul.msk.bf16.gmra.mxu3 %vm501_vm0, %v1103_v20  ;;  %1072 = vmatmul.msk.bf16.vlgmr.msra.gmra.mxu0 %vm501_vm0, %v1104_v21 }
  0x47   : > { %1039 = vmatmul.msk.bf16.gmra.mxu1 %vm501_vm0, %v1099_v22 }
  0x48   : > { %1075 = vmatmul.msk.bf16.gmra.mxu2 %vm501_vm0, %v1107_v23 }
  0xa3   : > { %v523_v24 = vpop.f32.mrf.mxu0 }
  0xa4   : > { %v613_v25 = vpop.f32.mrf.mxu1 }
  0xa9   : > { %v528_v26 = vpop.f32.mrf.mxu3 }
  0xaa   : > { %v614_v27 = vadd.f32 %v613_v25, %v528_v26 }
  0xab   : > { %v706_v28 = vpop.f32.mrf.mxu2  ;;  %v525_v30 = vpop.f32.mrf.mxu0 }
  0xac   : > { %v723_v31 = vadd.f32 %v706_v28, %v614_v27  ;;  %v615_v32 = vpop.f32.mrf.mxu1 }
  0xae   : > { %v735_v33 = vadd.f32 %v1445_v29, %v723_v31 }
  0xb0   : > { %vm743_vm1 = vcmp.ge.f32.partialorder %v735_v33, 0.0  ;;  %v751_v34 = vmul.f32 0.2, %v735_v33 }
  0xb1   : > { %v530_v35 = vpop.f32.mrf.mxu3 }
  0xb2   : > { %v1450_v36 = vsel %vm743_vm1, %v735_v33, %v751_v34  ;;  %v616_v37 = vadd.f32 %v615_v32, %v530_v35 }
  0xb3   : > { %v708_v38 = vpop.f32.mrf.mxu2  ;;  %767 = vst [vmem:[%s1452_s22 + $0x10] sm:$0xff] %v1450_v36  ;;  %v608_v39 = vpop.f32.mrf.mxu0 }
  0xb4   : > { %v724_v40 = vadd.f32 %v708_v38, %v616_v37  ;;  %v618_v41 = vpop.f32.mrf.mxu1  ;;  %v609_v54 = vadd.f32 %v608_v39, %v523_v24 }
  0xb6   : > { %v736_v42 = vadd.f32 %v1445_v29, %v724_v40 }
  0xb8   : > { %vm744_vm2 = vcmp.ge.f32.partialorder %v736_v42, 0.0  ;;  %v752_v43 = vmul.f32 0.2, %v736_v42 }
  0xb9   : > { %v533_v44 = vpop.f32.mrf.mxu3 }
  0xba   : > { %v1457_v45 = vsel %vm744_vm2, %v736_v42, %v752_v43  ;;  %v619_v46 = vadd.f32 %v618_v41, %v533_v44 }
  0xbb   : > { %v711_v47 = vpop.f32.mrf.mxu2  ;;  %768 = vst [vmem:[%s1452_s22 + $0x18] sm:$0xff] %v1457_v45  ;;  %v610_v48 = vpop.f32.mrf.mxu0 }
  0xbc   : > { %v725_v49 = vadd.f32 %v711_v47, %v619_v46  ;;  %v620_v50 = vpop.f32.mrf.mxu1  ;;  %v611_v3 = vadd.f32 %v610_v48, %v525_v30 }
  0xbe   : > { %v737_v51 = vadd.f32 %v1445_v29, %v725_v49 }
  0xc0   : > { %vm745_vm3 = vcmp.ge.f32.partialorder %v737_v51, 0.0  ;;  %v753_v52 = vmul.f32 0.2, %v737_v51 }
  0xc1   : > { %v535_v53 = vpop.f32.mrf.mxu3 }
  0xc2   : > { %v1462_v55 = vsel %vm745_vm3, %v737_v51, %v753_v52  ;;  %v621_v56 = vadd.f32 %v620_v50, %v535_v53 }
  0xc3   : > { %v713_v57 = vpop.f32.mrf.mxu2  ;;  %769 = vst [vmem:[%s1452_s22 + $0x20] sm:$0xff] %v1462_v55  ;;  %v701_v58 = vpop.f32.mrf.mxu0 }
  0xc4   : > { %v726_v59 = vadd.f32 %v713_v57, %v621_v56  ;;  %v721_v60 = vadd.f32 %v701_v58, %v609_v54  ;;  %v623_v63 = vpop.f32.mrf.mxu1 }
  0xc6   : > { %v738_v61 = vadd.f32 %v1445_v29, %v726_v59  ;;  %v733_v62 = vadd.f32 %v1445_v29, %v721_v60 }
  0xc8   : > { %vm746_vm4 = vcmp.ge.f32.partialorder %v738_v61, 0.0  ;;  %v754_v0 = vmul.f32 0.2, %v738_v61  ;;  %vm741_vm5 = vcmp.ge.f32.partialorder %v733_v62, 0.0  ;;  %v749_v1 = vmul.f32 0.2, %v733_v62 }
  0xc9   : > { %v538_v2 = vpop.f32.mrf.mxu3 }
  0xca   : > { %v762_v4 = vsel %vm746_vm4, %v738_v61, %v754_v0  ;;  %v757_v5 = vsel %vm741_vm5, %v733_v62, %v749_v1  ;;  %v624_v6 = vadd.f32 %v623_v63, %v538_v2 }
  0xcb   : > { %v716_v7 = vpop.f32.mrf.mxu2  ;;  %770 = vst [vmem:[%s1452_s22 + $0x28] sm:$0xff] %v762_v4  ;;  %v703_v8 = vpop.f32.mrf.mxu0  ;;  %v773_v26 = vmax.f32 %v757_v5, %v1462_v55 }
  0xcc   : > { %765 = vst [vmem:[%s1452_s22] sm:$0xff] %v757_v5  ;;  %v727_v9 = vadd.f32 %v716_v7, %v624_v6  ;;  %v722_v10 = vadd.f32 %v703_v8, %v611_v3  ;;  %v625_v15 = vpop.f32.mrf.mxu1 }
  0xce   : > { %v739_v11 = vadd.f32 %v1445_v29, %v727_v9  ;;  %v734_v12 = vadd.f32 %v1445_v29, %v722_v10 }
  0xd0   : > { %vm747_vm6 = vcmp.ge.f32.partialorder %v739_v11, 0.0  ;;  %v755_v13 = vmul.f32 0.2, %v739_v11  ;;  %vm742_vm7 = vcmp.ge.f32.partialorder %v734_v12, 0.0  ;;  %v750_v14 = vmul.f32 0.2, %v734_v12 }
  0xd1   : > { %v540_v16 = vpop.f32.mrf.mxu3 }
  0xd2   : > { %v763_v17 = vsel %vm747_vm6, %v739_v11, %v755_v13  ;;  %v758_v18 = vsel %vm742_vm7, %v734_v12, %v750_v14  ;;  %v626_v19 = vadd.f32 %v625_v15, %v540_v16 }
  0xd3   : > { %771 = vst [vmem:[%s1452_s22 + $0x30] sm:$0xff] %v763_v17  ;;  %v718_v20 = vpop.f32.mrf.mxu2  ;;  %v774_v24 = vmax.f32 %v758_v18, %v762_v4  ;;  %v775_v27 = vmax.f32 %v1450_v36, %v763_v17 }
  0xd4   : > { %766 = vst [vmem:[%s1452_s22 + $0x8] sm:$0xff] %v758_v18  ;;  %v728_v21 = vadd.f32 %v718_v20, %v626_v19 }
  0xd6   : > { %v740_v22 = vadd.f32 %v1445_v29, %v728_v21 }
  0xd8   : > { %vm748_vm8 = vcmp.ge.f32.partialorder %v740_v22, 0.0  ;;  %v756_v23 = vmul.f32 0.2, %v740_v22 }
  0xda   : > { %v764_v25 = vsel %vm748_vm8, %v740_v22, %v756_v23 }
  0xdb   : > { %772 = vst [vmem:[%s1452_s22 + $0x38] sm:$0xff] %v764_v25  ;;  %v776_v28 = vmax.f32 %v1457_v45, %v764_v25 }
  0xdc   : > { %1206 = shalt.err (!%p1203_p5)
}
  0xdd   : > { %s1259_s26 = smov 128   ;;  %s1260_s22 = smov 8   ;;  %v777_v29 = vmax.f32 %v773_v26, %v774_v24  ;;  %v778_v30 = vmax.f32 %v775_v27, %v776_v28 }
  0xde   : > { %1121 = dma.vmem_to_hbm [thread:$0]  (%p1346_p4), %s817_s30, 1024, %s819_s12, %s799_s14, %s1259_s26, %s1259_s26, %s1260_s22  }
  0xdf   : > { %v779_v31 = vmax.f32 %v777_v29, %v778_v30  ;;  %s415_s21 = scalar_lea.vmem %s1530_s8, %s1381_s19 }
  0xe1   : > { %v780_v32 = vrot.slane %v779_v31, 4 }
  0xe3   : > { %v781_v33 = vmax.f32 %v779_v31, %v780_v32 }
  0xe5   : > { %v782_v34 = vrot.slane %v781_v33, 2 }
  0xe7   : > { %v783_v35 = vmax.f32 %v781_v33, %v782_v34 }
  0xe9   : > { %v784_v36 = vrot.slane %v783_v35, 1 }
  0xeb   : > { %v785_v37 = vmax.f32 %v783_v35, %v784_v36 }
  0xed   : > { %790 = vst [vmem:[%s415_s21] sm:$0x1] %v785_v37 }
  0xee PF: > { %p1127_p6 = scmp.ge.s32.totalorder %s1257_s10, 2  ;;  %s836_s15 = sand.u32 1, %s1237_s27  }
  0xef   : > { %s837_s30 = scalar_lea.sflag [#allocation3], %s836_s15 }
  0xf0   : > { %p1124_p4 = pnand %p1127_p6, %p1353_p8 }
  0xf2   : > { %p1125_p7 = pneg %p1124_p4 }
  0xf4   : > { %1232 = dma.done.wait (%p1125_p7), %s837_s30, 1024  }
  0xf5   : > { %1234 = vsyncadd (%p1125_p7), %s837_s30, 4294966272  ;;  %s22_s10 = sadd.s32 1, %s1257_s10   ;;  %s1535_s27 = smov %s1241_s28 }
  0xf6   : > { %p19_p9 = scmp.ge.s32.totalorder %s22_s10, 4   ;;  %s1536_s28 = smov %s1245_s29 }
  0xf7   : > { %s1537_s29 = smov %s1359_s18  ;;  %s1538_s30 = smov %s1253_s9 }
  0xf8   : > { %s1539_s9 = smov %s1541_s13  ;;  %21 = sbr.rel (!%p19_p9) target bundleno = 6 (0x6), region = 109 }
  0xfd   :  { %849 = vsyncpa [#allocation3], 1 }
  0xfe   :  { %851 = vsyncpa [#allocation3 + $0x1], 1 }

</bundles_post_ra>
